<compile_context>
chip_gen: v7x
topology: tpu7x:2x2x1
jax: 0.10.0
libtpu: 0.0.40
codegen_flags: <defaults>
</compile_context>

<pallas_src>
import functools

import jax
import jax.numpy as jnp
from jax.experimental import pallas as pl
from jax.experimental.pallas import tpu as pltpu

LRELU_SLOPE = 0.1
KSIZE = 3
DILATIONS = (1, 3, 5)
N_CONVS = 2 * len(DILATIONS)                   # convs interleaved: c1_0, c2_0, c1_1, ...
MAX_REACH = (KSIZE // 2) * max(DILATIONS)      # 5 rows of reflect halo actually used
PAD = ((MAX_REACH + 7) // 8) * 8               # 8: sublane-aligned start of real data
LANE = 128


def _leaky(v):
    return jnp.where(v >= 0.0, v, v * LRELU_SLOPE)


# ---------------------------------------------------------------------------
# Fused ResBlock1 kernel: one grid step == one batch element; full time axis
# resident in VMEM; all 6 convs + leaky-relus + residual adds fused.
# ---------------------------------------------------------------------------
def _resblock1_kernel(x_ref, w_ref, b_ref, o_ref, xp_ref, tp_ref, *, T, C):
    # x_ref : (1, T, C)            channel-last input block
    # w_ref : (N_CONVS, KSIZE, C, C)  tap-major weights, (C_in, C_out) order
    # b_ref : (N_CONVS, C)
    # o_ref : (1, T, C)
    # xp_ref, tp_ref : (T + 2*PAD, C) f32 scratch (centered data + reflect halo)

    def fill_reflect_halo(buf, reach):
        # buf[PAD + t] == h[t] for t in [0, T). Torch reflect padding:
        # h[-j] = h[j], h[T-1+j] = h[T-1-j], j = 1..reach. Single-row copies.
        for j in range(1, reach + 1):
            buf[pl.ds(PAD - j, 1), :] = buf[pl.ds(PAD + j, 1), :]
            buf[pl.ds(PAD + T - 1 + j, 1), :] = buf[pl.ds(PAD + T - 1 - j, 1), :]

    def conv3(buf, layer, dil, act_input):
        # out[t] = bias + sum_k leaky?(h[t + (k - 1)*dil]) @ W[layer, k]
        acc = None
        for k in range(KSIZE):
            start = PAD + (k - KSIZE // 2) * dil
            v = buf[pl.ds(start, T), :]
            if act_input:
                # leaky-relu is elementwise, so it commutes with reflect padding;
                # applying it to the padded tap slices is exact.
                v = _leaky(v)
            part = jnp.dot(v, w_ref[layer, k], preferred_element_type=jnp.float32)
            acc = part if acc is None else acc + part
        return acc + b_ref[pl.ds(layer, 1), :]

    # Load the residual stream into the padded buffer (aligned center store).
    xp_ref[pl.ds(PAD, T), :] = x_ref[0].astype(jnp.float32)
    fill_reflect_halo(xp_ref, MAX_REACH)

    for i, dil in enumerate(DILATIONS):
        # xt = convs1[i](leaky_relu(x))           (dilated conv)
        xt = conv3(xp_ref, 2 * i, dil, act_input=True)
        # xt = leaky_relu(xt); stage with a 1-row halo for the second conv.
        tp_ref[pl.ds(PAD, T), :] = _leaky(xt)
        fill_reflect_halo(tp_ref, KSIZE // 2)
        # x = convs2[i](xt) + x                   (dilation 1, residual add)
        xt2 = conv3(tp_ref, 2 * i + 1, 1, act_input=False)
        xp_ref[pl.ds(PAD, T), :] = xt2 + xp_ref[pl.ds(PAD, T), :]
        if i + 1 < len(DILATIONS):
            fill_reflect_halo(xp_ref, (KSIZE // 2) * DILATIONS[i + 1])

    o_ref[0] = xp_ref[pl.ds(PAD, T), :].astype(o_ref.dtype)


def resblock1_pallas(x_btc, w_taps, bias):
    """x_btc: (B, T, C) channel-last, C % 128 == 0, T > MAX_REACH."""
    B, T, C = x_btc.shape
    assert C % LANE == 0, "caller must pad channels to a multiple of 128"
    assert T > MAX_REACH, "reflect padding requires T > max dilation reach"
    # TODO(synk): for very long T add a time-tiling grid axis with 12-row halos;
    # here the full time axis stays resident in VMEM per batch element.
    kernel = functools.partial(_resblock1_kernel, T=T, C=C)
    return pl.pallas_call(
        kernel,
        out_shape=jax.ShapeDtypeStruct((B, T, C), x_btc.dtype),
        grid=(B,),
        in_specs=[
            pl.BlockSpec((1, T, C), lambda b: (b, 0, 0)),
            pl.BlockSpec((N_CONVS, KSIZE, C, C), lambda b: (0, 0, 0, 0)),
            pl.BlockSpec((N_CONVS, C), lambda b: (0, 0)),
        ],
        out_specs=pl.BlockSpec((1, T, C), lambda b: (b, 0, 0)),
        scratch_shapes=[
            pltpu.VMEM((T + 2 * PAD, C), jnp.float32),
            pltpu.VMEM((T + 2 * PAD, C), jnp.float32),
        ],
        compiler_params=pltpu.CompilerParams(
            dimension_semantics=("parallel",),
        ),
    )(x_btc, w_taps, bias)


# ---------------------------------------------------------------------------
# Module-level wrapper: PyTorch (B, C, T) layout in/out, torch Conv1d weights.
# ---------------------------------------------------------------------------
def resblock1_forward(x_nct, params):
    """ResBlock1 forward. x_nct: (B, C, T). params: list of 6 (weight, bias)
    pairs ordered [c1_0, c2_0, c1_1, c2_1, c1_2, c2_2]; weight in torch Conv1d
    layout (C_out, C_in, K)."""
    B, C, T = x_nct.shape
    Cp = ((C + LANE - 1) // LANE) * LANE

    w = jnp.stack([w for (w, _) in params])          # (6, C_out, C_in, K)
    w = jnp.transpose(w, (0, 3, 2, 1))               # (6, K, C_in, C_out)
    b = jnp.stack([b for (_, b) in params])          # (6, C_out)
    x = jnp.transpose(x_nct, (0, 2, 1))              # channel-last (B, T, C)
    if Cp != C:
        # Zero-padded channels carry zeros end-to-end (zero weights / bias /
        # inputs), so the first C channels are unaffected.
        w = jnp.pad(w, ((0, 0), (0, 0), (0, Cp - C), (0, Cp - C)))
        b = jnp.pad(b, ((0, 0), (0, Cp - C)))
        x = jnp.pad(x, ((0, 0), (0, 0), (0, Cp - C)))

    y = resblock1_pallas(x, w, b)
    return jnp.transpose(y[:, :, :C], (0, 2, 1))     # back to (B, C, T)


# ---------------------------------------------------------------------------
# Pure-JAX reference (same math), used to validate the kernel numerically.
# ---------------------------------------------------------------------------
def resblock1_reference(x_nct, params):
    x = jnp.transpose(x_nct, (0, 2, 1)).astype(jnp.float32)   # (B, T, C)
    T = x.shape[1]

    def conv(h, w, b, dil):
        # w: (C_out, C_in, K) torch layout; reflect 'same' padding, stride 1.
        hp = jnp.pad(h, ((0, 0), (dil, dil), (0, 0)), mode="reflect")
        out = b[None, None, :]
        for k in range(KSIZE):
            out = out + jnp.einsum("btc,oc->bto",
                                   hp[:, k * dil:k * dil + T, :], w[:, :, k])
        return out

    for i, dil in enumerate(DILATIONS):
        w1, b1 = params[2 * i]
        w2, b2 = params[2 * i + 1]
        xt = _leaky(x)
        xt = conv(xt, w1, b1, dil)
        xt = _leaky(xt)
        xt = conv(xt, w2, b2, 1)
        x = xt + x
    return jnp.transpose(x, (0, 2, 1))


# ---------------------------------------------------------------------------
# Deterministic synthetic parameter init (weight_norm is identity at init).
# ---------------------------------------------------------------------------
def init_resblock1_params(key, channels):
    params = []
    for i in range(N_CONVS):
        kw, kb = jax.random.split(jax.random.fold_in(key, i))
        fan_in = channels * KSIZE
        w = jax.random.normal(kw, (channels, channels, KSIZE), jnp.float32)
        w = w / jnp.sqrt(fan_in)
        b = 0.05 * jax.random.normal(kb, (channels,), jnp.float32)
        params.append((w, b))
    return params


if __name__ == "__main__":
    key = jax.random.PRNGKey(0)
    B, C, T = 2, 128, 256   # small, lane/sublane-aligned test shape (B, channels, time)
    x = jax.random.normal(jax.random.fold_in(key, 0), (B, C, T), jnp.float32)
    params = init_resblock1_params(jax.random.fold_in(key, 1), C)

    fwd = jax.jit(resblock1_forward)
    out = fwd(x, params)
    jax.block_until_ready(out)
    assert out.shape == (B, C, T)
    assert bool(jnp.isfinite(out).all())

    ref = jax.jit(resblock1_reference)(x, params)
    jax.block_until_ready(ref)
    rel_err = jnp.linalg.norm(out - ref) / jnp.linalg.norm(ref)
    # Loose tolerance: covers default-precision MXU (bf16-pass) rounding while
    # still catching any structural error (wrong tap/pad/residual -> O(1) error).
    assert float(rel_err) < 2e-2, f"relative L2 error too large: {float(rel_err)}"

    print("KERNEL_OK")
</pallas_src>

<mosaic_0001>
module attributes {stable_mosaic.version = 11 : i64} {
  func.func @_resblock1_kernel(%arg0: i32, %arg1: memref<1x256x128xf32, #tpu.memory_space<vmem>>, %arg2: memref<6x3x128x128xf32, #tpu.memory_space<vmem>>, %arg3: memref<6x128xf32, #tpu.memory_space<vmem>>, %arg4: memref<1x256x128xf32, #tpu.memory_space<vmem>>, %arg5: memref<272x128xf32, #tpu.memory_space<vmem>>, %arg6: memref<272x128xf32, #tpu.memory_space<vmem>>) attributes {dimension_semantics = [#tpu.dimension_semantics<parallel>], iteration_bounds = array<i64: 2>, scalar_prefetch = 0 : i64, scratch_operands = 2 : i64, tpu.core_type = #tpu.core_type<tc>, window_params = [{transform_indices = @transform_0, window_bounds = array<i64: 1, 256, 128>}, {pipeline_mode = #tpu.pipeline_mode<synchronous>, transform_indices = @transform_1, window_bounds = array<i64: 6, 3, 128, 128>}, {pipeline_mode = #tpu.pipeline_mode<synchronous>, transform_indices = @transform_2, window_bounds = array<i64: 6, 128>}, {transform_indices = @transform_3, window_bounds = array<i64: 1, 256, 128>}]} {
    %c0 = arith.constant 0 : index
    %c0_0 = arith.constant 0 : index
    %c0_1 = arith.constant 0 : index
    %0 = vector.load %arg1[%c0, %c0_0, %c0_1] : memref<1x256x128xf32, #tpu.memory_space<vmem>>, vector<1x256x128xf32>
    %1 = vector.shape_cast %0 : vector<1x256x128xf32> to vector<256x128xf32>
    %c8 = arith.constant 8 : index
    %c0_2 = arith.constant 0 : index
    %2 = vector.load %arg5[%c8, %c0_2] : memref<272x128xf32, #tpu.memory_space<vmem>>, vector<256x128xf32>
    tpu.vector_store %arg5[%c8, %c0_2], %1 {strides = array<i32>} : memref<272x128xf32, #tpu.memory_space<vmem>>, vector<256x128xf32>,
    %c9 = arith.constant 9 : index
    %c0_3 = arith.constant 0 : index
    %3 = vector.load %arg5[%c9, %c0_3] : memref<272x128xf32, #tpu.memory_space<vmem>>, vector<1x128xf32>
    %c7 = arith.constant 7 : index
    %c0_4 = arith.constant 0 : index
    %4 = vector.load %arg5[%c7, %c0_4] : memref<272x128xf32, #tpu.memory_space<vmem>>, vector<1x128xf32>
    tpu.vector_store %arg5[%c7, %c0_4], %3 {strides = array<i32>} : memref<272x128xf32, #tpu.memory_space<vmem>>, vector<1x128xf32>,
    %c262 = arith.constant 262 : index
    %c0_5 = arith.constant 0 : index
    %5 = vector.load %arg5[%c262, %c0_5] : memref<272x128xf32, #tpu.memory_space<vmem>>, vector<1x128xf32>
    %c264 = arith.constant 264 : index
    %c0_6 = arith.constant 0 : index
    %6 = vector.load %arg5[%c264, %c0_6] : memref<272x128xf32, #tpu.memory_space<vmem>>, vector<1x128xf32>
    tpu.vector_store %arg5[%c264, %c0_6], %5 {strides = array<i32>} : memref<272x128xf32, #tpu.memory_space<vmem>>, vector<1x128xf32>,
    %c10 = arith.constant 10 : index
    %c0_7 = arith.constant 0 : index
    %7 = vector.load %arg5[%c10, %c0_7] : memref<272x128xf32, #tpu.memory_space<vmem>>, vector<1x128xf32>
    %c6 = arith.constant 6 : index
    %c0_8 = arith.constant 0 : index
    %8 = vector.load %arg5[%c6, %c0_8] : memref<272x128xf32, #tpu.memory_space<vmem>>, vector<1x128xf32>
    tpu.vector_store %arg5[%c6, %c0_8], %7 {strides = array<i32>} : memref<272x128xf32, #tpu.memory_space<vmem>>, vector<1x128xf32>,
    %c261 = arith.constant 261 : index
    %c0_9 = arith.constant 0 : index
    %9 = vector.load %arg5[%c261, %c0_9] : memref<272x128xf32, #tpu.memory_space<vmem>>, vector<1x128xf32>
    %c265 = arith.constant 265 : index
    %c0_10 = arith.constant 0 : index
    %10 = vector.load %arg5[%c265, %c0_10] : memref<272x128xf32, #tpu.memory_space<vmem>>, vector<1x128xf32>
    tpu.vector_store %arg5[%c265, %c0_10], %9 {strides = array<i32>} : memref<272x128xf32, #tpu.memory_space<vmem>>, vector<1x128xf32>,
    %c11 = arith.constant 11 : index
    %c0_11 = arith.constant 0 : index
    %11 = vector.load %arg5[%c11, %c0_11] : memref<272x128xf32, #tpu.memory_space<vmem>>, vector<1x128xf32>
    %c5 = arith.constant 5 : index
    %c0_12 = arith.constant 0 : index
    %12 = vector.load %arg5[%c5, %c0_12] : memref<272x128xf32, #tpu.memory_space<vmem>>, vector<1x128xf32>
    tpu.vector_store %arg5[%c5, %c0_12], %11 {strides = array<i32>} : memref<272x128xf32, #tpu.memory_space<vmem>>, vector<1x128xf32>,
    %c260 = arith.constant 260 : index
    %c0_13 = arith.constant 0 : index
    %13 = vector.load %arg5[%c260, %c0_13] : memref<272x128xf32, #tpu.memory_space<vmem>>, vector<1x128xf32>
    %c266 = arith.constant 266 : index
    %c0_14 = arith.constant 0 : index
    %14 = vector.load %arg5[%c266, %c0_14] : memref<272x128xf32, #tpu.memory_space<vmem>>, vector<1x128xf32>
    tpu.vector_store %arg5[%c266, %c0_14], %13 {strides = array<i32>} : memref<272x128xf32, #tpu.memory_space<vmem>>, vector<1x128xf32>,
    %c12 = arith.constant 12 : index
    %c0_15 = arith.constant 0 : index
    %15 = vector.load %arg5[%c12, %c0_15] : memref<272x128xf32, #tpu.memory_space<vmem>>, vector<1x128xf32>
    %c4 = arith.constant 4 : index
    %c0_16 = arith.constant 0 : index
    %16 = vector.load %arg5[%c4, %c0_16] : memref<272x128xf32, #tpu.memory_space<vmem>>, vector<1x128xf32>
    tpu.vector_store %arg5[%c4, %c0_16], %15 {strides = array<i32>} : memref<272x128xf32, #tpu.memory_space<vmem>>, vector<1x128xf32>,
    %c259 = arith.constant 259 : index
    %c0_17 = arith.constant 0 : index
    %17 = vector.load %arg5[%c259, %c0_17] : memref<272x128xf32, #tpu.memory_space<vmem>>, vector<1x128xf32>
    %c267 = arith.constant 267 : index
    %c0_18 = arith.constant 0 : index
    %18 = vector.load %arg5[%c267, %c0_18] : memref<272x128xf32, #tpu.memory_space<vmem>>, vector<1x128xf32>
    tpu.vector_store %arg5[%c267, %c0_18], %17 {strides = array<i32>} : memref<272x128xf32, #tpu.memory_space<vmem>>, vector<1x128xf32>,
    %c13 = arith.constant 13 : index
    %c0_19 = arith.constant 0 : index
    %19 = vector.load %arg5[%c13, %c0_19] : memref<272x128xf32, #tpu.memory_space<vmem>>, vector<1x128xf32>
    %c3 = arith.constant 3 : index
    %c0_20 = arith.constant 0 : index
    %20 = vector.load %arg5[%c3, %c0_20] : memref<272x128xf32, #tpu.memory_space<vmem>>, vector<1x128xf32>
    tpu.vector_store %arg5[%c3, %c0_20], %19 {strides = array<i32>} : memref<272x128xf32, #tpu.memory_space<vmem>>, vector<1x128xf32>,
    %c258 = arith.constant 258 : index
    %c0_21 = arith.constant 0 : index
    %21 = vector.load %arg5[%c258, %c0_21] : memref<272x128xf32, #tpu.memory_space<vmem>>, vector<1x128xf32>
    %c268 = arith.constant 268 : index
    %c0_22 = arith.constant 0 : index
    %22 = vector.load %arg5[%c268, %c0_22] : memref<272x128xf32, #tpu.memory_space<vmem>>, vector<1x128xf32>
    tpu.vector_store %arg5[%c268, %c0_22], %21 {strides = array<i32>} : memref<272x128xf32, #tpu.memory_space<vmem>>, vector<1x128xf32>,
    %c7_23 = arith.constant 7 : index
    %c0_24 = arith.constant 0 : index
    %23 = vector.load %arg5[%c7_23, %c0_24] : memref<272x128xf32, #tpu.memory_space<vmem>>, vector<256x128xf32>
    %cst = arith.constant 0.000000e+00 : f32
    %24 = vector.broadcast %cst : f32 to vector<256x128xf32>
    %25 = arith.cmpf oge, %23, %24 : vector<256x128xf32>
    %cst_25 = arith.constant 1.000000e-01 : f32
    %26 = vector.broadcast %cst_25 : f32 to vector<256x128xf32>
    %27 = arith.mulf %23, %26 : vector<256x128xf32>
    %28 = arith.select %25, %23, %27 : vector<256x128xi1>, vector<256x128xf32>
    %c0_26 = arith.constant 0 : index
    %c0_27 = arith.constant 0 : index
    %c0_28 = arith.constant 0 : index
    %c0_29 = arith.constant 0 : index
    %29 = vector.load %arg2[%c0_26, %c0_27, %c0_28, %c0_29] : memref<6x3x128x128xf32, #tpu.memory_space<vmem>>, vector<1x1x128x128xf32>
    %30 = vector.shape_cast %29 : vector<1x1x128x128xf32> to vector<128x128xf32>
    %cst_30 = arith.constant dense<0.000000e+00> : vector<256x128xf32>
    %31 = tpu.matmul %28, %30, %cst_30 {dimension_numbers = #tpu.dot_dimension_numbers<[1], [0], [0], [1], [0, 0, 1, 1], [], []>} : vector<256x128xf32>, vector<128x128xf32>, vector<256x128xf32> -> vector<256x128xf32>
    %c8_31 = arith.constant 8 : index
    %c0_32 = arith.constant 0 : index
    %32 = vector.load %arg5[%c8_31, %c0_32] : memref<272x128xf32, #tpu.memory_space<vmem>>, vector<256x128xf32>
    %cst_33 = arith.constant 0.000000e+00 : f32
    %33 = vector.broadcast %cst_33 : f32 to vector<256x128xf32>
    %34 = arith.cmpf oge, %32, %33 : vector<256x128xf32>
    %cst_34 = arith.constant 1.000000e-01 : f32
    %35 = vector.broadcast %cst_34 : f32 to vector<256x128xf32>
    %36 = arith.mulf %32, %35 : vector<256x128xf32>
    %37 = arith.select %34, %32, %36 : vector<256x128xi1>, vector<256x128xf32>
    %c0_35 = arith.constant 0 : index
    %c1 = arith.constant 1 : index
    %c0_36 = arith.constant 0 : index
    %c0_37 = arith.constant 0 : index
    %38 = vector.load %arg2[%c0_35, %c1, %c0_36, %c0_37] : memref<6x3x128x128xf32, #tpu.memory_space<vmem>>, vector<1x1x128x128xf32>
    %39 = vector.shape_cast %38 : vector<1x1x128x128xf32> to vector<128x128xf32>
    %cst_38 = arith.constant dense<0.000000e+00> : vector<256x128xf32>
    %40 = tpu.matmul %37, %39, %cst_38 {dimension_numbers = #tpu.dot_dimension_numbers<[1], [0], [0], [1], [0, 0, 1, 1], [], []>} : vector<256x128xf32>, vector<128x128xf32>, vector<256x128xf32> -> vector<256x128xf32>
    %41 = arith.addf %31, %40 : vector<256x128xf32>
    %c9_39 = arith.constant 9 : index
    %c0_40 = arith.constant 0 : index
    %42 = vector.load %arg5[%c9_39, %c0_40] : memref<272x128xf32, #tpu.memory_space<vmem>>, vector<256x128xf32>
    %cst_41 = arith.constant 0.000000e+00 : f32
    %43 = vector.broadcast %cst_41 : f32 to vector<256x128xf32>
    %44 = arith.cmpf oge, %42, %43 : vector<256x128xf32>
    %cst_42 = arith.constant 1.000000e-01 : f32
    %45 = vector.broadcast %cst_42 : f32 to vector<256x128xf32>
    %46 = arith.mulf %42, %45 : vector<256x128xf32>
    %47 = arith.select %44, %42, %46 : vector<256x128xi1>, vector<256x128xf32>
    %c0_43 = arith.constant 0 : index
    %c2 = arith.constant 2 : index
    %c0_44 = arith.constant 0 : index
    %c0_45 = arith.constant 0 : index
    %48 = vector.load %arg2[%c0_43, %c2, %c0_44, %c0_45] : memref<6x3x128x128xf32, #tpu.memory_space<vmem>>, vector<1x1x128x128xf32>
    %49 = vector.shape_cast %48 : vector<1x1x128x128xf32> to vector<128x128xf32>
    %cst_46 = arith.constant dense<0.000000e+00> : vector<256x128xf32>
    %50 = tpu.matmul %47, %49, %cst_46 {dimension_numbers = #tpu.dot_dimension_numbers<[1], [0], [0], [1], [0, 0, 1, 1], [], []>} : vector<256x128xf32>, vector<128x128xf32>, vector<256x128xf32> -> vector<256x128xf32>
    %51 = arith.addf %41, %50 : vector<256x128xf32>
    %c0_47 = arith.constant 0 : index
    %c0_48 = arith.constant 0 : index
    %52 = vector.load %arg3[%c0_47, %c0_48] : memref<6x128xf32, #tpu.memory_space<vmem>>, vector<1x128xf32>
    %53 = vector.broadcast %52 : vector<1x128xf32> to vector<256x128xf32>
    %54 = arith.addf %51, %53 : vector<256x128xf32>
    %cst_49 = arith.constant 0.000000e+00 : f32
    %55 = vector.broadcast %cst_49 : f32 to vector<256x128xf32>
    %56 = arith.cmpf oge, %54, %55 : vector<256x128xf32>
    %cst_50 = arith.constant 1.000000e-01 : f32
    %57 = vector.broadcast %cst_50 : f32 to vector<256x128xf32>
    %58 = arith.mulf %54, %57 : vector<256x128xf32>
    %59 = arith.select %56, %54, %58 : vector<256x128xi1>, vector<256x128xf32>
    %c8_51 = arith.constant 8 : index
    %c0_52 = arith.constant 0 : index
    %60 = vector.load %arg6[%c8_51, %c0_52] : memref<272x128xf32, #tpu.memory_space<vmem>>, vector<256x128xf32>
    tpu.vector_store %arg6[%c8_51, %c0_52], %59 {strides = array<i32>} : memref<272x128xf32, #tpu.memory_space<vmem>>, vector<256x128xf32>,
    %c9_53 = arith.constant 9 : index
    %c0_54 = arith.constant 0 : index
    %61 = vector.load %arg6[%c9_53, %c0_54] : memref<272x128xf32, #tpu.memory_space<vmem>>, vector<1x128xf32>
    %c7_55 = arith.constant 7 : index
    %c0_56 = arith.constant 0 : index
    %62 = vector.load %arg6[%c7_55, %c0_56] : memref<272x128xf32, #tpu.memory_space<vmem>>, vector<1x128xf32>
    tpu.vector_store %arg6[%c7_55, %c0_56], %61 {strides = array<i32>} : memref<272x128xf32, #tpu.memory_space<vmem>>, vector<1x128xf32>,
    %c262_57 = arith.constant 262 : index
    %c0_58 = arith.constant 0 : index
    %63 = vector.load %arg6[%c262_57, %c0_58] : memref<272x128xf32, #tpu.memory_space<vmem>>, vector<1x128xf32>
    %c264_59 = arith.constant 264 : index
    %c0_60 = arith.constant 0 : index
    %64 = vector.load %arg6[%c264_59, %c0_60] : memref<272x128xf32, #tpu.memory_space<vmem>>, vector<1x128xf32>
    tpu.vector_store %arg6[%c264_59, %c0_60], %63 {strides = array<i32>} : memref<272x128xf32, #tpu.memory_space<vmem>>, vector<1x128xf32>,
    %c7_61 = arith.constant 7 : index
    %c0_62 = arith.constant 0 : index
    %65 = vector.load %arg6[%c7_61, %c0_62] : memref<272x128xf32, #tpu.memory_space<vmem>>, vector<256x128xf32>
    %c1_63 = arith.constant 1 : index
    %c0_64 = arith.constant 0 : index
    %c0_65 = arith.constant 0 : index
    %c0_66 = arith.constant 0 : index
    %66 = vector.load %arg2[%c1_63, %c0_64, %c0_65, %c0_66] : memref<6x3x128x128xf32, #tpu.memory_space<vmem>>, vector<1x1x128x128xf32>
    %67 = vector.shape_cast %66 : vector<1x1x128x128xf32> to vector<128x128xf32>
    %cst_67 = arith.constant dense<0.000000e+00> : vector<256x128xf32>
    %68 = tpu.matmul %65, %67, %cst_67 {dimension_numbers = #tpu.dot_dimension_numbers<[1], [0], [0], [1], [0, 0, 1, 1], [], []>} : vector<256x128xf32>, vector<128x128xf32>, vector<256x128xf32> -> vector<256x128xf32>
    %c8_68 = arith.constant 8 : index
    %c0_69 = arith.constant 0 : index
    %69 = vector.load %arg6[%c8_68, %c0_69] : memref<272x128xf32, #tpu.memory_space<vmem>>, vector<256x128xf32>
    %c1_70 = arith.constant 1 : index
    %c1_71 = arith.constant 1 : index
    %c0_72 = arith.constant 0 : index
    %c0_73 = arith.constant 0 : index
    %70 = vector.load %arg2[%c1_70, %c1_71, %c0_72, %c0_73] : memref<6x3x128x128xf32, #tpu.memory_space<vmem>>, vector<1x1x128x128xf32>
    %71 = vector.shape_cast %70 : vector<1x1x128x128xf32> to vector<128x128xf32>
    %cst_74 = arith.constant dense<0.000000e+00> : vector<256x128xf32>
    %72 = tpu.matmul %69, %71, %cst_74 {dimension_numbers = #tpu.dot_dimension_numbers<[1], [0], [0], [1], [0, 0, 1, 1], [], []>} : vector<256x128xf32>, vector<128x128xf32>, vector<256x128xf32> -> vector<256x128xf32>
    %73 = arith.addf %68, %72 : vector<256x128xf32>
    %c9_75 = arith.constant 9 : index
    %c0_76 = arith.constant 0 : index
    %74 = vector.load %arg6[%c9_75, %c0_76] : memref<272x128xf32, #tpu.memory_space<vmem>>, vector<256x128xf32>
    %c1_77 = arith.constant 1 : index
    %c2_78 = arith.constant 2 : index
    %c0_79 = arith.constant 0 : index
    %c0_80 = arith.constant 0 : index
    %75 = vector.load %arg2[%c1_77, %c2_78, %c0_79, %c0_80] : memref<6x3x128x128xf32, #tpu.memory_space<vmem>>, vector<1x1x128x128xf32>
    %76 = vector.shape_cast %75 : vector<1x1x128x128xf32> to vector<128x128xf32>
    %cst_81 = arith.constant dense<0.000000e+00> : vector<256x128xf32>
    %77 = tpu.matmul %74, %76, %cst_81 {dimension_numbers = #tpu.dot_dimension_numbers<[1], [0], [0], [1], [0, 0, 1, 1], [], []>} : vector<256x128xf32>, vector<128x128xf32>, vector<256x128xf32> -> vector<256x128xf32>
    %78 = arith.addf %73, %77 : vector<256x128xf32>
    %c1_82 = arith.constant 1 : index
    %c0_83 = arith.constant 0 : index
    %79 = vector.load %arg3[%c1_82, %c0_83] : memref<6x128xf32, #tpu.memory_space<vmem>>, vector<1x128xf32>
    %80 = vector.broadcast %79 : vector<1x128xf32> to vector<256x128xf32>
    %81 = arith.addf %78, %80 : vector<256x128xf32>
    %c8_84 = arith.constant 8 : index
    %c0_85 = arith.constant 0 : index
    %82 = vector.load %arg5[%c8_84, %c0_85] : memref<272x128xf32, #tpu.memory_space<vmem>>, vector<256x128xf32>
    %83 = arith.addf %81, %82 : vector<256x128xf32>
    %c8_86 = arith.constant 8 : index
    %c0_87 = arith.constant 0 : index
    %84 = vector.load %arg5[%c8_86, %c0_87] : memref<272x128xf32, #tpu.memory_space<vmem>>, vector<256x128xf32>
    tpu.vector_store %arg5[%c8_86, %c0_87], %83 {strides = array<i32>} : memref<272x128xf32, #tpu.memory_space<vmem>>, vector<256x128xf32>,
    %c9_88 = arith.constant 9 : index
    %c0_89 = arith.constant 0 : index
    %85 = vector.load %arg5[%c9_88, %c0_89] : memref<272x128xf32, #tpu.memory_space<vmem>>, vector<1x128xf32>
    %c7_90 = arith.constant 7 : index
    %c0_91 = arith.constant 0 : index
    %86 = vector.load %arg5[%c7_90, %c0_91] : memref<272x128xf32, #tpu.memory_space<vmem>>, vector<1x128xf32>
    tpu.vector_store %arg5[%c7_90, %c0_91], %85 {strides = array<i32>} : memref<272x128xf32, #tpu.memory_space<vmem>>, vector<1x128xf32>,
    %c262_92 = arith.constant 262 : index
    %c0_93 = arith.constant 0 : index
    %87 = vector.load %arg5[%c262_92, %c0_93] : memref<272x128xf32, #tpu.memory_space<vmem>>, vector<1x128xf32>
    %c264_94 = arith.constant 264 : index
    %c0_95 = arith.constant 0 : index
    %88 = vector.load %arg5[%c264_94, %c0_95] : memref<272x128xf32, #tpu.memory_space<vmem>>, vector<1x128xf32>
    tpu.vector_store %arg5[%c264_94, %c0_95], %87 {strides = array<i32>} : memref<272x128xf32, #tpu.memory_space<vmem>>, vector<1x128xf32>,
    %c10_96 = arith.constant 10 : index
    %c0_97 = arith.constant 0 : index
    %89 = vector.load %arg5[%c10_96, %c0_97] : memref<272x128xf32, #tpu.memory_space<vmem>>, vector<1x128xf32>
    %c6_98 = arith.constant 6 : index
    %c0_99 = arith.constant 0 : index
    %90 = vector.load %arg5[%c6_98, %c0_99] : memref<272x128xf32, #tpu.memory_space<vmem>>, vector<1x128xf32>
    tpu.vector_store %arg5[%c6_98, %c0_99], %89 {strides = array<i32>} : memref<272x128xf32, #tpu.memory_space<vmem>>, vector<1x128xf32>,
    %c261_100 = arith.constant 261 : index
    %c0_101 = arith.constant 0 : index
    %91 = vector.load %arg5[%c261_100, %c0_101] : memref<272x128xf32, #tpu.memory_space<vmem>>, vector<1x128xf32>
    %c265_102 = arith.constant 265 : index
    %c0_103 = arith.constant 0 : index
    %92 = vector.load %arg5[%c265_102, %c0_103] : memref<272x128xf32, #tpu.memory_space<vmem>>, vector<1x128xf32>
    tpu.vector_store %arg5[%c265_102, %c0_103], %91 {strides = array<i32>} : memref<272x128xf32, #tpu.memory_space<vmem>>, vector<1x128xf32>,
    %c11_104 = arith.constant 11 : index
    %c0_105 = arith.constant 0 : index
    %93 = vector.load %arg5[%c11_104, %c0_105] : memref<272x128xf32, #tpu.memory_space<vmem>>, vector<1x128xf32>
    %c5_106 = arith.constant 5 : index
    %c0_107 = arith.constant 0 : index
    %94 = vector.load %arg5[%c5_106, %c0_107] : memref<272x128xf32, #tpu.memory_space<vmem>>, vector<1x128xf32>
    tpu.vector_store %arg5[%c5_106, %c0_107], %93 {strides = array<i32>} : memref<272x128xf32, #tpu.memory_space<vmem>>, vector<1x128xf32>,
    %c260_108 = arith.constant 260 : index
    %c0_109 = arith.constant 0 : index
    %95 = vector.load %arg5[%c260_108, %c0_109] : memref<272x128xf32, #tpu.memory_space<vmem>>, vector<1x128xf32>
    %c266_110 = arith.constant 266 : index
    %c0_111 = arith.constant 0 : index
    %96 = vector.load %arg5[%c266_110, %c0_111] : memref<272x128xf32, #tpu.memory_space<vmem>>, vector<1x128xf32>
    tpu.vector_store %arg5[%c266_110, %c0_111], %95 {strides = array<i32>} : memref<272x128xf32, #tpu.memory_space<vmem>>, vector<1x128xf32>,
    %c5_112 = arith.constant 5 : index
    %c0_113 = arith.constant 0 : index
    %97 = vector.load %arg5[%c5_112, %c0_113] : memref<272x128xf32, #tpu.memory_space<vmem>>, vector<256x128xf32>
    %cst_114 = arith.constant 0.000000e+00 : f32
    %98 = vector.broadcast %cst_114 : f32 to vector<256x128xf32>
    %99 = arith.cmpf oge, %97, %98 : vector<256x128xf32>
    %cst_115 = arith.constant 1.000000e-01 : f32
    %100 = vector.broadcast %cst_115 : f32 to vector<256x128xf32>
    %101 = arith.mulf %97, %100 : vector<256x128xf32>
    %102 = arith.select %99, %97, %101 : vector<256x128xi1>, vector<256x128xf32>
    %c2_116 = arith.constant 2 : index
    %c0_117 = arith.constant 0 : index
    %c0_118 = arith.constant 0 : index
    %c0_119 = arith.constant 0 : index
    %103 = vector.load %arg2[%c2_116, %c0_117, %c0_118, %c0_119] : memref<6x3x128x128xf32, #tpu.memory_space<vmem>>, vector<1x1x128x128xf32>
    %104 = vector.shape_cast %103 : vector<1x1x128x128xf32> to vector<128x128xf32>
    %cst_120 = arith.constant dense<0.000000e+00> : vector<256x128xf32>
    %105 = tpu.matmul %102, %104, %cst_120 {dimension_numbers = #tpu.dot_dimension_numbers<[1], [0], [0], [1], [0, 0, 1, 1], [], []>} : vector<256x128xf32>, vector<128x128xf32>, vector<256x128xf32> -> vector<256x128xf32>
    %c8_121 = arith.constant 8 : index
    %c0_122 = arith.constant 0 : index
    %106 = vector.load %arg5[%c8_121, %c0_122] : memref<272x128xf32, #tpu.memory_space<vmem>>, vector<256x128xf32>
    %cst_123 = arith.constant 0.000000e+00 : f32
    %107 = vector.broadcast %cst_123 : f32 to vector<256x128xf32>
    %108 = arith.cmpf oge, %106, %107 : vector<256x128xf32>
    %cst_124 = arith.constant 1.000000e-01 : f32
    %109 = vector.broadcast %cst_124 : f32 to vector<256x128xf32>
    %110 = arith.mulf %106, %109 : vector<256x128xf32>
    %111 = arith.select %108, %106, %110 : vector<256x128xi1>, vector<256x128xf32>
    %c2_125 = arith.constant 2 : index
    %c1_126 = arith.constant 1 : index
    %c0_127 = arith.constant 0 : index
    %c0_128 = arith.constant 0 : index
    %112 = vector.load %arg2[%c2_125, %c1_126, %c0_127, %c0_128] : memref<6x3x128x128xf32, #tpu.memory_space<vmem>>, vector<1x1x128x128xf32>
    %113 = vector.shape_cast %112 : vector<1x1x128x128xf32> to vector<128x128xf32>
    %cst_129 = arith.constant dense<0.000000e+00> : vector<256x128xf32>
    %114 = tpu.matmul %111, %113, %cst_129 {dimension_numbers = #tpu.dot_dimension_numbers<[1], [0], [0], [1], [0, 0, 1, 1], [], []>} : vector<256x128xf32>, vector<128x128xf32>, vector<256x128xf32> -> vector<256x128xf32>
    %115 = arith.addf %105, %114 : vector<256x128xf32>
    %c11_130 = arith.constant 11 : index
    %c0_131 = arith.constant 0 : index
    %116 = vector.load %arg5[%c11_130, %c0_131] : memref<272x128xf32, #tpu.memory_space<vmem>>, vector<256x128xf32>
    %cst_132 = arith.constant 0.000000e+00 : f32
    %117 = vector.broadcast %cst_132 : f32 to vector<256x128xf32>
    %118 = arith.cmpf oge, %116, %117 : vector<256x128xf32>
    %cst_133 = arith.constant 1.000000e-01 : f32
    %119 = vector.broadcast %cst_133 : f32 to vector<256x128xf32>
    %120 = arith.mulf %116, %119 : vector<256x128xf32>
    %121 = arith.select %118, %116, %120 : vector<256x128xi1>, vector<256x128xf32>
    %c2_134 = arith.constant 2 : index
    %c2_135 = arith.constant 2 : index
    %c0_136 = arith.constant 0 : index
    %c0_137 = arith.constant 0 : index
    %122 = vector.load %arg2[%c2_134, %c2_135, %c0_136, %c0_137] : memref<6x3x128x128xf32, #tpu.memory_space<vmem>>, vector<1x1x128x128xf32>
    %123 = vector.shape_cast %122 : vector<1x1x128x128xf32> to vector<128x128xf32>
    %cst_138 = arith.constant dense<0.000000e+00> : vector<256x128xf32>
    %124 = tpu.matmul %121, %123, %cst_138 {dimension_numbers = #tpu.dot_dimension_numbers<[1], [0], [0], [1], [0, 0, 1, 1], [], []>} : vector<256x128xf32>, vector<128x128xf32>, vector<256x128xf32> -> vector<256x128xf32>
    %125 = arith.addf %115, %124 : vector<256x128xf32>
    %c2_139 = arith.constant 2 : index
    %c0_140 = arith.constant 0 : index
    %126 = vector.load %arg3[%c2_139, %c0_140] : memref<6x128xf32, #tpu.memory_space<vmem>>, vector<1x128xf32>
    %127 = vector.broadcast %126 : vector<1x128xf32> to vector<256x128xf32>
    %128 = arith.addf %125, %127 : vector<256x128xf32>
    %cst_141 = arith.constant 0.000000e+00 : f32
    %129 = vector.broadcast %cst_141 : f32 to vector<256x128xf32>
    %130 = arith.cmpf oge, %128, %129 : vector<256x128xf32>
    %cst_142 = arith.constant 1.000000e-01 : f32
    %131 = vector.broadcast %cst_142 : f32 to vector<256x128xf32>
    %132 = arith.mulf %128, %131 : vector<256x128xf32>
    %133 = arith.select %130, %128, %132 : vector<256x128xi1>, vector<256x128xf32>
    %c8_143 = arith.constant 8 : index
    %c0_144 = arith.constant 0 : index
    %134 = vector.load %arg6[%c8_143, %c0_144] : memref<272x128xf32, #tpu.memory_space<vmem>>, vector<256x128xf32>
    tpu.vector_store %arg6[%c8_143, %c0_144], %133 {strides = array<i32>} : memref<272x128xf32, #tpu.memory_space<vmem>>, vector<256x128xf32>,
    %c9_145 = arith.constant 9 : index
    %c0_146 = arith.constant 0 : index
    %135 = vector.load %arg6[%c9_145, %c0_146] : memref<272x128xf32, #tpu.memory_space<vmem>>, vector<1x128xf32>
    %c7_147 = arith.constant 7 : index
    %c0_148 = arith.constant 0 : index
    %136 = vector.load %arg6[%c7_147, %c0_148] : memref<272x128xf32, #tpu.memory_space<vmem>>, vector<1x128xf32>
    tpu.vector_store %arg6[%c7_147, %c0_148], %135 {strides = array<i32>} : memref<272x128xf32, #tpu.memory_space<vmem>>, vector<1x128xf32>,
    %c262_149 = arith.constant 262 : index
    %c0_150 = arith.constant 0 : index
    %137 = vector.load %arg6[%c262_149, %c0_150] : memref<272x128xf32, #tpu.memory_space<vmem>>, vector<1x128xf32>
    %c264_151 = arith.constant 264 : index
    %c0_152 = arith.constant 0 : index
    %138 = vector.load %arg6[%c264_151, %c0_152] : memref<272x128xf32, #tpu.memory_space<vmem>>, vector<1x128xf32>
    tpu.vector_store %arg6[%c264_151, %c0_152], %137 {strides = array<i32>} : memref<272x128xf32, #tpu.memory_space<vmem>>, vector<1x128xf32>,
    %c7_153 = arith.constant 7 : index
    %c0_154 = arith.constant 0 : index
    %139 = vector.load %arg6[%c7_153, %c0_154] : memref<272x128xf32, #tpu.memory_space<vmem>>, vector<256x128xf32>
    %c3_155 = arith.constant 3 : index
    %c0_156 = arith.constant 0 : index
    %c0_157 = arith.constant 0 : index
    %c0_158 = arith.constant 0 : index
    %140 = vector.load %arg2[%c3_155, %c0_156, %c0_157, %c0_158] : memref<6x3x128x128xf32, #tpu.memory_space<vmem>>, vector<1x1x128x128xf32>
    %141 = vector.shape_cast %140 : vector<1x1x128x128xf32> to vector<128x128xf32>
    %cst_159 = arith.constant dense<0.000000e+00> : vector<256x128xf32>
    %142 = tpu.matmul %139, %141, %cst_159 {dimension_numbers = #tpu.dot_dimension_numbers<[1], [0], [0], [1], [0, 0, 1, 1], [], []>} : vector<256x128xf32>, vector<128x128xf32>, vector<256x128xf32> -> vector<256x128xf32>
    %c8_160 = arith.constant 8 : index
    %c0_161 = arith.constant 0 : index
    %143 = vector.load %arg6[%c8_160, %c0_161] : memref<272x128xf32, #tpu.memory_space<vmem>>, vector<256x128xf32>
    %c3_162 = arith.constant 3 : index
    %c1_163 = arith.constant 1 : index
    %c0_164 = arith.constant 0 : index
    %c0_165 = arith.constant 0 : index
    %144 = vector.load %arg2[%c3_162, %c1_163, %c0_164, %c0_165] : memref<6x3x128x128xf32, #tpu.memory_space<vmem>>, vector<1x1x128x128xf32>
    %145 = vector.shape_cast %144 : vector<1x1x128x128xf32> to vector<128x128xf32>
    %cst_166 = arith.constant dense<0.000000e+00> : vector<256x128xf32>
    %146 = tpu.matmul %143, %145, %cst_166 {dimension_numbers = #tpu.dot_dimension_numbers<[1], [0], [0], [1], [0, 0, 1, 1], [], []>} : vector<256x128xf32>, vector<128x128xf32>, vector<256x128xf32> -> vector<256x128xf32>
    %147 = arith.addf %142, %146 : vector<256x128xf32>
    %c9_167 = arith.constant 9 : index
    %c0_168 = arith.constant 0 : index
    %148 = vector.load %arg6[%c9_167, %c0_168] : memref<272x128xf32, #tpu.memory_space<vmem>>, vector<256x128xf32>
    %c3_169 = arith.constant 3 : index
    %c2_170 = arith.constant 2 : index
    %c0_171 = arith.constant 0 : index
    %c0_172 = arith.constant 0 : index
    %149 = vector.load %arg2[%c3_169, %c2_170, %c0_171, %c0_172] : memref<6x3x128x128xf32, #tpu.memory_space<vmem>>, vector<1x1x128x128xf32>
    %150 = vector.shape_cast %149 : vector<1x1x128x128xf32> to vector<128x128xf32>
    %cst_173 = arith.constant dense<0.000000e+00> : vector<256x128xf32>
    %151 = tpu.matmul %148, %150, %cst_173 {dimension_numbers = #tpu.dot_dimension_numbers<[1], [0], [0], [1], [0, 0, 1, 1], [], []>} : vector<256x128xf32>, vector<128x128xf32>, vector<256x128xf32> -> vector<256x128xf32>
    %152 = arith.addf %147, %151 : vector<256x128xf32>
    %c3_174 = arith.constant 3 : index
    %c0_175 = arith.constant 0 : index
    %153 = vector.load %arg3[%c3_174, %c0_175] : memref<6x128xf32, #tpu.memory_space<vmem>>, vector<1x128xf32>
    %154 = vector.broadcast %153 : vector<1x128xf32> to vector<256x128xf32>
    %155 = arith.addf %152, %154 : vector<256x128xf32>
    %c8_176 = arith.constant 8 : index
    %c0_177 = arith.constant 0 : index
    %156 = vector.load %arg5[%c8_176, %c0_177] : memref<272x128xf32, #tpu.memory_space<vmem>>, vector<256x128xf32>
    %157 = arith.addf %155, %156 : vector<256x128xf32>
    %c8_178 = arith.constant 8 : index
    %c0_179 = arith.constant 0 : index
    %158 = vector.load %arg5[%c8_178, %c0_179] : memref<272x128xf32, #tpu.memory_space<vmem>>, vector<256x128xf32>
    tpu.vector_store %arg5[%c8_178, %c0_179], %157 {strides = array<i32>} : memref<272x128xf32, #tpu.memory_space<vmem>>, vector<256x128xf32>,
    %c9_180 = arith.constant 9 : index
    %c0_181 = arith.constant 0 : index
    %159 = vector.load %arg5[%c9_180, %c0_181] : memref<272x128xf32, #tpu.memory_space<vmem>>, vector<1x128xf32>
    %c7_182 = arith.constant 7 : index
    %c0_183 = arith.constant 0 : index
    %160 = vector.load %arg5[%c7_182, %c0_183] : memref<272x128xf32, #tpu.memory_space<vmem>>, vector<1x128xf32>
    tpu.vector_store %arg5[%c7_182, %c0_183], %159 {strides = array<i32>} : memref<272x128xf32, #tpu.memory_space<vmem>>, vector<1x128xf32>,
    %c262_184 = arith.constant 262 : index
    %c0_185 = arith.constant 0 : index
    %161 = vector.load %arg5[%c262_184, %c0_185] : memref<272x128xf32, #tpu.memory_space<vmem>>, vector<1x128xf32>
    %c264_186 = arith.constant 264 : index
    %c0_187 = arith.constant 0 : index
    %162 = vector.load %arg5[%c264_186, %c0_187] : memref<272x128xf32, #tpu.memory_space<vmem>>, vector<1x128xf32>
    tpu.vector_store %arg5[%c264_186, %c0_187], %161 {strides = array<i32>} : memref<272x128xf32, #tpu.memory_space<vmem>>, vector<1x128xf32>,
    %c10_188 = arith.constant 10 : index
    %c0_189 = arith.constant 0 : index
    %163 = vector.load %arg5[%c10_188, %c0_189] : memref<272x128xf32, #tpu.memory_space<vmem>>, vector<1x128xf32>
    %c6_190 = arith.constant 6 : index
    %c0_191 = arith.constant 0 : index
    %164 = vector.load %arg5[%c6_190, %c0_191] : memref<272x128xf32, #tpu.memory_space<vmem>>, vector<1x128xf32>
    tpu.vector_store %arg5[%c6_190, %c0_191], %163 {strides = array<i32>} : memref<272x128xf32, #tpu.memory_space<vmem>>, vector<1x128xf32>,
    %c261_192 = arith.constant 261 : index
    %c0_193 = arith.constant 0 : index
    %165 = vector.load %arg5[%c261_192, %c0_193] : memref<272x128xf32, #tpu.memory_space<vmem>>, vector<1x128xf32>
    %c265_194 = arith.constant 265 : index
    %c0_195 = arith.constant 0 : index
    %166 = vector.load %arg5[%c265_194, %c0_195] : memref<272x128xf32, #tpu.memory_space<vmem>>, vector<1x128xf32>
    tpu.vector_store %arg5[%c265_194, %c0_195], %165 {strides = array<i32>} : memref<272x128xf32, #tpu.memory_space<vmem>>, vector<1x128xf32>,
    %c11_196 = arith.constant 11 : index
    %c0_197 = arith.constant 0 : index
    %167 = vector.load %arg5[%c11_196, %c0_197] : memref<272x128xf32, #tpu.memory_space<vmem>>, vector<1x128xf32>
    %c5_198 = arith.constant 5 : index
    %c0_199 = arith.constant 0 : index
    %168 = vector.load %arg5[%c5_198, %c0_199] : memref<272x128xf32, #tpu.memory_space<vmem>>, vector<1x128xf32>
    tpu.vector_store %arg5[%c5_198, %c0_199], %167 {strides = array<i32>} : memref<272x128xf32, #tpu.memory_space<vmem>>, vector<1x128xf32>,
    %c260_200 = arith.constant 260 : index
    %c0_201 = arith.constant 0 : index
    %169 = vector.load %arg5[%c260_200, %c0_201] : memref<272x128xf32, #tpu.memory_space<vmem>>, vector<1x128xf32>
    %c266_202 = arith.constant 266 : index
    %c0_203 = arith.constant 0 : index
    %170 = vector.load %arg5[%c266_202, %c0_203] : memref<272x128xf32, #tpu.memory_space<vmem>>, vector<1x128xf32>
    tpu.vector_store %arg5[%c266_202, %c0_203], %169 {strides = array<i32>} : memref<272x128xf32, #tpu.memory_space<vmem>>, vector<1x128xf32>,
    %c12_204 = arith.constant 12 : index
    %c0_205 = arith.constant 0 : index
    %171 = vector.load %arg5[%c12_204, %c0_205] : memref<272x128xf32, #tpu.memory_space<vmem>>, vector<1x128xf32>
    %c4_206 = arith.constant 4 : index
    %c0_207 = arith.constant 0 : index
    %172 = vector.load %arg5[%c4_206, %c0_207] : memref<272x128xf32, #tpu.memory_space<vmem>>, vector<1x128xf32>
    tpu.vector_store %arg5[%c4_206, %c0_207], %171 {strides = array<i32>} : memref<272x128xf32, #tpu.memory_space<vmem>>, vector<1x128xf32>,
    %c259_208 = arith.constant 259 : index
    %c0_209 = arith.constant 0 : index
    %173 = vector.load %arg5[%c259_208, %c0_209] : memref<272x128xf32, #tpu.memory_space<vmem>>, vector<1x128xf32>
    %c267_210 = arith.constant 267 : index
    %c0_211 = arith.constant 0 : index
    %174 = vector.load %arg5[%c267_210, %c0_211] : memref<272x128xf32, #tpu.memory_space<vmem>>, vector<1x128xf32>
    tpu.vector_store %arg5[%c267_210, %c0_211], %173 {strides = array<i32>} : memref<272x128xf32, #tpu.memory_space<vmem>>, vector<1x128xf32>,
    %c13_212 = arith.constant 13 : index
    %c0_213 = arith.constant 0 : index
    %175 = vector.load %arg5[%c13_212, %c0_213] : memref<272x128xf32, #tpu.memory_space<vmem>>, vector<1x128xf32>
    %c3_214 = arith.constant 3 : index
    %c0_215 = arith.constant 0 : index
    %176 = vector.load %arg5[%c3_214, %c0_215] : memref<272x128xf32, #tpu.memory_space<vmem>>, vector<1x128xf32>
    tpu.vector_store %arg5[%c3_214, %c0_215], %175 {strides = array<i32>} : memref<272x128xf32, #tpu.memory_space<vmem>>, vector<1x128xf32>,
    %c258_216 = arith.constant 258 : index
    %c0_217 = arith.constant 0 : index
    %177 = vector.load %arg5[%c258_216, %c0_217] : memref<272x128xf32, #tpu.memory_space<vmem>>, vector<1x128xf32>
    %c268_218 = arith.constant 268 : index
    %c0_219 = arith.constant 0 : index
    %178 = vector.load %arg5[%c268_218, %c0_219] : memref<272x128xf32, #tpu.memory_space<vmem>>, vector<1x128xf32>
    tpu.vector_store %arg5[%c268_218, %c0_219], %177 {strides = array<i32>} : memref<272x128xf32, #tpu.memory_space<vmem>>, vector<1x128xf32>,
    %c3_220 = arith.constant 3 : index
    %c0_221 = arith.constant 0 : index
    %179 = vector.load %arg5[%c3_220, %c0_221] : memref<272x128xf32, #tpu.memory_space<vmem>>, vector<256x128xf32>
    %cst_222 = arith.constant 0.000000e+00 : f32
    %180 = vector.broadcast %cst_222 : f32 to vector<256x128xf32>
    %181 = arith.cmpf oge, %179, %180 : vector<256x128xf32>
    %cst_223 = arith.constant 1.000000e-01 : f32
    %182 = vector.broadcast %cst_223 : f32 to vector<256x128xf32>
    %183 = arith.mulf %179, %182 : vector<256x128xf32>
    %184 = arith.select %181, %179, %183 : vector<256x128xi1>, vector<256x128xf32>
    %c4_224 = arith.constant 4 : index
    %c0_225 = arith.constant 0 : index
    %c0_226 = arith.constant 0 : index
    %c0_227 = arith.constant 0 : index
    %185 = vector.load %arg2[%c4_224, %c0_225, %c0_226, %c0_227] : memref<6x3x128x128xf32, #tpu.memory_space<vmem>>, vector<1x1x128x128xf32>
    %186 = vector.shape_cast %185 : vector<1x1x128x128xf32> to vector<128x128xf32>
    %cst_228 = arith.constant dense<0.000000e+00> : vector<256x128xf32>
    %187 = tpu.matmul %184, %186, %cst_228 {dimension_numbers = #tpu.dot_dimension_numbers<[1], [0], [0], [1], [0, 0, 1, 1], [], []>} : vector<256x128xf32>, vector<128x128xf32>, vector<256x128xf32> -> vector<256x128xf32>
    %c8_229 = arith.constant 8 : index
    %c0_230 = arith.constant 0 : index
    %188 = vector.load %arg5[%c8_229, %c0_230] : memref<272x128xf32, #tpu.memory_space<vmem>>, vector<256x128xf32>
    %cst_231 = arith.constant 0.000000e+00 : f32
    %189 = vector.broadcast %cst_231 : f32 to vector<256x128xf32>
    %190 = arith.cmpf oge, %188, %189 : vector<256x128xf32>
    %cst_232 = arith.constant 1.000000e-01 : f32
    %191 = vector.broadcast %cst_232 : f32 to vector<256x128xf32>
    %192 = arith.mulf %188, %191 : vector<256x128xf32>
    %193 = arith.select %190, %188, %192 : vector<256x128xi1>, vector<256x128xf32>
    %c4_233 = arith.constant 4 : index
    %c1_234 = arith.constant 1 : index
    %c0_235 = arith.constant 0 : index
    %c0_236 = arith.constant 0 : index
    %194 = vector.load %arg2[%c4_233, %c1_234, %c0_235, %c0_236] : memref<6x3x128x128xf32, #tpu.memory_space<vmem>>, vector<1x1x128x128xf32>
    %195 = vector.shape_cast %194 : vector<1x1x128x128xf32> to vector<128x128xf32>
    %cst_237 = arith.constant dense<0.000000e+00> : vector<256x128xf32>
    %196 = tpu.matmul %193, %195, %cst_237 {dimension_numbers = #tpu.dot_dimension_numbers<[1], [0], [0], [1], [0, 0, 1, 1], [], []>} : vector<256x128xf32>, vector<128x128xf32>, vector<256x128xf32> -> vector<256x128xf32>
    %197 = arith.addf %187, %196 : vector<256x128xf32>
    %c13_238 = arith.constant 13 : index
    %c0_239 = arith.constant 0 : index
    %198 = vector.load %arg5[%c13_238, %c0_239] : memref<272x128xf32, #tpu.memory_space<vmem>>, vector<256x128xf32>
    %cst_240 = arith.constant 0.000000e+00 : f32
    %199 = vector.broadcast %cst_240 : f32 to vector<256x128xf32>
    %200 = arith.cmpf oge, %198, %199 : vector<256x128xf32>
    %cst_241 = arith.constant 1.000000e-01 : f32
    %201 = vector.broadcast %cst_241 : f32 to vector<256x128xf32>
    %202 = arith.mulf %198, %201 : vector<256x128xf32>
    %203 = arith.select %200, %198, %202 : vector<256x128xi1>, vector<256x128xf32>
    %c4_242 = arith.constant 4 : index
    %c2_243 = arith.constant 2 : index
    %c0_244 = arith.constant 0 : index
    %c0_245 = arith.constant 0 : index
    %204 = vector.load %arg2[%c4_242, %c2_243, %c0_244, %c0_245] : memref<6x3x128x128xf32, #tpu.memory_space<vmem>>, vector<1x1x128x128xf32>
    %205 = vector.shape_cast %204 : vector<1x1x128x128xf32> to vector<128x128xf32>
    %cst_246 = arith.constant dense<0.000000e+00> : vector<256x128xf32>
    %206 = tpu.matmul %203, %205, %cst_246 {dimension_numbers = #tpu.dot_dimension_numbers<[1], [0], [0], [1], [0, 0, 1, 1], [], []>} : vector<256x128xf32>, vector<128x128xf32>, vector<256x128xf32> -> vector<256x128xf32>
    %207 = arith.addf %197, %206 : vector<256x128xf32>
    %c4_247 = arith.constant 4 : index
    %c0_248 = arith.constant 0 : index
    %208 = vector.load %arg3[%c4_247, %c0_248] : memref<6x128xf32, #tpu.memory_space<vmem>>, vector<1x128xf32>
    %209 = vector.broadcast %208 : vector<1x128xf32> to vector<256x128xf32>
    %210 = arith.addf %207, %209 : vector<256x128xf32>
    %cst_249 = arith.constant 0.000000e+00 : f32
    %211 = vector.broadcast %cst_249 : f32 to vector<256x128xf32>
    %212 = arith.cmpf oge, %210, %211 : vector<256x128xf32>
    %cst_250 = arith.constant 1.000000e-01 : f32
    %213 = vector.broadcast %cst_250 : f32 to vector<256x128xf32>
    %214 = arith.mulf %210, %213 : vector<256x128xf32>
    %215 = arith.select %212, %210, %214 : vector<256x128xi1>, vector<256x128xf32>
    %c8_251 = arith.constant 8 : index
    %c0_252 = arith.constant 0 : index
    %216 = vector.load %arg6[%c8_251, %c0_252] : memref<272x128xf32, #tpu.memory_space<vmem>>, vector<256x128xf32>
    tpu.vector_store %arg6[%c8_251, %c0_252], %215 {strides = array<i32>} : memref<272x128xf32, #tpu.memory_space<vmem>>, vector<256x128xf32>,
    %c9_253 = arith.constant 9 : index
    %c0_254 = arith.constant 0 : index
    %217 = vector.load %arg6[%c9_253, %c0_254] : memref<272x128xf32, #tpu.memory_space<vmem>>, vector<1x128xf32>
    %c7_255 = arith.constant 7 : index
    %c0_256 = arith.constant 0 : index
    %218 = vector.load %arg6[%c7_255, %c0_256] : memref<272x128xf32, #tpu.memory_space<vmem>>, vector<1x128xf32>
    tpu.vector_store %arg6[%c7_255, %c0_256], %217 {strides = array<i32>} : memref<272x128xf32, #tpu.memory_space<vmem>>, vector<1x128xf32>,
    %c262_257 = arith.constant 262 : index
    %c0_258 = arith.constant 0 : index
    %219 = vector.load %arg6[%c262_257, %c0_258] : memref<272x128xf32, #tpu.memory_space<vmem>>, vector<1x128xf32>
    %c264_259 = arith.constant 264 : index
    %c0_260 = arith.constant 0 : index
    %220 = vector.load %arg6[%c264_259, %c0_260] : memref<272x128xf32, #tpu.memory_space<vmem>>, vector<1x128xf32>
    tpu.vector_store %arg6[%c264_259, %c0_260], %219 {strides = array<i32>} : memref<272x128xf32, #tpu.memory_space<vmem>>, vector<1x128xf32>,
    %c7_261 = arith.constant 7 : index
    %c0_262 = arith.constant 0 : index
    %221 = vector.load %arg6[%c7_261, %c0_262] : memref<272x128xf32, #tpu.memory_space<vmem>>, vector<256x128xf32>
    %c5_263 = arith.constant 5 : index
    %c0_264 = arith.constant 0 : index
    %c0_265 = arith.constant 0 : index
    %c0_266 = arith.constant 0 : index
    %222 = vector.load %arg2[%c5_263, %c0_264, %c0_265, %c0_266] : memref<6x3x128x128xf32, #tpu.memory_space<vmem>>, vector<1x1x128x128xf32>
    %223 = vector.shape_cast %222 : vector<1x1x128x128xf32> to vector<128x128xf32>
    %cst_267 = arith.constant dense<0.000000e+00> : vector<256x128xf32>
    %224 = tpu.matmul %221, %223, %cst_267 {dimension_numbers = #tpu.dot_dimension_numbers<[1], [0], [0], [1], [0, 0, 1, 1], [], []>} : vector<256x128xf32>, vector<128x128xf32>, vector<256x128xf32> -> vector<256x128xf32>
    %c8_268 = arith.constant 8 : index
    %c0_269 = arith.constant 0 : index
    %225 = vector.load %arg6[%c8_268, %c0_269] : memref<272x128xf32, #tpu.memory_space<vmem>>, vector<256x128xf32>
    %c5_270 = arith.constant 5 : index
    %c1_271 = arith.constant 1 : index
    %c0_272 = arith.constant 0 : index
    %c0_273 = arith.constant 0 : index
    %226 = vector.load %arg2[%c5_270, %c1_271, %c0_272, %c0_273] : memref<6x3x128x128xf32, #tpu.memory_space<vmem>>, vector<1x1x128x128xf32>
    %227 = vector.shape_cast %226 : vector<1x1x128x128xf32> to vector<128x128xf32>
    %cst_274 = arith.constant dense<0.000000e+00> : vector<256x128xf32>
    %228 = tpu.matmul %225, %227, %cst_274 {dimension_numbers = #tpu.dot_dimension_numbers<[1], [0], [0], [1], [0, 0, 1, 1], [], []>} : vector<256x128xf32>, vector<128x128xf32>, vector<256x128xf32> -> vector<256x128xf32>
    %229 = arith.addf %224, %228 : vector<256x128xf32>
    %c9_275 = arith.constant 9 : index
    %c0_276 = arith.constant 0 : index
    %230 = vector.load %arg6[%c9_275, %c0_276] : memref<272x128xf32, #tpu.memory_space<vmem>>, vector<256x128xf32>
    %c5_277 = arith.constant 5 : index
    %c2_278 = arith.constant 2 : index
    %c0_279 = arith.constant 0 : index
    %c0_280 = arith.constant 0 : index
    %231 = vector.load %arg2[%c5_277, %c2_278, %c0_279, %c0_280] : memref<6x3x128x128xf32, #tpu.memory_space<vmem>>, vector<1x1x128x128xf32>
    %232 = vector.shape_cast %231 : vector<1x1x128x128xf32> to vector<128x128xf32>
    %cst_281 = arith.constant dense<0.000000e+00> : vector<256x128xf32>
    %233 = tpu.matmul %230, %232, %cst_281 {dimension_numbers = #tpu.dot_dimension_numbers<[1], [0], [0], [1], [0, 0, 1, 1], [], []>} : vector<256x128xf32>, vector<128x128xf32>, vector<256x128xf32> -> vector<256x128xf32>
    %234 = arith.addf %229, %233 : vector<256x128xf32>
    %c5_282 = arith.constant 5 : index
    %c0_283 = arith.constant 0 : index
    %235 = vector.load %arg3[%c5_282, %c0_283] : memref<6x128xf32, #tpu.memory_space<vmem>>, vector<1x128xf32>
    %236 = vector.broadcast %235 : vector<1x128xf32> to vector<256x128xf32>
    %237 = arith.addf %234, %236 : vector<256x128xf32>
    %c8_284 = arith.constant 8 : index
    %c0_285 = arith.constant 0 : index
    %238 = vector.load %arg5[%c8_284, %c0_285] : memref<272x128xf32, #tpu.memory_space<vmem>>, vector<256x128xf32>
    %239 = arith.addf %237, %238 : vector<256x128xf32>
    %c8_286 = arith.constant 8 : index
    %c0_287 = arith.constant 0 : index
    %240 = vector.load %arg5[%c8_286, %c0_287] : memref<272x128xf32, #tpu.memory_space<vmem>>, vector<256x128xf32>
    tpu.vector_store %arg5[%c8_286, %c0_287], %239 {strides = array<i32>} : memref<272x128xf32, #tpu.memory_space<vmem>>, vector<256x128xf32>,
    %c8_288 = arith.constant 8 : index
    %c0_289 = arith.constant 0 : index
    %241 = vector.load %arg5[%c8_288, %c0_289] : memref<272x128xf32, #tpu.memory_space<vmem>>, vector<256x128xf32>
    %c0_290 = arith.constant 0 : index
    %c0_291 = arith.constant 0 : index
    %c0_292 = arith.constant 0 : index
    %242 = vector.load %arg4[%c0_290, %c0_291, %c0_292] : memref<1x256x128xf32, #tpu.memory_space<vmem>>, vector<1x256x128xf32>
    %243 = vector.shape_cast %242 : vector<1x256x128xf32> to vector<256x128xf32>
    %244 = vector.shape_cast %241 : vector<256x128xf32> to vector<1x256x128xf32>
    tpu.vector_store %arg4[%c0_290, %c0_291, %c0_292], %244 {strides = array<i32>} : memref<1x256x128xf32, #tpu.memory_space<vmem>>, vector<1x256x128xf32>,
    return
  }
  func.func @transform_0(%arg0: i32) -> (i32, i32, i32) {
    %c0_i32 = arith.constant 0 : i32
    %c0_i32_0 = arith.constant 0 : i32
    %c0_i32_1 = arith.constant 0 : i32
    return %arg0, %c0_i32, %c0_i32_0 : i32, i32, i32
  }
  func.func @transform_1(%arg0: i32) -> (i32, i32, i32, i32) {
    %c0_i32 = arith.constant 0 : i32
    %c0_i32_0 = arith.constant 0 : i32
    %c0_i32_1 = arith.constant 0 : i32
    %c0_i32_2 = arith.constant 0 : i32
    %c0_i32_3 = arith.constant 0 : i32
    return %c0_i32, %c0_i32_0, %c0_i32_1, %c0_i32_2 : i32, i32, i32, i32
  }
  func.func @transform_2(%arg0: i32) -> (i32, i32) {
    %c0_i32 = arith.constant 0 : i32
    %c0_i32_0 = arith.constant 0 : i32
    %c0_i32_1 = arith.constant 0 : i32
    return %c0_i32, %c0_i32_0 : i32, i32
  }
  func.func @transform_3(%arg0: i32) -> (i32, i32, i32) {
    %c0_i32 = arith.constant 0 : i32
    %c0_i32_0 = arith.constant 0 : i32
    %c0_i32_1 = arith.constant 0 : i32
    return %arg0, %c0_i32, %c0_i32_0 : i32, i32, i32
  }
}

</mosaic_0001>

<bundles_post_ra>
// kernel: resblock1_forward.1
= control target key start
LH: loop header
LB: loop body
LE: loop exit
PB: predicated region body
PF: predicated region fallthrough
CT: control target
= control target key end

     0   :  { %s10890_s12 = smov 0   ;;  %s12288_s0 = inlined_call_operand.vmem [shape: f32[2,256,128], index: 0, kind: input, shape index: {}]   ;;  %s12289_s1 = inlined_call_operand.vmem [shape: f32[6,3,128,128], index: 1, kind: input, shape index: {}]   ;;  %s12290_s2 = inlined_call_operand.vmem [shape: f32[6,128], index: 2, kind: input, shape index: {}]   ;;  %s12291_s3 = inlined_call_operand.vmem [shape: f32[2,256,128], index: 3, kind: output, shape index: {}]  }
   0x1 LB: > { %s7299_s13 = sadd.s32 4294967295, %s10868_s12   ;;  %p7303_p0 = scmp.ge.s32.totalorder %s10868_s12, 1  ;;  %s10868_s12 = sphi %s10890_s12, %s13_s12  }
   0x2   : > { %p137_p1 = scmp.lt.s32.totalorder %s10868_s12, 3 }
   0x4   : > { %p138_p2 = pnand %p7303_p0, %p137_p1 }
   0x5   : > { %v7308_v0 = vld [vmem:[%s12289_s1 + $0x80] sm:$0xff] (!%p138_p2)  ;;  %v7309_v1 = vld [vmem:[%s12289_s1 + $0x88] sm:$0xff] (!%p138_p2)  ;;  %v7310_v2 = vld [vmem:[%s12289_s1 + $0x90] sm:$0xff] (!%p138_p2)  ;;  %p161_p3 = scmp.lt.s32.totalorder (!%p138_p2), %s7299_s13, 1 }
   0x6   : > { %141 = sbr.rel (%p138_p2) target bundleno = 2186 (0x88a), region = 32  ;;  %v9894_v3 = vpack.c.bf16 (!%p138_p2), %v7309_v1, %v7308_v0  ;;  %v7311_v4 = vld [vmem:[%s12289_s1 + $0x98] sm:$0xff] (!%p138_p2)  ;;  %v7312_v6 = vld [vmem:[%s12289_s1 + $0xa0] sm:$0xff] (!%p138_p2)  ;;  %v7313_v7 = vld [vmem:[%s12289_s1 + $0xa8] sm:$0xff] (!%p138_p2) }
   0x7   : > { %v9898_v5 = vpack.c.bf16 (!%p138_p2), %v7311_v4, %v7310_v2  ;;  %v9902_v8 = vpack.c.bf16 (!%p138_p2), %v7313_v7, %v7312_v6  ;;  %v7314_v9 = vld [vmem:[%s12289_s1 + $0xb0] sm:$0xff] (!%p138_p2)  ;;  %v7315_v10 = vld [vmem:[%s12289_s1 + $0xb8] sm:$0xff] (!%p138_p2)  ;;  %v7316_v19 = vld [vmem:[%s12289_s1 + $0xc0] sm:$0xff] (!%p138_p2) }
   0x8   : > { %9895 = vmatprep.subr.bf16.mxu0 (!%p138_p2), %v9894_v3  ;;  %v9906_v18 = vpack.c.bf16 (!%p138_p2), %v7315_v10, %v7314_v9  ;;  %v7317_v22 = vld [vmem:[%s12289_s1 + $0xc8] sm:$0xff] (!%p138_p2)  ;;  %v7318_v26 = vld [vmem:[%s12289_s1 + $0xd0] sm:$0xff] (!%p138_p2)  ;;  %v7319_v29 = vld [vmem:[%s12289_s1 + $0xd8] sm:$0xff] (!%p138_p2) }
   0x9   : > { %9897 = vmatpush3.bf16.msra.mxu0 (!%p138_p2), %v9894_v3  ;;  %v9910_v28 = vpack.c.bf16 (!%p138_p2), %v7317_v22, %v7316_v19  ;;  %v9914_v37 = vpack.c.bf16 (!%p138_p2), %v7319_v29, %v7318_v26  ;;  %v7320_v38 = vld [vmem:[%s12289_s1 + $0xe0] sm:$0xff] (!%p138_p2)  ;;  %v7321_v39 = vld [vmem:[%s12289_s1 + $0xe8] sm:$0xff] (!%p138_p2)  ;;  %v7322_v45 = vld [vmem:[%s12289_s1 + $0xf0] sm:$0xff] (!%p138_p2) }
   0xa   : > { %9899 = vmatprep.subr.bf16.mxu0 (!%p138_p2), %v9898_v5  ;;  %v9918_v44 = vpack.c.bf16 (!%p138_p2), %v7321_v39, %v7320_v38  ;;  %v7323_v46 = vld [vmem:[%s12289_s1 + $0xf8] sm:$0xff] (!%p138_p2)  ;;  %v383_v55 = vld [vmem:[%s12289_s1] sm:$0xff] (!%p138_p2)  ;;  %v384_v56 = vld [vmem:[%s12289_s1 + $0x8] sm:$0xff] (!%p138_p2) }
   0xb   : > { %v9922_v51 = vpack.c.bf16 (!%p138_p2), %v7323_v46, %v7322_v45  ;;  %v9926_v62 = vpack.c.bf16 (!%p138_p2), %v384_v56, %v383_v55  ;;  %v385_v0 = vld [vmem:[%s12289_s1 + $0x10] sm:$0xff] (!%p138_p2)  ;;  %v386_v2 = vld [vmem:[%s12289_s1 + $0x18] sm:$0xff] (!%p138_p2)  ;;  %v392_v38 = vld [vmem:[%s12289_s1 + $0x48] sm:$0xff] (!%p138_p2) }
   0xc   : > { %v9930_v10 = vpack.c.bf16 (!%p138_p2), %v386_v2, %v385_v0  ;;  %v389_v22 = vld [vmem:[%s12289_s1 + $0x30] sm:$0xff] (!%p138_p2) }
   0xd   : > { %s12293_s13 = smov (!%p161_p3, %s7299_s13), 1  ;;  %9901 = vmatpush3.bf16.msra.mxu0 %v9898_v5 }
   0xe   : > { %s7588_s26 = sshll.u32 %s12293_s13, 8  ;;  %9903 = vmatprep.subr.bf16.mxu0 %v9902_v8 }
   0xf   : > { %s10930_s6 = scalar_lea.vmem %s12288_s0, %s7588_s26  ;;  %s12220_s5 = scalar_lea.vmem %s12291_s3, %s7588_s26 }
  0x10   : > { %v171_v11 = vld [vmem:[%s10930_s6] sm:$0xff]  ;;  %v10934_v12 = vld [vmem:[%s10930_s6 + $0x8] sm:$0xff]  ;;  %v10937_v13 = vld [vmem:[%s10930_s6 + $0x10] sm:$0xff] }
  0x11   : > { %203 = vst [vmem:[#allocation2 + $0x8] sm:$0xff] %v171_v11  ;;  %vm431_vm0 = vcmp.ge.f32.partialorder %v171_v11, 0.0  ;;  %v463_v14 = vmul.f32 0.1, %v171_v11  ;;  %204 = vst [vmem:[#allocation2 + $0x10] sm:$0xff] %v10934_v12  ;;  %v10942_v15 = vld [vmem:[%s10930_s6 + $0x18] sm:$0xff]  ;;  %9905 = vmatpush3.bf16.msra.mxu0 %v9902_v8 }
  0x12   : > { %205 = vst [vmem:[#allocation2 + $0x18] sm:$0xff] %v10937_v13  ;;  %v10945_v16 = vld [vmem:[%s10930_s6 + $0x20] sm:$0xff]  ;;  %v10948_v17 = vld [vmem:[%s10930_s6 + $0x28] sm:$0xff]  ;;  %206 = vst [vmem:[#allocation2 + $0x20] sm:$0xff] %v10942_v15  ;;  %9907 = vmatprep.subr.bf16.mxu0 %v9906_v18  ;;  %v464_v60 = vmul.f32 0.1, %v10934_v12 }
  0x13   : > { %v495_v20 = vsel %vm431_vm0, %v171_v11, %v463_v14  ;;  %207 = vst [vmem:[#allocation2 + $0x28] sm:$0xff] %v10945_v16  ;;  %208 = vst [vmem:[#allocation2 + $0x30] sm:$0xff] %v10948_v17  ;;  %v10957_v21 = vld [vmem:[%s10930_s6 + $0x30] sm:$0xff]  ;;  %v10964_v23 = vld [vmem:[%s10930_s6 + $0x38] sm:$0xff]  ;;  %vm432_vm1 = vcmp.ge.f32.partialorder %v10934_v12, 0.0  ;;  %vm433_vm2 = vcmp.ge.f32.partialorder %v10937_v13, 0.0 }
  0x14   : > { %8486 = vmatprep.mubr.f32.mxu0 %v495_v20  ;;  %209 = vst [vmem:[#allocation2 + $0x38] sm:$0xff] %v10957_v21  ;;  %v10967_v24 = vld [vmem:[%s10930_s6 + $0x40] sm:$0xff]  ;;  %210 = vst [vmem:[#allocation2 + $0x40] sm:$0xff] %v10964_v23  ;;  %v10972_v25 = vld [vmem:[%s10930_s6 + $0x48] sm:$0xff]  ;;  %v465_v63 = vmul.f32 0.1, %v10937_v13  ;;  %v496_v6 = vsel %vm432_vm1, %v10934_v12, %v464_v60 }
  0x15   : > { %211 = vst [vmem:[#allocation2 + $0x48] sm:$0xff] %v10967_v24  ;;  %212 = vst [vmem:[#allocation2 + $0x50] sm:$0xff] %v10972_v25  ;;  %v10979_v27 = vld [vmem:[%s10930_s6 + $0x50] sm:$0xff]  ;;  %v10986_v30 = vld [vmem:[%s10930_s6 + $0x58] sm:$0xff]  ;;  %9909 = vmatpush3.bf16.msra.mxu0 %v9906_v18  ;;  %v466_v7 = vmul.f32 0.1, %v10942_v15 }
  0x16   : > { %213 = vst [vmem:[#allocation2 + $0x58] sm:$0xff] %v10979_v27  ;;  %v10989_v31 = vld [vmem:[%s10930_s6 + $0x60] sm:$0xff]  ;;  %214 = vst [vmem:[#allocation2 + $0x60] sm:$0xff] %v10986_v30  ;;  %v10994_v36 = vld [vmem:[%s10930_s6 + $0x68] sm:$0xff]  ;;  %9911 = vmatprep.subr.bf16.mxu0 %v9910_v28  ;;  %v497_v8 = vsel %vm433_vm2, %v10937_v13, %v465_v63  ;;  %vm434_vm3 = vcmp.ge.f32.partialorder %v10942_v15, 0.0  ;;  %vm435_vm4 = vcmp.ge.f32.partialorder %v10945_v16, 0.0 }
  0x17   : > { %215 = vst [vmem:[#allocation2 + $0x68] sm:$0xff] %v10989_v31  ;;  %216 = vst [vmem:[#allocation2 + $0x70] sm:$0xff] %v10994_v36  ;;  %v11004_v40 = vld [vmem:[%s10930_s6 + $0x70] sm:$0xff]  ;;  %v11007_v41 = vld [vmem:[%s10930_s6 + $0x78] sm:$0xff]  ;;  %v467_v9 = vmul.f32 0.1, %v10945_v16  ;;  %v498_v13 = vsel %vm434_vm3, %v10942_v15, %v466_v7 }
  0x18   : > { %v239_v32 = vld [vmem:[#allocation2 + $0xa] sm:$0x1]  ;;  %v243_v33 = vld [vmem:[#allocation2 + $0xb] sm:$0x1]  ;;  %v247_v34 = vld [vmem:[#allocation2 + $0xc] sm:$0x1] }
  0x19   : > { %v251_v35 = vld [vmem:[#allocation2 + $0xd] sm:$0x1]  ;;  %240 = vst [vmem:[#allocation2 + $0x6] sm:$0x1] %v239_v32  ;;  %244 = vst [vmem:[#allocation2 + $0x5] sm:$0x1] %v243_v33  ;;  %9913 = vmatpush3.bf16.msra.mxu0 %v9910_v28  ;;  %v499_v18 = vsel %vm435_vm4, %v10945_v16, %v467_v9 }
  0x1a   : > { %248 = vst [vmem:[#allocation2 + $0x4] sm:$0x1] %v247_v34  ;;  %252 = vst [vmem:[#allocation2 + $0x3] sm:$0x1] %v251_v35  ;;  %v11012_v42 = vld [vmem:[%s10930_s6 + $0x80] sm:$0xff]  ;;  %v11015_v43 = vld [vmem:[%s10930_s6 + $0x88] sm:$0xff]  ;;  %9915 = vmatprep.subr.bf16.mxu0 %v9914_v37 }
  0x1b   : > { %217 = vst [vmem:[#allocation2 + $0x78] sm:$0xff] %v11004_v40  ;;  %218 = vst [vmem:[#allocation2 + $0x80] sm:$0xff] %v11007_v41  ;;  %v11026_v47 = vld [vmem:[%s10930_s6 + $0x90] sm:$0xff]  ;;  %v11029_v48 = vld [vmem:[%s10930_s6 + $0x98] sm:$0xff]  ;;  %vm436_vm5 = vcmp.ge.f32.partialorder %v10948_v17, 0.0  ;;  %vm437_vm6 = vcmp.ge.f32.partialorder %v10957_v21, 0.0 }
  0x1c   : > { %219 = vst [vmem:[#allocation2 + $0x88] sm:$0xff] %v11012_v42  ;;  %220 = vst [vmem:[#allocation2 + $0x90] sm:$0xff] %v11015_v43  ;;  %v11032_v49 = vld [vmem:[%s10930_s6 + $0xa0] sm:$0xff]  ;;  %v11038_v50 = vld [vmem:[%s10930_s6 + $0xa8] sm:$0xff]  ;;  %v468_v14 = vmul.f32 0.1, %v10948_v17 }
  0x1d   : > { %221 = vst [vmem:[#allocation2 + $0x98] sm:$0xff] %v11026_v47  ;;  %222 = vst [vmem:[#allocation2 + $0xa0] sm:$0xff] %v11029_v48  ;;  %9917 = vmatpush3.bf16.msra.mxu0 %v9914_v37  ;;  %v11042_v52 = vld [vmem:[%s10930_s6 + $0xb0] sm:$0xff]  ;;  %v11045_v53 = vld [vmem:[%s10930_s6 + $0xb8] sm:$0xff]  ;;  %v469_v19 = vmul.f32 0.1, %v10957_v21 }
  0x1e   : > { %223 = vst [vmem:[#allocation2 + $0xa8] sm:$0xff] %v11032_v49  ;;  %224 = vst [vmem:[#allocation2 + $0xb0] sm:$0xff] %v11038_v50  ;;  %9919 = vmatprep.subr.bf16.mxu0 %v9918_v44  ;;  %v11048_v54 = vld [vmem:[%s10930_s6 + $0xc0] sm:$0xff]  ;;  %v11060_v57 = vld [vmem:[%s10930_s6 + $0xc8] sm:$0xff]  ;;  %v500_v16 = vsel %vm436_vm5, %v10948_v17, %v468_v14  ;;  %v470_v33 = vmul.f32 0.1, %v10964_v23 }
  0x1f   : > { %225 = vst [vmem:[#allocation2 + $0xb8] sm:$0xff] %v11042_v52  ;;  %226 = vst [vmem:[#allocation2 + $0xc0] sm:$0xff] %v11045_v53  ;;  %v11064_v58 = vld [vmem:[%s10930_s6 + $0xd0] sm:$0xff]  ;;  %v11067_v59 = vld [vmem:[%s10930_s6 + $0xd8] sm:$0xff]  ;;  %v501_v34 = vsel %vm437_vm6, %v10957_v21, %v469_v19  ;;  %vm438_vm7 = vcmp.ge.f32.partialorder %v10964_v23, 0.0  ;;  %vm439_vm8 = vcmp.ge.f32.partialorder %v10967_v24, 0.0 }
  0x20   : > { %227 = vst [vmem:[#allocation2 + $0xc8] sm:$0xff] %v11048_v54  ;;  %228 = vst [vmem:[#allocation2 + $0xd0] sm:$0xff] %v11060_v57  ;;  %v11073_v61 = vld [vmem:[%s10930_s6 + $0xe0] sm:$0xff]  ;;  %v11082_v1 = vld [vmem:[%s10930_s6 + $0xe8] sm:$0xff]  ;;  %v471_v35 = vmul.f32 0.1, %v10967_v24  ;;  %v502_v21 = vsel %vm438_vm7, %v10964_v23, %v470_v33 }
  0x21   : > { %9921 = vmatpush3.bf16.msra.mxu0 %v9918_v44  ;;  %229 = vst [vmem:[#allocation2 + $0xd8] sm:$0xff] %v11064_v58  ;;  %230 = vst [vmem:[#allocation2 + $0xe0] sm:$0xff] %v11067_v59  ;;  %v11090_v3 = vld [vmem:[%s10930_s6 + $0xf0] sm:$0xff]  ;;  %v11093_v4 = vld [vmem:[%s10930_s6 + $0xf8] sm:$0xff]  ;;  %v472_v39 = vmul.f32 0.1, %v10972_v25 }
  0x22   : > { %9923 = vmatprep.subr.bf16.mxu0 %v9922_v51  ;;  %231 = vst [vmem:[#allocation2 + $0xe8] sm:$0xff] %v11073_v61  ;;  %232 = vst [vmem:[#allocation2 + $0xf0] sm:$0xff] %v11082_v1  ;;  %v235_v5 = vld [vmem:[#allocation2 + $0x9] sm:$0x1]  ;;  %v387_v11 = vld [vmem:[%s12289_s1 + $0x20] sm:$0xff]  ;;  %v503_v44 = vsel %vm439_vm8, %v10967_v24, %v471_v35  ;;  %vm440_vm9 = vcmp.ge.f32.partialorder %v10972_v25, 0.0 }
  0x23   : > { %233 = vst [vmem:[#allocation2 + $0xf8] sm:$0xff] %v11090_v3  ;;  %234 = vst [vmem:[#allocation2 + $0x100] sm:$0xff] %v11093_v4  ;;  %v388_v12 = vld [vmem:[%s12289_s1 + $0x28] sm:$0xff]  ;;  %v390_v15 = vld [vmem:[%s12289_s1 + $0x38] sm:$0xff]  ;;  %v473_v45 = vmul.f32 0.1, %v10979_v27  ;;  %v504_v24 = vsel %vm440_vm9, %v10972_v25, %v472_v39 }
  0x24   : > { %236 = vst [vmem:[#allocation2 + $0x7] sm:$0x1] %v235_v5  ;;  %v9934_v20 = vpack.c.bf16 %v388_v12, %v387_v11  ;;  %v9938_v37 = vpack.c.bf16 %v390_v15, %v389_v22  ;;  %v391_v17 = vld [vmem:[%s12289_s1 + $0x40] sm:$0xff]  ;;  %vm441_vm10 = vcmp.ge.f32.partialorder %v10979_v27, 0.0  ;;  %v394_v23 = vld [vmem:[%s12289_s1 + $0x58] sm:$0xff]  ;;  %vm442_vm11 = vcmp.ge.f32.partialorder %v10986_v30, 0.0 }
  0x25   : > { %9925 = vmatpush3.bf16.msra.mxu0 %v9922_v51  ;;  %v9942_v46 = vpack.c.bf16 %v392_v38, %v391_v17  ;;  %v393_v51 = vld [vmem:[%s12289_s1 + $0x50] sm:$0xff]  ;;  %v474_v55 = vmul.f32 0.1, %v10986_v30  ;;  %v505_v56 = vsel %vm441_vm10, %v10979_v27, %v473_v45  ;;  %v475_v60 = vmul.f32 0.1, %v10989_v31  ;;  %v395_v63 = vld [vmem:[%s12289_s1 + $0x60] sm:$0xff] }
  0x26   : > { %9927 = vmatprep.subr.bf16.mxu0 %v9926_v62  ;;  %vm443_vm12 = vcmp.ge.f32.partialorder %v10989_v31, 0.0  ;;  %v396_v25 = vld [vmem:[%s12289_s1 + $0x68] sm:$0xff]  ;;  %v476_v0 = vmul.f32 0.1, %v10994_v36  ;;  %vm444_vm13 = vcmp.ge.f32.partialorder %v10994_v36, 0.0  ;;  %vm445_vm14 = vcmp.ge.f32.partialorder %v11004_v40, 0.0 }
  0x27   : > { %v506_v27 = vsel %vm442_vm11, %v10986_v30, %v474_v55  ;;  %v507_v2 = vsel %vm443_vm12, %v10989_v31, %v475_v60  ;;  %v477_v5 = vmul.f32 0.1, %v11004_v40  ;;  %v397_v7 = vld [vmem:[%s12289_s1 + $0x70] sm:$0xff]  ;;  %v398_v30 = vld [vmem:[%s12289_s1 + $0x78] sm:$0xff]  ;;  %vm446_vm15 = vcmp.ge.f32.partialorder %v11007_v41, 0.0  ;;  %v7324_v12 = vld [vmem:[%s12289_s1 + $0x100] sm:$0xff] }
  0x28   : > { %8487 = vmatmul.mubr.f32.vlgmr.msra.gmra.mrb[0].mxu0 %v496_v6  ;;  %v9950_v6 = vpack.c.bf16 %v396_v25, %v395_v63  ;;  %v508_v31 = vsel %vm444_vm13, %v10994_v36, %v476_v0  ;;  %v9954_v11 = vpack.c.bf16 %v398_v30, %v397_v7  ;;  %vm447_vm0 = vcmp.ge.f32.partialorder %v11012_v42, 0.0  ;;  %v7325_v36 = vld [vmem:[%s12289_s1 + $0x108] sm:$0xff]  ;;  %v258_v55 = vld [vmem:[#allocation2 + $0x1f] sm:$0xff]  ;;  %v261_v30 = vld [vmem:[#allocation2 + $0x37] sm:$0xff] }
  0x29   : > { %9929 = vmatpush3.bf16.msra.mxu0 %v9926_v62  ;;  %8489 = vmatprep.mubr.f32.mxu0 %v497_v8  ;;  %v9946_v62 = vpack.c.bf16 %v394_v23, %v393_v51  ;;  %v478_v8 = vmul.f32 0.1, %v11007_v41  ;;  %v509_v9 = vsel %vm445_vm14, %v11004_v40, %v477_v5  ;;  %vm448_vm1 = vcmp.ge.f32.partialorder %v11015_v43, 0.0  ;;  %v256_v45 = vld [vmem:[#allocation2 + $0xf] sm:$0xff]  ;;  %v7360_v0 = vld [vmem:[%s12289_s1 + $0x218] sm:$0xff] }
  0x2a   : > { %9931 = vmatprep.subr.bf16.mxu0 %v9930_v10  ;;  %v241_v26 = vld [vmem:[#allocation2 + $0x105] sm:$0x1]  ;;  %v245_v28 = vld [vmem:[#allocation2 + $0x104] sm:$0x1]  ;;  %v249_v29 = vld [vmem:[#allocation2 + $0x103] sm:$0x1]  ;;  %v11190_v19 = vpack.c.bf16 %v7325_v36, %v7324_v12 }
  0x2b   : > { %v253_v32 = vld [vmem:[#allocation2 + $0x102] sm:$0x1]  ;;  %242 = vst [vmem:[#allocation2 + $0x109] sm:$0x1] %v241_v26  ;;  %246 = vst [vmem:[#allocation2 + $0x10a] sm:$0x1] %v245_v28  ;;  %v510_v40 = vsel %vm446_vm15, %v11007_v41, %v478_v8 }
  0x2c   : > { %8490 = vmatmul.mubr.f32.gmra.mrb[2].mxu0 %v498_v13  ;;  %250 = vst [vmem:[#allocation2 + $0x10b] sm:$0x1] %v249_v29  ;;  %254 = vst [vmem:[#allocation2 + $0x10c] sm:$0x1] %v253_v32  ;;  %v480_v13 = vmul.f32 0.1, %v11015_v43 }
  0x2d   : > { %8492 = vmatprep.mubr.f32.mxu0 %v499_v18  ;;  %9933 = vmatpush3.bf16.msra.mxu0 %v9930_v10  ;;  %v479_v10 = vmul.f32 0.1, %v11012_v42  ;;  %v481_v18 = vmul.f32 0.1, %v11026_v47  ;;  %vm449_vm2 = vcmp.ge.f32.partialorder %v11026_v47, 0.0  ;;  %vm450_vm3 = vcmp.ge.f32.partialorder %v11029_v48, 0.0 }
  0x2e   : > { %9935 = vmatprep.subr.bf16.mxu0 %v9934_v20  ;;  %v482_v41 = vmul.f32 0.1, %v11029_v48  ;;  %vm451_vm4 = vcmp.ge.f32.partialorder %v11032_v49, 0.0  ;;  %v484_v26 = vmul.f32 0.1, %v11038_v50  ;;  %vm452_vm5 = vcmp.ge.f32.partialorder %v11038_v50, 0.0 }
  0x2f   : > { %v511_v14 = vsel %vm447_vm0, %v11012_v42, %v479_v10  ;;  %v513_v22 = vsel %vm449_vm2, %v11026_v47, %v481_v18  ;;  %v483_v42 = vmul.f32 0.1, %v11032_v49  ;;  %v485_v47 = vmul.f32 0.1, %v11042_v52  ;;  %v255_v38 = vld [vmem:[#allocation2 + $0x7] sm:$0xff] }
  0x30   : > { %8493 = vmatmul.mubr.f32.gmra.mrb[4].mxu0 %v500_v16  ;;  %v514_v15 = vsel %vm450_vm3, %v11029_v48, %v482_v41  ;;  %vm453_vm6 = vcmp.ge.f32.partialorder %v11042_v52, 0.0  ;;  %v516_v28 = vsel %vm452_vm5, %v11038_v50, %v484_v26  ;;  %v486_v29 = vmul.f32 0.1, %v11045_v53  ;;  %v7358_v60 = vld [vmem:[%s12289_s1 + $0x208] sm:$0xff]  ;;  %v7361_v10 = vld [vmem:[%s12289_s1 + $0x220] sm:$0xff]  ;;  %v7330_v41 = vld [vmem:[%s12289_s1 + $0x130] sm:$0xff] }
  0x31   : > { %8495 = vmatprep.mubr.f32.mxu0 %v501_v34  ;;  %9937 = vmatpush3.bf16.msra.mxu0 %v9934_v20  ;;  %v512_v20 = vsel %vm448_vm1, %v11015_v43, %v480_v13  ;;  %v515_v43 = vsel %vm451_vm4, %v11032_v49, %v483_v42  ;;  %v517_v32 = vsel %vm453_vm6, %v11042_v52, %v485_v47  ;;  %vm454_vm7 = vcmp.ge.f32.partialorder %v11045_v53, 0.0  ;;  %v263_v18 = vld [vmem:[#allocation2 + $0x47] sm:$0xff]  ;;  %v7363_v42 = vld [vmem:[%s12289_s1 + $0x230] sm:$0xff] }
  0x32   : > { %9939 = vmatprep.subr.bf16.mxu0 %v9938_v37  ;;  %v487_v48 = vmul.f32 0.1, %v11048_v54  ;;  %vm455_vm8 = vcmp.ge.f32.partialorder %v11048_v54, 0.0  ;;  %v518_v49 = vsel %vm454_vm7, %v11045_v53, %v486_v29  ;;  %v488_v16 = vmul.f32 0.1, %v11060_v57  ;;  %v264_v29 = vld [vmem:[#allocation2 + $0x4f] sm:$0xff] }
  0x33   : > { %vm456_vm9 = vcmp.ge.f32.partialorder %v11060_v57, 0.0  ;;  %v489_v50 = vmul.f32 0.1, %v11064_v58  ;;  %vm457_vm10 = vcmp.ge.f32.partialorder %v11064_v58, 0.0  ;;  %v490_v34 = vmul.f32 0.1, %v11067_v59 }
  0x34   : > { %8496 = vmatmul.mubr.f32.gmra.mrb[6].mxu0 %v502_v21  ;;  %v519_v33 = vsel %vm455_vm8, %v11048_v54, %v487_v48  ;;  %v520_v52 = vsel %vm456_vm9, %v11060_v57, %v488_v16  ;;  %vm458_vm11 = vcmp.ge.f32.partialorder %v11067_v59, 0.0  ;;  %v491_v53 = vmul.f32 0.1, %v11073_v61  ;;  %v237_v54 = vld [vmem:[#allocation2 + $0x106] sm:$0x1] }
  0x35   : > { %8498 = vmatprep.mubr.f32.mxu0 %v503_v44  ;;  %9941 = vmatpush3.bf16.msra.mxu0 %v9938_v37  ;;  %v521_v35 = vsel %vm457_vm10, %v11064_v58, %v489_v50  ;;  %vm459_vm12 = vcmp.ge.f32.partialorder %v11073_v61, 0.0  ;;  %v522_v37 = vsel %vm458_vm11, %v11067_v59, %v490_v34  ;;  %v492_v17 = vmul.f32 0.1, %v11082_v1  ;;  %238 = vst [vmem:[#allocation2 + $0x108] sm:$0x1] %v237_v54  ;;  %v7332_v16 = vld [vmem:[%s12289_s1 + $0x140] sm:$0xff] }
  0x36   : > { %9943 = vmatprep.subr.bf16.mxu0 %v9942_v46  ;;  %v523_v57 = vsel %vm459_vm12, %v11073_v61, %v491_v53  ;;  %vm460_vm13 = vcmp.ge.f32.partialorder %v11082_v1, 0.0  ;;  %v493_v58 = vmul.f32 0.1, %v11090_v3  ;;  %vm461_vm14 = vcmp.ge.f32.partialorder %v11090_v3, 0.0  ;;  %v257_v61 = vld [vmem:[#allocation2 + $0x17] sm:$0xff]  ;;  %v266_v53 = vld [vmem:[#allocation2 + $0x5f] sm:$0xff] }
  0x37   : > { %v524_v21 = vsel %vm460_vm13, %v11082_v1, %v492_v17  ;;  %v494_v39 = vmul.f32 0.1, %v11093_v4  ;;  %vm462_vm15 = vcmp.ge.f32.partialorder %v11093_v4, 0.0  ;;  %v319_v44 = vmul.f32 0.1, %v255_v38  ;;  %v259_v1 = vld [vmem:[#allocation2 + $0x27] sm:$0xff] }
  0x38   : > { %8499 = vmatmul.mubr.f32.gmra.mrb[8].mxu0 %v504_v24  ;;  %v525_v59 = vsel %vm461_vm14, %v11090_v3, %v493_v58  ;;  %vm287_vm0 = vcmp.ge.f32.partialorder %v255_v38, 0.0  ;;  %v320_v51 = vmul.f32 0.1, %v256_v45  ;;  %vm288_vm1 = vcmp.ge.f32.partialorder %v256_v45, 0.0  ;;  %v7326_v3 = vld [vmem:[%s12289_s1 + $0x110] sm:$0xff] }
  0x39   : > { %8501 = vmatprep.mubr.f32.mxu0 %v505_v56  ;;  %9945 = vmatpush3.bf16.msra.mxu0 %v9942_v46  ;;  %v526_v46 = vsel %vm462_vm15, %v11093_v4, %v494_v39  ;;  %v351_v23 = vsel %vm287_vm0, %v255_v38, %v319_v44  ;;  %v321_v24 = vmul.f32 0.1, %v257_v61  ;;  %vm289_vm2 = vcmp.ge.f32.partialorder %v257_v61, 0.0  ;;  %v7327_v56 = vld [vmem:[%s12289_s1 + $0x118] sm:$0xff]  ;;  %v7357_v4 = vld [vmem:[%s12289_s1 + $0x200] sm:$0xff]  ;;  %v7334_v17 = vld [vmem:[%s12289_s1 + $0x150] sm:$0xff] }
  0x3a   : > { %9947 = vmatprep.subr.bf16.mxu0 %v9946_v62  ;;  %v352_v63 = vsel %vm288_vm1, %v256_v45, %v320_v51  ;;  %vm290_vm3 = vcmp.ge.f32.partialorder %v258_v55, 0.0  ;;  %v322_v25 = vmul.f32 0.1, %v258_v55  ;;  %v323_v5 = vmul.f32 0.1, %v259_v1  ;;  %v269_v45 = vld [vmem:[#allocation2 + $0x77] sm:$0xff] }
  0x3b   : > { %v9962_v7 = vpack.c.bf16 %v7327_v56, %v7326_v3  ;;  %vm291_vm4 = vcmp.ge.f32.partialorder %v259_v1, 0.0  ;;  %v325_v13 = vmul.f32 0.1, %v261_v30  ;;  %vm293_vm6 = vcmp.ge.f32.partialorder %v261_v30, 0.0  ;;  %v271_v56 = vld [vmem:[#allocation2 + $0x87] sm:$0xff] }
  0x3c   : > { %8502 = vmatmul.mubr.f32.gmra.mrb[10].mxu0 %v506_v27  ;;  %v9990_v27 = vpack.c.bf16 %v7358_v60, %v7357_v4  ;;  %v354_v12 = vsel %vm290_vm3, %v258_v55, %v322_v25  ;;  %vm295_vm8 = vcmp.ge.f32.partialorder %v263_v18, 0.0  ;;  %vm296_vm9 = vcmp.ge.f32.partialorder %v264_v29, 0.0  ;;  %v7338_v4 = vld [vmem:[%s12289_s1 + $0x170] sm:$0xff]  ;;  %v7339_v60 = vld [vmem:[%s12289_s1 + $0x178] sm:$0xff] }
  0x3d   : > { %8504 = vmatprep.mubr.f32.mxu0 %v507_v2  ;;  %9949 = vmatpush3.bf16.msra.mxu0 %v9946_v62  ;;  %v7359_v62 = vld [vmem:[%s12289_s1 + $0x210] sm:$0xff]  ;;  %v353_v2 = vsel %vm289_vm2, %v257_v61, %v321_v24  ;;  %v357_v47 = vsel %vm293_vm6, %v261_v30, %v325_v13  ;;  %v330_v38 = vmul.f32 0.1, %v266_v53  ;;  %vm298_vm11 = vcmp.ge.f32.partialorder %v266_v53, 0.0  ;;  %v7336_v61 = vld [vmem:[%s12289_s1 + $0x160] sm:$0xff] }
  0x3e   : > { %9951 = vmatprep.subr.bf16.mxu0 %v9950_v6  ;;  %v9994_v8 = vpack.c.bf16 %v7360_v0, %v7359_v62  ;;  %9991 = vmatprep.subr.bf16.mxu1 %v9990_v27  ;;  %v333_v55 = vmul.f32 0.1, %v269_v45  ;;  %vm301_vm14 = vcmp.ge.f32.partialorder %v269_v45, 0.0  ;;  %v272_v0 = vld [vmem:[#allocation2 + $0x8f] sm:$0xff]  ;;  %vm303_vm0 = vcmp.ge.f32.partialorder %v271_v56, 0.0  ;;  %v277_v13 = vld [vmem:[#allocation2 + $0xb7] sm:$0xff] }
  0x3f   : > { %9993 = vmatpush3.bf16.msra.mxu1 %v9990_v27  ;;  %v362_v51 = vsel %vm298_vm11, %v266_v53, %v330_v38  ;;  %v335_v27 = vmul.f32 0.1, %v271_v56  ;;  %vm304_vm1 = vcmp.ge.f32.partialorder %v272_v0, 0.0  ;;  %vm309_vm6 = vcmp.ge.f32.partialorder %v277_v13, 0.0  ;;  %v284_v53 = vld [vmem:[#allocation2 + $0xef] sm:$0xff]  ;;  %v286_v38 = vld [vmem:[#allocation2 + $0xff] sm:$0xff] }
  0x40   : > { %8505 = vmatmul.mubr.f32.gmra.mrb[12].mxu0 %v508_v31  ;;  %v7328_v31 = vld [vmem:[%s12289_s1 + $0x120] sm:$0xff]  ;;  %9995 = vmatprep.subr.bf16.mxu1 %v9994_v8  ;;  %v365_v25 = vsel %vm301_vm14, %v269_v45, %v333_v55 }
  0x41   : > { %8507 = vmatprep.mubr.f32.mxu0 %v509_v9  ;;  %9953 = vmatpush3.bf16.msra.mxu0 %v9950_v6  ;;  %v260_v6 = vld [vmem:[#allocation2 + $0x2f] sm:$0xff]  ;;  %v367_v30 = vsel %vm303_vm0, %v271_v56, %v335_v27 }
  0x42   : > { %9955 = vmatprep.subr.bf16.mxu0 %v9954_v11  ;;  %v7329_v9 = vld [vmem:[%s12289_s1 + $0x128] sm:$0xff]  ;;  %vm292_vm5 = vcmp.ge.f32.partialorder %v260_v6, 0.0  ;;  %v324_v36 = vmul.f32 0.1, %v260_v6 }
  0x43   : > { %9997 = vmatpush3.bf16.msra.mxu1 %v9994_v8  ;;  %v274_v8 = vld [vmem:[#allocation2 + $0x9f] sm:$0xff] }
  0x44   : > { %8508 = vmatmul.mubr.f32.gmra.mrb[14].mxu0 %v510_v40  ;;  %v355_v40 = vsel %vm291_vm4, %v259_v1, %v323_v5  ;;  %v356_v26 = vsel %vm292_vm5, %v260_v6, %v324_v36  ;;  %v270_v1 = vld [vmem:[#allocation2 + $0x7f] sm:$0xff]  ;;  %v273_v5 = vld [vmem:[#allocation2 + $0x97] sm:$0xff]  ;;  %vm306_vm3 = vcmp.ge.f32.partialorder %v274_v8, 0.0 }
  0x45   : > { %8510 = vmatprep.mubr.f32.mxu0 %v511_v14  ;;  %9957 = vmatpush3.bf16.msra.mxu0 %v9954_v11  ;;  %v7362_v11 = vld [vmem:[%s12289_s1 + $0x228] sm:$0xff]  ;;  %v262_v14 = vld [vmem:[#allocation2 + $0x3f] sm:$0xff]  ;;  %vm302_vm15 = vcmp.ge.f32.partialorder %v270_v1, 0.0  ;;  %vm305_vm2 = vcmp.ge.f32.partialorder %v273_v5, 0.0 }
  0x46   : > { %9959 = vmatprep.subr.bf16.mxu0 %v11190_v19  ;;  %vm294_vm7 = vcmp.ge.f32.partialorder %v262_v14, 0.0 }
  0x48   : > { %8511 = vmatmul.mubr.f32.gmra.mrb[16].mxu0 %v512_v20  ;;  %v9966_v20 = vpack.c.bf16 %v7329_v9, %v7328_v31  ;;  %v337_v31 = vmul.f32 0.1, %v273_v5  ;;  %v275_v9 = vld [vmem:[#allocation2 + $0xa7] sm:$0xff] }
  0x49   : > { %8513 = vmatprep.mubr.f32.mxu0 %v513_v22  ;;  %v9998_v22 = vpack.c.bf16 %v7362_v11, %v7361_v10  ;;  %v338_v11 = vmul.f32 0.1, %v274_v8  ;;  %v339_v36 = vmul.f32 0.1, %v275_v9  ;;  %vm307_vm4 = vcmp.ge.f32.partialorder %v275_v9, 0.0 }
  0x4b   : > { %9999 = vmatprep.subr.bf16.mxu1 %v9998_v22 }
  0x4c   : > { %8514 = vmatmul.mubr.f32.gmra.mrb[18].mxu0 %v514_v15  ;;  %v7364_v15 = vld [vmem:[%s12289_s1 + $0x238] sm:$0xff]  ;;  %10001 = vmatpush3.bf16.msra.mxu1 %v9998_v22 }
  0x4d   : > { %8516 = vmatprep.mubr.f32.mxu0 %v515_v43  ;;  %v326_v43 = vmul.f32 0.1, %v262_v14  ;;  %v10002_v48 = vpack.c.bf16 %v7364_v15, %v7363_v42  ;;  %v278_v22 = vld [vmem:[#allocation2 + $0xbf] sm:$0xff] }
  0x4e   : > { %v342_v15 = vmul.f32 0.1, %v278_v22 }
  0x4f   : > { %v358_v50 = vsel %vm294_vm7, %v262_v14, %v326_v43  ;;  %10003 = vmatprep.subr.bf16.mxu1 %v10002_v48  ;;  %v370_v14 = vsel %vm306_vm3, %v274_v8, %v338_v11  ;;  %vm310_vm7 = vcmp.ge.f32.partialorder %v278_v22, 0.0  ;;  %v1004_v11 = vld [vmem:[#allocation2 + $0x59] sm:$0xff] }
  0x50   : > { %8517 = vmatmul.mubr.f32.gmra.mrb[20].mxu0 %v516_v28  ;;  %v327_v28 = vmul.f32 0.1, %v263_v18  ;;  %10005 = vmatpush3.bf16.msra.mxu1 %v10002_v48 }
  0x51   : > { %8519 = vmatprep.mubr.f32.mxu0 %v517_v32 }
  0x52   : > { %v359_v34 = vsel %vm295_vm8, %v263_v18, %v327_v28  ;;  %v281_v28 = vld [vmem:[#allocation2 + $0xd7] sm:$0xff] }
  0x54   : > { %8520 = vmatmul.mubr.f32.gmra.mrb[22].mxu0 %v518_v49  ;;  %v265_v49 = vld [vmem:[#allocation2 + $0x57] sm:$0xff] }
  0x55   : > { %8522 = vmatprep.mubr.f32.mxu0 %v519_v33  ;;  %v7333_v33 = vld [vmem:[%s12289_s1 + $0x148] sm:$0xff]  ;;  %vm297_vm10 = vcmp.ge.f32.partialorder %v265_v49, 0.0 }
  0x56   : > { %v9974_v54 = vpack.c.bf16 %v7333_v33, %v7332_v16  ;;  %v282_v16 = vld [vmem:[#allocation2 + $0xdf] sm:$0xff]  ;;  %v283_v33 = vld [vmem:[#allocation2 + $0xe7] sm:$0xff] }
  0x57   : > { %vm314_vm11 = vcmp.ge.f32.partialorder %v282_v16, 0.0 }
  0x58   : > { %8523 = vmatmul.mubr.f32.gmra.mrb[24].mxu0 %v520_v52  ;;  %v328_v52 = vmul.f32 0.1, %v264_v29 }
  0x59   : > { %8525 = vmatprep.mubr.f32.mxu0 %v521_v35  ;;  %v329_v35 = vmul.f32 0.1, %v265_v49 }
  0x5a   : > { %v360_v58 = vsel %vm296_vm9, %v264_v29, %v328_v52  ;;  %v374_v29 = vsel %vm310_vm7, %v278_v22, %v342_v15  ;;  %v346_v52 = vmul.f32 0.1, %v282_v16  ;;  %v1008_v15 = vld [vmem:[#allocation2 + $0x79] sm:$0xff] }
  0x5c   : > { %8526 = vmatmul.mubr.f32.gmra.mrb[26].mxu0 %v522_v37  ;;  %v267_v37 = vld [vmem:[#allocation2 + $0x67] sm:$0xff] }
  0x5d   : > { %8528 = vmatprep.mubr.f32.mxu0 %v523_v57  ;;  %v7335_v57 = vld [vmem:[%s12289_s1 + $0x158] sm:$0xff]  ;;  %v331_v39 = vmul.f32 0.1, %v267_v37  ;;  %vm299_vm12 = vcmp.ge.f32.partialorder %v267_v37, 0.0 }
  0x5e   : > { %v9978_v44 = vpack.c.bf16 %v7335_v57, %v7334_v17  ;;  %v348_v17 = vmul.f32 0.1, %v284_v53 }
  0x5f   : > { %v363_v24 = vsel %vm299_vm12, %v267_v37, %v331_v39  ;;  %vm315_vm12 = vcmp.ge.f32.partialorder %v283_v33, 0.0  ;;  %v378_v37 = vsel %vm314_vm11, %v282_v16, %v346_v52  ;;  %v1012_v52 = vld [vmem:[#allocation2 + $0x99] sm:$0xff] }
  0x60   : > { %8529 = vmatmul.mubr.f32.gmra.mrb[28].mxu0 %v524_v21  ;;  %v361_v21 = vsel %vm297_vm10, %v265_v49, %v329_v35  ;;  %v345_v49 = vmul.f32 0.1, %v281_v28  ;;  %vm313_vm10 = vcmp.ge.f32.partialorder %v281_v28, 0.0  ;;  %v347_v35 = vmul.f32 0.1, %v283_v33 }
  0x61   : > { %8531 = vmatprep.mubr.f32.mxu0 %v525_v59  ;;  %v268_v59 = vld [vmem:[#allocation2 + $0x6f] sm:$0xff] }
  0x62   : > { %vm300_vm13 = vcmp.ge.f32.partialorder %v268_v59, 0.0  ;;  %v379_v57 = vsel %vm315_vm12, %v283_v33, %v347_v35 }
  0x64   : > { %8532 = vmatmul.mubr.f32.gmra.mrb[30].mxu0 %v526_v46  ;;  %v7337_v46 = vld [vmem:[%s12289_s1 + $0x168] sm:$0xff] }
  0x65   : > { %8566 = vmatprep.mubr.f32.mxu0 %v351_v23  ;;  %v332_v23 = vmul.f32 0.1, %v268_v59  ;;  %v9982_v3 = vpack.c.bf16 %v7337_v46, %v7336_v61  ;;  %v995_v61 = vld [vmem:[#allocation2 + $0x11] sm:$0xff]  ;;  %v996_v46 = vld [vmem:[#allocation2 + $0x19] sm:$0xff] }
  0x66   : > { %v1060_v55 = vmul.f32 0.1, %v996_v46 }
  0x67   : > { %v364_v62 = vsel %vm300_vm13, %v268_v59, %v332_v23  ;;  %vm316_vm13 = vcmp.ge.f32.partialorder %v284_v53, 0.0  ;;  %v350_v59 = vmul.f32 0.1, %v286_v38  ;;  %v1059_v23 = vmul.f32 0.1, %v995_v61 }
  0x68   : > { %8567 = vmatmul.mubr.f32.vlgmr.msra.gmra.mrb[0].mxu0 %v352_v63  ;;  %v334_v63 = vmul.f32 0.1, %v270_v1  ;;  %v380_v39 = vsel %vm316_vm13, %v284_v53, %v348_v17  ;;  %v1014_v17 = vld [vmem:[#allocation2 + $0xa9] sm:$0xff] }
  0x69   : > { %9961 = vmatpush3.bf16.msra.mxu0 %v11190_v19  ;;  %8569 = vmatprep.mubr.f32.mxu0 %v353_v2  ;;  %v7331_v19 = vld [vmem:[%s12289_s1 + $0x138] sm:$0xff]  ;;  %v9986_v2 = vpack.c.bf16 %v7339_v60, %v7338_v4 }
  0x6a   : > { %9963 = vmatprep.subr.bf16.mxu0 %v9962_v7  ;;  %v9970_v32 = vpack.c.bf16 %v7331_v19, %v7330_v41  ;;  %v366_v6 = vsel %vm302_vm15, %v270_v1, %v334_v63  ;;  %v341_v41 = vmul.f32 0.1, %v277_v13  ;;  %v279_v19 = vld [vmem:[#allocation2 + $0xc7] sm:$0xff]  ;;  %vm318_vm15 = vcmp.ge.f32.partialorder %v286_v38, 0.0  ;;  %v999_v63 = vld [vmem:[#allocation2 + $0x31] sm:$0xff] }
  0x6b   : > { %v343_v43 = vmul.f32 0.1, %v279_v19  ;;  %vm311_vm8 = vcmp.ge.f32.partialorder %v279_v19, 0.0  ;;  %v997_v1 = vld [vmem:[#allocation2 + $0x21] sm:$0xff] }
  0x6c   : > { %8570 = vmatmul.mubr.f32.gmra.mrb[2].mxu0 %v354_v12  ;;  %v369_v12 = vsel %vm305_vm2, %v273_v5, %v337_v31  ;;  %vm1028_vm2 = vcmp.ge.f32.partialorder %v996_v46, 0.0  ;;  %v1061_v4 = vmul.f32 0.1, %v997_v1  ;;  %vm1029_vm3 = vcmp.ge.f32.partialorder %v997_v1, 0.0 }
  0x6d   : > { %8572 = vmatprep.mubr.f32.mxu0 %v355_v40  ;;  %9965 = vmatpush3.bf16.msra.mxu0 %v9962_v7  ;;  %v336_v7 = vmul.f32 0.1, %v272_v0  ;;  %v276_v40 = vld [vmem:[#allocation2 + $0xaf] sm:$0xff]  ;;  %v375_v48 = vsel %vm311_vm8, %v279_v19, %v343_v43  ;;  %v1092_v60 = vsel %vm1028_vm2, %v996_v46, %v1060_v55  ;;  %vm1044_vm2 = vcmp.ge.f32.partialorder %v1012_v52, 0.0 }
  0x6e   : > { %9967 = vmatprep.subr.bf16.mxu0 %v9966_v20  ;;  %v340_v18 = vmul.f32 0.1, %v276_v40  ;;  %vm308_vm5 = vcmp.ge.f32.partialorder %v276_v40, 0.0  ;;  %v1093_v27 = vsel %vm1029_vm3, %v997_v1, %v1061_v4  ;;  %v1020_v4 = vld [vmem:[#allocation2 + $0xd9] sm:$0xff] }
  0x6f   : > { %v368_v10 = vsel %vm304_vm1, %v272_v0, %v336_v7  ;;  %vm1027_vm1 = vcmp.ge.f32.partialorder %v995_v61, 0.0  ;;  %v1063_v0 = vmul.f32 0.1, %v999_v63  ;;  %v1002_v7 = vld [vmem:[#allocation2 + $0x49] sm:$0xff] }
  0x70   : > { %8573 = vmatmul.mubr.f32.gmra.mrb[4].mxu0 %v356_v26  ;;  %v372_v42 = vsel %vm308_vm5, %v276_v40, %v340_v18  ;;  %v373_v26 = vsel %vm309_vm6, %v277_v13, %v341_v41  ;;  %v1091_v56 = vsel %vm1027_vm1, %v995_v61, %v1059_v23  ;;  %vm1031_vm5 = vcmp.ge.f32.partialorder %v999_v63, 0.0  ;;  %v1006_v18 = vld [vmem:[#allocation2 + $0x69] sm:$0xff] }
  0x71   : > { %8575 = vmatprep.mubr.f32.mxu0 %v357_v47  ;;  %9969 = vmatpush3.bf16.msra.mxu0 %v9966_v20  ;;  %v371_v20 = vsel %vm307_vm4, %v275_v9, %v339_v36  ;;  %v280_v47 = vld [vmem:[#allocation2 + $0xcf] sm:$0xff]  ;;  %v1066_v9 = vmul.f32 0.1, %v1002_v7  ;;  %vm1034_vm8 = vcmp.ge.f32.partialorder %v1002_v7, 0.0  ;;  %v1068_v13 = vmul.f32 0.1, %v1004_v11 }
  0x72   : > { %9971 = vmatprep.subr.bf16.mxu0 %v9970_v32  ;;  %vm312_vm9 = vcmp.ge.f32.partialorder %v280_v47, 0.0  ;;  %v1070_v19 = vmul.f32 0.1, %v1006_v18  ;;  %vm1038_vm12 = vcmp.ge.f32.partialorder %v1006_v18, 0.0  ;;  %v1018_v23 = vld [vmem:[#allocation2 + $0xc9] sm:$0xff] }
  0x73   : > { %v1098_v40 = vsel %vm1034_vm8, %v1002_v7, %v1066_v9  ;;  %vm1050_vm8 = vcmp.ge.f32.partialorder %v1018_v23, 0.0 }
  0x74   : > { %8576 = vmatmul.mubr.f32.gmra.mrb[6].mxu0 %v358_v50 }
  0x75   : > { %8578 = vmatprep.mubr.f32.mxu0 %v359_v34  ;;  %9973 = vmatpush3.bf16.msra.mxu0 %v9970_v32  ;;  %v344_v32 = vmul.f32 0.1, %v280_v47  ;;  %v377_v34 = vsel %vm313_vm10, %v281_v28, %v345_v49  ;;  %vm1036_vm10 = vcmp.ge.f32.partialorder %v1004_v11, 0.0  ;;  %v1072_v28 = vmul.f32 0.1, %v1008_v15 }
  0x76   : > { %9975 = vmatprep.subr.bf16.mxu0 %v9974_v54  ;;  %v1100_v22 = vsel %vm1036_vm10, %v1004_v11, %v1068_v13  ;;  %vm1052_vm10 = vcmp.ge.f32.partialorder %v1020_v4, 0.0 }
  0x77   : > { %v376_v50 = vsel %vm312_vm9, %v280_v47, %v344_v32  ;;  %v1102_v47 = vsel %vm1038_vm12, %v1006_v18, %v1070_v19  ;;  %v1010_v32 = vld [vmem:[#allocation2 + $0x89] sm:$0xff]  ;;  %v7365_v18 = vld [vmem:[%s12289_s1 + $0x240] sm:$0xff]  ;;  %v7368_v19 = vld [vmem:[%s12289_s1 + $0x258] sm:$0xff] }
  0x78   : > { %8579 = vmatmul.mubr.f32.gmra.mrb[8].mxu0 %v360_v58  ;;  %v1074_v33 = vmul.f32 0.1, %v1010_v32 }
  0x79   : > { %8581 = vmatprep.mubr.f32.mxu0 %v361_v21  ;;  %9977 = vmatpush3.bf16.msra.mxu0 %v9974_v54  ;;  %v285_v54 = vld [vmem:[#allocation2 + $0xf7] sm:$0xff]  ;;  %v994_v21 = vld [vmem:[#allocation2 + $0x9] sm:$0xff] }
  0x7a   : > { %9979 = vmatprep.subr.bf16.mxu0 %v9978_v44  ;;  %v349_v58 = vmul.f32 0.1, %v285_v54  ;;  %vm317_vm14 = vcmp.ge.f32.partialorder %v285_v54, 0.0  ;;  %v1058_v45 = vmul.f32 0.1, %v994_v21  ;;  %vm1026_vm0 = vcmp.ge.f32.partialorder %v994_v21, 0.0 }
  0x7c   : > { %8582 = vmatmul.mubr.f32.gmra.mrb[10].mxu0 %v362_v51  ;;  %v382_v51 = vsel %vm318_vm15, %v286_v38, %v350_v59  ;;  %v1016_v59 = vld [vmem:[#allocation2 + $0xb9] sm:$0xff] }
  0x7d   : > { %8584 = vmatprep.mubr.f32.mxu0 %v363_v24  ;;  %9981 = vmatpush3.bf16.msra.mxu0 %v9978_v44  ;;  %v381_v44 = vsel %vm317_vm14, %v285_v54, %v349_v58  ;;  %v1090_v24 = vsel %vm1026_vm0, %v994_v21, %v1058_v45  ;;  %vm1040_vm14 = vcmp.ge.f32.partialorder %v1008_v15, 0.0  ;;  %vm1042_vm0 = vcmp.ge.f32.partialorder %v1010_v32, 0.0 }
  0x7e   : > { %9983 = vmatprep.subr.bf16.mxu0 %v9982_v3  ;;  %v1104_v16 = vsel %vm1040_vm14, %v1008_v15, %v1072_v28  ;;  %v1106_v53 = vsel %vm1042_vm0, %v1010_v32, %v1074_v33  ;;  %v1076_v54 = vmul.f32 0.1, %v1012_v52  ;;  %v1078_v21 = vmul.f32 0.1, %v1014_v17  ;;  %v7369_v15 = vld [vmem:[%s12289_s1 + $0x260] sm:$0xff]  ;;  %v7372_v28 = vld [vmem:[%s12289_s1 + $0x278] sm:$0xff] }
  0x7f   : > { %v1080_v46 = vmul.f32 0.1, %v1016_v59  ;;  %v7341_v32 = vld [vmem:[%s12289_s1 + $0x180] sm:$0xff] }
  0x80   : > { %8585 = vmatmul.mubr.f32.gmra.mrb[12].mxu0 %v364_v62  ;;  %v1108_v38 = vsel %vm1044_vm2, %v1012_v52, %v1076_v54  ;;  %v7344_v54 = vld [vmem:[%s12289_s1 + $0x198] sm:$0xff] }
  0x81   : > { %8587 = vmatprep.mubr.f32.mxu0 %v365_v25  ;;  %9985 = vmatpush3.bf16.msra.mxu0 %v9982_v3  ;;  %v998_v3 = vld [vmem:[#allocation2 + $0x29] sm:$0xff]  ;;  %v1000_v25 = vld [vmem:[#allocation2 + $0x39] sm:$0xff] }
  0x82   : > { %9987 = vmatprep.subr.bf16.mxu0 %v9986_v2  ;;  %v1062_v62 = vmul.f32 0.1, %v998_v3  ;;  %vm1030_vm4 = vcmp.ge.f32.partialorder %v998_v3, 0.0  ;;  %v1064_v5 = vmul.f32 0.1, %v1000_v25  ;;  %vm1032_vm6 = vcmp.ge.f32.partialorder %v1000_v25, 0.0 }
  0x84   : > { %8588 = vmatmul.mubr.f32.gmra.mrb[14].mxu0 %v366_v6  ;;  %v1001_v6 = vld [vmem:[#allocation2 + $0x41] sm:$0xff]  ;;  %v1096_v8 = vsel %vm1032_vm6, %v1000_v25, %v1064_v5  ;;  %vm1048_vm6 = vcmp.ge.f32.partialorder %v1016_v59, 0.0  ;;  %v1084_v25 = vmul.f32 0.1, %v1020_v4 }
  0x85   : > { %8590 = vmatprep.mubr.f32.mxu0 %v367_v30  ;;  %9989 = vmatpush3.bf16.msra.mxu0 %v9986_v2  ;;  %v1094_v2 = vsel %vm1030_vm4, %v998_v3, %v1062_v62  ;;  %v1095_v30 = vsel %vm1031_vm5, %v999_v63, %v1063_v0  ;;  %v1065_v31 = vmul.f32 0.1, %v1001_v6  ;;  %vm1033_vm7 = vcmp.ge.f32.partialorder %v1001_v6, 0.0  ;;  %v1022_v0 = vld [vmem:[#allocation2 + $0xe9] sm:$0xff] }
  0x86   : > { %vm1046_vm4 = vcmp.ge.f32.partialorder %v1014_v17, 0.0  ;;  %v1112_v1 = vsel %vm1048_vm6, %v1016_v59, %v1080_v46  ;;  %v1082_v3 = vmul.f32 0.1, %v1018_v23  ;;  %v1086_v7 = vmul.f32 0.1, %v1022_v0 }
  0x87   : > { %v1110_v61 = vsel %vm1046_vm4, %v1014_v17, %v1078_v21  ;;  %vm1054_vm12 = vcmp.ge.f32.partialorder %v1022_v0, 0.0 }
  0x88   : > { %8591 = vmatmul.mubr.f32.gmra.mrb[16].mxu0 %v368_v10  ;;  %v1003_v10 = vld [vmem:[#allocation2 + $0x51] sm:$0xff]  ;;  %v1114_v63 = vsel %vm1050_vm8, %v1018_v23, %v1082_v3 }
  0x89   : > { %8593 = vmatprep.mubr.f32.mxu0 %v369_v12  ;;  %v1097_v12 = vsel %vm1033_vm7, %v1001_v6, %v1065_v31  ;;  %v1067_v36 = vmul.f32 0.1, %v1003_v10  ;;  %vm1035_vm9 = vcmp.ge.f32.partialorder %v1003_v10, 0.0  ;;  %v1116_v6 = vsel %vm1052_vm10, %v1020_v4, %v1084_v25  ;;  %v1024_v31 = vld [vmem:[#allocation2 + $0xf9] sm:$0xff] }
  0x8a   : > { %v1088_v11 = vmul.f32 0.1, %v1024_v31  ;;  %vm1056_vm14 = vcmp.ge.f32.partialorder %v1024_v31, 0.0 }
  0x8c   : > { %8594 = vmatmul.mubr.f32.gmra.mrb[18].mxu0 %v370_v14  ;;  %v1005_v14 = vld [vmem:[#allocation2 + $0x61] sm:$0xff]  ;;  %v1120_v13 = vsel %vm1056_vm14, %v1024_v31, %v1088_v11 }
  0x8d   : > { %8596 = vmatprep.mubr.f32.mxu0 %v371_v20  ;;  %v1099_v20 = vsel %vm1035_vm9, %v1003_v10, %v1067_v36  ;;  %v1069_v41 = vmul.f32 0.1, %v1005_v14  ;;  %vm1037_vm11 = vcmp.ge.f32.partialorder %v1005_v14, 0.0  ;;  %v1118_v10 = vsel %vm1054_vm12, %v1022_v0, %v1086_v7 }
  0x90   : > { %8597 = vmatmul.mubr.f32.gmra.mrb[20].mxu0 %v372_v42  ;;  %v1007_v42 = vld [vmem:[#allocation2 + $0x71] sm:$0xff] }
  0x91   : > { %8599 = vmatprep.mubr.f32.mxu0 %v373_v26  ;;  %v1101_v26 = vsel %vm1037_vm11, %v1005_v14, %v1069_v41  ;;  %v1071_v43 = vmul.f32 0.1, %v1007_v42  ;;  %vm1039_vm13 = vcmp.ge.f32.partialorder %v1007_v42, 0.0 }
  0x94   : > { %8600 = vmatmul.mubr.f32.gmra.mrb[22].mxu0 %v374_v29  ;;  %v1009_v29 = vld [vmem:[#allocation2 + $0x81] sm:$0xff] }
  0x95   : > { %8602 = vmatprep.mubr.f32.mxu0 %v375_v48  ;;  %v1103_v48 = vsel %vm1039_vm13, %v1007_v42, %v1071_v43  ;;  %v1073_v49 = vmul.f32 0.1, %v1009_v29  ;;  %vm1041_vm15 = vcmp.ge.f32.partialorder %v1009_v29, 0.0 }
  0x98   : > { %8603 = vmatmul.mubr.f32.gmra.mrb[24].mxu0 %v376_v50  ;;  %v1011_v50 = vld [vmem:[#allocation2 + $0x91] sm:$0xff] }
  0x99   : > { %8605 = vmatprep.mubr.f32.mxu0 %v377_v34  ;;  %v1105_v34 = vsel %vm1041_vm15, %v1009_v29, %v1073_v49  ;;  %v1075_v35 = vmul.f32 0.1, %v1011_v50  ;;  %vm1043_vm1 = vcmp.ge.f32.partialorder %v1011_v50, 0.0 }
  0x9c   : > { %8606 = vmatmul.mubr.f32.gmra.mrb[26].mxu0 %v378_v37  ;;  %v1013_v37 = vld [vmem:[#allocation2 + $0xa1] sm:$0xff] }
  0x9d   : > { %8608 = vmatprep.mubr.f32.mxu0 %v379_v57  ;;  %v1107_v57 = vsel %vm1043_vm1, %v1011_v50, %v1075_v35  ;;  %v1077_v58 = vmul.f32 0.1, %v1013_v37  ;;  %vm1045_vm3 = vcmp.ge.f32.partialorder %v1013_v37, 0.0 }
  0xa0   : > { %8609 = vmatmul.mubr.f32.gmra.mrb[28].mxu0 %v380_v39  ;;  %v1015_v39 = vld [vmem:[#allocation2 + $0xb1] sm:$0xff] }
  0xa1   : > { %8611 = vmatprep.mubr.f32.mxu0 %v381_v44  ;;  %v1109_v44 = vsel %vm1045_vm3, %v1013_v37, %v1077_v58  ;;  %v1079_v45 = vmul.f32 0.1, %v1015_v39  ;;  %vm1047_vm5 = vcmp.ge.f32.partialorder %v1015_v39, 0.0 }
  0xa4   : > { %8612 = vmatmul.mubr.f32.gmra.mrb[30].mxu0 %v382_v51  ;;  %v1017_v51 = vld [vmem:[#allocation2 + $0xc1] sm:$0xff] }
  0xa5   : > { %8646 = vmatprep.mubr.f32.mxu0 %v1090_v24  ;;  %v1111_v24 = vsel %vm1047_vm5, %v1015_v39, %v1079_v45  ;;  %v1081_v55 = vmul.f32 0.1, %v1017_v51  ;;  %vm1049_vm7 = vcmp.ge.f32.partialorder %v1017_v51, 0.0  ;;  %v7345_v45 = vld [vmem:[%s12289_s1 + $0x1a0] sm:$0xff] }
  0xa8   : > { %8647 = vmatmul.mubr.f32.vlgmr.msra.gmra.mrb[0].mxu0 %v1091_v56  ;;  %v1019_v56 = vld [vmem:[#allocation2 + $0xd1] sm:$0xff] }
  0xa9   : > { %8649 = vmatprep.mubr.f32.mxu0 %v1092_v60  ;;  %v1113_v60 = vsel %vm1049_vm7, %v1017_v51, %v1081_v55  ;;  %v1083_v62 = vmul.f32 0.1, %v1019_v56  ;;  %vm1051_vm9 = vcmp.ge.f32.partialorder %v1019_v56, 0.0 }
  0xac   : > { %8650 = vmatmul.mubr.f32.gmra.mrb[2].mxu0 %v1093_v27  ;;  %v1021_v27 = vld [vmem:[#allocation2 + $0xe1] sm:$0xff] }
  0xad   : > { %8652 = vmatprep.mubr.f32.mxu0 %v1094_v2  ;;  %v1115_v2 = vsel %vm1051_vm9, %v1019_v56, %v1083_v62  ;;  %v1085_v5 = vmul.f32 0.1, %v1021_v27  ;;  %vm1053_vm11 = vcmp.ge.f32.partialorder %v1021_v27, 0.0  ;;  %v7348_v62 = vld [vmem:[%s12289_s1 + $0x1b8] sm:$0xff] }
  0xb0   : > { %8653 = vmatmul.mubr.f32.gmra.mrb[4].mxu0 %v1095_v30  ;;  %v1023_v30 = vld [vmem:[#allocation2 + $0xf1] sm:$0xff] }
  0xb1   : > { %8655 = vmatprep.mubr.f32.mxu0 %v1096_v8  ;;  %v1117_v8 = vsel %vm1053_vm11, %v1021_v27, %v1085_v5  ;;  %v1087_v9 = vmul.f32 0.1, %v1023_v30  ;;  %vm1055_vm13 = vcmp.ge.f32.partialorder %v1023_v30, 0.0 }
  0xb3   : > { %v1119_v36 = vsel %vm1055_vm13, %v1023_v30, %v1087_v9  ;;  %v7350_v9 = vld [vmem:[%s12289_s1 + $0x1c8] sm:$0xff] }
  0xb4   : > { %8656 = vmatmul.mubr.f32.gmra.mrb[6].mxu0 %v1097_v12  ;;  %v1025_v12 = vld [vmem:[#allocation2 + $0x101] sm:$0xff] }
  0xb5   : > { %8658 = vmatprep.mubr.f32.mxu0 %v1098_v40  ;;  %v1089_v40 = vmul.f32 0.1, %v1025_v12  ;;  %vm1057_vm15 = vcmp.ge.f32.partialorder %v1025_v12, 0.0 }
  0xb7   : > { %v1121_v14 = vsel %vm1057_vm15, %v1025_v12, %v1089_v40 }
  0xb8   : > { %8659 = vmatmul.mubr.f32.gmra.mrb[8].mxu0 %v1099_v20  ;;  %v7366_v20 = vld [vmem:[%s12289_s1 + $0x248] sm:$0xff] }
  0xb9   : > { %8661 = vmatprep.mubr.f32.mxu0 %v1100_v22  ;;  %v10006_v41 = vpack.c.bf16 %v7366_v20, %v7365_v18  ;;  %v7367_v22 = vld [vmem:[%s12289_s1 + $0x250] sm:$0xff] }
  0xba   : > { %v10010_v42 = vpack.c.bf16 %v7368_v19, %v7367_v22  ;;  %v7352_v22 = vld [vmem:[%s12289_s1 + $0x1d8] sm:$0xff] }
  0xbb   : > { %10007 = vmatprep.subr.bf16.mxu1 %v10006_v41 }
  0xbc   : > { %8662 = vmatmul.mubr.f32.gmra.mrb[10].mxu0 %v1101_v26  ;;  %10009 = vmatpush3.bf16.msra.mxu1 %v10006_v41  ;;  %v7370_v26 = vld [vmem:[%s12289_s1 + $0x268] sm:$0xff]  ;;  %v7351_v41 = vld [vmem:[%s12289_s1 + $0x1d0] sm:$0xff] }
  0xbd   : > { %8664 = vmatprep.mubr.f32.mxu0 %v1102_v47  ;;  %10011 = vmatprep.subr.bf16.mxu1 %v10010_v42  ;;  %v10014_v43 = vpack.c.bf16 %v7370_v26, %v7369_v15  ;;  %v7371_v47 = vld [vmem:[%s12289_s1 + $0x270] sm:$0xff] }
  0xbe   : > { %v10018_v29 = vpack.c.bf16 %v7372_v28, %v7371_v47 }
  0xc0   : > { %8665 = vmatmul.mubr.f32.gmra.mrb[12].mxu0 %v1103_v48  ;;  %10013 = vmatpush3.bf16.msra.mxu1 %v10010_v42  ;;  %v7342_v48 = vld [vmem:[%s12289_s1 + $0x188] sm:$0xff] }
  0xc1   : > { %8667 = vmatprep.mubr.f32.mxu0 %v1104_v16  ;;  %10015 = vmatprep.subr.bf16.mxu1 %v10014_v43  ;;  %v10022_v49 = vpack.c.bf16 %v7342_v48, %v7341_v32  ;;  %v11338_v16 = vld [vmem:[%s12290_s2] ss:$0 sm:$0xff] }
  0xc2   : > { %v7353_v48 = vld [vmem:[%s12289_s1 + $0x1e0] sm:$0xff] }
  0xc4   : > { %8668 = vmatmul.mubr.f32.gmra.mrb[14].mxu0 %v1105_v34  ;;  %10017 = vmatpush3.bf16.msra.mxu1 %v10014_v43 }
  0xc5   : > { %8670 = vmatprep.mubr.f32.mxu0 %v1106_v53  ;;  %10019 = vmatprep.subr.bf16.mxu1 %v10018_v29  ;;  %v7343_v53 = vld [vmem:[%s12289_s1 + $0x190] sm:$0xff] }
  0xc6   : > { %v10026_v59 = vpack.c.bf16 %v7344_v54, %v7343_v53 }
  0xc8   : > { %8671 = vmatmul.mubr.f32.gmra.mrb[16].mxu0 %v1107_v57  ;;  %10021 = vmatpush3.bf16.msra.mxu1 %v10018_v29  ;;  %v10042_v29 = vpack.c.bf16 %v7352_v22, %v7351_v41 }
  0xc9   : > { %8673 = vmatprep.mubr.f32.mxu0 %v1108_v38  ;;  %10023 = vmatprep.subr.bf16.mxu1 %v10022_v49 }
  0xcc   : > { %8674 = vmatmul.mubr.f32.gmra.mrb[18].mxu0 %v1109_v44 }
  0xcd   : > { %8676 = vmatprep.mubr.f32.mxu0 %v1110_v61  ;;  %v7346_v61 = vld [vmem:[%s12289_s1 + $0x1a8] sm:$0xff] }
  0xce   : > { %v10030_v56 = vpack.c.bf16 %v7346_v61, %v7345_v45 }
  0xd0   : > { %8677 = vmatmul.mubr.f32.gmra.mrb[20].mxu0 %v1111_v24 }
  0xd1   : > { %8679 = vmatprep.mubr.f32.mxu0 %v1112_v1 }
  0xd4   : > { %8680 = vmatmul.mubr.f32.gmra.mrb[22].mxu0 %v1113_v60  ;;  %v7347_v60 = vld [vmem:[%s12289_s1 + $0x1b0] sm:$0xff] }
  0xd5   : > { %8682 = vmatprep.mubr.f32.mxu0 %v1114_v63  ;;  %v10034_v30 = vpack.c.bf16 %v7348_v62, %v7347_v60 }
  0xd8   : > { %8683 = vmatmul.mubr.f32.gmra.mrb[24].mxu0 %v1115_v2 }
  0xd9   : > { %8685 = vmatprep.mubr.f32.mxu0 %v1116_v6 }
  0xdc   : > { %8686 = vmatmul.mubr.f32.gmra.mrb[26].mxu0 %v1117_v8  ;;  %v7349_v8 = vld [vmem:[%s12289_s1 + $0x1c0] sm:$0xff] }
  0xdd   : > { %8688 = vmatprep.mubr.f32.mxu0 %v1118_v10  ;;  %v10038_v18 = vpack.c.bf16 %v7350_v9, %v7349_v8 }
  0xe0   : > { %8689 = vmatmul.mubr.f32.gmra.mrb[28].mxu0 %v1119_v36 }
  0xe1   : > { %8691 = vmatprep.mubr.f32.mxu0 %v1120_v13 }
  0xe4   : > { %8692 = vmatmul.mubr.f32.gmra.mrb[30].mxu0 %v1121_v14 }
 0x17b   : > { %v8648_v33 = vpop.f32.mrb[0].mxu0 }
 0x17c   : > { %v1402_v50 = vadd.f32 %v8648_v33, %v11338_v16  ;;  %v1205_v52 = vpop.f32.mrb[1].mxu0 }
 0x17d   : > { %v1401_v34 = vadd.f32 %v11338_v16, %v1205_v52 }
 0x17e   : > { %vm1434_vm0 = vcmp.ge.f32.partialorder %v1402_v50, 0.0  ;;  %v1466_v35 = vmul.f32 0.1, %v1402_v50 }
 0x17f   : > { %vm1433_vm1 = vcmp.ge.f32.partialorder %v1401_v34, 0.0  ;;  %v1465_v37 = vmul.f32 0.1, %v1401_v34  ;;  %v8651_v17 = vpop.f32.mrb[2].mxu0 }
 0x180   : > { %v1498_v57 = vsel %vm1434_vm0, %v1402_v50, %v1466_v35  ;;  %v1404_v58 = vadd.f32 %v8651_v17, %v11338_v16  ;;  %v1215_v38 = vpop.f32.mrb[3].mxu0 }
 0x181   : > { %1530 = vst [vmem:[#allocation3 + $0x10] sm:$0xff] %v1498_v57  ;;  %v1497_v21 = vsel %vm1433_vm1, %v1401_v34, %v1465_v37  ;;  %v1403_v39 = vadd.f32 %v11338_v16, %v1215_v38 }
 0x182   : > { %1529 = vst [vmem:[#allocation3 + $0x8] sm:$0xff] %v1497_v21  ;;  %vm1436_vm2 = vcmp.ge.f32.partialorder %v1404_v58, 0.0  ;;  %v1468_v44 = vmul.f32 0.1, %v1404_v58  ;;  %8726 = vmatprep.mubr.f32.mxu1 %v1497_v21 }
 0x183   : > { %vm1435_vm3 = vcmp.ge.f32.partialorder %v1403_v39, 0.0  ;;  %v1467_v46 = vmul.f32 0.1, %v1403_v39  ;;  %v8654_v51 = vpop.f32.mrb[4].mxu0  ;;  %8727 = vmatmul.mubr.f32.vlgmr.msra.gmra.mrb[0].mxu1 %v1498_v57  ;;  %v7355_v57 = vld [vmem:[%s12289_s1 + $0x1f0] sm:$0xff] }
 0x184   : > { %v1500_v23 = vsel %vm1436_vm2, %v1404_v58, %v1468_v44  ;;  %v1406_v24 = vadd.f32 %v8654_v51, %v11338_v16  ;;  %v1225_v55 = vpop.f32.mrb[5].mxu0  ;;  %10025 = vmatpush3.bf16.msra.mxu1 %v10022_v49  ;;  %v7354_v49 = vld [vmem:[%s12289_s1 + $0x1e8] sm:$0xff]  ;;  %v7356_v58 = vld [vmem:[%s12289_s1 + $0x1f8] sm:$0xff] }
 0x185   : > { %1532 = vst [vmem:[#allocation3 + $0x20] sm:$0xff] %v1500_v23  ;;  %v1499_v1 = vsel %vm1435_vm3, %v1403_v39, %v1467_v46  ;;  %v1405_v3 = vadd.f32 %v11338_v16, %v1225_v55  ;;  %10027 = vmatprep.subr.bf16.mxu1 %v10026_v59  ;;  %v10046_v37 = vpack.c.bf16 %v7354_v49, %v7353_v48 }
 0x186   : > { %1531 = vst [vmem:[#allocation3 + $0x18] sm:$0xff] %v1499_v1  ;;  %vm1438_vm4 = vcmp.ge.f32.partialorder %v1406_v24, 0.0  ;;  %v1470_v4 = vmul.f32 0.1, %v1406_v24  ;;  %8729 = vmatprep.mubr.f32.mxu1 %v1499_v1  ;;  %v10050_v46 = vpack.c.bf16 %v7356_v58, %v7355_v57 }
 0x187   : > { %vm1437_vm5 = vcmp.ge.f32.partialorder %v1405_v3, 0.0  ;;  %v1469_v63 = vmul.f32 0.1, %v1405_v3  ;;  %v8657_v25 = vpop.f32.mrb[6].mxu0  ;;  %8730 = vmatmul.mubr.f32.gmra.mrb[2].mxu1 %v1500_v23  ;;  %v7373_v23 = vld [vmem:[%s12289_s1 + $0x280] sm:$0xff] }
 0x188   : > { %v1502_v27 = vsel %vm1438_vm4, %v1406_v24, %v1470_v4  ;;  %v1408_v0 = vadd.f32 %v8657_v25, %v11338_v16  ;;  %v1235_v2 = vpop.f32.mrb[7].mxu0  ;;  %10029 = vmatpush3.bf16.msra.mxu1 %v10026_v59  ;;  %v7374_v24 = vld [vmem:[%s12289_s1 + $0x288] sm:$0xff] }
 0x189   : > { %v1561_v5 = vld [vmem:[#allocation3 + $0x9] sm:$0x1]  ;;  %1534 = vst [vmem:[#allocation3 + $0x30] sm:$0xff] %v1502_v27  ;;  %v1501_v6 = vsel %vm1437_vm5, %v1405_v3, %v1469_v63  ;;  %v1407_v7 = vadd.f32 %v11338_v16, %v1235_v2  ;;  %10031 = vmatprep.subr.bf16.mxu1 %v10030_v56  ;;  %v11406_v63 = vpack.c.bf16 %v7374_v24, %v7373_v23 }
 0x18a   : > { %1562 = vst [vmem:[#allocation3 + $0x7] sm:$0x1] %v1561_v5  ;;  %1533 = vst [vmem:[#allocation3 + $0x28] sm:$0xff] %v1501_v6  ;;  %vm1440_vm6 = vcmp.ge.f32.partialorder %v1408_v0, 0.0  ;;  %v1472_v31 = vmul.f32 0.1, %v1408_v0  ;;  %8732 = vmatprep.mubr.f32.mxu1 %v1501_v6 }
 0x18b   : > { %vm1439_vm7 = vcmp.ge.f32.partialorder %v1407_v7, 0.0  ;;  %v1471_v10 = vmul.f32 0.1, %v1407_v7  ;;  %v8660_v11 = vpop.f32.mrb[8].mxu0  ;;  %8733 = vmatmul.mubr.f32.gmra.mrb[4].mxu1 %v1502_v27 }
 0x18c   : > { %v1504_v12 = vsel %vm1440_vm6, %v1408_v0, %v1472_v31  ;;  %v1410_v36 = vadd.f32 %v8660_v11, %v11338_v16  ;;  %v1245_v40 = vpop.f32.mrb[9].mxu0  ;;  %10033 = vmatpush3.bf16.msra.mxu1 %v10030_v56 }
 0x18d   : > { %1536 = vst [vmem:[#allocation3 + $0x40] sm:$0xff] %v1504_v12  ;;  %v1503_v13 = vsel %vm1439_vm7, %v1407_v7, %v1471_v10  ;;  %v1409_v14 = vadd.f32 %v11338_v16, %v1245_v40  ;;  %10035 = vmatprep.subr.bf16.mxu1 %v10034_v30 }
 0x18e   : > { %1535 = vst [vmem:[#allocation3 + $0x38] sm:$0xff] %v1503_v13  ;;  %vm1442_vm8 = vcmp.ge.f32.partialorder %v1410_v36, 0.0  ;;  %v1474_v20 = vmul.f32 0.1, %v1410_v36  ;;  %8735 = vmatprep.mubr.f32.mxu1 %v1503_v13 }
 0x18f   : > { %vm1441_vm9 = vcmp.ge.f32.partialorder %v1409_v14, 0.0  ;;  %v1473_v19 = vmul.f32 0.1, %v1409_v14  ;;  %v8663_v42 = vpop.f32.mrb[10].mxu0  ;;  %8736 = vmatmul.mubr.f32.gmra.mrb[6].mxu1 %v1504_v12 }
 0x190   : > { %v1506_v15 = vsel %vm1442_vm8, %v1410_v36, %v1474_v20  ;;  %v1412_v26 = vadd.f32 %v8663_v42, %v11338_v16  ;;  %v1255_v43 = vpop.f32.mrb[11].mxu0  ;;  %10037 = vmatpush3.bf16.msra.mxu1 %v10034_v30 }
 0x191   : > { %1538 = vst [vmem:[#allocation3 + $0x50] sm:$0xff] %v1506_v15  ;;  %v1505_v47 = vsel %vm1441_vm9, %v1409_v14, %v1473_v19  ;;  %v1411_v28 = vadd.f32 %v11338_v16, %v1255_v43  ;;  %10039 = vmatprep.subr.bf16.mxu1 %v10038_v18 }
 0x192   : > { %1537 = vst [vmem:[#allocation3 + $0x48] sm:$0xff] %v1505_v47  ;;  %vm1444_vm10 = vcmp.ge.f32.partialorder %v1412_v26, 0.0  ;;  %v1476_v32 = vmul.f32 0.1, %v1412_v26  ;;  %8738 = vmatprep.mubr.f32.mxu1 %v1505_v47 }
 0x193   : > { %vm1443_vm11 = vcmp.ge.f32.partialorder %v1411_v28, 0.0  ;;  %v1475_v33 = vmul.f32 0.1, %v1411_v28  ;;  %v8666_v50 = vpop.f32.mrb[12].mxu0  ;;  %8739 = vmatmul.mubr.f32.gmra.mrb[8].mxu1 %v1506_v15 }
 0x194   : > { %v1508_v52 = vsel %vm1444_vm10, %v1412_v26, %v1476_v32  ;;  %v1414_v34 = vadd.f32 %v8666_v50, %v11338_v16  ;;  %v1265_v35 = vpop.f32.mrb[13].mxu0  ;;  %10041 = vmatpush3.bf16.msra.mxu1 %v10038_v18 }
 0x195   : > { %1540 = vst [vmem:[#allocation3 + $0x60] sm:$0xff] %v1508_v52  ;;  %v1507_v53 = vsel %vm1443_vm11, %v1411_v28, %v1475_v33  ;;  %v1413_v54 = vadd.f32 %v11338_v16, %v1265_v35  ;;  %10043 = vmatprep.subr.bf16.mxu1 %v10042_v29 }
 0x196   : > { %1539 = vst [vmem:[#allocation3 + $0x58] sm:$0xff] %v1507_v53  ;;  %vm1446_vm12 = vcmp.ge.f32.partialorder %v1414_v34, 0.0  ;;  %v1478_v17 = vmul.f32 0.1, %v1414_v34  ;;  %8741 = vmatprep.mubr.f32.mxu1 %v1507_v53 }
 0x197   : > { %vm1445_vm13 = vcmp.ge.f32.partialorder %v1413_v54, 0.0  ;;  %v1477_v38 = vmul.f32 0.1, %v1413_v54  ;;  %v8669_v21 = vpop.f32.mrb[14].mxu0  ;;  %8742 = vmatmul.mubr.f32.gmra.mrb[10].mxu1 %v1508_v52 }
 0x198   : > { %v1510_v39 = vsel %vm1446_vm12, %v1414_v34, %v1478_v17  ;;  %v1416_v59 = vadd.f32 %v8669_v21, %v11338_v16  ;;  %v1275_v44 = vpop.f32.mrb[15].mxu0  ;;  %10045 = vmatpush3.bf16.msra.mxu1 %v10042_v29 }
 0x199   : > { %1542 = vst [vmem:[#allocation3 + $0x70] sm:$0xff] %v1510_v39  ;;  %v1509_v45 = vsel %vm1445_vm13, %v1413_v54, %v1477_v38  ;;  %v1415_v61 = vadd.f32 %v11338_v16, %v1275_v44  ;;  %10047 = vmatprep.subr.bf16.mxu1 %v10046_v37 }
 0x19a   : > { %1541 = vst [vmem:[#allocation3 + $0x68] sm:$0xff] %v1509_v45  ;;  %vm1448_vm14 = vcmp.ge.f32.partialorder %v1416_v59, 0.0  ;;  %v1480_v51 = vmul.f32 0.1, %v1416_v59  ;;  %8744 = vmatprep.mubr.f32.mxu1 %v1509_v45 }
 0x19b   : > { %vm1447_vm15 = vcmp.ge.f32.partialorder %v1415_v61, 0.0  ;;  %v1479_v55 = vmul.f32 0.1, %v1415_v61  ;;  %v8672_v1 = vpop.f32.mrb[16].mxu0  ;;  %8745 = vmatmul.mubr.f32.gmra.mrb[12].mxu1 %v1510_v39 }
 0x19c   : > { %v1512_v3 = vsel %vm1448_vm14, %v1416_v59, %v1480_v51  ;;  %v1418_v56 = vadd.f32 %v8672_v1, %v11338_v16  ;;  %v1285_v4 = vpop.f32.mrb[17].mxu0  ;;  %10049 = vmatpush3.bf16.msra.mxu1 %v10046_v37 }
 0x19d   : > { %1544 = vst [vmem:[#allocation3 + $0x80] sm:$0xff] %v1512_v3  ;;  %v1511_v60 = vsel %vm1447_vm15, %v1415_v61, %v1479_v55  ;;  %v1417_v62 = vadd.f32 %v11338_v16, %v1285_v4  ;;  %10051 = vmatprep.subr.bf16.mxu1 %v10050_v46 }
 0x19e   : > { %1543 = vst [vmem:[#allocation3 + $0x78] sm:$0xff] %v1511_v60  ;;  %vm1450_vm0 = vcmp.ge.f32.partialorder %v1418_v56, 0.0  ;;  %v1482_v25 = vmul.f32 0.1, %v1418_v56  ;;  %8747 = vmatprep.mubr.f32.mxu1 %v1511_v60  ;;  %v1565_v60 = vld [vmem:[#allocation3 + $0x7] sm:$0xff] }
 0x19f   : > { %vm1449_vm1 = vcmp.ge.f32.partialorder %v1417_v62, 0.0  ;;  %v1481_v27 = vmul.f32 0.1, %v1417_v62  ;;  %v8675_v0 = vpop.f32.mrb[18].mxu0  ;;  %8748 = vmatmul.mubr.f32.gmra.mrb[14].mxu1 %v1512_v3 }
 0x1a0   : > { %v1514_v2 = vsel %vm1450_vm0, %v1418_v56, %v1482_v25  ;;  %v1420_v5 = vadd.f32 %v8675_v0, %v11338_v16  ;;  %v1295_v6 = vpop.f32.mrb[19].mxu0  ;;  %10053 = vmatpush3.bf16.msra.mxu1 %v10050_v46  ;;  %v7406_v25 = vld [vmem:[%s12289_s1 + $0x380] sm:$0xff]  ;;  %v7408_v0 = vld [vmem:[%s12289_s1 + $0x390] sm:$0xff] }
 0x1a1   : > { %1546 = vst [vmem:[#allocation3 + $0x90] sm:$0xff] %v1514_v2  ;;  %v1513_v7 = vsel %vm1449_vm1, %v1417_v62, %v1481_v27  ;;  %v1419_v30 = vadd.f32 %v11338_v16, %v1295_v6  ;;  %10055 = vmatprep.subr.bf16.mxu1 %v11406_v63  ;;  %v7375_v62 = vld [vmem:[%s12289_s1 + $0x290] sm:$0xff]  ;;  %v7407_v27 = vld [vmem:[%s12289_s1 + $0x388] sm:$0xff] }
 0x1a2   : > { %1545 = vst [vmem:[#allocation3 + $0x88] sm:$0xff] %v1513_v7  ;;  %vm1452_vm2 = vcmp.ge.f32.partialorder %v1420_v5, 0.0  ;;  %v1484_v31 = vmul.f32 0.1, %v1420_v5  ;;  %8750 = vmatprep.mubr.f32.mxu1 %v1513_v7  ;;  %v7377_v7 = vld [vmem:[%s12289_s1 + $0x2a0] sm:$0xff] }
 0x1a3   : > { %vm1451_vm3 = vcmp.ge.f32.partialorder %v1419_v30, 0.0  ;;  %v1483_v8 = vmul.f32 0.1, %v1419_v30  ;;  %v8678_v9 = vpop.f32.mrb[20].mxu0  ;;  %8751 = vmatmul.mubr.f32.gmra.mrb[16].mxu1 %v1514_v2  ;;  %v10086_v2 = vpack.c.bf16 %v7407_v27, %v7406_v25 }
 0x1a4   : > { %v1516_v10 = vsel %vm1452_vm2, %v1420_v5, %v1484_v31  ;;  %v1422_v11 = vadd.f32 %v8678_v9, %v11338_v16  ;;  %v1305_v12 = vpop.f32.mrb[21].mxu0  ;;  %v7409_v5 = vld [vmem:[%s12289_s1 + $0x398] sm:$0xff]  ;;  %v7410_v9 = vld [vmem:[%s12289_s1 + $0x3a0] sm:$0xff] }
 0x1a5   : > { %1548 = vst [vmem:[#allocation3 + $0xa0] sm:$0xff] %v1516_v10  ;;  %v1515_v36 = vsel %vm1451_vm3, %v1419_v30, %v1483_v8  ;;  %v1421_v40 = vadd.f32 %v11338_v16, %v1305_v12  ;;  %v7378_v30 = vld [vmem:[%s12289_s1 + $0x2a8] sm:$0xff]  ;;  %v10090_v31 = vpack.c.bf16 %v7409_v5, %v7408_v0  ;;  %v1566_v8 = vld [vmem:[#allocation3 + $0xf] sm:$0xff]  ;;  %10087 = vmatprep.subr.bf16.mxu0 %v10086_v2 }
 0x1a6   : > { %1547 = vst [vmem:[#allocation3 + $0x98] sm:$0xff] %v1515_v36  ;;  %vm1454_vm4 = vcmp.ge.f32.partialorder %v1422_v11, 0.0  ;;  %v1486_v13 = vmul.f32 0.1, %v1422_v11  ;;  %8753 = vmatprep.mubr.f32.mxu1 %v1515_v36  ;;  %10089 = vmatpush3.bf16.msra.mxu0 %v10086_v2  ;;  %v10062_v36 = vpack.c.bf16 %v7378_v30, %v7377_v7  ;;  %v2114_v7 = vld [vmem:[#allocation3 + $0x11] sm:$0xff]  ;;  %v2115_v30 = vld [vmem:[#allocation3 + $0x19] sm:$0xff] }
 0x1a7   : > { %vm1453_vm5 = vcmp.ge.f32.partialorder %v1421_v40, 0.0  ;;  %v1485_v14 = vmul.f32 0.1, %v1421_v40  ;;  %v8681_v18 = vpop.f32.mrb[22].mxu0  ;;  %8754 = vmatmul.mubr.f32.gmra.mrb[18].mxu1 %v1516_v10  ;;  %v7411_v10 = vld [vmem:[%s12289_s1 + $0x3a8] sm:$0xff]  ;;  %10091 = vmatprep.subr.bf16.mxu0 %v10090_v31 }
 0x1a8   : > { %v1518_v20 = vsel %vm1454_vm4, %v1422_v11, %v1486_v13  ;;  %v1424_v41 = vadd.f32 %v8681_v18, %v11338_v16  ;;  %v1315_v22 = vpop.f32.mrb[23].mxu0  ;;  %v1567_v11 = vld [vmem:[#allocation3 + $0x17] sm:$0xff]  ;;  %v7380_v13 = vld [vmem:[%s12289_s1 + $0x2b8] sm:$0xff]  ;;  %v1568_v18 = vld [vmem:[#allocation3 + $0x1f] sm:$0xff] }
 0x1a9   : > { %1550 = vst [vmem:[#allocation3 + $0xb0] sm:$0xff] %v1518_v20  ;;  %v1517_v19 = vsel %vm1453_vm5, %v1421_v40, %v1485_v14  ;;  %v1423_v42 = vadd.f32 %v11338_v16, %v1315_v22  ;;  %v7379_v40 = vld [vmem:[%s12289_s1 + $0x2b0] sm:$0xff]  ;;  %v10094_v14 = vpack.c.bf16 %v7411_v10, %v7410_v9  ;;  %v2118_v9 = vld [vmem:[#allocation3 + $0x31] sm:$0xff] }
 0x1aa   : > { %1549 = vst [vmem:[#allocation3 + $0xa8] sm:$0xff] %v1517_v19  ;;  %vm1456_vm6 = vcmp.ge.f32.partialorder %v1424_v41, 0.0  ;;  %v1488_v15 = vmul.f32 0.1, %v1424_v41  ;;  %8756 = vmatprep.mubr.f32.mxu1 %v1517_v19  ;;  %10093 = vmatpush3.bf16.msra.mxu0 %v10090_v31  ;;  %v10066_v22 = vpack.c.bf16 %v7380_v13, %v7379_v40  ;;  %v7381_v19 = vld [vmem:[%s12289_s1 + $0x2c0] sm:$0xff]  ;;  %v2116_v31 = vld [vmem:[#allocation3 + $0x21] sm:$0xff] }
 0x1ab   : > { %vm1455_vm7 = vcmp.ge.f32.partialorder %v1423_v42, 0.0  ;;  %v1487_v26 = vmul.f32 0.1, %v1423_v42  ;;  %v8684_v43 = vpop.f32.mrb[24].mxu0  ;;  %8757 = vmatmul.mubr.f32.gmra.mrb[20].mxu1 %v1518_v20  ;;  %v7412_v20 = vld [vmem:[%s12289_s1 + $0x3b0] sm:$0xff]  ;;  %10095 = vmatprep.subr.bf16.mxu0 %v10094_v14 }
 0x1ac   : > { %v1520_v47 = vsel %vm1456_vm6, %v1424_v41, %v1488_v15  ;;  %v1426_v28 = vadd.f32 %v8684_v43, %v11338_v16  ;;  %v1325_v29 = vpop.f32.mrb[25].mxu0  ;;  %v1569_v41 = vld [vmem:[#allocation3 + $0x27] sm:$0xff]  ;;  %v7414_v43 = vld [vmem:[%s12289_s1 + $0x3c0] sm:$0xff]  ;;  %v2119_v10 = vld [vmem:[#allocation3 + $0x39] sm:$0xff] }
 0x1ad   : > { %1552 = vst [vmem:[#allocation3 + $0xc0] sm:$0xff] %v1520_v47  ;;  %v1519_v32 = vsel %vm1455_vm7, %v1423_v42, %v1487_v26  ;;  %v1425_v48 = vadd.f32 %v11338_v16, %v1325_v29  ;;  %v7382_v42 = vld [vmem:[%s12289_s1 + $0x2c8] sm:$0xff]  ;;  %v1570_v26 = vld [vmem:[#allocation3 + $0x2f] sm:$0xff]  ;;  %v2124_v13 = vld [vmem:[#allocation3 + $0x61] sm:$0xff] }
 0x1ae   : > { %1551 = vst [vmem:[#allocation3 + $0xb8] sm:$0xff] %v1519_v32  ;;  %vm1458_vm8 = vcmp.ge.f32.partialorder %v1426_v28, 0.0  ;;  %v1490_v49 = vmul.f32 0.1, %v1426_v28  ;;  %8759 = vmatprep.mubr.f32.mxu1 %v1519_v32  ;;  %10097 = vmatpush3.bf16.msra.mxu0 %v10094_v14  ;;  %v10070_v29 = vpack.c.bf16 %v7382_v42, %v7381_v19  ;;  %v7383_v32 = vld [vmem:[%s12289_s1 + $0x2d0] sm:$0xff]  ;;  %v2125_v14 = vld [vmem:[#allocation3 + $0x69] sm:$0xff] }
 0x1af   : > { %vm1457_vm9 = vcmp.ge.f32.partialorder %v1425_v48, 0.0  ;;  %v1489_v33 = vmul.f32 0.1, %v1425_v48  ;;  %v8687_v50 = vpop.f32.mrb[26].mxu0  ;;  %8760 = vmatmul.mubr.f32.gmra.mrb[22].mxu1 %v1520_v47  ;;  %v7415_v47 = vld [vmem:[%s12289_s1 + $0x3c8] sm:$0xff] }
 0x1b0   : > { %v1522_v52 = vsel %vm1458_vm8, %v1426_v28, %v1490_v49  ;;  %v1428_v34 = vadd.f32 %v8687_v50, %v11338_v16  ;;  %v1335_v35 = vpop.f32.mrb[27].mxu0  ;;  %v1571_v28 = vld [vmem:[#allocation3 + $0x37] sm:$0xff]  ;;  %v10102_v49 = vpack.c.bf16 %v7415_v47, %v7414_v43  ;;  %v7416_v50 = vld [vmem:[%s12289_s1 + $0x3d0] sm:$0xff] }
 0x1b1   : > { %1554 = vst [vmem:[#allocation3 + $0xd0] sm:$0xff] %v1522_v52  ;;  %v1521_v53 = vsel %vm1457_vm9, %v1425_v48, %v1489_v33  ;;  %v1427_v54 = vadd.f32 %v11338_v16, %v1335_v35  ;;  %v7384_v48 = vld [vmem:[%s12289_s1 + $0x2d8] sm:$0xff]  ;;  %v1572_v33 = vld [vmem:[#allocation3 + $0x3f] sm:$0xff] }
 0x1b2   : > { %1553 = vst [vmem:[#allocation3 + $0xc8] sm:$0xff] %v1521_v53  ;;  %vm1460_vm10 = vcmp.ge.f32.partialorder %v1428_v34, 0.0  ;;  %v1492_v37 = vmul.f32 0.1, %v1428_v34  ;;  %8762 = vmatprep.mubr.f32.mxu1 %v1521_v53  ;;  %v10074_v35 = vpack.c.bf16 %v7384_v48, %v7383_v32  ;;  %v2123_v40 = vld [vmem:[#allocation3 + $0x59] sm:$0xff]  ;;  %v2132_v42 = vld [vmem:[#allocation3 + $0xa1] sm:$0xff] }
 0x1b3   : > { %vm1459_vm11 = vcmp.ge.f32.partialorder %v1427_v54, 0.0  ;;  %v1491_v17 = vmul.f32 0.1, %v1427_v54  ;;  %v8690_v57 = vpop.f32.mrb[28].mxu0  ;;  %8763 = vmatmul.mubr.f32.gmra.mrb[24].mxu1 %v1522_v52  ;;  %v7417_v52 = vld [vmem:[%s12289_s1 + $0x3d8] sm:$0xff]  ;;  %v2131_v19 = vld [vmem:[#allocation3 + $0x99] sm:$0xff] }
 0x1b4   : > { %v1524_v58 = vsel %vm1460_vm10, %v1428_v34, %v1492_v37  ;;  %v1430_v38 = vadd.f32 %v8690_v57, %v11338_v16  ;;  %v1345_v21 = vpop.f32.mrb[29].mxu0  ;;  %v1573_v34 = vld [vmem:[#allocation3 + $0x47] sm:$0xff]  ;;  %v10106_v53 = vpack.c.bf16 %v7417_v52, %v7416_v50  ;;  %v7385_v37 = vld [vmem:[%s12289_s1 + $0x2e0] sm:$0xff] }
 0x1b5   : > { %1556 = vst [vmem:[#allocation3 + $0xe0] sm:$0xff] %v1524_v58  ;;  %v1523_v39 = vsel %vm1459_vm11, %v1427_v54, %v1491_v17  ;;  %v1429_v59 = vadd.f32 %v11338_v16, %v1345_v21  ;;  %v1574_v54 = vld [vmem:[#allocation3 + $0x4f] sm:$0xff]  ;;  %v7386_v17 = vld [vmem:[%s12289_s1 + $0x2e8] sm:$0xff]  ;;  %v7387_v21 = vld [vmem:[%s12289_s1 + $0x2f0] sm:$0xff] }
 0x1b6   : > { %1555 = vst [vmem:[#allocation3 + $0xd8] sm:$0xff] %v1523_v39  ;;  %vm1462_vm12 = vcmp.ge.f32.partialorder %v1430_v38, 0.0  ;;  %v1494_v44 = vmul.f32 0.1, %v1430_v38  ;;  %8765 = vmatprep.mubr.f32.mxu1 %v1523_v39  ;;  %v1575_v57 = vld [vmem:[#allocation3 + $0x57] sm:$0xff]  ;;  %v7388_v39 = vld [vmem:[%s12289_s1 + $0x2f8] sm:$0xff] }
 0x1b7   : > { %vm1461_vm13 = vcmp.ge.f32.partialorder %v1429_v59, 0.0  ;;  %v1493_v45 = vmul.f32 0.1, %v1429_v59  ;;  %v8693_v61 = vpop.f32.mrb[30].mxu0  ;;  %8766 = vmatmul.mubr.f32.gmra.mrb[26].mxu1 %v1524_v58  ;;  %v10078_v58 = vpack.c.bf16 %v7386_v17, %v7385_v37  ;;  %v2135_v43 = vld [vmem:[#allocation3 + $0xb9] sm:$0xff]  ;;  %v7421_v37 = vld [vmem:[%s12289_s1 + $0x3f8] sm:$0xff] }
 0x1b8   : > { %v1526_v46 = vsel %vm1462_vm12, %v1430_v38, %v1494_v44  ;;  %v1432_v51 = vadd.f32 %v8693_v61, %v11338_v16  ;;  %v1355_v23 = vpop.f32.mrb[31].mxu0  ;;  %v1576_v38 = vld [vmem:[#allocation3 + $0x5f] sm:$0xff]  ;;  %v10082_v44 = vpack.c.bf16 %v7388_v39, %v7387_v21  ;;  %v1579_v61 = vld [vmem:[#allocation3 + $0x77] sm:$0xff]  ;;  %v11523_v21 = vld [vmem:[%s12290_s2 + $0x1] ss:$0 sm:$0xff] }
 0x1b9   : > { %1558 = vst [vmem:[#allocation3 + $0xf0] sm:$0xff] %v1526_v46  ;;  %v1525_v24 = vsel %vm1461_vm13, %v1429_v59, %v1493_v45  ;;  %v1431_v55 = vadd.f32 %v11338_v16, %v1355_v23  ;;  %v7376_v16 = vld [vmem:[%s12289_s1 + $0x298] sm:$0xff] }
 0x1ba   : > { %1557 = vst [vmem:[#allocation3 + $0xe8] sm:$0xff] %v1525_v24  ;;  %vm1464_vm14 = vcmp.ge.f32.partialorder %v1432_v51, 0.0  ;;  %v1496_v1 = vmul.f32 0.1, %v1432_v51  ;;  %8768 = vmatprep.mubr.f32.mxu1 %v1525_v24  ;;  %v10058_v6 = vpack.c.bf16 %v7376_v16, %v7375_v62  ;;  %v1577_v59 = vld [vmem:[#allocation3 + $0x67] sm:$0xff]  ;;  %v1578_v45 = vld [vmem:[#allocation3 + $0x6f] sm:$0xff] }
 0x1bb   : > { %vm1463_vm15 = vcmp.ge.f32.partialorder %v1431_v55, 0.0  ;;  %v1495_v3 = vmul.f32 0.1, %v1431_v55  ;;  %8769 = vmatmul.mubr.f32.gmra.mrb[28].mxu1 %v1526_v46  ;;  %v1580_v46 = vld [vmem:[#allocation3 + $0x7f] sm:$0xff]  ;;  %v1582_v23 = vld [vmem:[#allocation3 + $0x8f] sm:$0xff]  ;;  %v1583_v24 = vld [vmem:[#allocation3 + $0x97] sm:$0xff] }
 0x1bc   : > { %v1528_v56 = vsel %vm1464_vm14, %v1432_v51, %v1496_v1  ;;  %v1581_v51 = vld [vmem:[#allocation3 + $0x87] sm:$0xff]  ;;  %v1590_v62 = vld [vmem:[#allocation3 + $0xcf] sm:$0xff] }
 0x1bd   : > { %1560 = vst [vmem:[#allocation3 + $0x100] sm:$0xff] %v1528_v56  ;;  %v1527_v4 = vsel %vm1463_vm15, %v1431_v55, %v1495_v3  ;;  %v1584_v55 = vld [vmem:[#allocation3 + $0x9f] sm:$0xff]  ;;  %v1585_v1 = vld [vmem:[#allocation3 + $0xa7] sm:$0xff]  ;;  %v1586_v3 = vld [vmem:[#allocation3 + $0xaf] sm:$0xff] }
 0x1be   : > { %1559 = vst [vmem:[#allocation3 + $0xf8] sm:$0xff] %v1527_v4  ;;  %8771 = vmatprep.mubr.f32.mxu1 %v1527_v4  ;;  %v1588_v4 = vld [vmem:[#allocation3 + $0xbf] sm:$0xff]  ;;  %v1591_v16 = vld [vmem:[#allocation3 + $0xd7] sm:$0xff] }
 0x1bf   : > { %8772 = vmatmul.mubr.f32.gmra.mrb[30].mxu1 %v1528_v56  ;;  %v1587_v56 = vld [vmem:[#allocation3 + $0xb7] sm:$0xff]  ;;  %v1592_v25 = vld [vmem:[#allocation3 + $0xdf] sm:$0xff] }
 0x1c0   : > { %8806 = vmatprep.mubr.f32.mxu1 %v1565_v60  ;;  %v1589_v60 = vld [vmem:[#allocation3 + $0xc7] sm:$0xff]  ;;  %v2139_v32 = vld [vmem:[#allocation3 + $0xd9] sm:$0xff] }
 0x1c1   : > { %v1593_v27 = vld [vmem:[#allocation3 + $0xe7] sm:$0xff]  ;;  %v1594_v0 = vld [vmem:[#allocation3 + $0xef] sm:$0xff] }
 0x1c2   : > { %v2136_v47 = vld [vmem:[#allocation3 + $0xc1] sm:$0xff] }
 0x1c3   : > { %8807 = vmatmul.mubr.f32.vlgmr.msra.gmra.mrb[0].mxu1 %v1566_v8  ;;  %v2117_v8 = vld [vmem:[#allocation3 + $0x29] sm:$0xff]  ;;  %v2140_v48 = vld [vmem:[#allocation3 + $0xe1] sm:$0xff] }
 0x1c4   : > { %v1563_v12 = vld [vmem:[#allocation3 + $0x106] sm:$0x1]  ;;  %8809 = vmatprep.mubr.f32.mxu1 %v1567_v11  ;;  %10057 = vmatpush3.bf16.msra.mxu1 %v11406_v63  ;;  %v7413_v63 = vld [vmem:[%s12289_s1 + $0x3b8] sm:$0xff] }
 0x1c5   : > { %1564 = vst [vmem:[#allocation3 + $0x108] sm:$0x1] %v1563_v12  ;;  %10059 = vmatprep.subr.bf16.mxu1 %v10058_v6  ;;  %v10098_v15 = vpack.c.bf16 %v7413_v63, %v7412_v20  ;;  %v1595_v2 = vld [vmem:[#allocation3 + $0xf7] sm:$0xff]  ;;  %v1596_v5 = vld [vmem:[#allocation3 + $0xff] sm:$0xff]  ;;  %v2121_v12 = vld [vmem:[#allocation3 + $0x49] sm:$0xff] }
 0x1c6   : > { %v2120_v11 = vld [vmem:[#allocation3 + $0x41] sm:$0xff]  ;;  %v2127_v20 = vld [vmem:[#allocation3 + $0x79] sm:$0xff] }
 0x1c7   : > { %8810 = vmatmul.mubr.f32.gmra.mrb[2].mxu1 %v1568_v18  ;;  %10099 = vmatprep.subr.bf16.mxu0 %v10098_v15  ;;  %v2126_v18 = vld [vmem:[#allocation3 + $0x71] sm:$0xff]  ;;  %v2128_v63 = vld [vmem:[#allocation3 + $0x81] sm:$0xff]  ;;  %v2143_v50 = vld [vmem:[#allocation3 + $0xf9] sm:$0xff] }
 0x1c8   : > { %8812 = vmatprep.mubr.f32.mxu1 %v1569_v41  ;;  %10061 = vmatpush3.bf16.msra.mxu1 %v10058_v6  ;;  %v2113_v6 = vld [vmem:[#allocation3 + $0x9] sm:$0xff] }
 0x1c9   : > { %10063 = vmatprep.subr.bf16.mxu1 %v10062_v36  ;;  %10101 = vmatpush3.bf16.msra.mxu0 %v10098_v15  ;;  %v2129_v41 = vld [vmem:[#allocation3 + $0x89] sm:$0xff] }
 0x1ca   : > { %10103 = vmatprep.subr.bf16.mxu0 %v10102_v49  ;;  %v2133_v15 = vld [vmem:[#allocation3 + $0xa9] sm:$0xff] }
 0x1cb   : > { %8813 = vmatmul.mubr.f32.gmra.mrb[4].mxu1 %v1570_v26  ;;  %v2134_v26 = vld [vmem:[#allocation3 + $0xb1] sm:$0xff] }
 0x1cc   : > { %8815 = vmatprep.mubr.f32.mxu1 %v1571_v28  ;;  %10065 = vmatpush3.bf16.msra.mxu1 %v10062_v36  ;;  %v2122_v36 = vld [vmem:[#allocation3 + $0x51] sm:$0xff]  ;;  %v2137_v28 = vld [vmem:[#allocation3 + $0xc9] sm:$0xff]  ;;  %v2144_v52 = vld [vmem:[#allocation3 + $0x101] sm:$0xff] }
 0x1cd   : > { %10067 = vmatprep.subr.bf16.mxu1 %v10066_v22  ;;  %10105 = vmatpush3.bf16.msra.mxu0 %v10102_v49  ;;  %v2141_v49 = vld [vmem:[#allocation3 + $0xe9] sm:$0xff] }
 0x1ce   : > { %10107 = vmatprep.subr.bf16.mxu0 %v10106_v53 }
 0x1cf   : > { %8816 = vmatmul.mubr.f32.gmra.mrb[6].mxu1 %v1572_v33  ;;  %v2142_v33 = vld [vmem:[#allocation3 + $0xf1] sm:$0xff] }
 0x1d0   : > { %8818 = vmatprep.mubr.f32.mxu1 %v1573_v34  ;;  %10069 = vmatpush3.bf16.msra.mxu1 %v10066_v22  ;;  %v2130_v22 = vld [vmem:[#allocation3 + $0x91] sm:$0xff] }
 0x1d1   : > { %10071 = vmatprep.subr.bf16.mxu1 %v10070_v29  ;;  %10109 = vmatpush3.bf16.msra.mxu0 %v10106_v53  ;;  %v7418_v34 = vld [vmem:[%s12289_s1 + $0x3e0] sm:$0xff] }
 0x1d3   : > { %8819 = vmatmul.mubr.f32.gmra.mrb[8].mxu1 %v1574_v54  ;;  %v7420_v54 = vld [vmem:[%s12289_s1 + $0x3f0] sm:$0xff] }
 0x1d4   : > { %8821 = vmatprep.mubr.f32.mxu1 %v1575_v57  ;;  %10073 = vmatpush3.bf16.msra.mxu1 %v10070_v29  ;;  %v2138_v29 = vld [vmem:[#allocation3 + $0xd1] sm:$0xff]  ;;  %v10114_v17 = vpack.c.bf16 %v7421_v37, %v7420_v54 }
 0x1d5   : > { %10075 = vmatprep.subr.bf16.mxu1 %v10074_v35  ;;  %v7390_v57 = vld [vmem:[%s12289_s1 + $0x300] sm:$0xff] }
 0x1d7   : > { %8822 = vmatmul.mubr.f32.gmra.mrb[10].mxu1 %v1576_v38 }
 0x1d8   : > { %8824 = vmatprep.mubr.f32.mxu1 %v1577_v59  ;;  %10077 = vmatpush3.bf16.msra.mxu1 %v10074_v35  ;;  %v7419_v35 = vld [vmem:[%s12289_s1 + $0x3e8] sm:$0xff]  ;;  %v2457_v59 = vld [vmem:[#allocation2 + $0x10] sm:$0xff] }
 0x1d9   : > { %10079 = vmatprep.subr.bf16.mxu1 %v10078_v58  ;;  %v10110_v53 = vpack.c.bf16 %v7419_v35, %v7418_v34  ;;  %v2465_v34 = vld [vmem:[#allocation2 + $0x50] sm:$0xff] }
 0x1db   : > { %8825 = vmatmul.mubr.f32.gmra.mrb[12].mxu1 %v1578_v45  ;;  %10111 = vmatprep.subr.bf16.mxu0 %v10110_v53 }
 0x1dc   : > { %8827 = vmatprep.mubr.f32.mxu1 %v1579_v61  ;;  %10081 = vmatpush3.bf16.msra.mxu1 %v10078_v58  ;;  %v7391_v58 = vld [vmem:[%s12289_s1 + $0x308] sm:$0xff] }
 0x1dd   : > { %10083 = vmatprep.subr.bf16.mxu1 %v10082_v44  ;;  %10113 = vmatpush3.bf16.msra.mxu0 %v10110_v53  ;;  %v10118_v38 = vpack.c.bf16 %v7391_v58, %v7390_v57  ;;  %v2456_v61 = vld [vmem:[#allocation2 + $0x8] sm:$0xff] }
 0x1de   : > { %10115 = vmatprep.subr.bf16.mxu0 %v10114_v17 }
 0x1df   : > { %8828 = vmatmul.mubr.f32.gmra.mrb[14].mxu1 %v1580_v46 }
 0x1e0   : > { %8830 = vmatprep.mubr.f32.mxu1 %v1581_v51  ;;  %10085 = vmatpush3.bf16.msra.mxu1 %v10082_v44 }
 0x1e1   : > { %10117 = vmatpush3.bf16.msra.mxu0 %v10114_v17  ;;  %v2464_v17 = vld [vmem:[#allocation2 + $0x48] sm:$0xff] }
 0x1e2   : > { %10119 = vmatprep.subr.bf16.mxu0 %v10118_v38 }
 0x1e3   : > { %8831 = vmatmul.mubr.f32.gmra.mrb[16].mxu1 %v1582_v23 }
 0x1e4   : > { %8833 = vmatprep.mubr.f32.mxu1 %v1583_v24 }
 0x1e7   : > { %8834 = vmatmul.mubr.f32.gmra.mrb[18].mxu1 %v1584_v55  ;;  %v2459_v55 = vld [vmem:[#allocation2 + $0x20] sm:$0xff] }
 0x1e8   : > { %8836 = vmatprep.mubr.f32.mxu1 %v1585_v1 }
 0x1eb   : > { %8837 = vmatmul.mubr.f32.gmra.mrb[20].mxu1 %v1586_v3 }
 0x1ec   : > { %8839 = vmatprep.mubr.f32.mxu1 %v1587_v56  ;;  %v2458_v56 = vld [vmem:[#allocation2 + $0x18] sm:$0xff] }
 0x1ef   : > { %8840 = vmatmul.mubr.f32.gmra.mrb[22].mxu1 %v1588_v4 }
 0x1f0   : > { %8842 = vmatprep.mubr.f32.mxu1 %v1589_v60  ;;  %v7392_v60 = vld [vmem:[%s12289_s1 + $0x310] sm:$0xff] }
 0x1f3   : > { %8843 = vmatmul.mubr.f32.gmra.mrb[24].mxu1 %v1590_v62  ;;  %v7393_v62 = vld [vmem:[%s12289_s1 + $0x318] sm:$0xff] }
 0x1f4   : > { %8845 = vmatprep.mubr.f32.mxu1 %v1591_v16 }
 0x1f7   : > { %8846 = vmatmul.mubr.f32.gmra.mrb[26].mxu1 %v1592_v25 }
 0x1f8   : > { %8848 = vmatprep.mubr.f32.mxu1 %v1593_v27 }
 0x1fb   : > { %8849 = vmatmul.mubr.f32.gmra.mrb[28].mxu1 %v1594_v0 }
 0x1fc   : > { %8851 = vmatprep.mubr.f32.mxu1 %v1595_v2 }
 0x1ff   : > { %8852 = vmatmul.mubr.f32.gmra.mrb[30].mxu1 %v1596_v5  ;;  %v2461_v5 = vld [vmem:[#allocation2 + $0x30] sm:$0xff] }
 0x200   : > { %8886 = vmatprep.mubr.f32.mxu1 %v2113_v6 }
 0x203   : > { %8887 = vmatmul.mubr.f32.vlgmr.msra.gmra.mrb[0].mxu1 %v2114_v7  ;;  %v10122_v7 = vpack.c.bf16 %v7393_v62, %v7392_v60  ;;  %v7400_v60 = vld [vmem:[%s12289_s1 + $0x350] sm:$0xff]  ;;  %v7401_v62 = vld [vmem:[%s12289_s1 + $0x358] sm:$0xff] }
 0x204   : > { %8889 = vmatprep.mubr.f32.mxu1 %v2115_v30 }
 0x207   : > { %8890 = vmatmul.mubr.f32.gmra.mrb[2].mxu1 %v2116_v31 }
 0x208   : > { %8892 = vmatprep.mubr.f32.mxu1 %v2117_v8  ;;  %v2460_v8 = vld [vmem:[#allocation2 + $0x28] sm:$0xff] }
 0x20b   : > { %8893 = vmatmul.mubr.f32.gmra.mrb[4].mxu1 %v2118_v9 }
 0x20c   : > { %8895 = vmatprep.mubr.f32.mxu1 %v2119_v10 }
 0x20f   : > { %8896 = vmatmul.mubr.f32.gmra.mrb[6].mxu1 %v2120_v11  ;;  %v7394_v11 = vld [vmem:[%s12289_s1 + $0x320] sm:$0xff] }
 0x210   : > { %8898 = vmatprep.mubr.f32.mxu1 %v2121_v12  ;;  %v7395_v12 = vld [vmem:[%s12289_s1 + $0x328] sm:$0xff] }
 0x213   : > { %8899 = vmatmul.mubr.f32.gmra.mrb[8].mxu1 %v2122_v36 }
 0x214   : > { %8901 = vmatprep.mubr.f32.mxu1 %v2123_v40 }
 0x217   : > { %8902 = vmatmul.mubr.f32.gmra.mrb[10].mxu1 %v2124_v13 }
 0x218   : > { %8904 = vmatprep.mubr.f32.mxu1 %v2125_v14 }
 0x21b   : > { %8905 = vmatmul.mubr.f32.gmra.mrb[12].mxu1 %v2126_v18 }
 0x21c   : > { %8907 = vmatprep.mubr.f32.mxu1 %v2127_v20  ;;  %v2463_v20 = vld [vmem:[#allocation2 + $0x40] sm:$0xff] }
 0x21f   : > { %8908 = vmatmul.mubr.f32.gmra.mrb[14].mxu1 %v2128_v63  ;;  %v2462_v63 = vld [vmem:[#allocation2 + $0x38] sm:$0xff] }
 0x220   : > { %8910 = vmatprep.mubr.f32.mxu1 %v2129_v41 }
 0x223   : > { %8911 = vmatmul.mubr.f32.gmra.mrb[16].mxu1 %v2130_v22  ;;  %v10126_v22 = vpack.c.bf16 %v7395_v12, %v7394_v11  ;;  %v7402_v11 = vld [vmem:[%s12289_s1 + $0x360] sm:$0xff]  ;;  %v7403_v12 = vld [vmem:[%s12289_s1 + $0x368] sm:$0xff] }
 0x224   : > { %8913 = vmatprep.mubr.f32.mxu1 %v2131_v19  ;;  %v7396_v19 = vld [vmem:[%s12289_s1 + $0x330] sm:$0xff] }
 0x227   : > { %8914 = vmatmul.mubr.f32.gmra.mrb[18].mxu1 %v2132_v42 }
 0x228   : > { %8916 = vmatprep.mubr.f32.mxu1 %v2133_v15 }
 0x22b   : > { %8917 = vmatmul.mubr.f32.gmra.mrb[20].mxu1 %v2134_v26 }
 0x22c   : > { %8919 = vmatprep.mubr.f32.mxu1 %v2135_v43 }
 0x22f   : > { %8920 = vmatmul.mubr.f32.gmra.mrb[22].mxu1 %v2136_v47  ;;  %v7397_v47 = vld [vmem:[%s12289_s1 + $0x338] sm:$0xff] }
 0x230   : > { %8922 = vmatprep.mubr.f32.mxu1 %v2137_v28  ;;  %v10130_v53 = vpack.c.bf16 %v7397_v47, %v7396_v19  ;;  %v7405_v47 = vld [vmem:[%s12289_s1 + $0x378] sm:$0xff] }
 0x233   : > { %8923 = vmatmul.mubr.f32.gmra.mrb[24].mxu1 %v2138_v29 }
 0x234   : > { %8925 = vmatprep.mubr.f32.mxu1 %v2139_v32 }
 0x237   : > { %8926 = vmatmul.mubr.f32.gmra.mrb[26].mxu1 %v2140_v48 }
 0x238   : > { %8928 = vmatprep.mubr.f32.mxu1 %v2141_v49 }
 0x23b   : > { %8929 = vmatmul.mubr.f32.gmra.mrb[28].mxu1 %v2142_v33 }
 0x23c   : > { %8931 = vmatprep.mubr.f32.mxu1 %v2143_v50 }
 0x23f   : > { %8932 = vmatmul.mubr.f32.gmra.mrb[30].mxu1 %v2144_v52 }
 0x2d6   : > { %v8888_v39 = vpop.f32.mrb[0].mxu1 }
 0x2d7   : > { %v2425_v44 = vadd.f32 %v8888_v39, %v11523_v21  ;;  %v2228_v45 = vpop.f32.mrb[1].mxu1  ;;  %v7399_v39 = vld [vmem:[%s12289_s1 + $0x348] sm:$0xff] }
 0x2d8   : > { %v2424_v46 = vadd.f32 %v11523_v21, %v2228_v45 }
 0x2d9   : > { %v2489_v51 = vadd.f32 %v2457_v59, %v2425_v44 }
 0x2da   : > { %v2488_v23 = vadd.f32 %v2456_v61, %v2424_v46  ;;  %v8891_v24 = vpop.f32.mrb[2].mxu1 }
 0x2db   : > { %2521 = vst [vmem:[#allocation2 + $0x10] sm:$0xff] %v2489_v51  ;;  %v2427_v1 = vadd.f32 %v8891_v24, %v11523_v21  ;;  %v2238_v3 = vpop.f32.mrb[3].mxu1  ;;  %v2774_v4 = vmul.f32 0.1, %v2489_v51  ;;  %vm2742_vm1 = vcmp.ge.f32.partialorder %v2489_v51, 0.0 }
 0x2dc   : > { %2520 = vst [vmem:[#allocation2 + $0x8] sm:$0xff] %v2488_v23  ;;  %v2426_v16 = vadd.f32 %v11523_v21, %v2238_v3  ;;  %vm2741_vm0 = vcmp.ge.f32.partialorder %v2488_v23, 0.0  ;;  %v2773_v25 = vmul.f32 0.1, %v2488_v23  ;;  %v2466_v3 = vld [vmem:[#allocation2 + $0x58] sm:$0xff] }
 0x2dd   : > { %v2491_v27 = vadd.f32 %v2459_v55, %v2427_v1  ;;  %v2806_v9 = vsel %vm2742_vm1, %v2489_v51, %v2774_v4  ;;  %v2467_v51 = vld [vmem:[#allocation2 + $0x60] sm:$0xff] }
 0x2de   : > { %v2490_v0 = vadd.f32 %v2458_v56, %v2426_v16  ;;  %v8894_v2 = vpop.f32.mrb[4].mxu1  ;;  %v2805_v6 = vsel %vm2741_vm0, %v2488_v23, %v2773_v25 }
 0x2df   : > { %2523 = vst [vmem:[#allocation2 + $0x20] sm:$0xff] %v2491_v27  ;;  %v2429_v30 = vadd.f32 %v8894_v2, %v11523_v21  ;;  %v2248_v31 = vpop.f32.mrb[5].mxu1  ;;  %8966 = vmatprep.mubr.f32.mxu0 %v2805_v6  ;;  %v2776_v10 = vmul.f32 0.1, %v2491_v27  ;;  %vm2744_vm3 = vcmp.ge.f32.partialorder %v2491_v27, 0.0 }
 0x2e0   : > { %2522 = vst [vmem:[#allocation2 + $0x18] sm:$0xff] %v2490_v0  ;;  %v2428_v36 = vadd.f32 %v11523_v21, %v2248_v31  ;;  %8967 = vmatmul.mubr.f32.vlgmr.msra.gmra.mrb[32].mxu0 %v2806_v9  ;;  %vm2743_vm2 = vcmp.ge.f32.partialorder %v2490_v0, 0.0  ;;  %v2775_v40 = vmul.f32 0.1, %v2490_v0 }
 0x2e1   : > { %v2493_v13 = vadd.f32 %v2461_v5, %v2429_v30  ;;  %10121 = vmatpush3.bf16.msra.mxu0 %v10118_v38  ;;  %v2808_v26 = vsel %vm2744_vm3, %v2491_v27, %v2776_v10  ;;  %v7398_v38 = vld [vmem:[%s12289_s1 + $0x340] sm:$0xff]  ;;  %v2469_v5 = vld [vmem:[#allocation2 + $0x70] sm:$0xff] }
 0x2e2   : > { %v2492_v14 = vadd.f32 %v2460_v8, %v2428_v36  ;;  %v8897_v18 = vpop.f32.mrb[6].mxu1  ;;  %v2807_v41 = vsel %vm2743_vm2, %v2490_v0, %v2775_v40  ;;  %10123 = vmatprep.subr.bf16.mxu0 %v10122_v7  ;;  %v10134_v24 = vpack.c.bf16 %v7399_v39, %v7398_v38  ;;  %v2468_v8 = vld [vmem:[#allocation2 + $0x68] sm:$0xff] }
 0x2e3   : > { %2525 = vst [vmem:[#allocation2 + $0x30] sm:$0xff] %v2493_v13  ;;  %v2431_v42 = vadd.f32 %v8897_v18, %v11523_v21  ;;  %v2258_v15 = vpop.f32.mrb[7].mxu1  ;;  %8969 = vmatprep.mubr.f32.mxu0 %v2807_v41  ;;  %v2778_v43 = vmul.f32 0.1, %v2493_v13  ;;  %v2552_v28 = vld [vmem:[#allocation2 + $0x9] sm:$0x1]  ;;  %v10142_v41 = vpack.c.bf16 %v7403_v12, %v7402_v11 }
 0x2e4   : > { %2524 = vst [vmem:[#allocation2 + $0x28] sm:$0xff] %v2492_v14  ;;  %v2430_v29 = vadd.f32 %v11523_v21, %v2258_v15  ;;  %8970 = vmatmul.mubr.f32.gmra.mrb[34].mxu0 %v2808_v26  ;;  %vm2745_vm4 = vcmp.ge.f32.partialorder %v2492_v14, 0.0  ;;  %v2777_v32 = vmul.f32 0.1, %v2492_v14  ;;  %vm2746_vm5 = vcmp.ge.f32.partialorder %v2493_v13, 0.0 }
 0x2e5   : > { %2553 = vst [vmem:[#allocation2 + $0x7] sm:$0x1] %v2552_v28  ;;  %v2556_v48 = vld [vmem:[#allocation2 + $0xa] sm:$0x1]  ;;  %v2495_v49 = vadd.f32 %v2463_v20, %v2431_v42  ;;  %10125 = vmatpush3.bf16.msra.mxu0 %v10122_v7  ;;  %v2560_v33 = vld [vmem:[#allocation2 + $0xb] sm:$0x1]  ;;  %v2810_v57 = vsel %vm2746_vm5, %v2493_v13, %v2778_v43  ;;  %v10138_v7 = vpack.c.bf16 %v7401_v62, %v7400_v60 }
 0x2e6   : > { %2557 = vst [vmem:[#allocation2 + $0x6] sm:$0x1] %v2556_v48  ;;  %v2494_v50 = vadd.f32 %v2462_v63, %v2430_v29  ;;  %v8900_v52 = vpop.f32.mrb[8].mxu1  ;;  %v2809_v35 = vsel %vm2745_vm4, %v2492_v14, %v2777_v32  ;;  %10127 = vmatprep.subr.bf16.mxu0 %v10126_v22  ;;  %2561 = vst [vmem:[#allocation2 + $0x5] sm:$0x1] %v2560_v33  ;;  %v2471_v20 = vld [vmem:[#allocation2 + $0x80] sm:$0xff] }
 0x2e7   : > { %2527 = vst [vmem:[#allocation2 + $0x40] sm:$0xff] %v2495_v49  ;;  %v2433_v54 = vadd.f32 %v8900_v52, %v11523_v21  ;;  %v2268_v37 = vpop.f32.mrb[9].mxu1  ;;  %8972 = vmatprep.mubr.f32.mxu0 %v2809_v35  ;;  %v2780_v58 = vmul.f32 0.1, %v2495_v49  ;;  %vm2748_vm7 = vcmp.ge.f32.partialorder %v2495_v49, 0.0  ;;  %v2470_v42 = vld [vmem:[#allocation2 + $0x78] sm:$0xff] }
 0x2e8   : > { %2526 = vst [vmem:[#allocation2 + $0x38] sm:$0xff] %v2494_v50  ;;  %v2432_v59 = vadd.f32 %v11523_v21, %v2268_v37  ;;  %8973 = vmatmul.mubr.f32.gmra.mrb[36].mxu0 %v2810_v57  ;;  %vm2747_vm6 = vcmp.ge.f32.partialorder %v2494_v50, 0.0  ;;  %v2779_v44 = vmul.f32 0.1, %v2494_v50  ;;  %v7404_v43 = vld [vmem:[%s12289_s1 + $0x370] sm:$0xff]  ;;  %v7423_v57 = vld [vmem:[%s12289_s1 + $0x408] sm:$0xff] }
 0x2e9   : > { %v2497_v45 = vadd.f32 %v2465_v34, %v2433_v54  ;;  %10129 = vmatpush3.bf16.msra.mxu0 %v10126_v22  ;;  %v2812_v56 = vsel %vm2748_vm7, %v2495_v49, %v2780_v58  ;;  %v2473_v33 = vld [vmem:[#allocation2 + $0x90] sm:$0xff]  ;;  %v10146_v52 = vpack.c.bf16 %v7405_v47, %v7404_v43  ;;  %v2480_v43 = vld [vmem:[#allocation2 + $0xc8] sm:$0xff] }
 0x2ea   : > { %v2496_v61 = vadd.f32 %v2464_v17, %v2432_v59  ;;  %v8903_v46 = vpop.f32.mrb[10].mxu1  ;;  %v2811_v23 = vsel %vm2747_vm6, %v2494_v50, %v2779_v44  ;;  %10131 = vmatprep.subr.bf16.mxu0 %v10130_v53  ;;  %v7422_v17 = vld [vmem:[%s12289_s1 + $0x400] sm:$0xff] }
 0x2eb   : > { %2529 = vst [vmem:[#allocation2 + $0x50] sm:$0xff] %v2497_v45  ;;  %v2435_v55 = vadd.f32 %v8903_v46, %v11523_v21  ;;  %v2278_v1 = vpop.f32.mrb[11].mxu1  ;;  %8975 = vmatprep.mubr.f32.mxu0 %v2811_v23  ;;  %v2782_v4 = vmul.f32 0.1, %v2497_v45  ;;  %vm2750_vm9 = vcmp.ge.f32.partialorder %v2497_v45, 0.0  ;;  %v11592_v46 = vpack.c.bf16 %v7423_v57, %v7422_v17 }
 0x2ec   : > { %2528 = vst [vmem:[#allocation2 + $0x48] sm:$0xff] %v2496_v61  ;;  %v2434_v16 = vadd.f32 %v11523_v21, %v2278_v1  ;;  %8976 = vmatmul.mubr.f32.gmra.mrb[38].mxu0 %v2812_v56  ;;  %vm2749_vm8 = vcmp.ge.f32.partialorder %v2496_v61, 0.0  ;;  %v2781_v25 = vmul.f32 0.1, %v2496_v61 }
 0x2ed   : > { %v2499_v27 = vadd.f32 %v2467_v51, %v2435_v55  ;;  %10133 = vmatpush3.bf16.msra.mxu0 %v10130_v53  ;;  %v2814_v9 = vsel %vm2750_vm9, %v2497_v45, %v2782_v4  ;;  %v2472_v53 = vld [vmem:[#allocation2 + $0x88] sm:$0xff]  ;;  %v2475_v45 = vld [vmem:[#allocation2 + $0xa0] sm:$0xff] }
 0x2ee   : > { %v2498_v0 = vadd.f32 %v2466_v3, %v2434_v16  ;;  %v8906_v2 = vpop.f32.mrb[12].mxu1  ;;  %v2813_v6 = vsel %vm2749_vm8, %v2496_v61, %v2781_v25  ;;  %10135 = vmatprep.subr.bf16.mxu0 %v10134_v24  ;;  %v2477_v16 = vld [vmem:[#allocation2 + $0xb0] sm:$0xff] }
 0x2ef   : > { %2531 = vst [vmem:[#allocation2 + $0x60] sm:$0xff] %v2499_v27  ;;  %v2437_v30 = vadd.f32 %v8906_v2, %v11523_v21  ;;  %v2288_v31 = vpop.f32.mrb[13].mxu1  ;;  %8978 = vmatprep.mubr.f32.mxu0 %v2813_v6  ;;  %v2784_v10 = vmul.f32 0.1, %v2499_v27  ;;  %vm2752_vm11 = vcmp.ge.f32.partialorder %v2499_v27, 0.0  ;;  %v2476_v2 = vld [vmem:[#allocation2 + $0xa8] sm:$0xff] }
 0x2f0   : > { %2530 = vst [vmem:[#allocation2 + $0x58] sm:$0xff] %v2498_v0  ;;  %v2436_v36 = vadd.f32 %v11523_v21, %v2288_v31  ;;  %8979 = vmatmul.mubr.f32.gmra.mrb[40].mxu0 %v2814_v9  ;;  %vm2751_vm10 = vcmp.ge.f32.partialorder %v2498_v0, 0.0  ;;  %v2783_v40 = vmul.f32 0.1, %v2498_v0 }
 0x2f1   : > { %v2501_v13 = vadd.f32 %v2469_v5, %v2437_v30  ;;  %10137 = vmatpush3.bf16.msra.mxu0 %v10134_v24  ;;  %v2816_v15 = vsel %vm2752_vm11, %v2499_v27, %v2784_v10  ;;  %v2474_v24 = vld [vmem:[#allocation2 + $0x98] sm:$0xff]  ;;  %v2479_v10 = vld [vmem:[#allocation2 + $0xc0] sm:$0xff] }
 0x2f2   : > { %v2500_v14 = vadd.f32 %v2468_v8, %v2436_v36  ;;  %v8909_v18 = vpop.f32.mrb[14].mxu1  ;;  %v2815_v63 = vsel %vm2751_vm10, %v2498_v0, %v2783_v40  ;;  %10139 = vmatprep.subr.bf16.mxu0 %v10138_v7  ;;  %v2478_v40 = vld [vmem:[#allocation2 + $0xb8] sm:$0xff] }
 0x2f3   : > { %2533 = vst [vmem:[#allocation2 + $0x70] sm:$0xff] %v2501_v13  ;;  %v2439_v22 = vadd.f32 %v8909_v18, %v11523_v21  ;;  %v2298_v19 = vpop.f32.mrb[15].mxu1  ;;  %8981 = vmatprep.mubr.f32.mxu0 %v2815_v63  ;;  %v2786_v26 = vmul.f32 0.1, %v2501_v13  ;;  %vm2754_vm13 = vcmp.ge.f32.partialorder %v2501_v13, 0.0 }
 0x2f4   : > { %2532 = vst [vmem:[#allocation2 + $0x68] sm:$0xff] %v2500_v14  ;;  %v2438_v28 = vadd.f32 %v11523_v21, %v2298_v19  ;;  %8982 = vmatmul.mubr.f32.gmra.mrb[42].mxu0 %v2816_v15  ;;  %vm2753_vm12 = vcmp.ge.f32.partialorder %v2500_v14, 0.0  ;;  %v2785_v29 = vmul.f32 0.1, %v2500_v14  ;;  %v2481_v19 = vld [vmem:[#allocation2 + $0xd0] sm:$0xff] }
 0x2f5   : > { %v2503_v32 = vadd.f32 %v2471_v20, %v2439_v22  ;;  %10141 = vmatpush3.bf16.msra.mxu0 %v10138_v7  ;;  %v2818_v54 = vsel %vm2754_vm13, %v2501_v13, %v2786_v26 }
 0x2f6   : > { %v2502_v48 = vadd.f32 %v2470_v42, %v2438_v28  ;;  %v8912_v49 = vpop.f32.mrb[16].mxu1  ;;  %v2817_v50 = vsel %vm2753_vm12, %v2500_v14, %v2785_v29  ;;  %10143 = vmatprep.subr.bf16.mxu0 %v10142_v41 }
 0x2f7   : > { %2535 = vst [vmem:[#allocation2 + $0x80] sm:$0xff] %v2503_v32  ;;  %v2441_v34 = vadd.f32 %v8912_v49, %v11523_v21  ;;  %v2308_v35 = vpop.f32.mrb[17].mxu1  ;;  %8984 = vmatprep.mubr.f32.mxu0 %v2817_v50  ;;  %v2788_v37 = vmul.f32 0.1, %v2503_v32  ;;  %vm2756_vm15 = vcmp.ge.f32.partialorder %v2503_v32, 0.0  ;;  %v2483_v50 = vld [vmem:[#allocation2 + $0xe0] sm:$0xff] }
 0x2f8   : > { %2534 = vst [vmem:[#allocation2 + $0x78] sm:$0xff] %v2502_v48  ;;  %v2440_v58 = vadd.f32 %v11523_v21, %v2308_v35  ;;  %8985 = vmatmul.mubr.f32.gmra.mrb[44].mxu0 %v2818_v54  ;;  %vm2755_vm14 = vcmp.ge.f32.partialorder %v2502_v48, 0.0  ;;  %v2787_v38 = vmul.f32 0.1, %v2502_v48 }
 0x2f9   : > { %v2505_v39 = vadd.f32 %v2473_v33, %v2441_v34  ;;  %10145 = vmatpush3.bf16.msra.mxu0 %v10142_v41  ;;  %v2820_v55 = vsel %vm2756_vm15, %v2503_v32, %v2788_v37 }
 0x2fa   : > { %v2504_v59 = vadd.f32 %v2472_v53, %v2440_v58  ;;  %v8915_v44 = vpop.f32.mrb[18].mxu1  ;;  %v2819_v61 = vsel %vm2755_vm14, %v2502_v48, %v2787_v38  ;;  %10147 = vmatprep.subr.bf16.mxu0 %v10146_v52  ;;  %v2482_v53 = vld [vmem:[#allocation2 + $0xd8] sm:$0xff] }
 0x2fb   : > { %2537 = vst [vmem:[#allocation2 + $0x90] sm:$0xff] %v2505_v39  ;;  %v2443_v51 = vadd.f32 %v8915_v44, %v11523_v21  ;;  %v2318_v23 = vpop.f32.mrb[19].mxu1  ;;  %8987 = vmatprep.mubr.f32.mxu0 %v2819_v61  ;;  %v2790_v1 = vmul.f32 0.1, %v2505_v39  ;;  %vm2758_vm1 = vcmp.ge.f32.partialorder %v2505_v39, 0.0 }
 0x2fc   : > { %2536 = vst [vmem:[#allocation2 + $0x88] sm:$0xff] %v2504_v59  ;;  %v2442_v3 = vadd.f32 %v11523_v21, %v2318_v23  ;;  %8988 = vmatmul.mubr.f32.gmra.mrb[46].mxu0 %v2820_v55  ;;  %vm2757_vm0 = vcmp.ge.f32.partialorder %v2504_v59, 0.0  ;;  %v2789_v56 = vmul.f32 0.1, %v2504_v59 }
 0x2fd   : > { %v2507_v4 = vadd.f32 %v2475_v45, %v2443_v51  ;;  %10149 = vmatpush3.bf16.msra.mxu0 %v10146_v52  ;;  %v2822_v5 = vsel %vm2758_vm1, %v2505_v39, %v2790_v1  ;;  %v2484_v51 = vld [vmem:[#allocation2 + $0xe8] sm:$0xff] }
 0x2fe   : > { %v2506_v60 = vadd.f32 %v2474_v24, %v2442_v3  ;;  %v8918_v62 = vpop.f32.mrb[20].mxu1  ;;  %v2821_v25 = vsel %vm2757_vm0, %v2504_v59, %v2789_v56  ;;  %10151 = vmatprep.subr.bf16.mxu0 %v11592_v46  ;;  %v2485_v59 = vld [vmem:[#allocation2 + $0xf0] sm:$0xff] }
 0x2ff   : > { %2539 = vst [vmem:[#allocation2 + $0xa0] sm:$0xff] %v2507_v4  ;;  %v2445_v27 = vadd.f32 %v8918_v62, %v11523_v21  ;;  %v2328_v0 = vpop.f32.mrb[21].mxu1  ;;  %8990 = vmatprep.mubr.f32.mxu0 %v2821_v25  ;;  %v2792_v6 = vmul.f32 0.1, %v2507_v4  ;;  %vm2760_vm3 = vcmp.ge.f32.partialorder %v2507_v4, 0.0 }
 0x300   : > { %2538 = vst [vmem:[#allocation2 + $0x98] sm:$0xff] %v2506_v60  ;;  %v2444_v7 = vadd.f32 %v11523_v21, %v2328_v0  ;;  %8991 = vmatmul.mubr.f32.gmra.mrb[48].mxu0 %v2822_v5  ;;  %vm2759_vm2 = vcmp.ge.f32.partialorder %v2506_v60, 0.0  ;;  %v2791_v30 = vmul.f32 0.1, %v2506_v60 }
 0x301   : > { %v2509_v31 = vadd.f32 %v2477_v16, %v2445_v27  ;;  %v2824_v13 = vsel %vm2760_vm3, %v2507_v4, %v2792_v6  ;;  %v2486_v27 = vld [vmem:[#allocation2 + $0xf8] sm:$0xff] }
 0x302   : > { %v2508_v8 = vadd.f32 %v2476_v2, %v2444_v7  ;;  %v8921_v9 = vpop.f32.mrb[22].mxu1  ;;  %v2823_v11 = vsel %vm2759_vm2, %v2506_v60, %v2791_v30  ;;  %v2487_v60 = vld [vmem:[#allocation2 + $0x100] sm:$0xff] }
 0x303   : > { %2541 = vst [vmem:[#allocation2 + $0xb0] sm:$0xff] %v2509_v31  ;;  %v2447_v12 = vadd.f32 %v8921_v9, %v11523_v21  ;;  %v2338_v36 = vpop.f32.mrb[23].mxu1  ;;  %8993 = vmatprep.mubr.f32.mxu0 %v2823_v11  ;;  %v2794_v14 = vmul.f32 0.1, %v2509_v31  ;;  %vm2762_vm5 = vcmp.ge.f32.partialorder %v2509_v31, 0.0  ;;  %v2564_v30 = vld [vmem:[#allocation2 + $0x5] sm:$0xff] }
 0x304   : > { %2540 = vst [vmem:[#allocation2 + $0xa8] sm:$0xff] %v2508_v8  ;;  %v2446_v18 = vadd.f32 %v11523_v21, %v2338_v36  ;;  %8994 = vmatmul.mubr.f32.gmra.mrb[50].mxu0 %v2824_v13  ;;  %vm2761_vm4 = vcmp.ge.f32.partialorder %v2508_v8, 0.0  ;;  %v2793_v20 = vmul.f32 0.1, %v2508_v8  ;;  %v2565_v11 = vld [vmem:[#allocation2 + $0xd] sm:$0xff]  ;;  %vm2596_vm0 = vcmp.ge.f32.partialorder %v2564_v30, 0.0 }
 0x305   : > { %v2511_v63 = vadd.f32 %v2479_v10, %v2447_v12  ;;  %v2826_v47 = vsel %vm2762_vm5, %v2509_v31, %v2794_v14  ;;  %v2628_v36 = vmul.f32 0.1, %v2564_v30  ;;  %v2629_v14 = vmul.f32 0.1, %v2565_v11 }
 0x306   : > { %v2510_v41 = vadd.f32 %v2478_v40, %v2446_v18  ;;  %v8924_v22 = vpop.f32.mrb[24].mxu1  ;;  %v2825_v42 = vsel %vm2761_vm4, %v2508_v8, %v2793_v20  ;;  %v7424_v18 = vld [vmem:[%s12289_s1 + $0x410] sm:$0xff]  ;;  %v7425_v20 = vld [vmem:[%s12289_s1 + $0x418] sm:$0xff]  ;;  %vm2597_vm1 = vcmp.ge.f32.partialorder %v2565_v11, 0.0 }
 0x307   : > { %2543 = vst [vmem:[#allocation2 + $0xc0] sm:$0xff] %v2511_v63  ;;  %v2449_v15 = vadd.f32 %v8924_v22, %v11523_v21  ;;  %v2348_v26 = vpop.f32.mrb[25].mxu1  ;;  %8996 = vmatprep.mubr.f32.mxu0 %v2825_v42  ;;  %v2796_v28 = vmul.f32 0.1, %v2511_v63  ;;  %vm2764_vm7 = vcmp.ge.f32.partialorder %v2511_v63, 0.0  ;;  %v2567_v22 = vld [vmem:[#allocation2 + $0x1d] sm:$0xff]  ;;  %v10154_v42 = vpack.c.bf16 %v7425_v20, %v7424_v18 }
 0x308   : > { %2542 = vst [vmem:[#allocation2 + $0xb8] sm:$0xff] %v2510_v41  ;;  %v2448_v29 = vadd.f32 %v11523_v21, %v2348_v26  ;;  %8997 = vmatmul.mubr.f32.gmra.mrb[52].mxu0 %v2826_v47  ;;  %vm2763_vm6 = vcmp.ge.f32.partialorder %v2510_v41, 0.0  ;;  %v2795_v32 = vmul.f32 0.1, %v2510_v41  ;;  %v2661_v26 = vsel %vm2597_vm1, %v2565_v11, %v2629_v14  ;;  %v7426_v47 = vld [vmem:[%s12289_s1 + $0x420] sm:$0xff]  ;;  %v7457_v11 = vld [vmem:[%s12289_s1 + $0x510] sm:$0xff] }
 0x309   : > { %v2513_v48 = vadd.f32 %v2481_v19, %v2449_v15  ;;  %v2828_v54 = vsel %vm2764_vm7, %v2511_v63, %v2796_v28  ;;  %v2660_v63 = vsel %vm2596_vm0, %v2564_v30, %v2628_v36  ;;  %v2568_v19 = vld [vmem:[#allocation2 + $0x25] sm:$0xff]  ;;  %vm2599_vm3 = vcmp.ge.f32.partialorder %v2567_v22, 0.0  ;;  %v2577_v30 = vld [vmem:[#allocation2 + $0x6d] sm:$0xff]  ;;  %v2579_v20 = vld [vmem:[#allocation2 + $0x7d] sm:$0xff] }
 0x30a   : > { %v2512_v49 = vadd.f32 %v2480_v43, %v2448_v29  ;;  %v8927_v33 = vpop.f32.mrb[26].mxu1  ;;  %v2827_v52 = vsel %vm2763_vm6, %v2510_v41, %v2795_v32  ;;  %v2631_v43 = vmul.f32 0.1, %v2567_v22  ;;  %v7427_v28 = vld [vmem:[%s12289_s1 + $0x428] sm:$0xff]  ;;  %v2632_v32 = vmul.f32 0.1, %v2568_v19 }
 0x30b   : > { %2545 = vst [vmem:[#allocation2 + $0xd0] sm:$0xff] %v2513_v48  ;;  %v2451_v34 = vadd.f32 %v8927_v33, %v11523_v21  ;;  %v2358_v35 = vpop.f32.mrb[27].mxu1  ;;  %8999 = vmatprep.mubr.f32.mxu0 %v2827_v52  ;;  %v2798_v37 = vmul.f32 0.1, %v2513_v48  ;;  %vm2766_vm9 = vcmp.ge.f32.partialorder %v2513_v48, 0.0  ;;  %vm2600_vm4 = vcmp.ge.f32.partialorder %v2568_v19, 0.0 }
 0x30c   : > { %2544 = vst [vmem:[#allocation2 + $0xc8] sm:$0xff] %v2512_v49  ;;  %v2450_v17 = vadd.f32 %v11523_v21, %v2358_v35  ;;  %9000 = vmatmul.mubr.f32.gmra.mrb[54].mxu0 %v2828_v54  ;;  %vm2765_vm8 = vcmp.ge.f32.partialorder %v2512_v49, 0.0  ;;  %v2797_v57 = vmul.f32 0.1, %v2512_v49  ;;  %v7429_v54 = vld [vmem:[%s12289_s1 + $0x438] sm:$0xff] }
 0x30d   : > { %v2515_v58 = vadd.f32 %v2483_v50, %v2451_v34  ;;  %v2830_v23 = vsel %vm2766_vm9, %v2513_v48, %v2798_v37  ;;  %v2569_v48 = vld [vmem:[#allocation2 + $0x2d] sm:$0xff]  ;;  %v10158_v50 = vpack.c.bf16 %v7427_v28, %v7426_v47  ;;  %v2663_v34 = vsel %vm2599_vm3, %v2567_v22, %v2631_v43 }
 0x30e   : > { %v2514_v38 = vadd.f32 %v2482_v53, %v2450_v17  ;;  %v8930_v39 = vpop.f32.mrb[28].mxu1  ;;  %v2829_v44 = vsel %vm2765_vm8, %v2512_v49, %v2797_v57  ;;  %v2570_v49 = vld [vmem:[#allocation2 + $0x35] sm:$0xff]  ;;  %v2633_v35 = vmul.f32 0.1, %v2569_v48  ;;  %vm2601_vm5 = vcmp.ge.f32.partialorder %v2569_v48, 0.0  ;;  %v2571_v17 = vld [vmem:[#allocation2 + $0x3d] sm:$0xff] }
 0x30f   : > { %2547 = vst [vmem:[#allocation2 + $0xe0] sm:$0xff] %v2515_v58  ;;  %v2453_v45 = vadd.f32 %v8930_v39, %v11523_v21  ;;  %v2368_v61 = vpop.f32.mrb[29].mxu1  ;;  %9002 = vmatprep.mubr.f32.mxu0 %v2829_v44  ;;  %v2800_v24 = vmul.f32 0.1, %v2515_v58  ;;  %vm2768_vm11 = vcmp.ge.f32.partialorder %v2515_v58, 0.0  ;;  %v7428_v53 = vld [vmem:[%s12289_s1 + $0x430] sm:$0xff] }
 0x310   : > { %2546 = vst [vmem:[#allocation2 + $0xd8] sm:$0xff] %v2514_v38  ;;  %v2452_v55 = vadd.f32 %v11523_v21, %v2368_v61  ;;  %9003 = vmatmul.mubr.f32.gmra.mrb[56].mxu0 %v2830_v23  ;;  %vm2767_vm10 = vcmp.ge.f32.partialorder %v2514_v38, 0.0  ;;  %v2799_v1 = vmul.f32 0.1, %v2514_v38  ;;  %v2634_v37 = vmul.f32 0.1, %v2570_v49 }
 0x311   : > { %v2517_v3 = vadd.f32 %v2485_v59, %v2453_v45  ;;  %v2832_v0 = vsel %vm2768_vm11, %v2515_v58, %v2800_v24  ;;  %vm2602_vm6 = vcmp.ge.f32.partialorder %v2570_v49, 0.0  ;;  %v2572_v57 = vld [vmem:[#allocation2 + $0x45] sm:$0xff]  ;;  %v10162_v58 = vpack.c.bf16 %v7429_v54, %v7428_v53  ;;  %v2574_v23 = vld [vmem:[#allocation2 + $0x55] sm:$0xff]  ;;  %v2583_v53 = vld [vmem:[#allocation2 + $0x9d] sm:$0xff] }
 0x312   : > { %v2516_v56 = vadd.f32 %v2484_v51, %v2452_v55  ;;  %v8933_v4 = vpop.f32.mrb[30].mxu1  ;;  %v2831_v62 = vsel %vm2767_vm10, %v2514_v38, %v2799_v1  ;;  %v2665_v38 = vsel %vm2601_vm5, %v2569_v48, %v2633_v35  ;;  %v2635_v39 = vmul.f32 0.1, %v2571_v17  ;;  %v7430_v59 = vld [vmem:[%s12289_s1 + $0x440] sm:$0xff]  ;;  %v7431_v44 = vld [vmem:[%s12289_s1 + $0x448] sm:$0xff]  ;;  %v2582_v48 = vld [vmem:[#allocation2 + $0x95] sm:$0xff] }
 0x313   : > { %2549 = vst [vmem:[#allocation2 + $0xf0] sm:$0xff] %v2517_v3  ;;  %v2455_v16 = vadd.f32 %v8933_v4, %v11523_v21  ;;  %v2378_v25 = vpop.f32.mrb[31].mxu1  ;;  %9005 = vmatprep.mubr.f32.mxu0 %v2831_v62  ;;  %v2802_v2 = vmul.f32 0.1, %v2517_v3  ;;  %vm2770_vm13 = vcmp.ge.f32.partialorder %v2517_v3, 0.0  ;;  %v2666_v45 = vsel %vm2602_vm6, %v2570_v49, %v2634_v37  ;;  %v2573_v51 = vld [vmem:[#allocation2 + $0x4d] sm:$0xff] }
 0x314   : > { %2548 = vst [vmem:[#allocation2 + $0xe8] sm:$0xff] %v2516_v56  ;;  %v2454_v5 = vadd.f32 %v11523_v21, %v2378_v25  ;;  %9006 = vmatmul.mubr.f32.gmra.mrb[58].mxu0 %v2832_v0  ;;  %vm2769_vm12 = vcmp.ge.f32.partialorder %v2516_v56, 0.0  ;;  %v2801_v6 = vmul.f32 0.1, %v2516_v56  ;;  %v2566_v21 = vld [vmem:[#allocation2 + $0x15] sm:$0xff]  ;;  %vm2603_vm7 = vcmp.ge.f32.partialorder %v2571_v17, 0.0 }
 0x315   : > { %v2519_v7 = vadd.f32 %v2487_v60, %v2455_v16  ;;  %v2834_v9 = vsel %vm2770_vm13, %v2517_v3, %v2802_v2  ;;  %v2630_v41 = vmul.f32 0.1, %v2566_v21  ;;  %vm2598_vm2 = vcmp.ge.f32.partialorder %v2566_v21, 0.0  ;;  %v7432_v3 = vld [vmem:[%s12289_s1 + $0x450] sm:$0xff]  ;;  %v2575_v62 = vld [vmem:[#allocation2 + $0x5d] sm:$0xff]  ;;  %v2576_v16 = vld [vmem:[#allocation2 + $0x65] sm:$0xff] }
 0x316   : > { %v2518_v31 = vadd.f32 %v2486_v27, %v2454_v5  ;;  %v2833_v8 = vsel %vm2769_vm12, %v2516_v56, %v2801_v6  ;;  %v2636_v61 = vmul.f32 0.1, %v2572_v57  ;;  %vm2604_vm8 = vcmp.ge.f32.partialorder %v2572_v57, 0.0  ;;  %v7433_v56 = vld [vmem:[%s12289_s1 + $0x458] sm:$0xff]  ;;  %v7434_v2 = vld [vmem:[%s12289_s1 + $0x460] sm:$0xff]  ;;  %v7435_v5 = vld [vmem:[%s12289_s1 + $0x468] sm:$0xff] }
 0x317   : > { %2551 = vst [vmem:[#allocation2 + $0x100] sm:$0xff] %v2519_v7  ;;  %9008 = vmatprep.mubr.f32.mxu0 %v2833_v8  ;;  %v2804_v10 = vmul.f32 0.1, %v2519_v7  ;;  %vm2772_vm15 = vcmp.ge.f32.partialorder %v2519_v7, 0.0  ;;  %v2662_v29 = vsel %vm2598_vm2, %v2566_v21, %v2630_v41  ;;  %v10166_v24 = vpack.c.bf16 %v7431_v44, %v7430_v59  ;;  %v7455_v8 = vld [vmem:[%s12289_s1 + $0x500] sm:$0xff]  ;;  %v7461_v49 = vld [vmem:[%s12289_s1 + $0x530] sm:$0xff] }
 0x318   : > { %2550 = vst [vmem:[#allocation2 + $0xf8] sm:$0xff] %v2518_v31  ;;  %9009 = vmatmul.mubr.f32.gmra.mrb[60].mxu0 %v2834_v9  ;;  %vm2771_vm14 = vcmp.ge.f32.partialorder %v2518_v31, 0.0  ;;  %v2803_v12 = vmul.f32 0.1, %v2518_v31  ;;  %v2667_v55 = vsel %vm2603_vm7, %v2571_v17, %v2635_v39  ;;  %v2637_v1 = vmul.f32 0.1, %v2573_v51 }
 0x319   : > { %v2836_v13 = vsel %vm2772_vm15, %v2519_v7, %v2804_v10  ;;  %v2668_v4 = vsel %vm2604_vm8, %v2572_v57, %v2636_v61  ;;  %vm2605_vm9 = vcmp.ge.f32.partialorder %v2573_v51, 0.0  ;;  %v2638_v60 = vmul.f32 0.1, %v2574_v23  ;;  %v7456_v9 = vld [vmem:[%s12289_s1 + $0x508] sm:$0xff]  ;;  %v7463_v37 = vld [vmem:[%s12289_s1 + $0x540] sm:$0xff]  ;;  %v7465_v61 = vld [vmem:[%s12289_s1 + $0x550] sm:$0xff] }
 0x31a   : > { %v2835_v40 = vsel %vm2771_vm14, %v2518_v31, %v2803_v12  ;;  %vm2606_vm10 = vcmp.ge.f32.partialorder %v2574_v23, 0.0  ;;  %v10170_v25 = vpack.c.bf16 %v7433_v56, %v7432_v3  ;;  %v2669_v27 = vsel %vm2605_vm9, %v2573_v51, %v2637_v1  ;;  %v2578_v31 = vld [vmem:[#allocation2 + $0x75] sm:$0xff]  ;;  %v2580_v41 = vld [vmem:[#allocation2 + $0x85] sm:$0xff]  ;;  %v2585_v59 = vld [vmem:[#allocation2 + $0xad] sm:$0xff] }
 0x31b   : > { %9011 = vmatprep.mubr.f32.mxu0 %v2835_v40  ;;  %v2639_v0 = vmul.f32 0.1, %v2575_v62  ;;  %v2670_v6 = vsel %vm2606_vm10, %v2574_v23, %v2638_v60  ;;  %vm2607_vm11 = vcmp.ge.f32.partialorder %v2575_v62, 0.0  ;;  %v2640_v7 = vmul.f32 0.1, %v2576_v16  ;;  %v7458_v12 = vld [vmem:[%s12289_s1 + $0x518] sm:$0xff] }
 0x31c   : > { %9012 = vmatmul.mubr.f32.gmra.mrb[62].mxu0 %v2836_v13  ;;  %vm2608_vm12 = vcmp.ge.f32.partialorder %v2576_v16, 0.0  ;;  %v10174_v10 = vpack.c.bf16 %v7435_v5, %v7434_v2  ;;  %v2641_v21 = vmul.f32 0.1, %v2577_v30  ;;  %v7436_v40 = vld [vmem:[%s12289_s1 + $0x470] sm:$0xff]  ;;  %v7437_v13 = vld [vmem:[%s12289_s1 + $0x478] sm:$0xff]  ;;  %vm2609_vm13 = vcmp.ge.f32.partialorder %v2577_v30, 0.0 }
 0x31d   : > { %9046 = vmatprep.mubr.f32.mxu0 %v2660_v63  ;;  %v2671_v36 = vsel %vm2607_vm11, %v2575_v62, %v2639_v0  ;;  %v2672_v14 = vsel %vm2608_vm12, %v2576_v16, %v2640_v7  ;;  %v2642_v18 = vmul.f32 0.1, %v2578_v31  ;;  %v10182_v63 = vpack.c.bf16 %v7456_v9, %v7455_v8  ;;  %v7464_v17 = vld [vmem:[%s12289_s1 + $0x548] sm:$0xff]  ;;  %v7466_v51 = vld [vmem:[%s12289_s1 + $0x558] sm:$0xff] }
 0x31e   : > { %v2554_v15 = vld [vmem:[#allocation2 + $0x106] sm:$0x1]  ;;  %v2558_v33 = vld [vmem:[#allocation2 + $0x105] sm:$0x1]  ;;  %v2562_v52 = vld [vmem:[#allocation2 + $0x104] sm:$0x1]  ;;  %v10186_v22 = vpack.c.bf16 %v7458_v12, %v7457_v11  ;;  %v10198_v44 = vpack.c.bf16 %v7464_v17, %v7463_v37  ;;  %v10202_v56 = vpack.c.bf16 %v7466_v51, %v7465_v61 }
 0x31f   : > { %2555 = vst [vmem:[#allocation2 + $0x108] sm:$0x1] %v2554_v15  ;;  %2559 = vst [vmem:[#allocation2 + $0x109] sm:$0x1] %v2558_v33  ;;  %vm2610_vm14 = vcmp.ge.f32.partialorder %v2578_v31, 0.0  ;;  %v10178_v15 = vpack.c.bf16 %v7437_v13, %v7436_v40  ;;  %10183 = vmatprep.subr.bf16.mxu1 %v10182_v63  ;;  %vm2611_vm15 = vcmp.ge.f32.partialorder %v2579_v20, 0.0 }
 0x320   : > { %9047 = vmatmul.mubr.f32.vlgmr.msra.gmra.mrb[32].mxu0 %v2661_v26  ;;  %2563 = vst [vmem:[#allocation2 + $0x10a] sm:$0x1] %v2562_v52  ;;  %v2673_v26 = vsel %vm2609_vm13, %v2577_v30, %v2641_v21  ;;  %v2643_v43 = vmul.f32 0.1, %v2579_v20  ;;  %10185 = vmatpush3.bf16.msra.mxu1 %v10182_v63  ;;  %v2674_v47 = vsel %vm2610_vm14, %v2578_v31, %v2642_v18  ;;  %v2644_v28 = vmul.f32 0.1, %v2580_v41 }
 0x321   : > { %9049 = vmatprep.mubr.f32.mxu0 %v2662_v29  ;;  %10153 = vmatpush3.bf16.msra.mxu0 %v11592_v46  ;;  %v2664_v46 = vsel %vm2600_vm4, %v2568_v19, %v2632_v32  ;;  %v7459_v19 = vld [vmem:[%s12289_s1 + $0x520] sm:$0xff]  ;;  %v2581_v29 = vld [vmem:[#allocation2 + $0x8d] sm:$0xff]  ;;  %vm2612_vm0 = vcmp.ge.f32.partialorder %v2580_v41, 0.0  ;;  %v7462_v33 = vld [vmem:[%s12289_s1 + $0x538] sm:$0xff]  ;;  %v2646_v35 = vmul.f32 0.1, %v2582_v48 }
 0x322   : > { %10155 = vmatprep.subr.bf16.mxu0 %v10154_v42  ;;  %10187 = vmatprep.subr.bf16.mxu1 %v10186_v22  ;;  %v2645_v52 = vmul.f32 0.1, %v2581_v29  ;;  %vm2613_vm1 = vcmp.ge.f32.partialorder %v2581_v29, 0.0  ;;  %v10194_v54 = vpack.c.bf16 %v7462_v33, %v7461_v49  ;;  %vm2614_vm2 = vcmp.ge.f32.partialorder %v2582_v48, 0.0  ;;  %v2587_v3 = vld [vmem:[#allocation2 + $0xbd] sm:$0xff]  ;;  %v2590_v0 = vld [vmem:[#allocation2 + $0xd5] sm:$0xff] }
 0x323   : > { %vm2615_vm3 = vcmp.ge.f32.partialorder %v2583_v53, 0.0  ;;  %vm2617_vm5 = vcmp.ge.f32.partialorder %v2585_v59, 0.0  ;;  %v2651_v62 = vmul.f32 0.1, %v2587_v3  ;;  %vm2619_vm7 = vcmp.ge.f32.partialorder %v2587_v3, 0.0  ;;  %v2591_v30 = vld [vmem:[#allocation2 + $0xdd] sm:$0xff] }
 0x324   : > { %9050 = vmatmul.mubr.f32.gmra.mrb[34].mxu0 %v2663_v34  ;;  %10189 = vmatpush3.bf16.msra.mxu1 %v10186_v22  ;;  %v2676_v34 = vsel %vm2612_vm0, %v2580_v41, %v2644_v28  ;;  %v2677_v57 = vsel %vm2613_vm1, %v2581_v29, %v2645_v52  ;;  %v2654_v7 = vmul.f32 0.1, %v2590_v0  ;;  %vm2622_vm10 = vcmp.ge.f32.partialorder %v2590_v0, 0.0  ;;  %v2592_v31 = vld [vmem:[#allocation2 + $0xe5] sm:$0xff]  ;;  %v2593_v12 = vld [vmem:[#allocation2 + $0xed] sm:$0xff]  ;;  %v2595_v18 = vld [vmem:[#allocation2 + $0xfd] sm:$0xff] }
 0x325   : > { %9052 = vmatprep.mubr.f32.mxu0 %v2664_v46  ;;  %10157 = vmatpush3.bf16.msra.mxu0 %v10154_v42  ;;  %v7460_v42 = vld [vmem:[%s12289_s1 + $0x528] sm:$0xff]  ;;  %v2683_v2 = vsel %vm2619_vm7, %v2587_v3, %v2651_v62  ;;  %v2655_v9 = vmul.f32 0.1, %v2591_v30  ;;  %vm2623_vm11 = vcmp.ge.f32.partialorder %v2591_v30, 0.0  ;;  %v2656_v11 = vmul.f32 0.1, %v2592_v31 }
 0x326   : > { %10159 = vmatprep.subr.bf16.mxu0 %v10158_v50  ;;  %v10190_v32 = vpack.c.bf16 %v7460_v42, %v7459_v19  ;;  %v2584_v46 = vld [vmem:[#allocation2 + $0xa5] sm:$0xff]  ;;  %vm2624_vm12 = vcmp.ge.f32.partialorder %v2592_v31, 0.0  ;;  %v2657_v40 = vmul.f32 0.1, %v2593_v12  ;;  %vm2625_vm13 = vcmp.ge.f32.partialorder %v2593_v12, 0.0  ;;  %v3305_v42 = vld [vmem:[#allocation2 + $0x13] sm:$0xff] }
 0x327   : > { %v2648_v39 = vmul.f32 0.1, %v2584_v46  ;;  %vm2616_vm4 = vcmp.ge.f32.partialorder %v2584_v46, 0.0  ;;  %v2687_v21 = vsel %vm2623_vm11, %v2591_v30, %v2655_v9  ;;  %v2688_v13 = vsel %vm2624_vm12, %v2592_v31, %v2656_v11  ;;  %v3307_v29 = vld [vmem:[#allocation2 + $0x23] sm:$0xff]  ;;  %v3309_v52 = vld [vmem:[#allocation2 + $0x33] sm:$0xff]  ;;  %v3312_v17 = vld [vmem:[#allocation2 + $0x4b] sm:$0xff] }
 0x328   : > { %9053 = vmatmul.mubr.f32.gmra.mrb[36].mxu0 %v2665_v38  ;;  %10191 = vmatprep.subr.bf16.mxu1 %v10190_v32  ;;  %v2678_v38 = vsel %vm2614_vm2, %v2582_v48, %v2646_v35  ;;  %v2689_v63 = vsel %vm2625_vm13, %v2593_v12, %v2657_v40  ;;  %v2659_v41 = vmul.f32 0.1, %v2595_v18  ;;  %vm3337_vm1 = vcmp.ge.f32.partialorder %v3305_v42, 0.0  ;;  %v3311_v37 = vld [vmem:[#allocation2 + $0x43] sm:$0xff]  ;;  %v3318_v62 = vld [vmem:[#allocation2 + $0x7b] sm:$0xff]  ;;  %v3324_v40 = vld [vmem:[#allocation2 + $0xab] sm:$0xff] }
 0x329   : > { %9055 = vmatprep.mubr.f32.mxu0 %v2666_v45  ;;  %10161 = vmatpush3.bf16.msra.mxu0 %v10158_v50  ;;  %v2675_v50 = vsel %vm2611_vm15, %v2579_v20, %v2643_v43  ;;  %v2586_v45 = vld [vmem:[#allocation2 + $0xb5] sm:$0xff]  ;;  %v3304_v20 = vld [vmem:[#allocation2 + $0xb] sm:$0xff]  ;;  %vm2627_vm15 = vcmp.ge.f32.partialorder %v2595_v18, 0.0  ;;  %v3369_v43 = vmul.f32 0.1, %v3305_v42  ;;  %vm3343_vm7 = vcmp.ge.f32.partialorder %v3311_v37, 0.0 }
 0x32a   : > { %10163 = vmatprep.subr.bf16.mxu0 %v10162_v58  ;;  %10193 = vmatpush3.bf16.msra.mxu1 %v10190_v32  ;;  %v2650_v1 = vmul.f32 0.1, %v2586_v45  ;;  %vm2618_vm6 = vcmp.ge.f32.partialorder %v2586_v45, 0.0  ;;  %v3368_v19 = vmul.f32 0.1, %v3304_v20  ;;  %vm3336_vm0 = vcmp.ge.f32.partialorder %v3304_v20, 0.0 }
 0x32b   : > { %10195 = vmatprep.subr.bf16.mxu1 %v10194_v54  ;;  %v3308_v32 = vld [vmem:[#allocation2 + $0x2b] sm:$0xff]  ;;  %v3401_v48 = vsel %vm3337_vm1, %v3305_v42, %v3369_v43  ;;  %v3371_v49 = vmul.f32 0.1, %v3307_v29  ;;  %v3322_v9 = vld [vmem:[#allocation2 + $0x9b] sm:$0xff] }
 0x32c   : > { %9056 = vmatmul.mubr.f32.gmra.mrb[38].mxu0 %v2667_v55  ;;  %v2680_v55 = vsel %vm2616_vm4, %v2584_v46, %v2648_v39  ;;  %v2682_v16 = vsel %vm2618_vm6, %v2586_v45, %v2650_v1  ;;  %vm3340_vm4 = vcmp.ge.f32.partialorder %v3308_v32, 0.0  ;;  %v3376_v39 = vmul.f32 0.1, %v3312_v17  ;;  %v3328_v43 = vld [vmem:[#allocation2 + $0xcb] sm:$0xff] }
 0x32d   : > { %9058 = vmatprep.mubr.f32.mxu0 %v2668_v4  ;;  %10165 = vmatpush3.bf16.msra.mxu0 %v10162_v58  ;;  %v2647_v58 = vmul.f32 0.1, %v2583_v53  ;;  %v2588_v4 = vld [vmem:[#allocation2 + $0xc5] sm:$0xff] }
 0x32e   : > { %10167 = vmatprep.subr.bf16.mxu0 %v10166_v24  ;;  %10197 = vmatpush3.bf16.msra.mxu1 %v10194_v54  ;;  %vm2620_vm8 = vcmp.ge.f32.partialorder %v2588_v4, 0.0 }
 0x32f   : > { %v2679_v23 = vsel %vm2615_vm3, %v2583_v53, %v2647_v58  ;;  %10199 = vmatprep.subr.bf16.mxu1 %v10198_v44  ;;  %vm3339_vm3 = vcmp.ge.f32.partialorder %v3307_v29, 0.0  ;;  %v3373_v53 = vmul.f32 0.1, %v3309_v52  ;;  %v3375_v58 = vmul.f32 0.1, %v3311_v37 }
 0x330   : > { %9059 = vmatmul.mubr.f32.gmra.mrb[40].mxu0 %v2669_v27  ;;  %v2589_v27 = vld [vmem:[#allocation2 + $0xcd] sm:$0xff]  ;;  %v3403_v35 = vsel %vm3339_vm3, %v3307_v29, %v3371_v49  ;;  %v3330_v49 = vld [vmem:[#allocation2 + $0xdb] sm:$0xff] }
 0x331   : > { %9061 = vmatprep.mubr.f32.mxu0 %v2670_v6  ;;  %10169 = vmatpush3.bf16.msra.mxu0 %v10166_v24  ;;  %v2649_v24 = vmul.f32 0.1, %v2585_v59  ;;  %v2653_v5 = vmul.f32 0.1, %v2589_v27  ;;  %vm2621_vm9 = vcmp.ge.f32.partialorder %v2589_v27, 0.0  ;;  %v3407_v45 = vsel %vm3343_vm7, %v3311_v37, %v3375_v58  ;;  %v3334_v58 = vld [vmem:[#allocation2 + $0xfb] sm:$0xff] }
 0x332   : > { %10171 = vmatprep.subr.bf16.mxu0 %v10170_v25  ;;  %10201 = vmatpush3.bf16.msra.mxu1 %v10198_v44  ;;  %v3314_v44 = vld [vmem:[#allocation2 + $0x5b] sm:$0xff] }
 0x333   : > { %v2681_v60 = vsel %vm2617_vm5, %v2585_v59, %v2649_v24  ;;  %10203 = vmatprep.subr.bf16.mxu1 %v10202_v56  ;;  %v2685_v8 = vsel %vm2621_vm9, %v2589_v27, %v2653_v5  ;;  %vm3341_vm5 = vcmp.ge.f32.partialorder %v3309_v52, 0.0  ;;  %v3313_v59 = vld [vmem:[#allocation2 + $0x53] sm:$0xff]  ;;  %v3315_v24 = vld [vmem:[#allocation2 + $0x63] sm:$0xff]  ;;  %v3320_v5 = vld [vmem:[#allocation2 + $0x8b] sm:$0xff] }
 0x334   : > { %9062 = vmatmul.mubr.f32.gmra.mrb[42].mxu0 %v2671_v36  ;;  %v2594_v36 = vld [vmem:[#allocation2 + $0xf5] sm:$0xff]  ;;  %v3377_v61 = vmul.f32 0.1, %v3313_v59  ;;  %vm3345_vm9 = vcmp.ge.f32.partialorder %v3313_v59, 0.0  ;;  %v3379_v3 = vmul.f32 0.1, %v3315_v24 }
 0x335   : > { %9064 = vmatprep.mubr.f32.mxu0 %v2672_v14  ;;  %10173 = vmatpush3.bf16.msra.mxu0 %v10170_v25  ;;  %v2652_v25 = vmul.f32 0.1, %v2588_v4  ;;  %v2658_v14 = vmul.f32 0.1, %v2594_v36  ;;  %vm2626_vm14 = vcmp.ge.f32.partialorder %v2594_v36, 0.0  ;;  %vm3347_vm11 = vcmp.ge.f32.partialorder %v3315_v24, 0.0 }
 0x336   : > { %10175 = vmatprep.subr.bf16.mxu0 %v10174_v10  ;;  %10205 = vmatpush3.bf16.msra.mxu1 %v10202_v56  ;;  %v3409_v1 = vsel %vm3345_vm9, %v3313_v59, %v3377_v61  ;;  %v3384_v31 = vmul.f32 0.1, %v3320_v5 }
 0x337   : > { %v2684_v6 = vsel %vm2620_vm8, %v2588_v4, %v2652_v25  ;;  %v2690_v22 = vsel %vm2626_vm14, %v2594_v36, %v2658_v14  ;;  %vm3344_vm8 = vcmp.ge.f32.partialorder %v3312_v17, 0.0  ;;  %vm3350_vm14 = vcmp.ge.f32.partialorder %v3318_v62, 0.0 }
 0x338   : > { %9065 = vmatmul.mubr.f32.gmra.mrb[44].mxu0 %v2673_v26  ;;  %v2691_v26 = vsel %vm2627_vm15, %v2595_v18, %v2659_v41  ;;  %v3408_v51 = vsel %vm3344_vm8, %v3312_v17, %v3376_v39  ;;  %v3386_v36 = vmul.f32 0.1, %v3322_v9  ;;  %v3326_v41 = vld [vmem:[#allocation2 + $0xbb] sm:$0xff]  ;;  %vm3360_vm8 = vcmp.ge.f32.partialorder %v3328_v43, 0.0 }
 0x339   : > { %9067 = vmatprep.mubr.f32.mxu0 %v2674_v47  ;;  %10177 = vmatpush3.bf16.msra.mxu0 %v10174_v10  ;;  %v2686_v10 = vsel %vm2622_vm10, %v2590_v0, %v2654_v7  ;;  %v3400_v47 = vsel %vm3336_vm0, %v3304_v20, %v3368_v19  ;;  %vm3346_vm10 = vcmp.ge.f32.partialorder %v3314_v44, 0.0  ;;  %v3382_v0 = vmul.f32 0.1, %v3318_v62 }
 0x33a   : > { %10179 = vmatprep.subr.bf16.mxu0 %v10178_v15  ;;  %vm3352_vm0 = vcmp.ge.f32.partialorder %v3320_v5, 0.0  ;;  %v3388_v20 = vmul.f32 0.1, %v3324_v40 }
 0x33b   : > { %v3414_v30 = vsel %vm3350_vm14, %v3318_v62, %v3382_v0  ;;  %v3416_v12 = vsel %vm3352_vm0, %v3320_v5, %v3384_v31  ;;  %vm3366_vm14 = vcmp.ge.f32.partialorder %v3334_v58, 0.0  ;;  %v7439_v62 = vld [vmem:[%s12289_s1 + $0x480] sm:$0xff]  ;;  %v7442_v31 = vld [vmem:[%s12289_s1 + $0x498] sm:$0xff] }
 0x33c   : > { %9068 = vmatmul.mubr.f32.gmra.mrb[46].mxu0 %v2675_v50  ;;  %v3372_v50 = vmul.f32 0.1, %v3308_v32 }
 0x33d   : > { %9070 = vmatprep.mubr.f32.mxu0 %v2676_v34  ;;  %10181 = vmatpush3.bf16.msra.mxu0 %v10178_v15  ;;  %v3306_v15 = vld [vmem:[#allocation2 + $0x1b] sm:$0xff] }
 0x33e   : > { %v3370_v28 = vmul.f32 0.1, %v3306_v15  ;;  %vm3338_vm2 = vcmp.ge.f32.partialorder %v3306_v15, 0.0  ;;  %v3310_v34 = vld [vmem:[#allocation2 + $0x3b] sm:$0xff]  ;;  %v3404_v54 = vsel %vm3340_vm4, %v3308_v32, %v3372_v50  ;;  %vm3356_vm4 = vcmp.ge.f32.partialorder %v3324_v40, 0.0 }
 0x33f   : > { %v3374_v46 = vmul.f32 0.1, %v3310_v34  ;;  %vm3342_vm6 = vcmp.ge.f32.partialorder %v3310_v34, 0.0  ;;  %v3420_v42 = vsel %vm3356_vm4, %v3324_v40, %v3388_v20  ;;  %v3392_v32 = vmul.f32 0.1, %v3328_v43 }
 0x340   : > { %9071 = vmatmul.mubr.f32.gmra.mrb[48].mxu0 %v2677_v57  ;;  %v3402_v33 = vsel %vm3338_vm2, %v3306_v15, %v3370_v28  ;;  %v3405_v57 = vsel %vm3341_vm5, %v3309_v52, %v3373_v53  ;;  %vm3354_vm2 = vcmp.ge.f32.partialorder %v3322_v9, 0.0  ;;  %v3390_v15 = vmul.f32 0.1, %v3326_v41  ;;  %v3332_v53 = vld [vmem:[#allocation2 + $0xeb] sm:$0xff] }
 0x341   : > { %9073 = vmatprep.mubr.f32.mxu0 %v2678_v38  ;;  %v3406_v38 = vsel %vm3342_vm6, %v3310_v34, %v3374_v46  ;;  %v3418_v18 = vsel %vm3354_vm2, %v3322_v9, %v3386_v36  ;;  %vm3358_vm6 = vcmp.ge.f32.partialorder %v3326_v41, 0.0  ;;  %v3424_v52 = vsel %vm3360_vm8, %v3328_v43, %v3392_v32 }
 0x342   : > { %v3422_v29 = vsel %vm3358_vm6, %v3326_v41, %v3390_v15  ;;  %v3394_v34 = vmul.f32 0.1, %v3330_v49  ;;  %v3396_v17 = vmul.f32 0.1, %v3332_v53 }
 0x344   : > { %9074 = vmatmul.mubr.f32.gmra.mrb[50].mxu0 %v2679_v23  ;;  %v3378_v23 = vmul.f32 0.1, %v3314_v44 }
 0x345   : > { %9076 = vmatprep.mubr.f32.mxu0 %v2680_v55  ;;  %v3316_v55 = vld [vmem:[#allocation2 + $0x6b] sm:$0xff] }
 0x346   : > { %v3410_v56 = vsel %vm3346_vm10, %v3314_v44, %v3378_v23  ;;  %v3380_v4 = vmul.f32 0.1, %v3316_v55  ;;  %vm3348_vm12 = vcmp.ge.f32.partialorder %v3316_v55, 0.0  ;;  %vm3362_vm10 = vcmp.ge.f32.partialorder %v3330_v49, 0.0 }
 0x347   : > { %v3426_v37 = vsel %vm3362_vm10, %v3330_v49, %v3394_v34  ;;  %v3398_v44 = vmul.f32 0.1, %v3334_v58 }
 0x348   : > { %9077 = vmatmul.mubr.f32.gmra.mrb[52].mxu0 %v2681_v60  ;;  %v3317_v60 = vld [vmem:[#allocation2 + $0x73] sm:$0xff]  ;;  %v3412_v27 = vsel %vm3348_vm12, %v3316_v55, %v3380_v4  ;;  %vm3364_vm12 = vcmp.ge.f32.partialorder %v3332_v53, 0.0  ;;  %v7467_v55 = vld [vmem:[%s12289_s1 + $0x560] sm:$0xff] }
 0x349   : > { %9079 = vmatprep.mubr.f32.mxu0 %v2682_v16  ;;  %v3411_v16 = vsel %vm3347_vm11, %v3315_v24, %v3379_v3  ;;  %v3381_v25 = vmul.f32 0.1, %v3317_v60  ;;  %vm3349_vm13 = vcmp.ge.f32.partialorder %v3317_v60, 0.0  ;;  %v3428_v59 = vsel %vm3364_vm12, %v3332_v53, %v3396_v17  ;;  %v7470_v4 = vld [vmem:[%s12289_s1 + $0x578] sm:$0xff] }
 0x34a   : > { %v3430_v23 = vsel %vm3366_vm14, %v3334_v58, %v3398_v44 }
 0x34c   : > { %9080 = vmatmul.mubr.f32.gmra.mrb[54].mxu0 %v2683_v2  ;;  %v3319_v2 = vld [vmem:[#allocation2 + $0x83] sm:$0xff] }
 0x34d   : > { %9082 = vmatprep.mubr.f32.mxu0 %v2684_v6  ;;  %v3413_v6 = vsel %vm3349_vm13, %v3317_v60, %v3381_v25  ;;  %v3383_v7 = vmul.f32 0.1, %v3319_v2  ;;  %vm3351_vm15 = vcmp.ge.f32.partialorder %v3319_v2, 0.0 }
 0x350   : > { %9083 = vmatmul.mubr.f32.gmra.mrb[56].mxu0 %v2685_v8  ;;  %v3321_v8 = vld [vmem:[#allocation2 + $0x93] sm:$0xff] }
 0x351   : > { %9085 = vmatprep.mubr.f32.mxu0 %v2686_v10  ;;  %v3415_v10 = vsel %vm3351_vm15, %v3319_v2, %v3383_v7  ;;  %v3385_v11 = vmul.f32 0.1, %v3321_v8  ;;  %vm3353_vm1 = vcmp.ge.f32.partialorder %v3321_v8, 0.0 }
 0x354   : > { %9086 = vmatmul.mubr.f32.gmra.mrb[58].mxu0 %v2687_v21  ;;  %v3323_v21 = vld [vmem:[#allocation2 + $0xa3] sm:$0xff] }
 0x355   : > { %9088 = vmatprep.mubr.f32.mxu0 %v2688_v13  ;;  %v3417_v13 = vsel %vm3353_vm1, %v3321_v8, %v3385_v11  ;;  %v3387_v14 = vmul.f32 0.1, %v3323_v21  ;;  %vm3355_vm3 = vcmp.ge.f32.partialorder %v3323_v21, 0.0 }
 0x358   : > { %9089 = vmatmul.mubr.f32.gmra.mrb[60].mxu0 %v2689_v63  ;;  %v3325_v63 = vld [vmem:[#allocation2 + $0xb3] sm:$0xff] }
 0x359   : > { %9091 = vmatprep.mubr.f32.mxu0 %v2690_v22  ;;  %v3419_v22 = vsel %vm3355_vm3, %v3323_v21, %v3387_v14  ;;  %v3389_v19 = vmul.f32 0.1, %v3325_v63  ;;  %vm3357_vm5 = vcmp.ge.f32.partialorder %v3325_v63, 0.0  ;;  %v7443_v14 = vld [vmem:[%s12289_s1 + $0x4a0] sm:$0xff] }
 0x35c   : > { %9092 = vmatmul.mubr.f32.gmra.mrb[62].mxu0 %v2691_v26  ;;  %v3327_v26 = vld [vmem:[#allocation2 + $0xc3] sm:$0xff] }
 0x35d   : > { %9126 = vmatprep.mubr.f32.mxu0 %v3400_v47  ;;  %v3421_v47 = vsel %vm3357_vm5, %v3325_v63, %v3389_v19  ;;  %v3391_v28 = vmul.f32 0.1, %v3327_v26  ;;  %vm3359_vm7 = vcmp.ge.f32.partialorder %v3327_v26, 0.0 }
 0x360   : > { %9127 = vmatmul.mubr.f32.vlgmr.msra.gmra.mrb[32].mxu0 %v3401_v48  ;;  %v3329_v48 = vld [vmem:[#allocation2 + $0xd3] sm:$0xff] }
 0x361   : > { %9129 = vmatprep.mubr.f32.mxu0 %v3402_v33  ;;  %v3423_v33 = vsel %vm3359_vm7, %v3327_v26, %v3391_v28  ;;  %v3393_v50 = vmul.f32 0.1, %v3329_v48  ;;  %vm3361_vm9 = vcmp.ge.f32.partialorder %v3329_v48, 0.0  ;;  %v7446_v28 = vld [vmem:[%s12289_s1 + $0x4b8] sm:$0xff] }
 0x364   : > { %9130 = vmatmul.mubr.f32.gmra.mrb[34].mxu0 %v3403_v35  ;;  %v3331_v35 = vld [vmem:[#allocation2 + $0xe3] sm:$0xff] }
 0x365   : > { %9132 = vmatprep.mubr.f32.mxu0 %v3404_v54  ;;  %v3425_v54 = vsel %vm3361_vm9, %v3329_v48, %v3393_v50  ;;  %v3395_v46 = vmul.f32 0.1, %v3331_v35  ;;  %vm3363_vm11 = vcmp.ge.f32.partialorder %v3331_v35, 0.0 }
 0x368   : > { %9133 = vmatmul.mubr.f32.gmra.mrb[36].mxu0 %v3405_v57  ;;  %v3333_v57 = vld [vmem:[#allocation2 + $0xf3] sm:$0xff] }
 0x369   : > { %9135 = vmatprep.mubr.f32.mxu0 %v3406_v38  ;;  %v3427_v38 = vsel %vm3363_vm11, %v3331_v35, %v3395_v46  ;;  %v3397_v39 = vmul.f32 0.1, %v3333_v57  ;;  %vm3365_vm13 = vcmp.ge.f32.partialorder %v3333_v57, 0.0  ;;  %v7448_v46 = vld [vmem:[%s12289_s1 + $0x4c8] sm:$0xff] }
 0x36b   : > { %v3429_v61 = vsel %vm3365_vm13, %v3333_v57, %v3397_v39 }
 0x36c   : > { %9136 = vmatmul.mubr.f32.gmra.mrb[38].mxu0 %v3407_v45  ;;  %v3335_v45 = vld [vmem:[#allocation2 + $0x103] sm:$0xff] }
 0x36d   : > { %9138 = vmatprep.mubr.f32.mxu0 %v3408_v51  ;;  %v3399_v51 = vmul.f32 0.1, %v3335_v45  ;;  %vm3367_vm15 = vcmp.ge.f32.partialorder %v3335_v45, 0.0 }
 0x36f   : > { %v3431_v24 = vsel %vm3367_vm15, %v3335_v45, %v3399_v51  ;;  %v7450_v51 = vld [vmem:[%s12289_s1 + $0x4d8] sm:$0xff] }
 0x370   : > { %9139 = vmatmul.mubr.f32.gmra.mrb[40].mxu0 %v3409_v1  ;;  %v7468_v1 = vld [vmem:[%s12289_s1 + $0x568] sm:$0xff] }
 0x371   : > { %9141 = vmatprep.mubr.f32.mxu0 %v3410_v56  ;;  %v10206_v3 = vpack.c.bf16 %v7468_v1, %v7467_v55  ;;  %v7469_v56 = vld [vmem:[%s12289_s1 + $0x570] sm:$0xff] }
 0x372   : > { %v10210_v60 = vpack.c.bf16 %v7470_v4, %v7469_v56 }
 0x373   : > { %10207 = vmatprep.subr.bf16.mxu1 %v10206_v3 }
 0x374   : > { %9142 = vmatmul.mubr.f32.gmra.mrb[42].mxu0 %v3411_v16  ;;  %10209 = vmatpush3.bf16.msra.mxu1 %v10206_v3  ;;  %v7440_v16 = vld [vmem:[%s12289_s1 + $0x488] sm:$0xff] }
 0x375   : > { %9144 = vmatprep.mubr.f32.mxu0 %v3412_v27  ;;  %10211 = vmatprep.subr.bf16.mxu1 %v10210_v60  ;;  %v10214_v25 = vpack.c.bf16 %v7440_v16, %v7439_v62  ;;  %v11709_v27 = vld [vmem:[%s12290_s2 + $0x2] ss:$0 sm:$0xff] }
 0x376   : > { %v7451_v16 = vld [vmem:[%s12289_s1 + $0x4e0] sm:$0xff] }
 0x378   : > { %9145 = vmatmul.mubr.f32.gmra.mrb[44].mxu0 %v3413_v6  ;;  %10213 = vmatpush3.bf16.msra.mxu1 %v10210_v60 }
 0x379   : > { %9147 = vmatprep.mubr.f32.mxu0 %v3414_v30  ;;  %10215 = vmatprep.subr.bf16.mxu1 %v10214_v25  ;;  %v7441_v30 = vld [vmem:[%s12289_s1 + $0x490] sm:$0xff] }
 0x37a   : > { %v10218_v40 = vpack.c.bf16 %v7442_v31, %v7441_v30 }
 0x37c   : > { %9148 = vmatmul.mubr.f32.gmra.mrb[46].mxu0 %v3415_v10 }
 0x37d   : > { %9150 = vmatprep.mubr.f32.mxu0 %v3416_v12 }
 0x380   : > { %9151 = vmatmul.mubr.f32.gmra.mrb[48].mxu0 %v3417_v13 }
 0x381   : > { %9153 = vmatprep.mubr.f32.mxu0 %v3418_v18  ;;  %v7444_v18 = vld [vmem:[%s12289_s1 + $0x4a8] sm:$0xff] }
 0x382   : > { %v10222_v26 = vpack.c.bf16 %v7444_v18, %v7443_v14 }
 0x384   : > { %9154 = vmatmul.mubr.f32.gmra.mrb[50].mxu0 %v3419_v22 }
 0x385   : > { %9156 = vmatprep.mubr.f32.mxu0 %v3420_v42 }
 0x388   : > { %9157 = vmatmul.mubr.f32.gmra.mrb[52].mxu0 %v3421_v47  ;;  %v7445_v47 = vld [vmem:[%s12289_s1 + $0x4b0] sm:$0xff] }
 0x389   : > { %9159 = vmatprep.mubr.f32.mxu0 %v3422_v29  ;;  %v10226_v34 = vpack.c.bf16 %v7446_v28, %v7445_v47 }
 0x38c   : > { %9160 = vmatmul.mubr.f32.gmra.mrb[54].mxu0 %v3423_v33 }
 0x38d   : > { %9162 = vmatprep.mubr.f32.mxu0 %v3424_v52 }
 0x390   : > { %9163 = vmatmul.mubr.f32.gmra.mrb[56].mxu0 %v3425_v54  ;;  %v7447_v54 = vld [vmem:[%s12289_s1 + $0x4c0] sm:$0xff] }
 0x391   : > { %9165 = vmatprep.mubr.f32.mxu0 %v3426_v37  ;;  %v10230_v44 = vpack.c.bf16 %v7448_v46, %v7447_v54 }
 0x394   : > { %9166 = vmatmul.mubr.f32.gmra.mrb[58].mxu0 %v3427_v38 }
 0x395   : > { %9168 = vmatprep.mubr.f32.mxu0 %v3428_v59 }
 0x398   : > { %9169 = vmatmul.mubr.f32.gmra.mrb[60].mxu0 %v3429_v61  ;;  %v7449_v61 = vld [vmem:[%s12289_s1 + $0x4d0] sm:$0xff] }
 0x399   : > { %9171 = vmatprep.mubr.f32.mxu0 %v3430_v23  ;;  %v10234_v60 = vpack.c.bf16 %v7450_v51, %v7449_v61 }
 0x39c   : > { %9172 = vmatmul.mubr.f32.gmra.mrb[62].mxu0 %v3431_v24 }
 0x433   : > { %v9128_v0 = vpop.f32.mrb[32].mxu0 }
 0x434   : > { %v3712_v2 = vadd.f32 %v9128_v0, %v11709_v27  ;;  %v3515_v5 = vpop.f32.mrb[33].mxu0 }
 0x435   : > { %v3711_v6 = vadd.f32 %v11709_v27, %v3515_v5 }
 0x436   : > { %vm3744_vm0 = vcmp.ge.f32.partialorder %v3712_v2, 0.0  ;;  %v3776_v7 = vmul.f32 0.1, %v3712_v2 }
 0x437   : > { %vm3743_vm1 = vcmp.ge.f32.partialorder %v3711_v6, 0.0  ;;  %v3775_v8 = vmul.f32 0.1, %v3711_v6  ;;  %v9131_v9 = vpop.f32.mrb[34].mxu0 }
 0x438   : > { %v3808_v10 = vsel %vm3744_vm0, %v3712_v2, %v3776_v7  ;;  %v3714_v11 = vadd.f32 %v9131_v9, %v11709_v27  ;;  %v3525_v12 = vpop.f32.mrb[35].mxu0 }
 0x439   : > { %3840 = vst [vmem:[#allocation3 + $0x10] sm:$0xff] %v3808_v10  ;;  %v3807_v36 = vsel %vm3743_vm1, %v3711_v6, %v3775_v8  ;;  %v3713_v21 = vadd.f32 %v11709_v27, %v3525_v12 }
 0x43a   : > { %3839 = vst [vmem:[#allocation3 + $0x8] sm:$0xff] %v3807_v36  ;;  %vm3746_vm2 = vcmp.ge.f32.partialorder %v3714_v11, 0.0  ;;  %v3778_v13 = vmul.f32 0.1, %v3714_v11  ;;  %9206 = vmatprep.mubr.f32.mxu1 %v3807_v36 }
 0x43b   : > { %vm3745_vm3 = vcmp.ge.f32.partialorder %v3713_v21, 0.0  ;;  %v3777_v20 = vmul.f32 0.1, %v3713_v21  ;;  %v9134_v63 = vpop.f32.mrb[36].mxu0  ;;  %9207 = vmatmul.mubr.f32.vlgmr.msra.gmra.mrb[32].mxu1 %v3808_v10  ;;  %v7453_v10 = vld [vmem:[%s12289_s1 + $0x4f0] sm:$0xff] }
 0x43c   : > { %v3810_v41 = vsel %vm3746_vm2, %v3714_v11, %v3778_v13  ;;  %v3716_v22 = vadd.f32 %v9134_v63, %v11709_v27  ;;  %v3535_v19 = vpop.f32.mrb[37].mxu0  ;;  %10217 = vmatpush3.bf16.msra.mxu1 %v10214_v25  ;;  %v7452_v25 = vld [vmem:[%s12289_s1 + $0x4e8] sm:$0xff]  ;;  %v7454_v11 = vld [vmem:[%s12289_s1 + $0x4f8] sm:$0xff] }
 0x43d   : > { %3842 = vst [vmem:[#allocation3 + $0x20] sm:$0xff] %v3810_v41  ;;  %v3809_v42 = vsel %vm3745_vm3, %v3713_v21, %v3777_v20  ;;  %v3715_v15 = vadd.f32 %v11709_v27, %v3535_v19  ;;  %10219 = vmatprep.subr.bf16.mxu1 %v10218_v40  ;;  %v10238_v8 = vpack.c.bf16 %v7452_v25, %v7451_v16 }
 0x43e   : > { %3841 = vst [vmem:[#allocation3 + $0x18] sm:$0xff] %v3809_v42  ;;  %vm3748_vm4 = vcmp.ge.f32.partialorder %v3716_v22, 0.0  ;;  %v3780_v43 = vmul.f32 0.1, %v3716_v22  ;;  %9209 = vmatprep.mubr.f32.mxu1 %v3809_v42  ;;  %v10242_v20 = vpack.c.bf16 %v7454_v11, %v7453_v10 }
 0x43f   : > { %vm3747_vm5 = vcmp.ge.f32.partialorder %v3715_v15, 0.0  ;;  %v3779_v29 = vmul.f32 0.1, %v3715_v15  ;;  %v9137_v32 = vpop.f32.mrb[38].mxu0  ;;  %9210 = vmatmul.mubr.f32.gmra.mrb[34].mxu1 %v3810_v41  ;;  %v7471_v41 = vld [vmem:[%s12289_s1 + $0x580] sm:$0xff] }
 0x440   : > { %v3812_v48 = vsel %vm3748_vm4, %v3716_v22, %v3780_v43  ;;  %v3718_v49 = vadd.f32 %v9137_v32, %v11709_v27  ;;  %v3545_v33 = vpop.f32.mrb[39].mxu0  ;;  %10221 = vmatpush3.bf16.msra.mxu1 %v10218_v40  ;;  %v7472_v22 = vld [vmem:[%s12289_s1 + $0x588] sm:$0xff] }
 0x441   : > { %3844 = vst [vmem:[#allocation3 + $0x30] sm:$0xff] %v3812_v48  ;;  %v3811_v50 = vsel %vm3747_vm5, %v3715_v15, %v3779_v29  ;;  %v3717_v52 = vadd.f32 %v11709_v27, %v3545_v33  ;;  %10223 = vmatprep.subr.bf16.mxu1 %v10222_v26  ;;  %v3871_v35 = vld [vmem:[#allocation3 + $0x9] sm:$0x1]  ;;  %v11777_v29 = vpack.c.bf16 %v7472_v22, %v7471_v41 }
 0x442   : > { %3843 = vst [vmem:[#allocation3 + $0x28] sm:$0xff] %v3811_v50  ;;  %vm3750_vm6 = vcmp.ge.f32.partialorder %v3718_v49, 0.0  ;;  %v3782_v53 = vmul.f32 0.1, %v3718_v49  ;;  %9212 = vmatprep.mubr.f32.mxu1 %v3811_v50  ;;  %3872 = vst [vmem:[#allocation3 + $0x7] sm:$0x1] %v3871_v35 }
 0x443   : > { %vm3749_vm7 = vcmp.ge.f32.partialorder %v3717_v52, 0.0  ;;  %v3781_v37 = vmul.f32 0.1, %v3717_v52  ;;  %v9140_v17 = vpop.f32.mrb[40].mxu0  ;;  %9213 = vmatmul.mubr.f32.gmra.mrb[36].mxu1 %v3812_v48 }
 0x444   : > { %v3814_v57 = vsel %vm3750_vm6, %v3718_v49, %v3782_v53  ;;  %v3720_v58 = vadd.f32 %v9140_v17, %v11709_v27  ;;  %v3555_v38 = vpop.f32.mrb[41].mxu0  ;;  %10225 = vmatpush3.bf16.msra.mxu1 %v10222_v26 }
 0x445   : > { %3846 = vst [vmem:[#allocation3 + $0x40] sm:$0xff] %v3814_v57  ;;  %v3813_v39 = vsel %vm3749_vm7, %v3717_v52, %v3781_v37  ;;  %v3719_v59 = vadd.f32 %v11709_v27, %v3555_v38  ;;  %10227 = vmatprep.subr.bf16.mxu1 %v10226_v34 }
 0x446   : > { %3845 = vst [vmem:[#allocation3 + $0x38] sm:$0xff] %v3813_v39  ;;  %vm3752_vm8 = vcmp.ge.f32.partialorder %v3720_v58, 0.0  ;;  %v3784_v45 = vmul.f32 0.1, %v3720_v58  ;;  %9215 = vmatprep.mubr.f32.mxu1 %v3813_v39 }
 0x447   : > { %vm3751_vm9 = vcmp.ge.f32.partialorder %v3719_v59, 0.0  ;;  %v3783_v23 = vmul.f32 0.1, %v3719_v59  ;;  %v9143_v24 = vpop.f32.mrb[42].mxu0  ;;  %9216 = vmatmul.mubr.f32.gmra.mrb[38].mxu1 %v3814_v57 }
 0x448   : > { %v3816_v55 = vsel %vm3752_vm8, %v3720_v58, %v3784_v45  ;;  %v3722_v1 = vadd.f32 %v9143_v24, %v11709_v27  ;;  %v3565_v3 = vpop.f32.mrb[43].mxu0  ;;  %10229 = vmatpush3.bf16.msra.mxu1 %v10226_v34 }
 0x449   : > { %3848 = vst [vmem:[#allocation3 + $0x50] sm:$0xff] %v3816_v55  ;;  %v3815_v56 = vsel %vm3751_vm9, %v3719_v59, %v3783_v23  ;;  %v3721_v4 = vadd.f32 %v11709_v27, %v3565_v3  ;;  %10231 = vmatprep.subr.bf16.mxu1 %v10230_v44 }
 0x44a   : > { %3847 = vst [vmem:[#allocation3 + $0x48] sm:$0xff] %v3815_v56  ;;  %vm3754_vm10 = vcmp.ge.f32.partialorder %v3722_v1, 0.0  ;;  %v3786_v62 = vmul.f32 0.1, %v3722_v1  ;;  %9218 = vmatprep.mubr.f32.mxu1 %v3815_v56 }
 0x44b   : > { %vm3753_vm11 = vcmp.ge.f32.partialorder %v3721_v4, 0.0  ;;  %v3785_v0 = vmul.f32 0.1, %v3721_v4  ;;  %v9146_v2 = vpop.f32.mrb[44].mxu0  ;;  %9219 = vmatmul.mubr.f32.gmra.mrb[40].mxu1 %v3816_v55 }
 0x44c   : > { %v3818_v5 = vsel %vm3754_vm10, %v3722_v1, %v3786_v62  ;;  %v3724_v6 = vadd.f32 %v9146_v2, %v11709_v27  ;;  %v3575_v7 = vpop.f32.mrb[45].mxu0  ;;  %10233 = vmatpush3.bf16.msra.mxu1 %v10230_v44 }
 0x44d   : > { %3850 = vst [vmem:[#allocation3 + $0x60] sm:$0xff] %v3818_v5  ;;  %v3817_v30 = vsel %vm3753_vm11, %v3721_v4, %v3785_v0  ;;  %v3723_v31 = vadd.f32 %v11709_v27, %v3575_v7  ;;  %10235 = vmatprep.subr.bf16.mxu1 %v10234_v60 }
 0x44e   : > { %3849 = vst [vmem:[#allocation3 + $0x58] sm:$0xff] %v3817_v30  ;;  %vm3756_vm12 = vcmp.ge.f32.partialorder %v3724_v6, 0.0  ;;  %v3788_v9 = vmul.f32 0.1, %v3724_v6  ;;  %9221 = vmatprep.mubr.f32.mxu1 %v3817_v30 }
 0x44f   : > { %vm3755_vm13 = vcmp.ge.f32.partialorder %v3723_v31, 0.0  ;;  %v3787_v12 = vmul.f32 0.1, %v3723_v31  ;;  %v9149_v36 = vpop.f32.mrb[46].mxu0  ;;  %9222 = vmatmul.mubr.f32.gmra.mrb[42].mxu1 %v3818_v5 }
 0x450   : > { %v3820_v21 = vsel %vm3756_vm12, %v3724_v6, %v3788_v9  ;;  %v3726_v40 = vadd.f32 %v9149_v36, %v11709_v27  ;;  %v3585_v13 = vpop.f32.mrb[47].mxu0  ;;  %10237 = vmatpush3.bf16.msra.mxu1 %v10234_v60 }
 0x451   : > { %3852 = vst [vmem:[#allocation3 + $0x70] sm:$0xff] %v3820_v21  ;;  %v3819_v14 = vsel %vm3755_vm13, %v3723_v31, %v3787_v12  ;;  %v3725_v18 = vadd.f32 %v11709_v27, %v3585_v13  ;;  %10239 = vmatprep.subr.bf16.mxu1 %v10238_v8 }
 0x452   : > { %3851 = vst [vmem:[#allocation3 + $0x68] sm:$0xff] %v3819_v14  ;;  %vm3758_vm14 = vcmp.ge.f32.partialorder %v3726_v40, 0.0  ;;  %v3790_v63 = vmul.f32 0.1, %v3726_v40  ;;  %9224 = vmatprep.mubr.f32.mxu1 %v3819_v14 }
 0x453   : > { %vm3757_vm15 = vcmp.ge.f32.partialorder %v3725_v18, 0.0  ;;  %v3789_v19 = vmul.f32 0.1, %v3725_v18  ;;  %v9152_v42 = vpop.f32.mrb[48].mxu0  ;;  %9225 = vmatmul.mubr.f32.gmra.mrb[44].mxu1 %v3820_v21 }
 0x454   : > { %v3822_v15 = vsel %vm3758_vm14, %v3726_v40, %v3790_v63  ;;  %v3728_v26 = vadd.f32 %v9152_v42, %v11709_v27  ;;  %v3595_v43 = vpop.f32.mrb[49].mxu0  ;;  %10241 = vmatpush3.bf16.msra.mxu1 %v10238_v8 }
 0x455   : > { %3854 = vst [vmem:[#allocation3 + $0x80] sm:$0xff] %v3822_v15  ;;  %v3821_v47 = vsel %vm3757_vm15, %v3725_v18, %v3789_v19  ;;  %v3727_v28 = vadd.f32 %v11709_v27, %v3595_v43  ;;  %10243 = vmatprep.subr.bf16.mxu1 %v10242_v20 }
 0x456   : > { %3853 = vst [vmem:[#allocation3 + $0x78] sm:$0xff] %v3821_v47  ;;  %vm3760_vm0 = vcmp.ge.f32.partialorder %v3728_v26, 0.0  ;;  %v3792_v32 = vmul.f32 0.1, %v3728_v26  ;;  %9227 = vmatprep.mubr.f32.mxu1 %v3821_v47  ;;  %v3875_v47 = vld [vmem:[#allocation3 + $0x7] sm:$0xff] }
 0x457   : > { %vm3759_vm1 = vcmp.ge.f32.partialorder %v3727_v28, 0.0  ;;  %v3791_v48 = vmul.f32 0.1, %v3727_v28  ;;  %v9155_v49 = vpop.f32.mrb[50].mxu0  ;;  %9228 = vmatmul.mubr.f32.gmra.mrb[46].mxu1 %v3822_v15 }
 0x458   : > { %v3824_v33 = vsel %vm3760_vm0, %v3728_v26, %v3792_v32  ;;  %v3730_v50 = vadd.f32 %v9155_v49, %v11709_v27  ;;  %v3605_v52 = vpop.f32.mrb[51].mxu0  ;;  %10245 = vmatpush3.bf16.msra.mxu1 %v10242_v20  ;;  %v7504_v32 = vld [vmem:[%s12289_s1 + $0x680] sm:$0xff]  ;;  %v7506_v49 = vld [vmem:[%s12289_s1 + $0x690] sm:$0xff] }
 0x459   : > { %3856 = vst [vmem:[#allocation3 + $0x90] sm:$0xff] %v3824_v33  ;;  %v3823_v34 = vsel %vm3759_vm1, %v3727_v28, %v3791_v48  ;;  %v3729_v35 = vadd.f32 %v11709_v27, %v3605_v52  ;;  %10247 = vmatprep.subr.bf16.mxu1 %v11777_v29  ;;  %v7473_v28 = vld [vmem:[%s12289_s1 + $0x590] sm:$0xff]  ;;  %v7505_v48 = vld [vmem:[%s12289_s1 + $0x688] sm:$0xff] }
 0x45a   : > { %3855 = vst [vmem:[#allocation3 + $0x88] sm:$0xff] %v3823_v34  ;;  %vm3762_vm2 = vcmp.ge.f32.partialorder %v3730_v50, 0.0  ;;  %v3794_v53 = vmul.f32 0.1, %v3730_v50  ;;  %9230 = vmatprep.mubr.f32.mxu1 %v3823_v34  ;;  %v7475_v34 = vld [vmem:[%s12289_s1 + $0x5a0] sm:$0xff] }
 0x45b   : > { %vm3761_vm3 = vcmp.ge.f32.partialorder %v3729_v35, 0.0  ;;  %v3793_v54 = vmul.f32 0.1, %v3729_v35  ;;  %v9158_v46 = vpop.f32.mrb[52].mxu0  ;;  %9231 = vmatmul.mubr.f32.gmra.mrb[48].mxu1 %v3824_v33  ;;  %v10278_v33 = vpack.c.bf16 %v7505_v48, %v7504_v32 }
 0x45c   : > { %v3826_v37 = vsel %vm3762_vm2, %v3730_v50, %v3794_v53  ;;  %v3732_v17 = vadd.f32 %v9158_v46, %v11709_v27  ;;  %v3615_v57 = vpop.f32.mrb[53].mxu0  ;;  %v7507_v50 = vld [vmem:[%s12289_s1 + $0x698] sm:$0xff]  ;;  %v7508_v46 = vld [vmem:[%s12289_s1 + $0x6a0] sm:$0xff] }
 0x45d   : > { %3858 = vst [vmem:[#allocation3 + $0xa0] sm:$0xff] %v3826_v37  ;;  %v3825_v58 = vsel %vm3761_vm3, %v3729_v35, %v3793_v54  ;;  %v3731_v38 = vadd.f32 %v11709_v27, %v3615_v57  ;;  %v7476_v35 = vld [vmem:[%s12289_s1 + $0x5a8] sm:$0xff]  ;;  %v10282_v53 = vpack.c.bf16 %v7507_v50, %v7506_v49  ;;  %v3876_v54 = vld [vmem:[#allocation3 + $0xf] sm:$0xff]  ;;  %10279 = vmatprep.subr.bf16.mxu0 %v10278_v33 }
 0x45e   : > { %3857 = vst [vmem:[#allocation3 + $0x98] sm:$0xff] %v3825_v58  ;;  %vm3764_vm4 = vcmp.ge.f32.partialorder %v3732_v17, 0.0  ;;  %v3796_v39 = vmul.f32 0.1, %v3732_v17  ;;  %9233 = vmatprep.mubr.f32.mxu1 %v3825_v58  ;;  %10281 = vmatpush3.bf16.msra.mxu0 %v10278_v33  ;;  %v10254_v58 = vpack.c.bf16 %v7476_v35, %v7475_v34  ;;  %v4424_v34 = vld [vmem:[#allocation3 + $0x11] sm:$0xff]  ;;  %v4425_v35 = vld [vmem:[#allocation3 + $0x19] sm:$0xff] }
 0x45f   : > { %vm3763_vm5 = vcmp.ge.f32.partialorder %v3731_v38, 0.0  ;;  %v3795_v59 = vmul.f32 0.1, %v3731_v38  ;;  %v9161_v44 = vpop.f32.mrb[54].mxu0  ;;  %9234 = vmatmul.mubr.f32.gmra.mrb[50].mxu1 %v3826_v37  ;;  %v7509_v37 = vld [vmem:[%s12289_s1 + $0x6a8] sm:$0xff]  ;;  %10283 = vmatprep.subr.bf16.mxu0 %v10282_v53 }
 0x460   : > { %v3828_v45 = vsel %vm3764_vm4, %v3732_v17, %v3796_v39  ;;  %v3734_v61 = vadd.f32 %v9161_v44, %v11709_v27  ;;  %v3625_v51 = vpop.f32.mrb[55].mxu0  ;;  %v3877_v17 = vld [vmem:[#allocation3 + $0x17] sm:$0xff]  ;;  %v7478_v39 = vld [vmem:[%s12289_s1 + $0x5b8] sm:$0xff]  ;;  %v3878_v44 = vld [vmem:[#allocation3 + $0x1f] sm:$0xff] }
 0x461   : > { %3860 = vst [vmem:[#allocation3 + $0xb0] sm:$0xff] %v3828_v45  ;;  %v3827_v23 = vsel %vm3763_vm5, %v3731_v38, %v3795_v59  ;;  %v3733_v24 = vadd.f32 %v11709_v27, %v3625_v51  ;;  %v7477_v38 = vld [vmem:[%s12289_s1 + $0x5b0] sm:$0xff]  ;;  %v10286_v59 = vpack.c.bf16 %v7509_v37, %v7508_v46  ;;  %v4428_v46 = vld [vmem:[#allocation3 + $0x31] sm:$0xff] }
 0x462   : > { %3859 = vst [vmem:[#allocation3 + $0xa8] sm:$0xff] %v3827_v23  ;;  %vm3766_vm6 = vcmp.ge.f32.partialorder %v3734_v61, 0.0  ;;  %v3798_v55 = vmul.f32 0.1, %v3734_v61  ;;  %9236 = vmatprep.mubr.f32.mxu1 %v3827_v23  ;;  %10285 = vmatpush3.bf16.msra.mxu0 %v10282_v53  ;;  %v10258_v51 = vpack.c.bf16 %v7478_v39, %v7477_v38  ;;  %v7479_v23 = vld [vmem:[%s12289_s1 + $0x5c0] sm:$0xff]  ;;  %v4426_v53 = vld [vmem:[#allocation3 + $0x21] sm:$0xff] }
 0x463   : > { %vm3765_vm7 = vcmp.ge.f32.partialorder %v3733_v24, 0.0  ;;  %v3797_v1 = vmul.f32 0.1, %v3733_v24  ;;  %v9164_v3 = vpop.f32.mrb[56].mxu0  ;;  %9237 = vmatmul.mubr.f32.gmra.mrb[52].mxu1 %v3828_v45  ;;  %v7510_v45 = vld [vmem:[%s12289_s1 + $0x6b0] sm:$0xff]  ;;  %10287 = vmatprep.subr.bf16.mxu0 %v10286_v59 }
 0x464   : > { %v3830_v56 = vsel %vm3766_vm6, %v3734_v61, %v3798_v55  ;;  %v3736_v4 = vadd.f32 %v9164_v3, %v11709_v27  ;;  %v3635_v60 = vpop.f32.mrb[57].mxu0  ;;  %v3879_v61 = vld [vmem:[#allocation3 + $0x27] sm:$0xff]  ;;  %v7512_v3 = vld [vmem:[%s12289_s1 + $0x6c0] sm:$0xff]  ;;  %v4429_v37 = vld [vmem:[#allocation3 + $0x39] sm:$0xff] }
 0x465   : > { %3862 = vst [vmem:[#allocation3 + $0xc0] sm:$0xff] %v3830_v56  ;;  %v3829_v62 = vsel %vm3765_vm7, %v3733_v24, %v3797_v1  ;;  %v3735_v16 = vadd.f32 %v11709_v27, %v3635_v60  ;;  %v7480_v24 = vld [vmem:[%s12289_s1 + $0x5c8] sm:$0xff]  ;;  %v3880_v1 = vld [vmem:[#allocation3 + $0x2f] sm:$0xff]  ;;  %v4434_v39 = vld [vmem:[#allocation3 + $0x61] sm:$0xff] }
 0x466   : > { %3861 = vst [vmem:[#allocation3 + $0xb8] sm:$0xff] %v3829_v62  ;;  %vm3768_vm8 = vcmp.ge.f32.partialorder %v3736_v4, 0.0  ;;  %v3800_v25 = vmul.f32 0.1, %v3736_v4  ;;  %9239 = vmatprep.mubr.f32.mxu1 %v3829_v62  ;;  %10289 = vmatpush3.bf16.msra.mxu0 %v10286_v59  ;;  %v10262_v60 = vpack.c.bf16 %v7480_v24, %v7479_v23  ;;  %v7481_v62 = vld [vmem:[%s12289_s1 + $0x5d0] sm:$0xff]  ;;  %v4435_v59 = vld [vmem:[#allocation3 + $0x69] sm:$0xff] }
 0x467   : > { %vm3767_vm9 = vcmp.ge.f32.partialorder %v3735_v16, 0.0  ;;  %v3799_v0 = vmul.f32 0.1, %v3735_v16  ;;  %v9167_v2 = vpop.f32.mrb[58].mxu0  ;;  %9240 = vmatmul.mubr.f32.gmra.mrb[54].mxu1 %v3830_v56  ;;  %v7513_v56 = vld [vmem:[%s12289_s1 + $0x6c8] sm:$0xff] }
 0x468   : > { %v3832_v5 = vsel %vm3768_vm8, %v3736_v4, %v3800_v25  ;;  %v3738_v6 = vadd.f32 %v9167_v2, %v11709_v27  ;;  %v3645_v7 = vpop.f32.mrb[59].mxu0  ;;  %v3881_v4 = vld [vmem:[#allocation3 + $0x37] sm:$0xff]  ;;  %v10294_v25 = vpack.c.bf16 %v7513_v56, %v7512_v3  ;;  %v7514_v2 = vld [vmem:[%s12289_s1 + $0x6d0] sm:$0xff] }
 0x469   : > { %3864 = vst [vmem:[#allocation3 + $0xd0] sm:$0xff] %v3832_v5  ;;  %v3831_v30 = vsel %vm3767_vm9, %v3735_v16, %v3799_v0  ;;  %v3737_v31 = vadd.f32 %v11709_v27, %v3645_v7  ;;  %v7482_v16 = vld [vmem:[%s12289_s1 + $0x5d8] sm:$0xff]  ;;  %v3882_v0 = vld [vmem:[#allocation3 + $0x3f] sm:$0xff] }
 0x46a   : > { %3863 = vst [vmem:[#allocation3 + $0xc8] sm:$0xff] %v3831_v30  ;;  %vm3770_vm10 = vcmp.ge.f32.partialorder %v3738_v6, 0.0  ;;  %v3802_v8 = vmul.f32 0.1, %v3738_v6  ;;  %9242 = vmatprep.mubr.f32.mxu1 %v3831_v30  ;;  %v10266_v7 = vpack.c.bf16 %v7482_v16, %v7481_v62  ;;  %v4433_v38 = vld [vmem:[#allocation3 + $0x59] sm:$0xff]  ;;  %v4442_v24 = vld [vmem:[#allocation3 + $0xa1] sm:$0xff] }
 0x46b   : > { %vm3769_vm11 = vcmp.ge.f32.partialorder %v3737_v31, 0.0  ;;  %v3801_v9 = vmul.f32 0.1, %v3737_v31  ;;  %v9170_v10 = vpop.f32.mrb[60].mxu0  ;;  %9243 = vmatmul.mubr.f32.gmra.mrb[56].mxu1 %v3832_v5  ;;  %v7515_v5 = vld [vmem:[%s12289_s1 + $0x6d8] sm:$0xff]  ;;  %v4441_v23 = vld [vmem:[#allocation3 + $0x99] sm:$0xff] }
 0x46c   : > { %v3834_v11 = vsel %vm3770_vm10, %v3738_v6, %v3802_v8  ;;  %v3740_v12 = vadd.f32 %v9170_v10, %v11709_v27  ;;  %v3655_v36 = vpop.f32.mrb[61].mxu0  ;;  %v3883_v6 = vld [vmem:[#allocation3 + $0x47] sm:$0xff]  ;;  %v10298_v30 = vpack.c.bf16 %v7515_v5, %v7514_v2  ;;  %v7483_v8 = vld [vmem:[%s12289_s1 + $0x5e0] sm:$0xff] }
 0x46d   : > { %3866 = vst [vmem:[#allocation3 + $0xe0] sm:$0xff] %v3834_v11  ;;  %v3833_v21 = vsel %vm3769_vm11, %v3737_v31, %v3801_v9  ;;  %v3739_v40 = vadd.f32 %v11709_v27, %v3655_v36  ;;  %v3884_v31 = vld [vmem:[#allocation3 + $0x4f] sm:$0xff]  ;;  %v7484_v9 = vld [vmem:[%s12289_s1 + $0x5e8] sm:$0xff]  ;;  %v7485_v36 = vld [vmem:[%s12289_s1 + $0x5f0] sm:$0xff] }
 0x46e   : > { %3865 = vst [vmem:[#allocation3 + $0xd8] sm:$0xff] %v3833_v21  ;;  %vm3772_vm12 = vcmp.ge.f32.partialorder %v3740_v12, 0.0  ;;  %v3804_v13 = vmul.f32 0.1, %v3740_v12  ;;  %9245 = vmatprep.mubr.f32.mxu1 %v3833_v21  ;;  %v3885_v10 = vld [vmem:[#allocation3 + $0x57] sm:$0xff]  ;;  %v7486_v21 = vld [vmem:[%s12289_s1 + $0x5f8] sm:$0xff] }
 0x46f   : > { %vm3771_vm13 = vcmp.ge.f32.partialorder %v3739_v40, 0.0  ;;  %v3803_v14 = vmul.f32 0.1, %v3739_v40  ;;  %v9173_v18 = vpop.f32.mrb[62].mxu0  ;;  %9246 = vmatmul.mubr.f32.gmra.mrb[58].mxu1 %v3834_v11  ;;  %v10270_v11 = vpack.c.bf16 %v7484_v9, %v7483_v8  ;;  %v4445_v3 = vld [vmem:[#allocation3 + $0xb9] sm:$0xff]  ;;  %v7519_v8 = vld [vmem:[%s12289_s1 + $0x6f8] sm:$0xff] }
 0x470   : > { %v3836_v20 = vsel %vm3772_vm12, %v3740_v12, %v3804_v13  ;;  %v3742_v63 = vadd.f32 %v9173_v18, %v11709_v27  ;;  %v3665_v41 = vpop.f32.mrb[63].mxu0  ;;  %v3886_v12 = vld [vmem:[#allocation3 + $0x5f] sm:$0xff]  ;;  %v10274_v13 = vpack.c.bf16 %v7486_v21, %v7485_v36  ;;  %v3889_v18 = vld [vmem:[#allocation3 + $0x77] sm:$0xff]  ;;  %v11894_v36 = vld [vmem:[%s12290_s2 + $0x3] ss:$0 sm:$0xff] }
 0x471   : > { %3868 = vst [vmem:[#allocation3 + $0xf0] sm:$0xff] %v3836_v20  ;;  %v3835_v22 = vsel %vm3771_vm13, %v3739_v40, %v3803_v14  ;;  %v3741_v19 = vadd.f32 %v11709_v27, %v3665_v41  ;;  %v7474_v27 = vld [vmem:[%s12289_s1 + $0x598] sm:$0xff] }
 0x472   : > { %3867 = vst [vmem:[#allocation3 + $0xe8] sm:$0xff] %v3835_v22  ;;  %vm3774_vm14 = vcmp.ge.f32.partialorder %v3742_v63, 0.0  ;;  %v3806_v42 = vmul.f32 0.1, %v3742_v63  ;;  %9248 = vmatprep.mubr.f32.mxu1 %v3835_v22  ;;  %v10250_v52 = vpack.c.bf16 %v7474_v27, %v7473_v28  ;;  %v3887_v40 = vld [vmem:[#allocation3 + $0x67] sm:$0xff]  ;;  %v3888_v14 = vld [vmem:[#allocation3 + $0x6f] sm:$0xff] }
 0x473   : > { %vm3773_vm15 = vcmp.ge.f32.partialorder %v3741_v19, 0.0  ;;  %v3805_v15 = vmul.f32 0.1, %v3741_v19  ;;  %9249 = vmatmul.mubr.f32.gmra.mrb[60].mxu1 %v3836_v20  ;;  %v3890_v20 = vld [vmem:[#allocation3 + $0x7f] sm:$0xff]  ;;  %v3892_v41 = vld [vmem:[#allocation3 + $0x8f] sm:$0xff]  ;;  %v3893_v22 = vld [vmem:[#allocation3 + $0x97] sm:$0xff] }
 0x474   : > { %v3838_v26 = vsel %vm3774_vm14, %v3742_v63, %v3806_v42  ;;  %v3891_v63 = vld [vmem:[#allocation3 + $0x87] sm:$0xff]  ;;  %v3900_v28 = vld [vmem:[#allocation3 + $0xcf] sm:$0xff] }
 0x475   : > { %3870 = vst [vmem:[#allocation3 + $0x100] sm:$0xff] %v3838_v26  ;;  %v3837_v43 = vsel %vm3773_vm15, %v3741_v19, %v3805_v15  ;;  %v3894_v19 = vld [vmem:[#allocation3 + $0x9f] sm:$0xff]  ;;  %v3895_v42 = vld [vmem:[#allocation3 + $0xa7] sm:$0xff]  ;;  %v3896_v15 = vld [vmem:[#allocation3 + $0xaf] sm:$0xff] }
 0x476   : > { %3869 = vst [vmem:[#allocation3 + $0xf8] sm:$0xff] %v3837_v43  ;;  %9251 = vmatprep.mubr.f32.mxu1 %v3837_v43  ;;  %v3898_v43 = vld [vmem:[#allocation3 + $0xbf] sm:$0xff]  ;;  %v3901_v27 = vld [vmem:[#allocation3 + $0xd7] sm:$0xff] }
 0x477   : > { %9252 = vmatmul.mubr.f32.gmra.mrb[62].mxu1 %v3838_v26  ;;  %v3897_v26 = vld [vmem:[#allocation3 + $0xb7] sm:$0xff]  ;;  %v3902_v32 = vld [vmem:[#allocation3 + $0xdf] sm:$0xff] }
 0x478   : > { %9286 = vmatprep.mubr.f32.mxu1 %v3875_v47  ;;  %v3899_v47 = vld [vmem:[#allocation3 + $0xc7] sm:$0xff]  ;;  %v4449_v62 = vld [vmem:[#allocation3 + $0xd9] sm:$0xff] }
 0x479   : > { %v3903_v48 = vld [vmem:[#allocation3 + $0xe7] sm:$0xff]  ;;  %v3904_v49 = vld [vmem:[#allocation3 + $0xef] sm:$0xff] }
 0x47a   : > { %v4446_v56 = vld [vmem:[#allocation3 + $0xc1] sm:$0xff] }
 0x47b   : > { %9287 = vmatmul.mubr.f32.vlgmr.msra.gmra.mrb[32].mxu1 %v3876_v54  ;;  %v4427_v54 = vld [vmem:[#allocation3 + $0x29] sm:$0xff]  ;;  %v4450_v16 = vld [vmem:[#allocation3 + $0xe1] sm:$0xff] }
 0x47c   : > { %9289 = vmatprep.mubr.f32.mxu1 %v3877_v17  ;;  %10249 = vmatpush3.bf16.msra.mxu1 %v11777_v29  ;;  %v3873_v57 = vld [vmem:[#allocation3 + $0x106] sm:$0x1]  ;;  %v7511_v29 = vld [vmem:[%s12289_s1 + $0x6b8] sm:$0xff] }
 0x47d   : > { %10251 = vmatprep.subr.bf16.mxu1 %v10250_v52  ;;  %3874 = vst [vmem:[#allocation3 + $0x108] sm:$0x1] %v3873_v57  ;;  %v10290_v55 = vpack.c.bf16 %v7511_v29, %v7510_v45  ;;  %v3905_v33 = vld [vmem:[#allocation3 + $0xf7] sm:$0xff]  ;;  %v3906_v50 = vld [vmem:[#allocation3 + $0xff] sm:$0xff]  ;;  %v4431_v57 = vld [vmem:[#allocation3 + $0x49] sm:$0xff] }
 0x47e   : > { %v4430_v17 = vld [vmem:[#allocation3 + $0x41] sm:$0xff]  ;;  %v4437_v45 = vld [vmem:[#allocation3 + $0x79] sm:$0xff] }
 0x47f   : > { %9290 = vmatmul.mubr.f32.gmra.mrb[34].mxu1 %v3878_v44  ;;  %10291 = vmatprep.subr.bf16.mxu0 %v10290_v55  ;;  %v4436_v44 = vld [vmem:[#allocation3 + $0x71] sm:$0xff]  ;;  %v4438_v29 = vld [vmem:[#allocation3 + $0x81] sm:$0xff]  ;;  %v4453_v2 = vld [vmem:[#allocation3 + $0xf9] sm:$0xff] }
 0x480   : > { %9292 = vmatprep.mubr.f32.mxu1 %v3879_v61  ;;  %10253 = vmatpush3.bf16.msra.mxu1 %v10250_v52  ;;  %v4423_v52 = vld [vmem:[#allocation3 + $0x9] sm:$0xff] }
 0x481   : > { %10255 = vmatprep.subr.bf16.mxu1 %v10254_v58  ;;  %10293 = vmatpush3.bf16.msra.mxu0 %v10290_v55  ;;  %v4439_v61 = vld [vmem:[#allocation3 + $0x89] sm:$0xff] }
 0x482   : > { %10295 = vmatprep.subr.bf16.mxu0 %v10294_v25  ;;  %v4443_v55 = vld [vmem:[#allocation3 + $0xa9] sm:$0xff] }
 0x483   : > { %9293 = vmatmul.mubr.f32.gmra.mrb[36].mxu1 %v3880_v1  ;;  %v4444_v1 = vld [vmem:[#allocation3 + $0xb1] sm:$0xff] }
 0x484   : > { %9295 = vmatprep.mubr.f32.mxu1 %v3881_v4  ;;  %10257 = vmatpush3.bf16.msra.mxu1 %v10254_v58  ;;  %v4432_v58 = vld [vmem:[#allocation3 + $0x51] sm:$0xff]  ;;  %v4447_v4 = vld [vmem:[#allocation3 + $0xc9] sm:$0xff]  ;;  %v4454_v5 = vld [vmem:[#allocation3 + $0x101] sm:$0xff] }
 0x485   : > { %10259 = vmatprep.subr.bf16.mxu1 %v10258_v51  ;;  %10297 = vmatpush3.bf16.msra.mxu0 %v10294_v25  ;;  %v4451_v25 = vld [vmem:[#allocation3 + $0xe9] sm:$0xff] }
 0x486   : > { %10299 = vmatprep.subr.bf16.mxu0 %v10298_v30 }
 0x487   : > { %9296 = vmatmul.mubr.f32.gmra.mrb[38].mxu1 %v3882_v0  ;;  %v4452_v0 = vld [vmem:[#allocation3 + $0xf1] sm:$0xff] }
 0x488   : > { %9298 = vmatprep.mubr.f32.mxu1 %v3883_v6  ;;  %10261 = vmatpush3.bf16.msra.mxu1 %v10258_v51  ;;  %v4440_v51 = vld [vmem:[#allocation3 + $0x91] sm:$0xff] }
 0x489   : > { %10263 = vmatprep.subr.bf16.mxu1 %v10262_v60  ;;  %10301 = vmatpush3.bf16.msra.mxu0 %v10298_v30  ;;  %v7516_v6 = vld [vmem:[%s12289_s1 + $0x6e0] sm:$0xff] }
 0x48b   : > { %9299 = vmatmul.mubr.f32.gmra.mrb[40].mxu1 %v3884_v31  ;;  %v7518_v31 = vld [vmem:[%s12289_s1 + $0x6f0] sm:$0xff] }
 0x48c   : > { %9301 = vmatprep.mubr.f32.mxu1 %v3885_v10  ;;  %10265 = vmatpush3.bf16.msra.mxu1 %v10262_v60  ;;  %v4448_v60 = vld [vmem:[#allocation3 + $0xd1] sm:$0xff]  ;;  %v10306_v9 = vpack.c.bf16 %v7519_v8, %v7518_v31 }
 0x48d   : > { %10267 = vmatprep.subr.bf16.mxu1 %v10266_v7  ;;  %v7488_v10 = vld [vmem:[%s12289_s1 + $0x600] sm:$0xff] }
 0x48f   : > { %9302 = vmatmul.mubr.f32.gmra.mrb[42].mxu1 %v3886_v12 }
 0x490   : > { %9304 = vmatprep.mubr.f32.mxu1 %v3887_v40  ;;  %10269 = vmatpush3.bf16.msra.mxu1 %v10266_v7  ;;  %v7517_v7 = vld [vmem:[%s12289_s1 + $0x6e8] sm:$0xff] }
 0x491   : > { %10271 = vmatprep.subr.bf16.mxu1 %v10270_v11  ;;  %v10302_v30 = vpack.c.bf16 %v7517_v7, %v7516_v6 }
 0x493   : > { %9305 = vmatmul.mubr.f32.gmra.mrb[44].mxu1 %v3888_v14  ;;  %10303 = vmatprep.subr.bf16.mxu0 %v10302_v30  ;;  %v4767_v14 = vld [vmem:[#allocation2 + $0x10] sm:$0xff] }
 0x494   : > { %9307 = vmatprep.mubr.f32.mxu1 %v3889_v18  ;;  %10273 = vmatpush3.bf16.msra.mxu1 %v10270_v11  ;;  %v7489_v11 = vld [vmem:[%s12289_s1 + $0x608] sm:$0xff] }
 0x495   : > { %10275 = vmatprep.subr.bf16.mxu1 %v10274_v13  ;;  %10305 = vmatpush3.bf16.msra.mxu0 %v10302_v30  ;;  %v10310_v12 = vpack.c.bf16 %v7489_v11, %v7488_v10 }
 0x496   : > { %10307 = vmatprep.subr.bf16.mxu0 %v10306_v9 }
 0x497   : > { %9308 = vmatmul.mubr.f32.gmra.mrb[46].mxu1 %v3890_v20 }
 0x498   : > { %9310 = vmatprep.mubr.f32.mxu1 %v3891_v63  ;;  %10277 = vmatpush3.bf16.msra.mxu1 %v10274_v13  ;;  %v4766_v63 = vld [vmem:[#allocation2 + $0x8] sm:$0xff] }
 0x499   : > { %10309 = vmatpush3.bf16.msra.mxu0 %v10306_v9 }
 0x49a   : > { %10311 = vmatprep.subr.bf16.mxu0 %v10310_v12 }
 0x49b   : > { %9311 = vmatmul.mubr.f32.gmra.mrb[48].mxu1 %v3892_v41 }
 0x49c   : > { %9313 = vmatprep.mubr.f32.mxu1 %v3893_v22 }
 0x49f   : > { %9314 = vmatmul.mubr.f32.gmra.mrb[50].mxu1 %v3894_v19 }
 0x4a0   : > { %9316 = vmatprep.mubr.f32.mxu1 %v3895_v42 }
 0x4a3   : > { %9317 = vmatmul.mubr.f32.gmra.mrb[52].mxu1 %v3896_v15 }
 0x4a4   : > { %9319 = vmatprep.mubr.f32.mxu1 %v3897_v26  ;;  %v7490_v26 = vld [vmem:[%s12289_s1 + $0x610] sm:$0xff] }
 0x4a7   : > { %9320 = vmatmul.mubr.f32.gmra.mrb[54].mxu1 %v3898_v43  ;;  %v7491_v43 = vld [vmem:[%s12289_s1 + $0x618] sm:$0xff] }
 0x4a8   : > { %9322 = vmatprep.mubr.f32.mxu1 %v3899_v47  ;;  %v4769_v47 = vld [vmem:[#allocation2 + $0x20] sm:$0xff] }
 0x4ab   : > { %9323 = vmatmul.mubr.f32.gmra.mrb[56].mxu1 %v3900_v28 }
 0x4ac   : > { %9325 = vmatprep.mubr.f32.mxu1 %v3901_v27 }
 0x4af   : > { %9326 = vmatmul.mubr.f32.gmra.mrb[58].mxu1 %v3902_v32 }
 0x4b0   : > { %9328 = vmatprep.mubr.f32.mxu1 %v3903_v48  ;;  %v4768_v48 = vld [vmem:[#allocation2 + $0x18] sm:$0xff] }
 0x4b3   : > { %9329 = vmatmul.mubr.f32.gmra.mrb[60].mxu1 %v3904_v49 }
 0x4b4   : > { %9331 = vmatprep.mubr.f32.mxu1 %v3905_v33 }
 0x4b7   : > { %9332 = vmatmul.mubr.f32.gmra.mrb[62].mxu1 %v3906_v50 }
 0x4b8   : > { %9366 = vmatprep.mubr.f32.mxu1 %v4423_v52  ;;  %v10314_v52 = vpack.c.bf16 %v7491_v43, %v7490_v26 }
 0x4bb   : > { %9367 = vmatmul.mubr.f32.vlgmr.msra.gmra.mrb[32].mxu1 %v4424_v34 }
 0x4bc   : > { %9369 = vmatprep.mubr.f32.mxu1 %v4425_v35 }
 0x4bf   : > { %9370 = vmatmul.mubr.f32.gmra.mrb[34].mxu1 %v4426_v53 }
 0x4c0   : > { %9372 = vmatprep.mubr.f32.mxu1 %v4427_v54 }
 0x4c3   : > { %9373 = vmatmul.mubr.f32.gmra.mrb[36].mxu1 %v4428_v46  ;;  %v7492_v46 = vld [vmem:[%s12289_s1 + $0x620] sm:$0xff] }
 0x4c4   : > { %9375 = vmatprep.mubr.f32.mxu1 %v4429_v37  ;;  %v7493_v37 = vld [vmem:[%s12289_s1 + $0x628] sm:$0xff] }
 0x4c7   : > { %9376 = vmatmul.mubr.f32.gmra.mrb[38].mxu1 %v4430_v17  ;;  %v4771_v17 = vld [vmem:[#allocation2 + $0x30] sm:$0xff] }
 0x4c8   : > { %9378 = vmatprep.mubr.f32.mxu1 %v4431_v57 }
 0x4cb   : > { %9379 = vmatmul.mubr.f32.gmra.mrb[40].mxu1 %v4432_v58 }
 0x4cc   : > { %9381 = vmatprep.mubr.f32.mxu1 %v4433_v38 }
 0x4cf   : > { %9382 = vmatmul.mubr.f32.gmra.mrb[42].mxu1 %v4434_v39  ;;  %v4770_v39 = vld [vmem:[#allocation2 + $0x28] sm:$0xff] }
 0x4d0   : > { %9384 = vmatprep.mubr.f32.mxu1 %v4435_v59 }
 0x4d3   : > { %9385 = vmatmul.mubr.f32.gmra.mrb[44].mxu1 %v4436_v44 }
 0x4d4   : > { %9387 = vmatprep.mubr.f32.mxu1 %v4437_v45  ;;  %v4773_v45 = vld [vmem:[#allocation2 + $0x40] sm:$0xff] }
 0x4d7   : > { %9388 = vmatmul.mubr.f32.gmra.mrb[46].mxu1 %v4438_v29 }
 0x4d8   : > { %9390 = vmatprep.mubr.f32.mxu1 %v4439_v61  ;;  %v10318_v61 = vpack.c.bf16 %v7493_v37, %v7492_v46 }
 0x4db   : > { %9391 = vmatmul.mubr.f32.gmra.mrb[48].mxu1 %v4440_v51  ;;  %v7494_v51 = vld [vmem:[%s12289_s1 + $0x630] sm:$0xff] }
 0x4dc   : > { %9393 = vmatprep.mubr.f32.mxu1 %v4441_v23 }
 0x4df   : > { %9394 = vmatmul.mubr.f32.gmra.mrb[50].mxu1 %v4442_v24 }
 0x4e0   : > { %9396 = vmatprep.mubr.f32.mxu1 %v4443_v55  ;;  %v4772_v55 = vld [vmem:[#allocation2 + $0x38] sm:$0xff] }
 0x4e3   : > { %9397 = vmatmul.mubr.f32.gmra.mrb[52].mxu1 %v4444_v1 }
 0x4e4   : > { %9399 = vmatprep.mubr.f32.mxu1 %v4445_v3 }
 0x4e7   : > { %9400 = vmatmul.mubr.f32.gmra.mrb[54].mxu1 %v4446_v56  ;;  %v7495_v56 = vld [vmem:[%s12289_s1 + $0x638] sm:$0xff] }
 0x4e8   : > { %9402 = vmatprep.mubr.f32.mxu1 %v4447_v4  ;;  %v10322_v31 = vpack.c.bf16 %v7495_v56, %v7494_v51  ;;  %v7503_v56 = vld [vmem:[%s12289_s1 + $0x678] sm:$0xff] }
 0x4eb   : > { %9403 = vmatmul.mubr.f32.gmra.mrb[56].mxu1 %v4448_v60 }
 0x4ec   : > { %9405 = vmatprep.mubr.f32.mxu1 %v4449_v62 }
 0x4ef   : > { %9406 = vmatmul.mubr.f32.gmra.mrb[58].mxu1 %v4450_v16 }
 0x4f0   : > { %9408 = vmatprep.mubr.f32.mxu1 %v4451_v25 }
 0x4f3   : > { %9409 = vmatmul.mubr.f32.gmra.mrb[60].mxu1 %v4452_v0 }
 0x4f4   : > { %9411 = vmatprep.mubr.f32.mxu1 %v4453_v2 }
 0x4f7   : > { %9412 = vmatmul.mubr.f32.gmra.mrb[62].mxu1 %v4454_v5 }
 0x58e   : > { %v9368_v21 = vpop.f32.mrb[32].mxu1 }
 0x58f   : > { %v4735_v40 = vadd.f32 %v9368_v21, %v11894_v36  ;;  %v4538_v13 = vpop.f32.mrb[33].mxu1  ;;  %v7497_v21 = vld [vmem:[%s12289_s1 + $0x648] sm:$0xff] }
 0x590   : > { %v4734_v18 = vadd.f32 %v11894_v36, %v4538_v13 }
 0x591   : > { %v4799_v20 = vadd.f32 %v4767_v14, %v4735_v40  ;;  %v4775_v40 = vld [vmem:[#allocation2 + $0x50] sm:$0xff] }
 0x592   : > { %v4798_v41 = vadd.f32 %v4766_v63, %v4734_v18  ;;  %v9371_v22 = vpop.f32.mrb[34].mxu1 }
 0x593   : > { %4831 = vst [vmem:[#allocation2 + $0x10] sm:$0xff] %v4799_v20  ;;  %v4737_v19 = vadd.f32 %v9371_v22, %v11894_v36  ;;  %v4548_v42 = vpop.f32.mrb[35].mxu1  ;;  %v5092_v15 = vmul.f32 0.1, %v4799_v20  ;;  %vm5060_vm1 = vcmp.ge.f32.partialorder %v4799_v20, 0.0 }
 0x594   : > { %4830 = vst [vmem:[#allocation2 + $0x8] sm:$0xff] %v4798_v41  ;;  %v4736_v28 = vadd.f32 %v11894_v36, %v4548_v42  ;;  %vm5059_vm0 = vcmp.ge.f32.partialorder %v4798_v41, 0.0  ;;  %v5091_v27 = vmul.f32 0.1, %v4798_v41 }
 0x595   : > { %v4801_v32 = vadd.f32 %v4769_v47, %v4737_v19  ;;  %v5124_v53 = vsel %vm5060_vm1, %v4799_v20, %v5092_v15  ;;  %v4774_v20 = vld [vmem:[#allocation2 + $0x48] sm:$0xff]  ;;  %v7498_v47 = vld [vmem:[%s12289_s1 + $0x650] sm:$0xff] }
 0x596   : > { %v4800_v49 = vadd.f32 %v4768_v48, %v4736_v28  ;;  %v9374_v33 = vpop.f32.mrb[36].mxu1  ;;  %v5123_v50 = vsel %vm5059_vm0, %v4798_v41, %v5091_v27  ;;  %v7499_v28 = vld [vmem:[%s12289_s1 + $0x658] sm:$0xff]  ;;  %v4777_v27 = vld [vmem:[#allocation2 + $0x60] sm:$0xff] }
 0x597   : > { %4833 = vst [vmem:[#allocation2 + $0x20] sm:$0xff] %v4801_v32  ;;  %v4739_v34 = vadd.f32 %v9374_v33, %v11894_v36  ;;  %v4558_v35 = vpop.f32.mrb[37].mxu1  ;;  %9446 = vmatprep.mubr.f32.mxu0 %v5123_v50  ;;  %v5094_v54 = vmul.f32 0.1, %v4801_v32  ;;  %vm5062_vm3 = vcmp.ge.f32.partialorder %v4801_v32, 0.0  ;;  %v4776_v33 = vld [vmem:[#allocation2 + $0x58] sm:$0xff] }
 0x598   : > { %4832 = vst [vmem:[#allocation2 + $0x18] sm:$0xff] %v4800_v49  ;;  %v4738_v57 = vadd.f32 %v11894_v36, %v4558_v35  ;;  %9447 = vmatmul.mubr.f32.vlgmr.msra.gmra.mrb[64].mxu0 %v5124_v53  ;;  %vm5061_vm2 = vcmp.ge.f32.partialorder %v4800_v49, 0.0  ;;  %v5093_v58 = vmul.f32 0.1, %v4800_v49  ;;  %v10330_v35 = vpack.c.bf16 %v7499_v28, %v7498_v47  ;;  %v4784_v28 = vld [vmem:[#allocation2 + $0x98] sm:$0xff] }
 0x599   : > { %v4803_v38 = vadd.f32 %v4771_v17, %v4739_v34  ;;  %10313 = vmatpush3.bf16.msra.mxu0 %v10310_v12  ;;  %v5126_v1 = vsel %vm5062_vm3, %v4801_v32, %v5094_v54  ;;  %v7496_v12 = vld [vmem:[%s12289_s1 + $0x640] sm:$0xff] }
 0x59a   : > { %v4802_v59 = vadd.f32 %v4770_v39, %v4738_v57  ;;  %v9377_v44 = vpop.f32.mrb[38].mxu1  ;;  %v5125_v29 = vsel %vm5061_vm2, %v4800_v49, %v5093_v58  ;;  %10315 = vmatprep.subr.bf16.mxu0 %v10314_v52  ;;  %v10326_v19 = vpack.c.bf16 %v7497_v21, %v7496_v12  ;;  %v7500_v17 = vld [vmem:[%s12289_s1 + $0x660] sm:$0xff]  ;;  %v7501_v57 = vld [vmem:[%s12289_s1 + $0x668] sm:$0xff]  ;;  %v4779_v58 = vld [vmem:[#allocation2 + $0x70] sm:$0xff] }
 0x59b   : > { %4835 = vst [vmem:[#allocation2 + $0x30] sm:$0xff] %v4803_v38  ;;  %v4741_v23 = vadd.f32 %v9377_v44, %v11894_v36  ;;  %v4568_v24 = vpop.f32.mrb[39].mxu1  ;;  %9449 = vmatprep.mubr.f32.mxu0 %v5125_v29  ;;  %v5096_v3 = vmul.f32 0.1, %v4803_v38  ;;  %v4862_v4 = vld [vmem:[#allocation2 + $0x9] sm:$0x1]  ;;  %v10334_v51 = vpack.c.bf16 %v7501_v57, %v7500_v17 }
 0x59c   : > { %4834 = vst [vmem:[#allocation2 + $0x28] sm:$0xff] %v4802_v59  ;;  %v4740_v60 = vadd.f32 %v11894_v36, %v4568_v24  ;;  %9450 = vmatmul.mubr.f32.gmra.mrb[66].mxu0 %v5126_v1  ;;  %vm5063_vm4 = vcmp.ge.f32.partialorder %v4802_v59, 0.0  ;;  %v5095_v62 = vmul.f32 0.1, %v4802_v59  ;;  %vm5064_vm5 = vcmp.ge.f32.partialorder %v4803_v38, 0.0  ;;  %v4778_v44 = vld [vmem:[#allocation2 + $0x68] sm:$0xff] }
 0x59d   : > { %4863 = vst [vmem:[#allocation2 + $0x7] sm:$0x1] %v4862_v4  ;;  %v4866_v16 = vld [vmem:[#allocation2 + $0xa] sm:$0x1]  ;;  %v4805_v25 = vadd.f32 %v4773_v45, %v4741_v23  ;;  %10317 = vmatpush3.bf16.msra.mxu0 %v10314_v52  ;;  %v4870_v0 = vld [vmem:[#allocation2 + $0xb] sm:$0x1]  ;;  %v5128_v10 = vsel %vm5064_vm5, %v4803_v38, %v5096_v3 }
 0x59e   : > { %4867 = vst [vmem:[#allocation2 + $0x6] sm:$0x1] %v4866_v16  ;;  %v4874_v2 = vld [vmem:[#allocation2 + $0xc] sm:$0x1]  ;;  %v4878_v5 = vld [vmem:[#allocation2 + $0xd] sm:$0x1]  ;;  %v4804_v6 = vadd.f32 %v4772_v55, %v4740_v60  ;;  %v5127_v30 = vsel %vm5063_vm4, %v4802_v59, %v5095_v62  ;;  %10319 = vmatprep.subr.bf16.mxu0 %v10318_v61 }
 0x59f   : > { %v9380_v7 = vpop.f32.mrb[40].mxu1  ;;  %4871 = vst [vmem:[#allocation2 + $0x5] sm:$0x1] %v4870_v0  ;;  %4875 = vst [vmem:[#allocation2 + $0x4] sm:$0x1] %v4874_v2  ;;  %9452 = vmatprep.mubr.f32.mxu0 %v5127_v30  ;;  %vm5066_vm7 = vcmp.ge.f32.partialorder %v4805_v25, 0.0 }
 0x5a0   : > { %4879 = vst [vmem:[#allocation2 + $0x3] sm:$0x1] %v4878_v5  ;;  %4837 = vst [vmem:[#allocation2 + $0x40] sm:$0xff] %v4805_v25  ;;  %v4743_v8 = vadd.f32 %v9380_v7, %v11894_v36  ;;  %v4578_v9 = vpop.f32.mrb[41].mxu1  ;;  %v5098_v11 = vmul.f32 0.1, %v4805_v25  ;;  %9453 = vmatmul.mubr.f32.gmra.mrb[68].mxu0 %v5128_v10 }
 0x5a1   : > { %4836 = vst [vmem:[#allocation2 + $0x38] sm:$0xff] %v4804_v6  ;;  %v4742_v13 = vadd.f32 %v11894_v36, %v4578_v9  ;;  %vm5065_vm6 = vcmp.ge.f32.partialorder %v4804_v6, 0.0  ;;  %v5097_v14 = vmul.f32 0.1, %v4804_v6  ;;  %10321 = vmatpush3.bf16.msra.mxu0 %v10318_v61  ;;  %v7502_v3 = vld [vmem:[%s12289_s1 + $0x670] sm:$0xff]  ;;  %v4781_v4 = vld [vmem:[#allocation2 + $0x80] sm:$0xff] }
 0x5a2   : > { %v4807_v18 = vadd.f32 %v4775_v40, %v4743_v8  ;;  %v9383_v41 = vpop.f32.mrb[42].mxu1  ;;  %10323 = vmatprep.subr.bf16.mxu0 %v10322_v31  ;;  %v5130_v26 = vsel %vm5066_vm7, %v4805_v25, %v5098_v11  ;;  %v4780_v25 = vld [vmem:[#allocation2 + $0x78] sm:$0xff]  ;;  %v7520_v9 = vld [vmem:[%s12289_s1 + $0x700] sm:$0xff]  ;;  %v7521_v10 = vld [vmem:[%s12289_s1 + $0x708] sm:$0xff] }
 0x5a3   : > { %v4806_v63 = vadd.f32 %v4774_v20, %v4742_v13  ;;  %v5129_v22 = vsel %vm5065_vm6, %v4804_v6, %v5097_v14  ;;  %v4745_v42 = vadd.f32 %v9383_v41, %v11894_v36  ;;  %v4588_v15 = vpop.f32.mrb[43].mxu1  ;;  %v10338_v6 = vpack.c.bf16 %v7503_v56, %v7502_v3  ;;  %v4783_v11 = vld [vmem:[#allocation2 + $0x90] sm:$0xff]  ;;  %v4782_v13 = vld [vmem:[#allocation2 + $0x88] sm:$0xff] }
 0x5a4   : > { %4839 = vst [vmem:[#allocation2 + $0x50] sm:$0xff] %v4807_v18  ;;  %9455 = vmatprep.mubr.f32.mxu0 %v5129_v22  ;;  %v5100_v43 = vmul.f32 0.1, %v4807_v18  ;;  %v4744_v32 = vadd.f32 %v11894_v36, %v4588_v15  ;;  %vm5068_vm9 = vcmp.ge.f32.partialorder %v4807_v18, 0.0  ;;  %v4785_v15 = vld [vmem:[#allocation2 + $0xa0] sm:$0xff] }
 0x5a5   : > { %4838 = vst [vmem:[#allocation2 + $0x48] sm:$0xff] %v4806_v63  ;;  %9456 = vmatmul.mubr.f32.gmra.mrb[70].mxu0 %v5130_v26  ;;  %vm5067_vm8 = vcmp.ge.f32.partialorder %v4806_v63, 0.0  ;;  %v5099_v48 = vmul.f32 0.1, %v4806_v63  ;;  %v4809_v49 = vadd.f32 %v4777_v27, %v4745_v42 }
 0x5a6   : > { %10325 = vmatpush3.bf16.msra.mxu0 %v10322_v31  ;;  %v4808_v50 = vadd.f32 %v4776_v33, %v4744_v32  ;;  %v9386_v52 = vpop.f32.mrb[44].mxu1  ;;  %v5132_v46 = vsel %vm5068_vm9, %v4807_v18, %v5100_v43 }
 0x5a7   : > { %v5131_v34 = vsel %vm5067_vm8, %v4806_v63, %v5099_v48  ;;  %10327 = vmatprep.subr.bf16.mxu0 %v10326_v19  ;;  %4841 = vst [vmem:[#allocation2 + $0x60] sm:$0xff] %v4809_v49  ;;  %v4747_v53 = vadd.f32 %v9386_v52, %v11894_v36  ;;  %v4598_v54 = vpop.f32.mrb[45].mxu1  ;;  %v5102_v37 = vmul.f32 0.1, %v4809_v49  ;;  %vm5070_vm11 = vcmp.ge.f32.partialorder %v4809_v49, 0.0 }
 0x5a8   : > { %9458 = vmatprep.mubr.f32.mxu0 %v5131_v34  ;;  %4840 = vst [vmem:[#allocation2 + $0x58] sm:$0xff] %v4808_v50  ;;  %v4746_v38 = vadd.f32 %v11894_v36, %v4598_v54  ;;  %vm5069_vm10 = vcmp.ge.f32.partialorder %v4808_v50, 0.0  ;;  %v5101_v39 = vmul.f32 0.1, %v4808_v50  ;;  %v11964_v63 = vpack.c.bf16 %v7521_v10, %v7520_v9  ;;  %v4787_v34 = vld [vmem:[#allocation2 + $0xb0] sm:$0xff]  ;;  %v4793_v9 = vld [vmem:[#allocation2 + $0xe0] sm:$0xff] }
 0x5a9   : > { %9459 = vmatmul.mubr.f32.gmra.mrb[72].mxu0 %v5132_v46  ;;  %v4811_v59 = vadd.f32 %v4779_v58, %v4747_v53  ;;  %v5134_v55 = vsel %vm5070_vm11, %v4809_v49, %v5102_v37  ;;  %v4786_v46 = vld [vmem:[#allocation2 + $0xa8] sm:$0xff] }
 0x5aa   : > { %10329 = vmatpush3.bf16.msra.mxu0 %v10326_v19  ;;  %v4810_v45 = vadd.f32 %v4778_v44, %v4746_v38  ;;  %v9389_v29 = vpop.f32.mrb[46].mxu1  ;;  %v5133_v61 = vsel %vm5069_vm10, %v4808_v50, %v5101_v39  ;;  %v4789_v44 = vld [vmem:[#allocation2 + $0xc0] sm:$0xff] }
 0x5ab   : > { %10331 = vmatprep.subr.bf16.mxu0 %v10330_v35  ;;  %4843 = vst [vmem:[#allocation2 + $0x70] sm:$0xff] %v4811_v59  ;;  %v4749_v23 = vadd.f32 %v9389_v29, %v11894_v36  ;;  %v4608_v24 = vpop.f32.mrb[47].mxu1  ;;  %9461 = vmatprep.mubr.f32.mxu0 %v5133_v61  ;;  %v5104_v1 = vmul.f32 0.1, %v4811_v59  ;;  %vm5072_vm13 = vcmp.ge.f32.partialorder %v4811_v59, 0.0 }
 0x5ac   : > { %4842 = vst [vmem:[#allocation2 + $0x68] sm:$0xff] %v4810_v45  ;;  %v4748_v60 = vadd.f32 %v11894_v36, %v4608_v24  ;;  %vm5071_vm12 = vcmp.ge.f32.partialorder %v4810_v45, 0.0  ;;  %v5103_v62 = vmul.f32 0.1, %v4810_v45 }
 0x5ad   : > { %9462 = vmatmul.mubr.f32.gmra.mrb[74].mxu0 %v5134_v55  ;;  %v4813_v16 = vadd.f32 %v4781_v4, %v4749_v23  ;;  %v5136_v31 = vsel %vm5072_vm13, %v4811_v59, %v5104_v1 }
 0x5ae   : > { %10333 = vmatpush3.bf16.msra.mxu0 %v10330_v35  ;;  %v4812_v0 = vadd.f32 %v4780_v25, %v4748_v60  ;;  %v9392_v2 = vpop.f32.mrb[48].mxu1  ;;  %v5135_v5 = vsel %vm5071_vm12, %v4810_v45, %v5103_v62  ;;  %v4791_v60 = vld [vmem:[#allocation2 + $0xd0] sm:$0xff] }
 0x5af   : > { %10335 = vmatprep.subr.bf16.mxu0 %v10334_v51  ;;  %4845 = vst [vmem:[#allocation2 + $0x80] sm:$0xff] %v4813_v16  ;;  %v4751_v7 = vadd.f32 %v9392_v2, %v11894_v36  ;;  %v4618_v30 = vpop.f32.mrb[49].mxu1  ;;  %9464 = vmatprep.mubr.f32.mxu0 %v5135_v5  ;;  %v5106_v8 = vmul.f32 0.1, %v4813_v16  ;;  %vm5074_vm15 = vcmp.ge.f32.partialorder %v4813_v16, 0.0 }
 0x5b0   : > { %4844 = vst [vmem:[#allocation2 + $0x78] sm:$0xff] %v4812_v0  ;;  %v4750_v12 = vadd.f32 %v11894_v36, %v4618_v30  ;;  %vm5073_vm14 = vcmp.ge.f32.partialorder %v4812_v0, 0.0  ;;  %v5105_v21 = vmul.f32 0.1, %v4812_v0 }
 0x5b1   : > { %9465 = vmatmul.mubr.f32.gmra.mrb[76].mxu0 %v5136_v31  ;;  %v4815_v40 = vadd.f32 %v4783_v11, %v4751_v7  ;;  %v5138_v19 = vsel %vm5074_vm15, %v4813_v16, %v5106_v8 }
 0x5b2   : > { %10337 = vmatpush3.bf16.msra.mxu0 %v10334_v51  ;;  %v4814_v14 = vadd.f32 %v4782_v13, %v4750_v12  ;;  %v9395_v18 = vpop.f32.mrb[50].mxu1  ;;  %v5137_v20 = vsel %vm5073_vm14, %v4812_v0, %v5105_v21  ;;  %v4788_v51 = vld [vmem:[#allocation2 + $0xb8] sm:$0xff]  ;;  %v4790_v0 = vld [vmem:[#allocation2 + $0xc8] sm:$0xff] }
 0x5b3   : > { %10339 = vmatprep.subr.bf16.mxu0 %v10338_v6  ;;  %4847 = vst [vmem:[#allocation2 + $0x90] sm:$0xff] %v4815_v40  ;;  %v4753_v41 = vadd.f32 %v9395_v18, %v11894_v36  ;;  %v4628_v22 = vpop.f32.mrb[51].mxu1  ;;  %9467 = vmatprep.mubr.f32.mxu0 %v5137_v20  ;;  %v5108_v42 = vmul.f32 0.1, %v4815_v40  ;;  %vm5076_vm1 = vcmp.ge.f32.partialorder %v4815_v40, 0.0  ;;  %v4792_v21 = vld [vmem:[#allocation2 + $0xd8] sm:$0xff] }
 0x5b4   : > { %4846 = vst [vmem:[#allocation2 + $0x88] sm:$0xff] %v4814_v14  ;;  %v4752_v26 = vadd.f32 %v11894_v36, %v4628_v22  ;;  %vm5075_vm0 = vcmp.ge.f32.partialorder %v4814_v14, 0.0  ;;  %v5107_v43 = vmul.f32 0.1, %v4814_v14 }
 0x5b5   : > { %9468 = vmatmul.mubr.f32.gmra.mrb[78].mxu0 %v5138_v19  ;;  %v4817_v47 = vadd.f32 %v4785_v15, %v4753_v41  ;;  %v5140_v50 = vsel %vm5076_vm1, %v4815_v40, %v5108_v42  ;;  %v4795_v19 = vld [vmem:[#allocation2 + $0xf0] sm:$0xff] }
 0x5b6   : > { %10341 = vmatpush3.bf16.msra.mxu0 %v10338_v6  ;;  %v4816_v27 = vadd.f32 %v4784_v28, %v4752_v26  ;;  %v9398_v32 = vpop.f32.mrb[52].mxu1  ;;  %v5139_v48 = vsel %vm5075_vm0, %v4814_v14, %v5107_v43  ;;  %v4794_v43 = vld [vmem:[#allocation2 + $0xe8] sm:$0xff] }
 0x5b7   : > { %10343 = vmatprep.subr.bf16.mxu0 %v11964_v63  ;;  %4849 = vst [vmem:[#allocation2 + $0xa0] sm:$0xff] %v4817_v47  ;;  %v4755_v49 = vadd.f32 %v9398_v32, %v11894_v36  ;;  %v4638_v33 = vpop.f32.mrb[53].mxu1  ;;  %9470 = vmatprep.mubr.f32.mxu0 %v5139_v48  ;;  %v5110_v52 = vmul.f32 0.1, %v4817_v47  ;;  %vm5078_vm3 = vcmp.ge.f32.partialorder %v4817_v47, 0.0 }
 0x5b8   : > { %4848 = vst [vmem:[#allocation2 + $0x98] sm:$0xff] %v4816_v27  ;;  %v4754_v35 = vadd.f32 %v11894_v36, %v4638_v33  ;;  %vm5077_vm2 = vcmp.ge.f32.partialorder %v4816_v27, 0.0  ;;  %v5109_v53 = vmul.f32 0.1, %v4816_v27 }
 0x5b9   : > { %9471 = vmatmul.mubr.f32.gmra.mrb[80].mxu0 %v5140_v50  ;;  %v4819_v54 = vadd.f32 %v4787_v34, %v4755_v49  ;;  %v5142_v39 = vsel %vm5078_vm3, %v4817_v47, %v5110_v52  ;;  %v4797_v50 = vld [vmem:[#allocation2 + $0x100] sm:$0xff] }
 0x5ba   : > { %v4818_v37 = vadd.f32 %v4786_v46, %v4754_v35  ;;  %v9401_v17 = vpop.f32.mrb[54].mxu1  ;;  %v5141_v57 = vsel %vm5077_vm2, %v4816_v27, %v5109_v53  ;;  %v4796_v53 = vld [vmem:[#allocation2 + $0xf8] sm:$0xff] }
 0x5bb   : > { %4851 = vst [vmem:[#allocation2 + $0xb0] sm:$0xff] %v4819_v54  ;;  %v4757_v58 = vadd.f32 %v9401_v17, %v11894_v36  ;;  %v4648_v38 = vpop.f32.mrb[55].mxu1  ;;  %9473 = vmatprep.mubr.f32.mxu0 %v5141_v57  ;;  %v5112_v59 = vmul.f32 0.1, %v4819_v54  ;;  %vm5080_vm5 = vcmp.ge.f32.partialorder %v4819_v54, 0.0 }
 0x5bc   : > { %4850 = vst [vmem:[#allocation2 + $0xa8] sm:$0xff] %v4818_v37  ;;  %v4756_v45 = vadd.f32 %v11894_v36, %v4648_v38  ;;  %vm5079_vm4 = vcmp.ge.f32.partialorder %v4818_v37, 0.0  ;;  %v5111_v29 = vmul.f32 0.1, %v4818_v37 }
 0x5bd   : > { %9474 = vmatmul.mubr.f32.gmra.mrb[82].mxu0 %v5142_v39  ;;  %v4821_v61 = vadd.f32 %v4789_v44, %v4757_v58  ;;  %v5144_v56 = vsel %vm5080_vm5, %v4819_v54, %v5112_v59  ;;  %v4882_v54 = vld [vmem:[#allocation2 + $0x3] sm:$0xff]  ;;  %v4883_v58 = vld [vmem:[#allocation2 + $0xb] sm:$0xff]  ;;  %v4884_v39 = vld [vmem:[#allocation2 + $0x13] sm:$0xff] }
 0x5be   : > { %v4820_v23 = vadd.f32 %v4788_v51, %v4756_v45  ;;  %v9404_v24 = vpop.f32.mrb[56].mxu1  ;;  %v5143_v55 = vsel %vm5079_vm4, %v4818_v37, %v5111_v29  ;;  %vm4914_vm0 = vcmp.ge.f32.partialorder %v4882_v54, 0.0  ;;  %v4947_v45 = vmul.f32 0.1, %v4883_v58  ;;  %v7522_v29 = vld [vmem:[%s12289_s1 + $0x710] sm:$0xff] }
 0x5bf   : > { %4853 = vst [vmem:[#allocation2 + $0xc0] sm:$0xff] %v4821_v61  ;;  %v4759_v1 = vadd.f32 %v9404_v24, %v11894_v36  ;;  %v4658_v3 = vpop.f32.mrb[57].mxu1  ;;  %9476 = vmatprep.mubr.f32.mxu0 %v5143_v55  ;;  %v5114_v4 = vmul.f32 0.1, %v4821_v61  ;;  %vm5082_vm7 = vcmp.ge.f32.partialorder %v4821_v61, 0.0  ;;  %vm4915_vm1 = vcmp.ge.f32.partialorder %v4883_v58, 0.0 }
 0x5c0   : > { %4852 = vst [vmem:[#allocation2 + $0xb8] sm:$0xff] %v4820_v23  ;;  %v4758_v62 = vadd.f32 %v11894_v36, %v4658_v3  ;;  %vm5081_vm6 = vcmp.ge.f32.partialorder %v4820_v23, 0.0  ;;  %v5113_v16 = vmul.f32 0.1, %v4820_v23  ;;  %v4885_v24 = vld [vmem:[#allocation2 + $0x1b] sm:$0xff]  ;;  %vm4916_vm2 = vcmp.ge.f32.partialorder %v4884_v39, 0.0 }
 0x5c1   : > { %9477 = vmatmul.mubr.f32.gmra.mrb[84].mxu0 %v5144_v56  ;;  %v4823_v25 = vadd.f32 %v4791_v60, %v4759_v1  ;;  %v5146_v31 = vsel %vm5082_vm7, %v4821_v61, %v5114_v4  ;;  %v7523_v61 = vld [vmem:[%s12289_s1 + $0x718] sm:$0xff]  ;;  %v4886_v55 = vld [vmem:[#allocation2 + $0x23] sm:$0xff]  ;;  %v4979_v56 = vsel %vm4915_vm1, %v4883_v58, %v4947_v45  ;;  %v4949_v4 = vmul.f32 0.1, %v4885_v24  ;;  %v7534_v58 = vld [vmem:[%s12289_s1 + $0x770] sm:$0xff] }
 0x5c2   : > { %v4822_v2 = vadd.f32 %v4790_v0, %v4758_v62  ;;  %v9407_v5 = vpop.f32.mrb[58].mxu1  ;;  %v5145_v6 = vsel %vm5081_vm6, %v4820_v23, %v5113_v16  ;;  %v4948_v23 = vmul.f32 0.1, %v4884_v39  ;;  %v10346_v1 = vpack.c.bf16 %v7523_v61, %v7522_v29  ;;  %v7524_v60 = vld [vmem:[%s12289_s1 + $0x720] sm:$0xff]  ;;  %v7525_v62 = vld [vmem:[%s12289_s1 + $0x728] sm:$0xff]  ;;  %v7555_v45 = vld [vmem:[%s12289_s1 + $0x810] sm:$0xff] }
 0x5c3   : > { %4855 = vst [vmem:[#allocation2 + $0xd0] sm:$0xff] %v4823_v25  ;;  %v4761_v7 = vadd.f32 %v9407_v5, %v11894_v36  ;;  %v4668_v30 = vpop.f32.mrb[59].mxu1  ;;  %9479 = vmatprep.mubr.f32.mxu0 %v5145_v6  ;;  %v5116_v8 = vmul.f32 0.1, %v4823_v25  ;;  %vm5084_vm9 = vcmp.ge.f32.partialorder %v4823_v25, 0.0  ;;  %vm4917_vm3 = vcmp.ge.f32.partialorder %v4885_v24, 0.0 }
 0x5c4   : > { %4854 = vst [vmem:[#allocation2 + $0xc8] sm:$0xff] %v4822_v2  ;;  %v4760_v10 = vadd.f32 %v11894_v36, %v4668_v30  ;;  %vm5083_vm8 = vcmp.ge.f32.partialorder %v4822_v2, 0.0  ;;  %v5115_v11 = vmul.f32 0.1, %v4822_v2  ;;  %v4980_v16 = vsel %vm4916_vm2, %v4884_v39, %v4948_v23  ;;  %v4887_v0 = vld [vmem:[#allocation2 + $0x2b] sm:$0xff]  ;;  %v7556_v29 = vld [vmem:[%s12289_s1 + $0x818] sm:$0xff] }
 0x5c5   : > { %9480 = vmatmul.mubr.f32.gmra.mrb[86].mxu0 %v5146_v31  ;;  %v4825_v12 = vadd.f32 %v4793_v9, %v4761_v7  ;;  %v5148_v41 = vsel %vm5084_vm9, %v4823_v25, %v5116_v8  ;;  %v4950_v25 = vmul.f32 0.1, %v4886_v55  ;;  %vm4918_vm4 = vcmp.ge.f32.partialorder %v4886_v55, 0.0  ;;  %v7526_v8 = vld [vmem:[%s12289_s1 + $0x730] sm:$0xff]  ;;  %v7527_v9 = vld [vmem:[%s12289_s1 + $0x738] sm:$0xff] }
 0x5c6   : > { %v4824_v40 = vadd.f32 %v4792_v21, %v4760_v10  ;;  %v9410_v13 = vpop.f32.mrb[60].mxu1  ;;  %v5147_v14 = vsel %vm5083_vm8, %v4822_v2, %v5115_v11  ;;  %v4888_v2 = vld [vmem:[#allocation2 + $0x33] sm:$0xff]  ;;  %v10350_v6 = vpack.c.bf16 %v7525_v62, %v7524_v60  ;;  %v4981_v30 = vsel %vm4917_vm3, %v4885_v24, %v4949_v4  ;;  %v4890_v21 = vld [vmem:[#allocation2 + $0x43] sm:$0xff]  ;;  %v4897_v23 = vld [vmem:[#allocation2 + $0x7b] sm:$0xff] }
 0x5c7   : > { %4857 = vst [vmem:[#allocation2 + $0xe0] sm:$0xff] %v4825_v12  ;;  %v4763_v18 = vadd.f32 %v9410_v13, %v11894_v36  ;;  %v4678_v20 = vpop.f32.mrb[61].mxu1  ;;  %9482 = vmatprep.mubr.f32.mxu0 %v5147_v14  ;;  %v5118_v22 = vmul.f32 0.1, %v4825_v12  ;;  %vm5086_vm11 = vcmp.ge.f32.partialorder %v4825_v12, 0.0  ;;  %vm4919_vm5 = vcmp.ge.f32.partialorder %v4887_v0, 0.0 }
 0x5c8   : > { %4856 = vst [vmem:[#allocation2 + $0xd8] sm:$0xff] %v4824_v40  ;;  %v4762_v42 = vadd.f32 %v11894_v36, %v4678_v20  ;;  %vm5085_vm10 = vcmp.ge.f32.partialorder %v4824_v40, 0.0  ;;  %v5117_v15 = vmul.f32 0.1, %v4824_v40  ;;  %v4951_v31 = vmul.f32 0.1, %v4887_v0 }
 0x5c9   : > { %9483 = vmatmul.mubr.f32.gmra.mrb[88].mxu0 %v5148_v41  ;;  %v4827_v26 = vadd.f32 %v4795_v19, %v4763_v18  ;;  %v5150_v49 = vsel %vm5086_vm11, %v4825_v12, %v5118_v22  ;;  %v4952_v11 = vmul.f32 0.1, %v4888_v2  ;;  %v4889_v12 = vld [vmem:[#allocation2 + $0x3b] sm:$0xff]  ;;  %vm4920_vm6 = vcmp.ge.f32.partialorder %v4888_v2, 0.0  ;;  %v7529_v41 = vld [vmem:[%s12289_s1 + $0x748] sm:$0xff] }
 0x5ca   : > { %v4826_v47 = vadd.f32 %v4794_v43, %v4762_v42  ;;  %v9413_v28 = vpop.f32.mrb[62].mxu1  ;;  %v5149_v27 = vsel %vm5085_vm10, %v4824_v40, %v5117_v15  ;;  %v10354_v13 = vpack.c.bf16 %v7527_v9, %v7526_v8  ;;  %v4983_v14 = vsel %vm4919_vm5, %v4887_v0, %v4951_v31  ;;  %v7528_v20 = vld [vmem:[%s12289_s1 + $0x740] sm:$0xff]  ;;  %v4891_v42 = vld [vmem:[#allocation2 + $0x4b] sm:$0xff]  ;;  %v4892_v15 = vld [vmem:[#allocation2 + $0x53] sm:$0xff] }
 0x5cb   : > { %4859 = vst [vmem:[#allocation2 + $0xf0] sm:$0xff] %v4827_v26  ;;  %v4765_v32 = vadd.f32 %v9413_v28, %v11894_v36  ;;  %v4688_v48 = vpop.f32.mrb[63].mxu1  ;;  %9485 = vmatprep.mubr.f32.mxu0 %v5149_v27  ;;  %v5120_v33 = vmul.f32 0.1, %v4827_v26  ;;  %vm5088_vm13 = vcmp.ge.f32.partialorder %v4827_v26, 0.0  ;;  %v4984_v22 = vsel %vm4920_vm6, %v4888_v2, %v4952_v11  ;;  %v7530_v28 = vld [vmem:[%s12289_s1 + $0x750] sm:$0xff] }
 0x5cc   : > { %4858 = vst [vmem:[#allocation2 + $0xe8] sm:$0xff] %v4826_v47  ;;  %v4764_v52 = vadd.f32 %v11894_v36, %v4688_v48  ;;  %vm5087_vm12 = vcmp.ge.f32.partialorder %v4826_v47, 0.0  ;;  %v5119_v34 = vmul.f32 0.1, %v4826_v47  ;;  %v4946_v36 = vmul.f32 0.1, %v4882_v54 }
 0x5cd   : > { %9486 = vmatmul.mubr.f32.gmra.mrb[90].mxu0 %v5150_v49  ;;  %v4829_v35 = vadd.f32 %v4797_v50, %v4765_v32  ;;  %v5152_v17 = vsel %vm5088_vm13, %v4827_v26, %v5120_v33  ;;  %v4953_v18 = vmul.f32 0.1, %v4889_v12  ;;  %vm4921_vm7 = vcmp.ge.f32.partialorder %v4889_v12, 0.0  ;;  %v7531_v27 = vld [vmem:[%s12289_s1 + $0x758] sm:$0xff]  ;;  %v4894_v33 = vld [vmem:[#allocation2 + $0x63] sm:$0xff]  ;;  %v4899_v0 = vld [vmem:[#allocation2 + $0x8b] sm:$0xff] }
 0x5ce   : > { %v4828_v46 = vadd.f32 %v4796_v53, %v4764_v52  ;;  %v5151_v37 = vsel %vm5087_vm12, %v4826_v47, %v5119_v34  ;;  %v4978_v51 = vsel %vm4914_vm0, %v4882_v54, %v4946_v36  ;;  %v4954_v19 = vmul.f32 0.1, %v4890_v21  ;;  %v4893_v49 = vld [vmem:[#allocation2 + $0x5b] sm:$0xff]  ;;  %v7533_v53 = vld [vmem:[%s12289_s1 + $0x768] sm:$0xff]  ;;  %v4900_v2 = vld [vmem:[#allocation2 + $0x93] sm:$0xff] }
 0x5cf   : > { %4861 = vst [vmem:[#allocation2 + $0x100] sm:$0xff] %v4829_v35  ;;  %9488 = vmatprep.mubr.f32.mxu0 %v5151_v37  ;;  %v5122_v57 = vmul.f32 0.1, %v4829_v35  ;;  %vm5090_vm15 = vcmp.ge.f32.partialorder %v4829_v35, 0.0  ;;  %vm4922_vm8 = vcmp.ge.f32.partialorder %v4890_v21, 0.0  ;;  %v10358_v26 = vpack.c.bf16 %v7529_v41, %v7528_v20  ;;  %v4895_v37 = vld [vmem:[#allocation2 + $0x6b] sm:$0xff] }
 0x5d0   : > { %4860 = vst [vmem:[#allocation2 + $0xf8] sm:$0xff] %v4828_v46  ;;  %vm5089_vm14 = vcmp.ge.f32.partialorder %v4828_v46, 0.0  ;;  %v5121_v38 = vmul.f32 0.1, %v4828_v46  ;;  %v4985_v43 = vsel %vm4921_vm7, %v4889_v12, %v4953_v18  ;;  %v4955_v47 = vmul.f32 0.1, %v4891_v42 }
 0x5d1   : > { %9489 = vmatmul.mubr.f32.gmra.mrb[92].mxu0 %v5152_v17  ;;  %v5154_v44 = vsel %vm5090_vm15, %v4829_v35, %v5122_v57  ;;  %v4986_v32 = vsel %vm4922_vm8, %v4890_v21, %v4954_v19  ;;  %vm4923_vm9 = vcmp.ge.f32.partialorder %v4891_v42, 0.0  ;;  %v4956_v48 = vmul.f32 0.1, %v4892_v15  ;;  %v7532_v35 = vld [vmem:[%s12289_s1 + $0x760] sm:$0xff]  ;;  %v4896_v17 = vld [vmem:[#allocation2 + $0x73] sm:$0xff]  ;;  %v7554_v36 = vld [vmem:[%s12289_s1 + $0x808] sm:$0xff] }
 0x5d2   : > { %v5153_v59 = vsel %vm5089_vm14, %v4828_v46, %v5121_v38  ;;  %vm4924_vm10 = vcmp.ge.f32.partialorder %v4892_v15, 0.0  ;;  %v10362_v50 = vpack.c.bf16 %v7531_v27, %v7530_v28  ;;  %v4987_v52 = vsel %vm4923_vm9, %v4891_v42, %v4955_v47  ;;  %v7553_v38 = vld [vmem:[%s12289_s1 + $0x800] sm:$0xff]  ;;  %v7558_v62 = vld [vmem:[%s12289_s1 + $0x828] sm:$0xff]  ;;  %v4904_v41 = vld [vmem:[#allocation2 + $0xb3] sm:$0xff] }
 0x5d3   : > { %9491 = vmatprep.mubr.f32.mxu0 %v5153_v59  ;;  %v4957_v34 = vmul.f32 0.1, %v4893_v49  ;;  %v4988_v54 = vsel %vm4924_vm10, %v4892_v15, %v4956_v48  ;;  %vm4925_vm11 = vcmp.ge.f32.partialorder %v4893_v49, 0.0  ;;  %v4958_v46 = vmul.f32 0.1, %v4894_v33  ;;  %v4898_v24 = vld [vmem:[#allocation2 + $0x83] sm:$0xff] }
 0x5d4   : > { %vm4926_vm12 = vcmp.ge.f32.partialorder %v4894_v33, 0.0  ;;  %v10366_v57 = vpack.c.bf16 %v7533_v53, %v7532_v35  ;;  %v4959_v59 = vmul.f32 0.1, %v4895_v37  ;;  %vm4927_vm13 = vcmp.ge.f32.partialorder %v4895_v37, 0.0  ;;  %v7557_v60 = vld [vmem:[%s12289_s1 + $0x820] sm:$0xff]  ;;  %v7562_v21 = vld [vmem:[%s12289_s1 + $0x848] sm:$0xff] }
 0x5d5   : > { %9492 = vmatmul.mubr.f32.gmra.mrb[94].mxu0 %v5154_v44  ;;  %v4989_v39 = vsel %vm4925_vm11, %v4893_v49, %v4957_v34  ;;  %v7535_v44 = vld [vmem:[%s12289_s1 + $0x778] sm:$0xff]  ;;  %v4990_v61 = vsel %vm4926_vm12, %v4894_v33, %v4958_v46  ;;  %vm4928_vm14 = vcmp.ge.f32.partialorder %v4896_v17, 0.0  ;;  %v4961_v4 = vmul.f32 0.1, %v4897_v23  ;;  %v7561_v12 = vld [vmem:[%s12289_s1 + $0x840] sm:$0xff]  ;;  %v4903_v20 = vld [vmem:[#allocation2 + $0xab] sm:$0xff] }
 0x5d6   : > { %9526 = vmatprep.mubr.f32.mxu0 %v4978_v51  ;;  %v4864_v3 = vld [vmem:[#allocation2 + $0x106] sm:$0x1]  ;;  %v4868_v5 = vld [vmem:[#allocation2 + $0x105] sm:$0x1]  ;;  %v4872_v7 = vld [vmem:[#allocation2 + $0x104] sm:$0x1] }
 0x5d7   : > { %4865 = vst [vmem:[#allocation2 + $0x108] sm:$0x1] %v4864_v3  ;;  %4869 = vst [vmem:[#allocation2 + $0x109] sm:$0x1] %v4868_v5  ;;  %v4876_v10 = vld [vmem:[#allocation2 + $0x103] sm:$0x1]  ;;  %v10378_v3 = vpack.c.bf16 %v7556_v29, %v7555_v45  ;;  %v10382_v5 = vpack.c.bf16 %v7558_v62, %v7557_v60 }
 0x5d8   : > { %4873 = vst [vmem:[#allocation2 + $0x10a] sm:$0x1] %v4872_v7  ;;  %4877 = vst [vmem:[#allocation2 + $0x10b] sm:$0x1] %v4876_v10  ;;  %v4880_v40 = vld [vmem:[#allocation2 + $0x102] sm:$0x1] }
 0x5d9   : > { %9527 = vmatmul.mubr.f32.vlgmr.msra.gmra.mrb[64].mxu0 %v4979_v56  ;;  %4881 = vst [vmem:[#allocation2 + $0x10c] sm:$0x1] %v4880_v40  ;;  %v4960_v51 = vmul.f32 0.1, %v4896_v17  ;;  %v4991_v56 = vsel %vm4927_vm13, %v4895_v37, %v4959_v59  ;;  %vm4929_vm15 = vcmp.ge.f32.partialorder %v4897_v23, 0.0  ;;  %vm4930_vm0 = vcmp.ge.f32.partialorder %v4898_v24, 0.0 }
 0x5da   : > { %9529 = vmatprep.mubr.f32.mxu0 %v4980_v16  ;;  %10345 = vmatpush3.bf16.msra.mxu0 %v11964_v63  ;;  %v4982_v63 = vsel %vm4918_vm4, %v4886_v55, %v4950_v25  ;;  %v10374_v55 = vpack.c.bf16 %v7554_v36, %v7553_v38  ;;  %v4962_v25 = vmul.f32 0.1, %v4898_v24  ;;  %v7560_v7 = vld [vmem:[%s12289_s1 + $0x838] sm:$0xff]  ;;  %v4963_v31 = vmul.f32 0.1, %v4899_v0  ;;  %v7563_v19 = vld [vmem:[%s12289_s1 + $0x850] sm:$0xff] }
 0x5db   : > { %10347 = vmatprep.subr.bf16.mxu0 %v10346_v1  ;;  %v4992_v16 = vsel %vm4928_vm14, %v4896_v17, %v4960_v51  ;;  %vm4931_vm1 = vcmp.ge.f32.partialorder %v4899_v0, 0.0  ;;  %v4964_v9 = vmul.f32 0.1, %v4900_v2  ;;  %v4901_v10 = vld [vmem:[#allocation2 + $0x9b] sm:$0xff]  ;;  %vm4932_vm2 = vcmp.ge.f32.partialorder %v4900_v2, 0.0  ;;  %v4906_v27 = vld [vmem:[#allocation2 + $0xc3] sm:$0xff] }
 0x5dc   : > { %10375 = vmatprep.subr.bf16.mxu1 %v10374_v55  ;;  %v4994_v8 = vsel %vm4930_vm0, %v4898_v24, %v4962_v25  ;;  %v4995_v40 = vsel %vm4931_vm1, %v4899_v0, %v4963_v31  ;;  %vm4933_vm3 = vcmp.ge.f32.partialorder %v4901_v10, 0.0  ;;  %v7564_v42 = vld [vmem:[%s12289_s1 + $0x858] sm:$0xff]  ;;  %vm4935_vm5 = vcmp.ge.f32.partialorder %v4903_v20, 0.0  ;;  %v4910_v17 = vld [vmem:[#allocation2 + $0xe3] sm:$0xff] }
 0x5dd   : > { %9530 = vmatmul.mubr.f32.gmra.mrb[66].mxu0 %v4981_v30  ;;  %10377 = vmatpush3.bf16.msra.mxu1 %v10374_v55  ;;  %v4993_v30 = vsel %vm4929_vm15, %v4897_v23, %v4961_v4  ;;  %v4968_v47 = vmul.f32 0.1, %v4904_v41  ;;  %v4905_v28 = vld [vmem:[#allocation2 + $0xbb] sm:$0xff]  ;;  %vm4936_vm6 = vcmp.ge.f32.partialorder %v4904_v41, 0.0  ;;  %vm4938_vm8 = vcmp.ge.f32.partialorder %v4906_v27, 0.0  ;;  %v4908_v34 = vld [vmem:[#allocation2 + $0xd3] sm:$0xff] }
 0x5de   : > { %9532 = vmatprep.mubr.f32.mxu0 %v4982_v63  ;;  %10349 = vmatpush3.bf16.msra.mxu0 %v10346_v1  ;;  %v10370_v1 = vpack.c.bf16 %v7535_v44, %v7534_v58  ;;  %v4902_v63 = vld [vmem:[#allocation2 + $0xa3] sm:$0xff]  ;;  %v4969_v49 = vmul.f32 0.1, %v4905_v28  ;;  %vm4937_vm7 = vcmp.ge.f32.partialorder %v4905_v28, 0.0  ;;  %v4972_v46 = vmul.f32 0.1, %v4908_v34 }
 0x5df   : > { %10351 = vmatprep.subr.bf16.mxu0 %v10350_v6  ;;  %10379 = vmatprep.subr.bf16.mxu1 %v10378_v3  ;;  %v4966_v18 = vmul.f32 0.1, %v4902_v63  ;;  %vm4934_vm4 = vcmp.ge.f32.partialorder %v4902_v63, 0.0  ;;  %v5000_v33 = vsel %vm4936_vm6, %v4904_v41, %v4968_v47  ;;  %v4909_v37 = vld [vmem:[#allocation2 + $0xdb] sm:$0xff]  ;;  %vm4940_vm10 = vcmp.ge.f32.partialorder %v4908_v34, 0.0  ;;  %v4912_v59 = vld [vmem:[#allocation2 + $0xf3] sm:$0xff] }
 0x5e0   : > { %v5001_v35 = vsel %vm4937_vm7, %v4905_v28, %v4969_v49  ;;  %v4973_v58 = vmul.f32 0.1, %v4909_v37  ;;  %v5004_v38 = vsel %vm4940_vm10, %v4908_v34, %v4972_v46  ;;  %vm4941_vm11 = vcmp.ge.f32.partialorder %v4909_v37, 0.0  ;;  %v4913_v51 = vld [vmem:[#allocation2 + $0xfb] sm:$0xff]  ;;  %v5622_v23 = vld [vmem:[#allocation2 + $0xd] sm:$0xff]  ;;  %v5625_v0 = vld [vmem:[#allocation2 + $0x25] sm:$0xff] }
 0x5e1   : > { %9533 = vmatmul.mubr.f32.gmra.mrb[68].mxu0 %v4983_v14  ;;  %10381 = vmatpush3.bf16.msra.mxu1 %v10378_v3  ;;  %v4996_v14 = vsel %vm4932_vm2, %v4900_v2, %v4964_v9  ;;  %v4974_v36 = vmul.f32 0.1, %v4910_v17  ;;  %vm4942_vm12 = vcmp.ge.f32.partialorder %v4910_v17, 0.0  ;;  %vm4944_vm14 = vcmp.ge.f32.partialorder %v4912_v59, 0.0  ;;  %v5624_v4 = vld [vmem:[#allocation2 + $0x1d] sm:$0xff]  ;;  %v5626_v2 = vld [vmem:[#allocation2 + $0x2d] sm:$0xff] }
 0x5e2   : > { %9535 = vmatprep.mubr.f32.mxu0 %v4984_v22  ;;  %10353 = vmatpush3.bf16.msra.mxu0 %v10350_v6  ;;  %v7559_v6 = vld [vmem:[%s12289_s1 + $0x830] sm:$0xff]  ;;  %v10390_v22 = vpack.c.bf16 %v7562_v21, %v7561_v12  ;;  %v5005_v44 = vsel %vm4941_vm11, %v4909_v37, %v4973_v58  ;;  %v4977_v55 = vmul.f32 0.1, %v4913_v51  ;;  %vm4945_vm15 = vcmp.ge.f32.partialorder %v4913_v51, 0.0  ;;  %v5629_v12 = vld [vmem:[#allocation2 + $0x45] sm:$0xff]  ;;  %v5632_v41 = vld [vmem:[#allocation2 + $0x5d] sm:$0xff] }
 0x5e3   : > { %10355 = vmatprep.subr.bf16.mxu0 %v10354_v13  ;;  %v10386_v11 = vpack.c.bf16 %v7560_v7, %v7559_v6  ;;  %10383 = vmatprep.subr.bf16.mxu1 %v10382_v5  ;;  %v5006_v29 = vsel %vm4942_vm12, %v4910_v17, %v4974_v36  ;;  %v5686_v3 = vmul.f32 0.1, %v5622_v23  ;;  %vm5654_vm0 = vcmp.ge.f32.partialorder %v5622_v23, 0.0  ;;  %v5627_v31 = vld [vmem:[#allocation2 + $0x35] sm:$0xff]  ;;  %v5630_v21 = vld [vmem:[#allocation2 + $0x4d] sm:$0xff]  ;;  %v5636_v49 = vld [vmem:[#allocation2 + $0x7d] sm:$0xff] }
 0x5e4   : > { %v5009_v60 = vsel %vm4945_vm15, %v4913_v51, %v4977_v55  ;;  %v5688_v25 = vmul.f32 0.1, %v5624_v4  ;;  %vm5656_vm2 = vcmp.ge.f32.partialorder %v5624_v4, 0.0  ;;  %v5689_v6 = vmul.f32 0.1, %v5625_v0  ;;  %v5640_v58 = vld [vmem:[#allocation2 + $0x9d] sm:$0xff] }
 0x5e5   : > { %9536 = vmatmul.mubr.f32.gmra.mrb[70].mxu0 %v4985_v43  ;;  %10385 = vmatpush3.bf16.msra.mxu1 %v10382_v5  ;;  %v4998_v43 = vsel %vm4934_vm4, %v4902_v63, %v4966_v18  ;;  %vm5658_vm4 = vcmp.ge.f32.partialorder %v5626_v2, 0.0  ;;  %vm5661_vm7 = vcmp.ge.f32.partialorder %v5629_v12, 0.0  ;;  %v5694_v18 = vmul.f32 0.1, %v5630_v21  ;;  %v5644_v55 = vld [vmem:[#allocation2 + $0xbd] sm:$0xff] }
 0x5e6   : > { %9538 = vmatprep.mubr.f32.mxu0 %v4986_v32  ;;  %10357 = vmatpush3.bf16.msra.mxu0 %v10354_v13  ;;  %v4965_v13 = vmul.f32 0.1, %v4901_v10  ;;  %v10394_v32 = vpack.c.bf16 %v7564_v42, %v7563_v19  ;;  %v5720_v7 = vsel %vm5656_vm2, %v5624_v4, %v5688_v25  ;;  %vm5664_vm10 = vcmp.ge.f32.partialorder %v5632_v41, 0.0 }
 0x5e7   : > { %10359 = vmatprep.subr.bf16.mxu0 %v10358_v26  ;;  %10387 = vmatprep.subr.bf16.mxu1 %v10386_v11  ;;  %v5700_v34 = vmul.f32 0.1, %v5636_v49  ;;  %vm5672_vm2 = vcmp.ge.f32.partialorder %v5640_v58, 0.0  ;;  %v5708_v4 = vmul.f32 0.1, %v5644_v55 }
 0x5e8   : > { %v4997_v15 = vsel %vm4933_vm3, %v4901_v10, %v4965_v13  ;;  %vm5657_vm3 = vcmp.ge.f32.partialorder %v5625_v0, 0.0  ;;  %v5691_v10 = vmul.f32 0.1, %v5627_v31  ;;  %v5693_v13 = vmul.f32 0.1, %v5629_v12 }
 0x5e9   : > { %9539 = vmatmul.mubr.f32.gmra.mrb[72].mxu0 %v4987_v52  ;;  %10389 = vmatpush3.bf16.msra.mxu1 %v10386_v11  ;;  %v4907_v52 = vld [vmem:[#allocation2 + $0xcb] sm:$0xff]  ;;  %v5721_v9 = vsel %vm5657_vm3, %v5625_v0, %v5689_v6  ;;  %v5648_v6 = vld [vmem:[#allocation2 + $0xdd] sm:$0xff] }
 0x5ea   : > { %9541 = vmatprep.mubr.f32.mxu0 %v4988_v54  ;;  %10361 = vmatpush3.bf16.msra.mxu0 %v10358_v26  ;;  %v4967_v26 = vmul.f32 0.1, %v4903_v20  ;;  %v4971_v53 = vmul.f32 0.1, %v4907_v52  ;;  %vm4939_vm9 = vcmp.ge.f32.partialorder %v4907_v52, 0.0 }
 0x5eb   : > { %10363 = vmatprep.subr.bf16.mxu0 %v10362_v50  ;;  %10391 = vmatprep.subr.bf16.mxu1 %v10390_v22 }
 0x5ec   : > { %v4999_v48 = vsel %vm4935_vm5, %v4903_v20, %v4967_v26  ;;  %vm5659_vm5 = vcmp.ge.f32.partialorder %v5627_v31, 0.0  ;;  %v5631_v20 = vld [vmem:[#allocation2 + $0x55] sm:$0xff]  ;;  %v5633_v26 = vld [vmem:[#allocation2 + $0x65] sm:$0xff] }
 0x5ed   : > { %9542 = vmatmul.mubr.f32.gmra.mrb[74].mxu0 %v4989_v39  ;;  %10393 = vmatpush3.bf16.msra.mxu1 %v10390_v22  ;;  %v4911_v39 = vld [vmem:[#allocation2 + $0xeb] sm:$0xff]  ;;  %v5725_v22 = vsel %vm5661_vm7, %v5629_v12, %v5693_v13  ;;  %v5695_v19 = vmul.f32 0.1, %v5631_v20  ;;  %v5697_v28 = vmul.f32 0.1, %v5633_v26  ;;  %vm5665_vm11 = vcmp.ge.f32.partialorder %v5633_v26, 0.0 }
 0x5ee   : > { %9544 = vmatprep.mubr.f32.mxu0 %v4990_v61  ;;  %10365 = vmatpush3.bf16.msra.mxu0 %v10362_v50  ;;  %v4970_v50 = vmul.f32 0.1, %v4906_v27  ;;  %v4975_v45 = vmul.f32 0.1, %v4911_v39  ;;  %vm4943_vm13 = vcmp.ge.f32.partialorder %v4911_v39, 0.0  ;;  %v5652_v13 = vld [vmem:[#allocation2 + $0xfd] sm:$0xff] }
 0x5ef   : > { %10367 = vmatprep.subr.bf16.mxu0 %v10366_v57  ;;  %10395 = vmatprep.subr.bf16.mxu1 %v10394_v32  ;;  %v4976_v61 = vmul.f32 0.1, %v4912_v59 }
 0x5f0   : > { %v5002_v54 = vsel %vm4938_vm8, %v4906_v27, %v4970_v50  ;;  %v5007_v24 = vsel %vm4943_vm13, %v4911_v39, %v4975_v45  ;;  %vm5662_vm8 = vcmp.ge.f32.partialorder %v5630_v21, 0.0  ;;  %v5642_v45 = vld [vmem:[#allocation2 + $0xad] sm:$0xff] }
 0x5f1   : > { %9545 = vmatmul.mubr.f32.gmra.mrb[76].mxu0 %v4991_v56  ;;  %10397 = vmatpush3.bf16.msra.mxu1 %v10394_v32  ;;  %v5623_v56 = vld [vmem:[#allocation2 + $0x15] sm:$0xff]  ;;  %v5726_v42 = vsel %vm5662_vm8, %v5630_v21, %v5694_v18 }
 0x5f2   : > { %9547 = vmatprep.mubr.f32.mxu0 %v4992_v16  ;;  %10369 = vmatpush3.bf16.msra.mxu0 %v10366_v57  ;;  %v5003_v57 = vsel %vm4939_vm9, %v4907_v52, %v4971_v53  ;;  %v5687_v62 = vmul.f32 0.1, %v5623_v56  ;;  %v5718_v16 = vsel %vm5654_vm0, %v5622_v23, %v5686_v3  ;;  %vm5655_vm1 = vcmp.ge.f32.partialorder %v5623_v56, 0.0  ;;  %v5638_v53 = vld [vmem:[#allocation2 + $0x8d] sm:$0xff] }
 0x5f3   : > { %10371 = vmatprep.subr.bf16.mxu0 %v10370_v1  ;;  %vm5663_vm9 = vcmp.ge.f32.partialorder %v5631_v20, 0.0  ;;  %v5702_v17 = vmul.f32 0.1, %v5638_v53  ;;  %vm5670_vm0 = vcmp.ge.f32.partialorder %v5638_v53, 0.0  ;;  %v5706_v23 = vmul.f32 0.1, %v5642_v45 }
 0x5f4   : > { %v5719_v5 = vsel %vm5655_vm1, %v5623_v56, %v5687_v62  ;;  %v5727_v47 = vsel %vm5663_vm9, %v5631_v20, %v5695_v19  ;;  %v5646_v62 = vld [vmem:[#allocation2 + $0xcd] sm:$0xff] }
 0x5f5   : > { %9548 = vmatmul.mubr.f32.gmra.mrb[78].mxu0 %v4993_v30  ;;  %v5690_v30 = vmul.f32 0.1, %v5626_v2  ;;  %v5734_v39 = vsel %vm5670_vm0, %v5638_v53, %v5702_v17  ;;  %vm5678_vm8 = vcmp.ge.f32.partialorder %v5646_v62, 0.0  ;;  %v7540_v17 = vld [vmem:[%s12289_s1 + $0x798] sm:$0xff] }
 0x5f6   : > { %9550 = vmatprep.mubr.f32.mxu0 %v4994_v8  ;;  %10373 = vmatpush3.bf16.msra.mxu0 %v10370_v1  ;;  %v5008_v1 = vsel %vm4944_vm14, %v4912_v59, %v4976_v61  ;;  %v5628_v8 = vld [vmem:[#allocation2 + $0x3d] sm:$0xff]  ;;  %vm5668_vm14 = vcmp.ge.f32.partialorder %v5636_v49, 0.0  ;;  %v5704_v59 = vmul.f32 0.1, %v5640_v58 }
 0x5f7   : > { %v5722_v63 = vsel %vm5658_vm4, %v5626_v2, %v5690_v30  ;;  %v5692_v11 = vmul.f32 0.1, %v5628_v8  ;;  %vm5660_vm6 = vcmp.ge.f32.partialorder %v5628_v8, 0.0  ;;  %v5732_v37 = vsel %vm5668_vm14, %v5636_v49, %v5700_v34  ;;  %v7537_v49 = vld [vmem:[%s12289_s1 + $0x780] sm:$0xff] }
 0x5f8   : > { %v5736_v51 = vsel %vm5672_vm2, %v5640_v58, %v5704_v59  ;;  %vm5674_vm4 = vcmp.ge.f32.partialorder %v5642_v45, 0.0  ;;  %v5710_v2 = vmul.f32 0.1, %v5646_v62  ;;  %vm5684_vm14 = vcmp.ge.f32.partialorder %v5652_v13, 0.0 }
 0x5f9   : > { %9551 = vmatmul.mubr.f32.gmra.mrb[80].mxu0 %v4995_v40  ;;  %v5723_v40 = vsel %vm5659_vm5, %v5627_v31, %v5691_v10  ;;  %v5738_v56 = vsel %vm5674_vm4, %v5642_v45, %v5706_v23  ;;  %v5650_v10 = vld [vmem:[#allocation2 + $0xed] sm:$0xff] }
 0x5fa   : > { %9553 = vmatprep.mubr.f32.mxu0 %v4996_v14  ;;  %v5724_v14 = vsel %vm5660_vm6, %v5628_v8, %v5692_v11  ;;  %vm5676_vm6 = vcmp.ge.f32.partialorder %v5644_v55, 0.0  ;;  %v5742_v31 = vsel %vm5678_vm8, %v5646_v62, %v5710_v2  ;;  %v5712_v8 = vmul.f32 0.1, %v5648_v6 }
 0x5fb   : > { %v5740_v0 = vsel %vm5676_vm6, %v5644_v55, %v5708_v4  ;;  %v5714_v21 = vmul.f32 0.1, %v5650_v10 }
 0x5fd   : > { %9554 = vmatmul.mubr.f32.gmra.mrb[82].mxu0 %v4997_v15  ;;  %v5696_v15 = vmul.f32 0.1, %v5632_v41 }
 0x5fe   : > { %9556 = vmatprep.mubr.f32.mxu0 %v4998_v43  ;;  %v5634_v43 = vld [vmem:[#allocation2 + $0x6d] sm:$0xff] }
 0x5ff   : > { %v5728_v27 = vsel %vm5664_vm10, %v5632_v41, %v5696_v15  ;;  %v5698_v32 = vmul.f32 0.1, %v5634_v43  ;;  %vm5666_vm12 = vcmp.ge.f32.partialorder %v5634_v43, 0.0  ;;  %vm5680_vm10 = vcmp.ge.f32.partialorder %v5648_v6, 0.0 }
 0x600   : > { %v5744_v12 = vsel %vm5680_vm10, %v5648_v6, %v5712_v8  ;;  %v5716_v41 = vmul.f32 0.1, %v5652_v13 }
 0x601   : > { %9557 = vmatmul.mubr.f32.gmra.mrb[84].mxu0 %v4999_v48  ;;  %v5635_v48 = vld [vmem:[#allocation2 + $0x75] sm:$0xff]  ;;  %v5730_v52 = vsel %vm5666_vm12, %v5634_v43, %v5698_v32  ;;  %vm5682_vm12 = vcmp.ge.f32.partialorder %v5650_v10, 0.0  ;;  %v7565_v43 = vld [vmem:[%s12289_s1 + $0x860] sm:$0xff] }
 0x602   : > { %9559 = vmatprep.mubr.f32.mxu0 %v5000_v33  ;;  %v5729_v33 = vsel %vm5665_vm11, %v5633_v26, %v5697_v28  ;;  %v5699_v50 = vmul.f32 0.1, %v5635_v48  ;;  %vm5667_vm13 = vcmp.ge.f32.partialorder %v5635_v48, 0.0  ;;  %v5746_v20 = vsel %vm5682_vm12, %v5650_v10, %v5714_v21  ;;  %v7568_v32 = vld [vmem:[%s12289_s1 + $0x878] sm:$0xff] }
 0x603   : > { %v5748_v15 = vsel %vm5684_vm14, %v5652_v13, %v5716_v41 }
 0x605   : > { %9560 = vmatmul.mubr.f32.gmra.mrb[86].mxu0 %v5001_v35  ;;  %v5637_v35 = vld [vmem:[#allocation2 + $0x85] sm:$0xff] }
 0x606   : > { %9562 = vmatprep.mubr.f32.mxu0 %v5002_v54  ;;  %v5731_v54 = vsel %vm5667_vm13, %v5635_v48, %v5699_v50  ;;  %v5701_v46 = vmul.f32 0.1, %v5637_v35  ;;  %vm5669_vm15 = vcmp.ge.f32.partialorder %v5637_v35, 0.0 }
 0x609   : > { %9563 = vmatmul.mubr.f32.gmra.mrb[88].mxu0 %v5003_v57  ;;  %v5639_v57 = vld [vmem:[#allocation2 + $0x95] sm:$0xff] }
 0x60a   : > { %9565 = vmatprep.mubr.f32.mxu0 %v5004_v38  ;;  %v5733_v38 = vsel %vm5669_vm15, %v5637_v35, %v5701_v46  ;;  %v5703_v36 = vmul.f32 0.1, %v5639_v57  ;;  %vm5671_vm1 = vcmp.ge.f32.partialorder %v5639_v57, 0.0 }
 0x60d   : > { %9566 = vmatmul.mubr.f32.gmra.mrb[90].mxu0 %v5005_v44  ;;  %v5641_v44 = vld [vmem:[#allocation2 + $0xa5] sm:$0xff] }
 0x60e   : > { %9568 = vmatprep.mubr.f32.mxu0 %v5006_v29  ;;  %v5735_v29 = vsel %vm5671_vm1, %v5639_v57, %v5703_v36  ;;  %v5705_v61 = vmul.f32 0.1, %v5641_v44  ;;  %vm5673_vm3 = vcmp.ge.f32.partialorder %v5641_v44, 0.0 }
 0x611   : > { %9569 = vmatmul.mubr.f32.gmra.mrb[92].mxu0 %v5007_v24  ;;  %v5643_v24 = vld [vmem:[#allocation2 + $0xb5] sm:$0xff] }
 0x612   : > { %9571 = vmatprep.mubr.f32.mxu0 %v5008_v1  ;;  %v5737_v1 = vsel %vm5673_vm3, %v5641_v44, %v5705_v61  ;;  %v5707_v3 = vmul.f32 0.1, %v5643_v24  ;;  %vm5675_vm5 = vcmp.ge.f32.partialorder %v5643_v24, 0.0  ;;  %v7541_v61 = vld [vmem:[%s12289_s1 + $0x7a0] sm:$0xff] }
 0x615   : > { %9572 = vmatmul.mubr.f32.gmra.mrb[94].mxu0 %v5009_v60  ;;  %v5645_v60 = vld [vmem:[#allocation2 + $0xc5] sm:$0xff] }
 0x616   : > { %9606 = vmatprep.mubr.f32.mxu0 %v5718_v16  ;;  %v5739_v16 = vsel %vm5675_vm5, %v5643_v24, %v5707_v3  ;;  %v5709_v25 = vmul.f32 0.1, %v5645_v60  ;;  %vm5677_vm7 = vcmp.ge.f32.partialorder %v5645_v60, 0.0 }
 0x619   : > { %9607 = vmatmul.mubr.f32.vlgmr.msra.gmra.mrb[64].mxu0 %v5719_v5  ;;  %v5647_v5 = vld [vmem:[#allocation2 + $0xd5] sm:$0xff] }
 0x61a   : > { %9609 = vmatprep.mubr.f32.mxu0 %v5720_v7  ;;  %v5741_v7 = vsel %vm5677_vm7, %v5645_v60, %v5709_v25  ;;  %v5711_v30 = vmul.f32 0.1, %v5647_v5  ;;  %vm5679_vm9 = vcmp.ge.f32.partialorder %v5647_v5, 0.0  ;;  %v7544_v25 = vld [vmem:[%s12289_s1 + $0x7b8] sm:$0xff] }
 0x61d   : > { %9610 = vmatmul.mubr.f32.gmra.mrb[66].mxu0 %v5721_v9  ;;  %v5649_v9 = vld [vmem:[#allocation2 + $0xe5] sm:$0xff] }
 0x61e   : > { %9612 = vmatprep.mubr.f32.mxu0 %v5722_v63  ;;  %v5743_v63 = vsel %vm5679_vm9, %v5647_v5, %v5711_v30  ;;  %v5713_v11 = vmul.f32 0.1, %v5649_v9  ;;  %vm5681_vm11 = vcmp.ge.f32.partialorder %v5649_v9, 0.0 }
 0x621   : > { %9613 = vmatmul.mubr.f32.gmra.mrb[68].mxu0 %v5723_v40  ;;  %v5651_v40 = vld [vmem:[#allocation2 + $0xf5] sm:$0xff] }
 0x622   : > { %9615 = vmatprep.mubr.f32.mxu0 %v5724_v14  ;;  %v5745_v14 = vsel %vm5681_vm11, %v5649_v9, %v5713_v11  ;;  %v5715_v18 = vmul.f32 0.1, %v5651_v40  ;;  %vm5683_vm13 = vcmp.ge.f32.partialorder %v5651_v40, 0.0  ;;  %v7546_v11 = vld [vmem:[%s12289_s1 + $0x7c8] sm:$0xff] }
 0x624   : > { %v5747_v19 = vsel %vm5683_vm13, %v5651_v40, %v5715_v18 }
 0x625   : > { %9616 = vmatmul.mubr.f32.gmra.mrb[70].mxu0 %v5725_v22  ;;  %v5653_v22 = vld [vmem:[#allocation2 + $0x105] sm:$0xff] }
 0x626   : > { %9618 = vmatprep.mubr.f32.mxu0 %v5726_v42  ;;  %v5717_v42 = vmul.f32 0.1, %v5653_v22  ;;  %vm5685_vm15 = vcmp.ge.f32.partialorder %v5653_v22, 0.0 }
 0x628   : > { %v5749_v26 = vsel %vm5685_vm15, %v5653_v22, %v5717_v42  ;;  %v7548_v42 = vld [vmem:[%s12289_s1 + $0x7d8] sm:$0xff] }
 0x629   : > { %9619 = vmatmul.mubr.f32.gmra.mrb[72].mxu0 %v5727_v47  ;;  %v7566_v47 = vld [vmem:[%s12289_s1 + $0x868] sm:$0xff] }
 0x62a   : > { %9621 = vmatprep.mubr.f32.mxu0 %v5728_v27  ;;  %v10398_v28 = vpack.c.bf16 %v7566_v47, %v7565_v43  ;;  %v7567_v27 = vld [vmem:[%s12289_s1 + $0x870] sm:$0xff] }
 0x62b   : > { %v10402_v48 = vpack.c.bf16 %v7568_v32, %v7567_v27 }
 0x62c   : > { %10399 = vmatprep.subr.bf16.mxu1 %v10398_v28 }
 0x62d   : > { %9622 = vmatmul.mubr.f32.gmra.mrb[74].mxu0 %v5729_v33  ;;  %10401 = vmatpush3.bf16.msra.mxu1 %v10398_v28  ;;  %v7538_v33 = vld [vmem:[%s12289_s1 + $0x788] sm:$0xff] }
 0x62e   : > { %9624 = vmatprep.mubr.f32.mxu0 %v5730_v52  ;;  %10403 = vmatprep.subr.bf16.mxu1 %v10402_v48  ;;  %v10406_v50 = vpack.c.bf16 %v7538_v33, %v7537_v49  ;;  %v12081_v52 = vld [vmem:[%s12290_s2 + $0x4] ss:$0 sm:$0xff] }
 0x62f   : > { %v7549_v33 = vld [vmem:[%s12289_s1 + $0x7e0] sm:$0xff] }
 0x631   : > { %9625 = vmatmul.mubr.f32.gmra.mrb[76].mxu0 %v5731_v54  ;;  %10405 = vmatpush3.bf16.msra.mxu1 %v10402_v48 }
 0x632   : > { %9627 = vmatprep.mubr.f32.mxu0 %v5732_v37  ;;  %10407 = vmatprep.subr.bf16.mxu1 %v10406_v50  ;;  %v7539_v37 = vld [vmem:[%s12289_s1 + $0x790] sm:$0xff] }
 0x633   : > { %v10410_v45 = vpack.c.bf16 %v7540_v17, %v7539_v37 }
 0x635   : > { %9628 = vmatmul.mubr.f32.gmra.mrb[78].mxu0 %v5733_v38 }
 0x636   : > { %9630 = vmatprep.mubr.f32.mxu0 %v5734_v39 }
 0x639   : > { %9631 = vmatmul.mubr.f32.gmra.mrb[80].mxu0 %v5735_v29 }
 0x63a   : > { %9633 = vmatprep.mubr.f32.mxu0 %v5736_v51  ;;  %v7542_v51 = vld [vmem:[%s12289_s1 + $0x7a8] sm:$0xff] }
 0x63b   : > { %v10414_v60 = vpack.c.bf16 %v7542_v51, %v7541_v61 }
 0x63d   : > { %9634 = vmatmul.mubr.f32.gmra.mrb[82].mxu0 %v5737_v1 }
 0x63e   : > { %9636 = vmatprep.mubr.f32.mxu0 %v5738_v56 }
 0x641   : > { %9637 = vmatmul.mubr.f32.gmra.mrb[84].mxu0 %v5739_v16  ;;  %v7543_v16 = vld [vmem:[%s12289_s1 + $0x7b0] sm:$0xff] }
 0x642   : > { %9639 = vmatprep.mubr.f32.mxu0 %v5740_v0  ;;  %v10418_v8 = vpack.c.bf16 %v7544_v25, %v7543_v16 }
 0x645   : > { %9640 = vmatmul.mubr.f32.gmra.mrb[86].mxu0 %v5741_v7 }
 0x646   : > { %9642 = vmatprep.mubr.f32.mxu0 %v5742_v31 }
 0x649   : > { %9643 = vmatmul.mubr.f32.gmra.mrb[88].mxu0 %v5743_v63  ;;  %v7545_v63 = vld [vmem:[%s12289_s1 + $0x7c0] sm:$0xff] }
 0x64a   : > { %9645 = vmatprep.mubr.f32.mxu0 %v5744_v12  ;;  %v10422_v41 = vpack.c.bf16 %v7546_v11, %v7545_v63 }
 0x64d   : > { %9646 = vmatmul.mubr.f32.gmra.mrb[90].mxu0 %v5745_v14 }
 0x64e   : > { %9648 = vmatprep.mubr.f32.mxu0 %v5746_v20 }
 0x651   : > { %9649 = vmatmul.mubr.f32.gmra.mrb[92].mxu0 %v5747_v19  ;;  %v7547_v19 = vld [vmem:[%s12289_s1 + $0x7d0] sm:$0xff] }
 0x652   : > { %9651 = vmatprep.mubr.f32.mxu0 %v5748_v15  ;;  %v10426_v48 = vpack.c.bf16 %v7548_v42, %v7547_v19 }
 0x655   : > { %9652 = vmatmul.mubr.f32.gmra.mrb[94].mxu0 %v5749_v26 }
 0x6ec   : > { %v9608_v34 = vpop.f32.mrb[64].mxu0 }
 0x6ed   : > { %v6030_v35 = vadd.f32 %v9608_v34, %v12081_v52  ;;  %v5833_v53 = vpop.f32.mrb[65].mxu0 }
 0x6ee   : > { %v6029_v54 = vadd.f32 %v12081_v52, %v5833_v53 }
 0x6ef   : > { %vm6062_vm0 = vcmp.ge.f32.partialorder %v6030_v35, 0.0  ;;  %v6094_v46 = vmul.f32 0.1, %v6030_v35 }
 0x6f0   : > { %vm6061_vm1 = vcmp.ge.f32.partialorder %v6029_v54, 0.0  ;;  %v6093_v57 = vmul.f32 0.1, %v6029_v54  ;;  %v9611_v58 = vpop.f32.mrb[66].mxu0 }
 0x6f1   : > { %v6126_v38 = vsel %vm6062_vm0, %v6030_v35, %v6094_v46  ;;  %v6032_v36 = vadd.f32 %v9611_v58, %v12081_v52  ;;  %v5843_v39 = vpop.f32.mrb[67].mxu0 }
 0x6f2   : > { %6158 = vst [vmem:[#allocation3 + $0x10] sm:$0xff] %v6126_v38  ;;  %v6125_v59 = vsel %vm6061_vm1, %v6029_v54, %v6093_v57  ;;  %v6031_v44 = vadd.f32 %v12081_v52, %v5843_v39 }
 0x6f3   : > { %6157 = vst [vmem:[#allocation3 + $0x8] sm:$0xff] %v6125_v59  ;;  %vm6064_vm2 = vcmp.ge.f32.partialorder %v6032_v36, 0.0  ;;  %v6096_v29 = vmul.f32 0.1, %v6032_v36  ;;  %9686 = vmatprep.mubr.f32.mxu1 %v6125_v59 }
 0x6f4   : > { %vm6063_vm3 = vcmp.ge.f32.partialorder %v6031_v44, 0.0  ;;  %v6095_v23 = vmul.f32 0.1, %v6031_v44  ;;  %v9614_v24 = vpop.f32.mrb[68].mxu0  ;;  %9687 = vmatmul.mubr.f32.vlgmr.msra.gmra.mrb[64].mxu1 %v6126_v38  ;;  %v7551_v38 = vld [vmem:[%s12289_s1 + $0x7f0] sm:$0xff] }
 0x6f5   : > { %v6128_v55 = vsel %vm6064_vm2, %v6032_v36, %v6096_v29  ;;  %v6034_v1 = vadd.f32 %v9614_v24, %v12081_v52  ;;  %v5853_v3 = vpop.f32.mrb[69].mxu0  ;;  %10409 = vmatpush3.bf16.msra.mxu1 %v10406_v50  ;;  %v7550_v50 = vld [vmem:[%s12289_s1 + $0x7e8] sm:$0xff]  ;;  %v7552_v36 = vld [vmem:[%s12289_s1 + $0x7f8] sm:$0xff] }
 0x6f6   : > { %6160 = vst [vmem:[#allocation3 + $0x20] sm:$0xff] %v6128_v55  ;;  %v6127_v56 = vsel %vm6063_vm3, %v6031_v44, %v6095_v23  ;;  %v6033_v4 = vadd.f32 %v12081_v52, %v5853_v3  ;;  %10411 = vmatprep.subr.bf16.mxu1 %v10410_v45  ;;  %v10430_v57 = vpack.c.bf16 %v7550_v50, %v7549_v33 }
 0x6f7   : > { %6159 = vst [vmem:[#allocation3 + $0x18] sm:$0xff] %v6127_v56  ;;  %vm6066_vm4 = vcmp.ge.f32.partialorder %v6034_v1, 0.0  ;;  %v6098_v62 = vmul.f32 0.1, %v6034_v1  ;;  %9689 = vmatprep.mubr.f32.mxu1 %v6127_v56  ;;  %v10434_v23 = vpack.c.bf16 %v7552_v36, %v7551_v38 }
 0x6f8   : > { %vm6065_vm5 = vcmp.ge.f32.partialorder %v6033_v4, 0.0  ;;  %v6097_v0 = vmul.f32 0.1, %v6033_v4  ;;  %v9617_v2 = vpop.f32.mrb[70].mxu0  ;;  %9690 = vmatmul.mubr.f32.gmra.mrb[66].mxu1 %v6128_v55  ;;  %v7569_v55 = vld [vmem:[%s12289_s1 + $0x880] sm:$0xff] }
 0x6f9   : > { %v6130_v5 = vsel %vm6066_vm4, %v6034_v1, %v6098_v62  ;;  %v6036_v6 = vadd.f32 %v9617_v2, %v12081_v52  ;;  %v5863_v7 = vpop.f32.mrb[71].mxu0  ;;  %10413 = vmatpush3.bf16.msra.mxu1 %v10410_v45  ;;  %v7570_v1 = vld [vmem:[%s12289_s1 + $0x888] sm:$0xff] }
 0x6fa   : > { %6162 = vst [vmem:[#allocation3 + $0x30] sm:$0xff] %v6130_v5  ;;  %v6129_v30 = vsel %vm6065_vm5, %v6033_v4, %v6097_v0  ;;  %v6035_v31 = vadd.f32 %v12081_v52, %v5863_v7  ;;  %10415 = vmatprep.subr.bf16.mxu1 %v10414_v60  ;;  %v6189_v9 = vld [vmem:[#allocation3 + $0x9] sm:$0x1]  ;;  %v12149_v0 = vpack.c.bf16 %v7570_v1, %v7569_v55 }
 0x6fb   : > { %6161 = vst [vmem:[#allocation3 + $0x28] sm:$0xff] %v6129_v30  ;;  %vm6068_vm6 = vcmp.ge.f32.partialorder %v6036_v6, 0.0  ;;  %v6100_v10 = vmul.f32 0.1, %v6036_v6  ;;  %9692 = vmatprep.mubr.f32.mxu1 %v6129_v30  ;;  %6190 = vst [vmem:[#allocation3 + $0x7] sm:$0x1] %v6189_v9 }
 0x6fc   : > { %vm6067_vm7 = vcmp.ge.f32.partialorder %v6035_v31, 0.0  ;;  %v6099_v12 = vmul.f32 0.1, %v6035_v31  ;;  %v9620_v21 = vpop.f32.mrb[72].mxu0  ;;  %9693 = vmatmul.mubr.f32.gmra.mrb[68].mxu1 %v6130_v5 }
 0x6fd   : > { %v6132_v40 = vsel %vm6068_vm6, %v6036_v6, %v6100_v10  ;;  %v6038_v13 = vadd.f32 %v9620_v21, %v12081_v52  ;;  %v5873_v14 = vpop.f32.mrb[73].mxu0  ;;  %10417 = vmatpush3.bf16.msra.mxu1 %v10414_v60 }
 0x6fe   : > { %6164 = vst [vmem:[#allocation3 + $0x40] sm:$0xff] %v6132_v40  ;;  %v6131_v18 = vsel %vm6067_vm7, %v6035_v31, %v6099_v12  ;;  %v6037_v20 = vadd.f32 %v12081_v52, %v5873_v14  ;;  %10419 = vmatprep.subr.bf16.mxu1 %v10418_v8 }
 0x6ff   : > { %6163 = vst [vmem:[#allocation3 + $0x38] sm:$0xff] %v6131_v18  ;;  %vm6070_vm8 = vcmp.ge.f32.partialorder %v6038_v13, 0.0  ;;  %v6102_v22 = vmul.f32 0.1, %v6038_v13  ;;  %9695 = vmatprep.mubr.f32.mxu1 %v6131_v18 }
 0x700   : > { %vm6069_vm9 = vcmp.ge.f32.partialorder %v6037_v20, 0.0  ;;  %v6101_v15 = vmul.f32 0.1, %v6037_v20  ;;  %v9623_v26 = vpop.f32.mrb[74].mxu0  ;;  %9696 = vmatmul.mubr.f32.gmra.mrb[70].mxu1 %v6132_v40 }
 0x701   : > { %v6134_v43 = vsel %vm6070_vm8, %v6038_v13, %v6102_v22  ;;  %v6040_v47 = vadd.f32 %v9623_v26, %v12081_v52  ;;  %v5883_v28 = vpop.f32.mrb[75].mxu0  ;;  %10421 = vmatpush3.bf16.msra.mxu1 %v10418_v8 }
 0x702   : > { %6166 = vst [vmem:[#allocation3 + $0x50] sm:$0xff] %v6134_v43  ;;  %v6133_v27 = vsel %vm6069_vm9, %v6037_v20, %v6101_v15  ;;  %v6039_v32 = vadd.f32 %v12081_v52, %v5883_v28  ;;  %10423 = vmatprep.subr.bf16.mxu1 %v10422_v41 }
 0x703   : > { %6165 = vst [vmem:[#allocation3 + $0x48] sm:$0xff] %v6133_v27  ;;  %vm6072_vm10 = vcmp.ge.f32.partialorder %v6040_v47, 0.0  ;;  %v6104_v49 = vmul.f32 0.1, %v6040_v47  ;;  %9698 = vmatprep.mubr.f32.mxu1 %v6133_v27 }
 0x704   : > { %vm6071_vm11 = vcmp.ge.f32.partialorder %v6039_v32, 0.0  ;;  %v6103_v34 = vmul.f32 0.1, %v6039_v32  ;;  %v9626_v35 = vpop.f32.mrb[76].mxu0  ;;  %9699 = vmatmul.mubr.f32.gmra.mrb[72].mxu1 %v6134_v43 }
 0x705   : > { %v6136_v53 = vsel %vm6072_vm10, %v6040_v47, %v6104_v49  ;;  %v6042_v54 = vadd.f32 %v9626_v35, %v12081_v52  ;;  %v5893_v46 = vpop.f32.mrb[77].mxu0  ;;  %10425 = vmatpush3.bf16.msra.mxu1 %v10422_v41 }
 0x706   : > { %6168 = vst [vmem:[#allocation3 + $0x60] sm:$0xff] %v6136_v53  ;;  %v6135_v37 = vsel %vm6071_vm11, %v6039_v32, %v6103_v34  ;;  %v6041_v17 = vadd.f32 %v12081_v52, %v5893_v46  ;;  %10427 = vmatprep.subr.bf16.mxu1 %v10426_v48 }
 0x707   : > { %6167 = vst [vmem:[#allocation3 + $0x58] sm:$0xff] %v6135_v37  ;;  %vm6074_vm12 = vcmp.ge.f32.partialorder %v6042_v54, 0.0  ;;  %v6106_v58 = vmul.f32 0.1, %v6042_v54  ;;  %9701 = vmatprep.mubr.f32.mxu1 %v6135_v37 }
 0x708   : > { %vm6073_vm13 = vcmp.ge.f32.partialorder %v6041_v17, 0.0  ;;  %v6105_v39 = vmul.f32 0.1, %v6041_v17  ;;  %v9629_v59 = vpop.f32.mrb[78].mxu0  ;;  %9702 = vmatmul.mubr.f32.gmra.mrb[74].mxu1 %v6136_v53 }
 0x709   : > { %v6138_v44 = vsel %vm6074_vm12, %v6042_v54, %v6106_v58  ;;  %v6044_v45 = vadd.f32 %v9629_v59, %v12081_v52  ;;  %v5903_v29 = vpop.f32.mrb[79].mxu0  ;;  %10429 = vmatpush3.bf16.msra.mxu1 %v10426_v48 }
 0x70a   : > { %6170 = vst [vmem:[#allocation3 + $0x70] sm:$0xff] %v6138_v44  ;;  %v6137_v61 = vsel %vm6073_vm13, %v6041_v17, %v6105_v39  ;;  %v6043_v51 = vadd.f32 %v12081_v52, %v5903_v29  ;;  %10431 = vmatprep.subr.bf16.mxu1 %v10430_v57 }
 0x70b   : > { %6169 = vst [vmem:[#allocation3 + $0x68] sm:$0xff] %v6137_v61  ;;  %vm6076_vm14 = vcmp.ge.f32.partialorder %v6044_v45, 0.0  ;;  %v6108_v24 = vmul.f32 0.1, %v6044_v45  ;;  %9704 = vmatprep.mubr.f32.mxu1 %v6137_v61 }
 0x70c   : > { %vm6075_vm15 = vcmp.ge.f32.partialorder %v6043_v51, 0.0  ;;  %v6107_v3 = vmul.f32 0.1, %v6043_v51  ;;  %v9632_v56 = vpop.f32.mrb[80].mxu0  ;;  %9705 = vmatmul.mubr.f32.gmra.mrb[76].mxu1 %v6138_v44 }
 0x70d   : > { %v6140_v4 = vsel %vm6076_vm14, %v6044_v45, %v6108_v24  ;;  %v6046_v60 = vadd.f32 %v9632_v56, %v12081_v52  ;;  %v5913_v62 = vpop.f32.mrb[81].mxu0  ;;  %10433 = vmatpush3.bf16.msra.mxu1 %v10430_v57 }
 0x70e   : > { %6172 = vst [vmem:[#allocation3 + $0x80] sm:$0xff] %v6140_v4  ;;  %v6139_v16 = vsel %vm6075_vm15, %v6043_v51, %v6107_v3  ;;  %v6045_v25 = vadd.f32 %v12081_v52, %v5913_v62  ;;  %10435 = vmatprep.subr.bf16.mxu1 %v10434_v23 }
 0x70f   : > { %6171 = vst [vmem:[#allocation3 + $0x78] sm:$0xff] %v6139_v16  ;;  %vm6078_vm0 = vcmp.ge.f32.partialorder %v6046_v60, 0.0  ;;  %v6110_v2 = vmul.f32 0.1, %v6046_v60  ;;  %9707 = vmatprep.mubr.f32.mxu1 %v6139_v16  ;;  %v7571_v16 = vld [vmem:[%s12289_s1 + $0x890] sm:$0xff] }
 0x710   : > { %vm6077_vm1 = vcmp.ge.f32.partialorder %v6045_v25, 0.0  ;;  %v6109_v5 = vmul.f32 0.1, %v6045_v25  ;;  %v9635_v6 = vpop.f32.mrb[82].mxu0  ;;  %9708 = vmatmul.mubr.f32.gmra.mrb[78].mxu1 %v6140_v4 }
 0x711   : > { %v6142_v7 = vsel %vm6078_vm0, %v6046_v60, %v6110_v2  ;;  %v6048_v30 = vadd.f32 %v9635_v6, %v12081_v52  ;;  %v5923_v31 = vpop.f32.mrb[83].mxu0  ;;  %10437 = vmatpush3.bf16.msra.mxu1 %v10434_v23  ;;  %v7573_v6 = vld [vmem:[%s12289_s1 + $0x8a0] sm:$0xff] }
 0x712   : > { %6174 = vst [vmem:[#allocation3 + $0x90] sm:$0xff] %v6142_v7  ;;  %v6141_v8 = vsel %vm6077_vm1, %v6045_v25, %v6109_v5  ;;  %v6047_v9 = vadd.f32 %v12081_v52, %v5923_v31  ;;  %10439 = vmatprep.subr.bf16.mxu1 %v12149_v0  ;;  %v6193_v25 = vld [vmem:[#allocation3 + $0x7] sm:$0xff]  ;;  %v6194_v5 = vld [vmem:[#allocation3 + $0xf] sm:$0xff] }
 0x713   : > { %6173 = vst [vmem:[#allocation3 + $0x88] sm:$0xff] %v6141_v8  ;;  %vm6080_vm2 = vcmp.ge.f32.partialorder %v6048_v30, 0.0  ;;  %v6112_v10 = vmul.f32 0.1, %v6048_v30  ;;  %9710 = vmatprep.mubr.f32.mxu1 %v6141_v8 }
 0x714   : > { %vm6079_vm3 = vcmp.ge.f32.partialorder %v6047_v9, 0.0  ;;  %v6111_v63 = vmul.f32 0.1, %v6047_v9  ;;  %v9638_v11 = vpop.f32.mrb[84].mxu0  ;;  %9711 = vmatmul.mubr.f32.gmra.mrb[80].mxu1 %v6142_v7  ;;  %v7574_v7 = vld [vmem:[%s12289_s1 + $0x8a8] sm:$0xff] }
 0x715   : > { %v6144_v12 = vsel %vm6080_vm2, %v6048_v30, %v6112_v10  ;;  %v6050_v21 = vadd.f32 %v9638_v11, %v12081_v52  ;;  %v5933_v40 = vpop.f32.mrb[85].mxu0  ;;  %v6195_v30 = vld [vmem:[#allocation3 + $0x17] sm:$0xff]  ;;  %v10446_v8 = vpack.c.bf16 %v7574_v7, %v7573_v6  ;;  %v7575_v10 = vld [vmem:[%s12289_s1 + $0x8b0] sm:$0xff] }
 0x716   : > { %6176 = vst [vmem:[#allocation3 + $0xa0] sm:$0xff] %v6144_v12  ;;  %v6143_v13 = vsel %vm6079_vm3, %v6047_v9, %v6111_v63  ;;  %v6049_v14 = vadd.f32 %v12081_v52, %v5933_v40  ;;  %v6196_v9 = vld [vmem:[#allocation3 + $0x1f] sm:$0xff]  ;;  %v7576_v63 = vld [vmem:[%s12289_s1 + $0x8b8] sm:$0xff] }
 0x717   : > { %6175 = vst [vmem:[#allocation3 + $0x98] sm:$0xff] %v6143_v13  ;;  %vm6082_vm4 = vcmp.ge.f32.partialorder %v6050_v21, 0.0  ;;  %v6114_v18 = vmul.f32 0.1, %v6050_v21  ;;  %9713 = vmatprep.mubr.f32.mxu1 %v6143_v13  ;;  %v6197_v11 = vld [vmem:[#allocation3 + $0x27] sm:$0xff]  ;;  %v7578_v40 = vld [vmem:[%s12289_s1 + $0x8c8] sm:$0xff] }
 0x718   : > { %vm6081_vm5 = vcmp.ge.f32.partialorder %v6049_v14, 0.0  ;;  %v6113_v20 = vmul.f32 0.1, %v6049_v14  ;;  %v9641_v41 = vpop.f32.mrb[86].mxu0  ;;  %9714 = vmatmul.mubr.f32.gmra.mrb[82].mxu1 %v6144_v12  ;;  %v10450_v12 = vpack.c.bf16 %v7576_v63, %v7575_v10  ;;  %v6199_v13 = vld [vmem:[#allocation3 + $0x37] sm:$0xff] }
 0x719   : > { %v6146_v22 = vsel %vm6082_vm4, %v6050_v21, %v6114_v18  ;;  %v6052_v19 = vadd.f32 %v9641_v41, %v12081_v52  ;;  %v5943_v42 = vpop.f32.mrb[87].mxu0  ;;  %v7577_v21 = vld [vmem:[%s12289_s1 + $0x8c0] sm:$0xff]  ;;  %v6200_v18 = vld [vmem:[#allocation3 + $0x3f] sm:$0xff]  ;;  %v7580_v41 = vld [vmem:[%s12289_s1 + $0x8d8] sm:$0xff] }
 0x71a   : > { %6178 = vst [vmem:[#allocation3 + $0xb0] sm:$0xff] %v6146_v22  ;;  %v6145_v15 = vsel %vm6081_vm5, %v6049_v14, %v6113_v20  ;;  %v6051_v26 = vadd.f32 %v12081_v52, %v5943_v42  ;;  %v10454_v14 = vpack.c.bf16 %v7578_v40, %v7577_v21  ;;  %v7579_v20 = vld [vmem:[%s12289_s1 + $0x8d0] sm:$0xff]  ;;  %v6202_v42 = vld [vmem:[#allocation3 + $0x4f] sm:$0xff] }
 0x71b   : > { %6177 = vst [vmem:[#allocation3 + $0xa8] sm:$0xff] %v6145_v15  ;;  %vm6084_vm6 = vcmp.ge.f32.partialorder %v6052_v19, 0.0  ;;  %v6116_v43 = vmul.f32 0.1, %v6052_v19  ;;  %9716 = vmatprep.mubr.f32.mxu1 %v6145_v15  ;;  %v7581_v15 = vld [vmem:[%s12289_s1 + $0x8e0] sm:$0xff]  ;;  %v6756_v6 = vld [vmem:[#allocation3 + $0x81] sm:$0xff] }
 0x71c   : > { %vm6083_vm7 = vcmp.ge.f32.partialorder %v6051_v26, 0.0  ;;  %v6115_v47 = vmul.f32 0.1, %v6051_v26  ;;  %v9644_v28 = vpop.f32.mrb[88].mxu0  ;;  %9717 = vmatmul.mubr.f32.gmra.mrb[84].mxu1 %v6146_v22  ;;  %v6201_v22 = vld [vmem:[#allocation3 + $0x47] sm:$0xff] }
 0x71d   : > { %v6148_v27 = vsel %vm6084_vm6, %v6052_v19, %v6116_v43  ;;  %v6054_v32 = vadd.f32 %v9644_v28, %v12081_v52  ;;  %v5953_v48 = vpop.f32.mrb[89].mxu0  ;;  %v10458_v19 = vpack.c.bf16 %v7580_v41, %v7579_v20  ;;  %v6203_v43 = vld [vmem:[#allocation3 + $0x57] sm:$0xff]  ;;  %v6204_v28 = vld [vmem:[#allocation3 + $0x5f] sm:$0xff]  ;;  %v6757_v7 = vld [vmem:[#allocation3 + $0x89] sm:$0xff] }
 0x71e   : > { %6180 = vst [vmem:[#allocation3 + $0xc0] sm:$0xff] %v6148_v27  ;;  %v6147_v49 = vsel %vm6083_vm7, %v6051_v26, %v6115_v47  ;;  %v6053_v33 = vadd.f32 %v12081_v52, %v5953_v48  ;;  %v7582_v26 = vld [vmem:[%s12289_s1 + $0x8e8] sm:$0xff]  ;;  %v6205_v48 = vld [vmem:[#allocation3 + $0x67] sm:$0xff]  ;;  %v12212_v41 = vld [vmem:[%s12290_s2 + $0x5] ss:$0 sm:$0xff] }
 0x71f   : > { %6179 = vst [vmem:[#allocation3 + $0xb8] sm:$0xff] %v6147_v49  ;;  %vm6086_vm8 = vcmp.ge.f32.partialorder %v6054_v32, 0.0  ;;  %v6118_v50 = vmul.f32 0.1, %v6054_v32  ;;  %9719 = vmatprep.mubr.f32.mxu1 %v6147_v49  ;;  %v10462_v47 = vpack.c.bf16 %v7582_v26, %v7581_v15  ;;  %v7085_v15 = vld [vmem:[#allocation2 + $0x10] sm:$0xff] }
 0x720   : > { %vm6085_vm9 = vcmp.ge.f32.partialorder %v6053_v33, 0.0  ;;  %v6117_v34 = vmul.f32 0.1, %v6053_v33  ;;  %v9647_v35 = vpop.f32.mrb[90].mxu0  ;;  %9720 = vmatmul.mubr.f32.gmra.mrb[86].mxu1 %v6148_v27  ;;  %v7583_v27 = vld [vmem:[%s12289_s1 + $0x8f0] sm:$0xff] }
 0x721   : > { %v6150_v53 = vsel %vm6086_vm8, %v6054_v32, %v6118_v50  ;;  %v6056_v54 = vadd.f32 %v9647_v35, %v12081_v52  ;;  %v5963_v46 = vpop.f32.mrb[91].mxu0  ;;  %v7584_v32 = vld [vmem:[%s12289_s1 + $0x8f8] sm:$0xff]  ;;  %v6207_v50 = vld [vmem:[#allocation3 + $0x77] sm:$0xff] }
 0x722   : > { %6182 = vst [vmem:[#allocation3 + $0xd0] sm:$0xff] %v6150_v53  ;;  %v6149_v37 = vsel %vm6085_vm9, %v6053_v33, %v6117_v34  ;;  %v6055_v17 = vadd.f32 %v12081_v52, %v5963_v46  ;;  %v10466_v49 = vpack.c.bf16 %v7584_v32, %v7583_v27  ;;  %v6206_v33 = vld [vmem:[#allocation3 + $0x6f] sm:$0xff]  ;;  %v6208_v34 = vld [vmem:[#allocation3 + $0x7f] sm:$0xff]  ;;  %v6209_v35 = vld [vmem:[#allocation3 + $0x87] sm:$0xff] }
 0x723   : > { %6181 = vst [vmem:[#allocation3 + $0xc8] sm:$0xff] %v6149_v37  ;;  %vm6088_vm10 = vcmp.ge.f32.partialorder %v6056_v54, 0.0  ;;  %v6120_v57 = vmul.f32 0.1, %v6056_v54  ;;  %9722 = vmatprep.mubr.f32.mxu1 %v6149_v37  ;;  %v6212_v46 = vld [vmem:[#allocation3 + $0x9f] sm:$0xff]  ;;  %v6213_v37 = vld [vmem:[#allocation3 + $0xa7] sm:$0xff] }
 0x724   : > { %vm6087_vm11 = vcmp.ge.f32.partialorder %v6055_v17, 0.0  ;;  %v6119_v58 = vmul.f32 0.1, %v6055_v17  ;;  %v9650_v38 = vpop.f32.mrb[92].mxu0  ;;  %9723 = vmatmul.mubr.f32.gmra.mrb[88].mxu1 %v6150_v53  ;;  %v6210_v53 = vld [vmem:[#allocation3 + $0x8f] sm:$0xff] }
 0x725   : > { %v6152_v36 = vsel %vm6088_vm10, %v6056_v54, %v6120_v57  ;;  %v6058_v39 = vadd.f32 %v9650_v38, %v12081_v52  ;;  %v5973_v59 = vpop.f32.mrb[93].mxu0  ;;  %v6211_v54 = vld [vmem:[#allocation3 + $0x97] sm:$0xff] }
 0x726   : > { %6184 = vst [vmem:[#allocation3 + $0xe0] sm:$0xff] %v6152_v36  ;;  %v6151_v44 = vsel %vm6087_vm11, %v6055_v17, %v6119_v58  ;;  %v6057_v45 = vadd.f32 %v12081_v52, %v5973_v59  ;;  %v6214_v17 = vld [vmem:[#allocation3 + $0xaf] sm:$0xff]  ;;  %v6215_v57 = vld [vmem:[#allocation3 + $0xb7] sm:$0xff]  ;;  %v6216_v58 = vld [vmem:[#allocation3 + $0xbf] sm:$0xff] }
 0x727   : > { %6183 = vst [vmem:[#allocation3 + $0xd8] sm:$0xff] %v6151_v44  ;;  %vm6090_vm12 = vcmp.ge.f32.partialorder %v6058_v39, 0.0  ;;  %v6122_v29 = vmul.f32 0.1, %v6058_v39  ;;  %9725 = vmatprep.mubr.f32.mxu1 %v6151_v44  ;;  %v6762_v10 = vld [vmem:[#allocation3 + $0xb1] sm:$0xff]  ;;  %v6763_v63 = vld [vmem:[#allocation3 + $0xb9] sm:$0xff] }
 0x728   : > { %vm6089_vm13 = vcmp.ge.f32.partialorder %v6057_v45, 0.0  ;;  %v6121_v61 = vmul.f32 0.1, %v6057_v45  ;;  %v9653_v51 = vpop.f32.mrb[94].mxu0  ;;  %9726 = vmatmul.mubr.f32.gmra.mrb[90].mxu1 %v6152_v36 }
 0x729   : > { %v6154_v23 = vsel %vm6090_vm12, %v6058_v39, %v6122_v29  ;;  %v6060_v24 = vadd.f32 %v9653_v51, %v12081_v52  ;;  %v5983_v55 = vpop.f32.mrb[95].mxu0  ;;  %v6741_v51 = vld [vmem:[#allocation3 + $0x9] sm:$0xff] }
 0x72a   : > { %6186 = vst [vmem:[#allocation3 + $0xf0] sm:$0xff] %v6154_v23  ;;  %v6153_v1 = vsel %vm6089_vm13, %v6057_v45, %v6121_v61  ;;  %v6059_v3 = vadd.f32 %v12081_v52, %v5983_v55  ;;  %v7572_v52 = vld [vmem:[%s12289_s1 + $0x898] sm:$0xff] }
 0x72b   : > { %6185 = vst [vmem:[#allocation3 + $0xe8] sm:$0xff] %v6153_v1  ;;  %vm6092_vm14 = vcmp.ge.f32.partialorder %v6060_v24, 0.0  ;;  %v6124_v56 = vmul.f32 0.1, %v6060_v24  ;;  %9728 = vmatprep.mubr.f32.mxu1 %v6153_v1  ;;  %v10442_v2 = vpack.c.bf16 %v7572_v52, %v7571_v16  ;;  %v6217_v38 = vld [vmem:[#allocation3 + $0xc7] sm:$0xff]  ;;  %v6218_v36 = vld [vmem:[#allocation3 + $0xcf] sm:$0xff] }
 0x72c   : > { %vm6091_vm15 = vcmp.ge.f32.partialorder %v6059_v3, 0.0  ;;  %v6123_v4 = vmul.f32 0.1, %v6059_v3  ;;  %9729 = vmatmul.mubr.f32.gmra.mrb[92].mxu1 %v6154_v23  ;;  %v6742_v23 = vld [vmem:[#allocation3 + $0x11] sm:$0xff]  ;;  %v6744_v55 = vld [vmem:[#allocation3 + $0x21] sm:$0xff]  ;;  %v6745_v1 = vld [vmem:[#allocation3 + $0x29] sm:$0xff] }
 0x72d   : > { %v6156_v60 = vsel %vm6092_vm14, %v6060_v24, %v6124_v56  ;;  %v6743_v24 = vld [vmem:[#allocation3 + $0x19] sm:$0xff]  ;;  %v6752_v52 = vld [vmem:[#allocation3 + $0x61] sm:$0xff] }
 0x72e   : > { %6188 = vst [vmem:[#allocation3 + $0x100] sm:$0xff] %v6156_v60  ;;  %v6155_v62 = vsel %vm6091_vm15, %v6059_v3, %v6123_v4  ;;  %v6219_v39 = vld [vmem:[#allocation3 + $0xd7] sm:$0xff]  ;;  %v6220_v59 = vld [vmem:[#allocation3 + $0xdf] sm:$0xff] }
 0x72f   : > { %6187 = vst [vmem:[#allocation3 + $0xf8] sm:$0xff] %v6155_v62  ;;  %9731 = vmatprep.mubr.f32.mxu1 %v6155_v62  ;;  %v6746_v3 = vld [vmem:[#allocation3 + $0x31] sm:$0xff]  ;;  %v6747_v56 = vld [vmem:[#allocation3 + $0x39] sm:$0xff]  ;;  %v6748_v4 = vld [vmem:[#allocation3 + $0x41] sm:$0xff] }
 0x730   : > { %9732 = vmatmul.mubr.f32.gmra.mrb[94].mxu1 %v6156_v60  ;;  %v6749_v60 = vld [vmem:[#allocation3 + $0x49] sm:$0xff]  ;;  %v6750_v62 = vld [vmem:[#allocation3 + $0x51] sm:$0xff]  ;;  %v6751_v16 = vld [vmem:[#allocation3 + $0x59] sm:$0xff] }
 0x731   : > { %9766 = vmatprep.mubr.f32.mxu1 %v6193_v25  ;;  %v6753_v25 = vld [vmem:[#allocation3 + $0x69] sm:$0xff]  ;;  %v6767_v21 = vld [vmem:[#allocation3 + $0xd9] sm:$0xff] }
 0x732   : > { %v6221_v44 = vld [vmem:[#allocation3 + $0xe7] sm:$0xff]  ;;  %v6222_v45 = vld [vmem:[#allocation3 + $0xef] sm:$0xff] }
 0x733   : > { %v6768_v40 = vld [vmem:[#allocation3 + $0xe1] sm:$0xff] }
 0x734   : > { %9767 = vmatmul.mubr.f32.vlgmr.msra.gmra.mrb[64].mxu1 %v6194_v5  ;;  %v6755_v5 = vld [vmem:[#allocation3 + $0x79] sm:$0xff] }
 0x735   : > { %9769 = vmatprep.mubr.f32.mxu1 %v6195_v30  ;;  %10441 = vmatpush3.bf16.msra.mxu1 %v12149_v0  ;;  %v6191_v31 = vld [vmem:[#allocation3 + $0x106] sm:$0x1]  ;;  %v6198_v0 = vld [vmem:[#allocation3 + $0x2f] sm:$0xff] }
 0x736   : > { %10443 = vmatprep.subr.bf16.mxu1 %v10442_v2  ;;  %6192 = vst [vmem:[#allocation3 + $0x108] sm:$0x1] %v6191_v31  ;;  %v6223_v29 = vld [vmem:[#allocation3 + $0xf7] sm:$0xff]  ;;  %v6224_v61 = vld [vmem:[#allocation3 + $0xff] sm:$0xff] }
 0x737   : > { %v6758_v30 = vld [vmem:[#allocation3 + $0x91] sm:$0xff]  ;;  %v6759_v31 = vld [vmem:[#allocation3 + $0x99] sm:$0xff] }
 0x738   : > { %9770 = vmatmul.mubr.f32.gmra.mrb[66].mxu1 %v6196_v9  ;;  %v6761_v9 = vld [vmem:[#allocation3 + $0xa9] sm:$0xff] }
 0x739   : > { %9772 = vmatprep.mubr.f32.mxu1 %v6197_v11  ;;  %10445 = vmatpush3.bf16.msra.mxu1 %v10442_v2  ;;  %v6754_v2 = vld [vmem:[#allocation3 + $0x71] sm:$0xff]  ;;  %v6764_v11 = vld [vmem:[#allocation3 + $0xc1] sm:$0xff] }
 0x73a   : > { %10447 = vmatprep.subr.bf16.mxu1 %v10446_v8 }
 0x73c   : > { %9773 = vmatmul.mubr.f32.gmra.mrb[68].mxu1 %v6198_v0  ;;  %v6766_v0 = vld [vmem:[#allocation3 + $0xd1] sm:$0xff] }
 0x73d   : > { %9775 = vmatprep.mubr.f32.mxu1 %v6199_v13  ;;  %10449 = vmatpush3.bf16.msra.mxu1 %v10446_v8  ;;  %v6760_v8 = vld [vmem:[#allocation3 + $0xa1] sm:$0xff]  ;;  %v6769_v13 = vld [vmem:[#allocation3 + $0xe9] sm:$0xff] }
 0x73e   : > { %10451 = vmatprep.subr.bf16.mxu1 %v10450_v12  ;;  %v6772_v20 = vld [vmem:[#allocation3 + $0x101] sm:$0xff] }
 0x740   : > { %9776 = vmatmul.mubr.f32.gmra.mrb[70].mxu1 %v6200_v18  ;;  %v6771_v18 = vld [vmem:[#allocation3 + $0xf9] sm:$0xff] }
 0x741   : > { %9778 = vmatprep.mubr.f32.mxu1 %v6201_v22  ;;  %10453 = vmatpush3.bf16.msra.mxu1 %v10450_v12  ;;  %v6765_v12 = vld [vmem:[#allocation3 + $0xc9] sm:$0xff] }
 0x742   : > { %10455 = vmatprep.subr.bf16.mxu1 %v10454_v14 }
 0x744   : > { %9779 = vmatmul.mubr.f32.gmra.mrb[72].mxu1 %v6202_v42 }
 0x745   : > { %9781 = vmatprep.mubr.f32.mxu1 %v6203_v43  ;;  %10457 = vmatpush3.bf16.msra.mxu1 %v10454_v14  ;;  %v6770_v14 = vld [vmem:[#allocation3 + $0xf1] sm:$0xff] }
 0x746   : > { %10459 = vmatprep.subr.bf16.mxu1 %v10458_v19 }
 0x748   : > { %9782 = vmatmul.mubr.f32.gmra.mrb[74].mxu1 %v6204_v28 }
 0x749   : > { %9784 = vmatprep.mubr.f32.mxu1 %v6205_v48  ;;  %10461 = vmatpush3.bf16.msra.mxu1 %v10458_v19 }
 0x74a   : > { %10463 = vmatprep.subr.bf16.mxu1 %v10462_v47 }
 0x74c   : > { %9785 = vmatmul.mubr.f32.gmra.mrb[76].mxu1 %v6206_v33 }
 0x74d   : > { %9787 = vmatprep.mubr.f32.mxu1 %v6207_v50  ;;  %10465 = vmatpush3.bf16.msra.mxu1 %v10462_v47  ;;  %v7084_v47 = vld [vmem:[#allocation2 + $0x8] sm:$0xff] }
 0x74e   : > { %10467 = vmatprep.subr.bf16.mxu1 %v10466_v49 }
 0x750   : > { %9788 = vmatmul.mubr.f32.gmra.mrb[78].mxu1 %v6208_v34  ;;  %v7086_v34 = vld [vmem:[#allocation2 + $0x18] sm:$0xff] }
 0x751   : > { %9790 = vmatprep.mubr.f32.mxu1 %v6209_v35  ;;  %10469 = vmatpush3.bf16.msra.mxu1 %v10466_v49  ;;  %v7087_v49 = vld [vmem:[#allocation2 + $0x20] sm:$0xff] }
 0x754   : > { %9791 = vmatmul.mubr.f32.gmra.mrb[80].mxu1 %v6210_v53 }
 0x755   : > { %9793 = vmatprep.mubr.f32.mxu1 %v6211_v54 }
 0x758   : > { %9794 = vmatmul.mubr.f32.gmra.mrb[82].mxu1 %v6212_v46 }
 0x759   : > { %9796 = vmatprep.mubr.f32.mxu1 %v6213_v37  ;;  %v7089_v37 = vld [vmem:[#allocation2 + $0x30] sm:$0xff] }
 0x75c   : > { %9797 = vmatmul.mubr.f32.gmra.mrb[84].mxu1 %v6214_v17 }
 0x75d   : > { %9799 = vmatprep.mubr.f32.mxu1 %v6215_v57 }
 0x760   : > { %9800 = vmatmul.mubr.f32.gmra.mrb[86].mxu1 %v6216_v58  ;;  %v7088_v58 = vld [vmem:[#allocation2 + $0x28] sm:$0xff] }
 0x761   : > { %9802 = vmatprep.mubr.f32.mxu1 %v6217_v38 }
 0x764   : > { %9803 = vmatmul.mubr.f32.gmra.mrb[88].mxu1 %v6218_v36 }
 0x765   : > { %9805 = vmatprep.mubr.f32.mxu1 %v6219_v39 }
 0x768   : > { %9806 = vmatmul.mubr.f32.gmra.mrb[90].mxu1 %v6220_v59 }
 0x769   : > { %9808 = vmatprep.mubr.f32.mxu1 %v6221_v44  ;;  %v7091_v44 = vld [vmem:[#allocation2 + $0x40] sm:$0xff] }
 0x76c   : > { %9809 = vmatmul.mubr.f32.gmra.mrb[92].mxu1 %v6222_v45 }
 0x76d   : > { %9811 = vmatprep.mubr.f32.mxu1 %v6223_v29 }
 0x770   : > { %9812 = vmatmul.mubr.f32.gmra.mrb[94].mxu1 %v6224_v61  ;;  %v7090_v61 = vld [vmem:[#allocation2 + $0x38] sm:$0xff] }
 0x771   : > { %9846 = vmatprep.mubr.f32.mxu1 %v6741_v51 }
 0x774   : > { %9847 = vmatmul.mubr.f32.vlgmr.msra.gmra.mrb[64].mxu1 %v6742_v23 }
 0x775   : > { %9849 = vmatprep.mubr.f32.mxu1 %v6743_v24 }
 0x778   : > { %9850 = vmatmul.mubr.f32.gmra.mrb[66].mxu1 %v6744_v55 }
 0x779   : > { %9852 = vmatprep.mubr.f32.mxu1 %v6745_v1  ;;  %v7093_v1 = vld [vmem:[#allocation2 + $0x50] sm:$0xff] }
 0x77c   : > { %9853 = vmatmul.mubr.f32.gmra.mrb[68].mxu1 %v6746_v3 }
 0x77d   : > { %9855 = vmatprep.mubr.f32.mxu1 %v6747_v56 }
 0x780   : > { %9856 = vmatmul.mubr.f32.gmra.mrb[70].mxu1 %v6748_v4  ;;  %v7092_v4 = vld [vmem:[#allocation2 + $0x48] sm:$0xff] }
 0x781   : > { %9858 = vmatprep.mubr.f32.mxu1 %v6749_v60 }
 0x784   : > { %9859 = vmatmul.mubr.f32.gmra.mrb[72].mxu1 %v6750_v62 }
 0x785   : > { %9861 = vmatprep.mubr.f32.mxu1 %v6751_v16 }
 0x788   : > { %9862 = vmatmul.mubr.f32.gmra.mrb[74].mxu1 %v6752_v52 }
 0x789   : > { %9864 = vmatprep.mubr.f32.mxu1 %v6753_v25  ;;  %v7095_v25 = vld [vmem:[#allocation2 + $0x60] sm:$0xff] }
 0x78c   : > { %9865 = vmatmul.mubr.f32.gmra.mrb[76].mxu1 %v6754_v2 }
 0x78d   : > { %9867 = vmatprep.mubr.f32.mxu1 %v6755_v5 }
 0x790   : > { %9868 = vmatmul.mubr.f32.gmra.mrb[78].mxu1 %v6756_v6  ;;  %v7094_v6 = vld [vmem:[#allocation2 + $0x58] sm:$0xff] }
 0x791   : > { %9870 = vmatprep.mubr.f32.mxu1 %v6757_v7 }
 0x794   : > { %9871 = vmatmul.mubr.f32.gmra.mrb[80].mxu1 %v6758_v30 }
 0x795   : > { %9873 = vmatprep.mubr.f32.mxu1 %v6759_v31 }
 0x798   : > { %9874 = vmatmul.mubr.f32.gmra.mrb[82].mxu1 %v6760_v8 }
 0x799   : > { %9876 = vmatprep.mubr.f32.mxu1 %v6761_v9  ;;  %v7097_v9 = vld [vmem:[#allocation2 + $0x70] sm:$0xff] }
 0x79c   : > { %9877 = vmatmul.mubr.f32.gmra.mrb[84].mxu1 %v6762_v10 }
 0x79d   : > { %9879 = vmatprep.mubr.f32.mxu1 %v6763_v63 }
 0x7a0   : > { %9880 = vmatmul.mubr.f32.gmra.mrb[86].mxu1 %v6764_v11  ;;  %v7096_v11 = vld [vmem:[#allocation2 + $0x68] sm:$0xff] }
 0x7a1   : > { %9882 = vmatprep.mubr.f32.mxu1 %v6765_v12 }
 0x7a4   : > { %9883 = vmatmul.mubr.f32.gmra.mrb[88].mxu1 %v6766_v0 }
 0x7a5   : > { %9885 = vmatprep.mubr.f32.mxu1 %v6767_v21 }
 0x7a8   : > { %9886 = vmatmul.mubr.f32.gmra.mrb[90].mxu1 %v6768_v40 }
 0x7a9   : > { %9888 = vmatprep.mubr.f32.mxu1 %v6769_v13  ;;  %v7099_v13 = vld [vmem:[#allocation2 + $0x80] sm:$0xff] }
 0x7ac   : > { %9889 = vmatmul.mubr.f32.gmra.mrb[92].mxu1 %v6770_v14 }
 0x7ad   : > { %9891 = vmatprep.mubr.f32.mxu1 %v6771_v18 }
 0x7b0   : > { %9892 = vmatmul.mubr.f32.gmra.mrb[94].mxu1 %v6772_v20  ;;  %v7098_v20 = vld [vmem:[#allocation2 + $0x78] sm:$0xff] }
 0x847   : > { %v9848_v22 = vpop.f32.mrb[64].mxu1 }
 0x848   : > { %v7053_v19 = vadd.f32 %v9848_v22, %v12212_v41  ;;  %v6856_v42 = vpop.f32.mrb[65].mxu1 }
 0x849   : > { %v7052_v26 = vadd.f32 %v12212_v41, %v6856_v42 }
 0x84a   : > { %v7117_v43 = vadd.f32 %v7085_v15, %v7053_v19 }
 0x84b   : > { %v7116_v28 = vadd.f32 %v7084_v47, %v7052_v26  ;;  %v9851_v27 = vpop.f32.mrb[66].mxu1  ;;  %v7101_v26 = vld [vmem:[#allocation2 + $0x90] sm:$0xff] }
 0x84c   : > { %7149 = vst [vmem:[#allocation2 + $0x10] sm:$0xff] %v7117_v43  ;;  %7213 = vst [vmem:[%s12220_s5 + $0x8] sm:$0xff] %v7117_v43  ;;  %v7055_v32 = vadd.f32 %v9851_v27, %v12212_v41  ;;  %v6866_v48 = vpop.f32.mrb[67].mxu1 }
 0x84d   : > { %7148 = vst [vmem:[#allocation2 + $0x8] sm:$0xff] %v7116_v28  ;;  %7212 = vst [vmem:[%s12220_s5] sm:$0xff] %v7116_v28  ;;  %v7054_v33 = vadd.f32 %v12212_v41, %v6866_v48  ;;  %v7100_v28 = vld [vmem:[#allocation2 + $0x88] sm:$0xff] }
 0x84e   : > { %v7119_v50 = vadd.f32 %v7087_v49, %v7055_v32 }
 0x84f   : > { %v7118_v35 = vadd.f32 %v7086_v34, %v7054_v33  ;;  %v9854_v53 = vpop.f32.mrb[68].mxu1  ;;  %v7103_v33 = vld [vmem:[#allocation2 + $0xa0] sm:$0xff] }
 0x850   : > { %7151 = vst [vmem:[#allocation2 + $0x20] sm:$0xff] %v7119_v50  ;;  %7215 = vst [vmem:[%s12220_s5 + $0x18] sm:$0xff] %v7119_v50  ;;  %v7057_v54 = vadd.f32 %v9854_v53, %v12212_v41  ;;  %v6876_v46 = vpop.f32.mrb[69].mxu1 }
 0x851   : > { %7150 = vst [vmem:[#allocation2 + $0x18] sm:$0xff] %v7118_v35  ;;  %7214 = vst [vmem:[%s12220_s5 + $0x10] sm:$0xff] %v7118_v35  ;;  %v7056_v17 = vadd.f32 %v12212_v41, %v6876_v46  ;;  %v7102_v35 = vld [vmem:[#allocation2 + $0x98] sm:$0xff] }
 0x852   : > { %v7121_v57 = vadd.f32 %v7089_v37, %v7057_v54 }
 0x853   : > { %v7120_v38 = vadd.f32 %v7088_v58, %v7056_v17  ;;  %v9857_v36 = vpop.f32.mrb[70].mxu1  ;;  %v7105_v17 = vld [vmem:[#allocation2 + $0xb0] sm:$0xff] }
 0x854   : > { %7153 = vst [vmem:[#allocation2 + $0x30] sm:$0xff] %v7121_v57  ;;  %7217 = vst [vmem:[%s12220_s5 + $0x28] sm:$0xff] %v7121_v57  ;;  %v7059_v39 = vadd.f32 %v9857_v36, %v12212_v41  ;;  %v6886_v59 = vpop.f32.mrb[71].mxu1 }
 0x855   : > { %7152 = vst [vmem:[#allocation2 + $0x28] sm:$0xff] %v7120_v38  ;;  %7216 = vst [vmem:[%s12220_s5 + $0x20] sm:$0xff] %v7120_v38  ;;  %v7058_v45 = vadd.f32 %v12212_v41, %v6886_v59  ;;  %v7104_v38 = vld [vmem:[#allocation2 + $0xa8] sm:$0xff] }
 0x856   : > { %v7123_v29 = vadd.f32 %v7091_v44, %v7059_v39 }
 0x857   : > { %v7122_v51 = vadd.f32 %v7090_v61, %v7058_v45  ;;  %v9860_v23 = vpop.f32.mrb[72].mxu1  ;;  %v7107_v45 = vld [vmem:[#allocation2 + $0xc0] sm:$0xff] }
 0x858   : > { %7155 = vst [vmem:[#allocation2 + $0x40] sm:$0xff] %v7123_v29  ;;  %7219 = vst [vmem:[%s12220_s5 + $0x38] sm:$0xff] %v7123_v29  ;;  %v7061_v24 = vadd.f32 %v9860_v23, %v12212_v41  ;;  %v6896_v55 = vpop.f32.mrb[73].mxu1 }
 0x859   : > { %7154 = vst [vmem:[#allocation2 + $0x38] sm:$0xff] %v7122_v51  ;;  %7218 = vst [vmem:[%s12220_s5 + $0x30] sm:$0xff] %v7122_v51  ;;  %v7060_v3 = vadd.f32 %v12212_v41, %v6896_v55  ;;  %v7106_v51 = vld [vmem:[#allocation2 + $0xb8] sm:$0xff] }
 0x85a   : > { %v7125_v56 = vadd.f32 %v7093_v1, %v7061_v24 }
 0x85b   : > { %v7124_v60 = vadd.f32 %v7092_v4, %v7060_v3  ;;  %v9863_v62 = vpop.f32.mrb[74].mxu1  ;;  %v7109_v3 = vld [vmem:[#allocation2 + $0xd0] sm:$0xff] }
 0x85c   : > { %7157 = vst [vmem:[#allocation2 + $0x50] sm:$0xff] %v7125_v56  ;;  %7221 = vst [vmem:[%s12220_s5 + $0x48] sm:$0xff] %v7125_v56  ;;  %v7063_v16 = vadd.f32 %v9863_v62, %v12212_v41  ;;  %v6906_v52 = vpop.f32.mrb[75].mxu1 }
 0x85d   : > { %7156 = vst [vmem:[#allocation2 + $0x48] sm:$0xff] %v7124_v60  ;;  %7220 = vst [vmem:[%s12220_s5 + $0x40] sm:$0xff] %v7124_v60  ;;  %v7062_v2 = vadd.f32 %v12212_v41, %v6906_v52  ;;  %v7108_v60 = vld [vmem:[#allocation2 + $0xc8] sm:$0xff] }
 0x85e   : > { %v7127_v5 = vadd.f32 %v7095_v25, %v7063_v16 }
 0x85f   : > { %v7126_v7 = vadd.f32 %v7094_v6, %v7062_v2  ;;  %v9866_v30 = vpop.f32.mrb[76].mxu1  ;;  %v7111_v2 = vld [vmem:[#allocation2 + $0xe0] sm:$0xff] }
 0x860   : > { %7159 = vst [vmem:[#allocation2 + $0x60] sm:$0xff] %v7127_v5  ;;  %7223 = vst [vmem:[%s12220_s5 + $0x58] sm:$0xff] %v7127_v5  ;;  %v7065_v31 = vadd.f32 %v9866_v30, %v12212_v41  ;;  %v6916_v8 = vpop.f32.mrb[77].mxu1 }
 0x861   : > { %7158 = vst [vmem:[#allocation2 + $0x58] sm:$0xff] %v7126_v7  ;;  %7222 = vst [vmem:[%s12220_s5 + $0x50] sm:$0xff] %v7126_v7  ;;  %v7064_v10 = vadd.f32 %v12212_v41, %v6916_v8  ;;  %v7110_v7 = vld [vmem:[#allocation2 + $0xd8] sm:$0xff] }
 0x862   : > { %v7129_v63 = vadd.f32 %v7097_v9, %v7065_v31 }
 0x863   : > { %v7128_v12 = vadd.f32 %v7096_v11, %v7064_v10  ;;  %v9869_v0 = vpop.f32.mrb[78].mxu1  ;;  %v7113_v10 = vld [vmem:[#allocation2 + $0xf0] sm:$0xff] }
 0x864   : > { %7161 = vst [vmem:[#allocation2 + $0x70] sm:$0xff] %v7129_v63  ;;  %7225 = vst [vmem:[%s12220_s5 + $0x68] sm:$0xff] %v7129_v63  ;;  %v7067_v21 = vadd.f32 %v9869_v0, %v12212_v41  ;;  %v6926_v40 = vpop.f32.mrb[79].mxu1 }
 0x865   : > { %7160 = vst [vmem:[#allocation2 + $0x68] sm:$0xff] %v7128_v12  ;;  %7224 = vst [vmem:[%s12220_s5 + $0x60] sm:$0xff] %v7128_v12  ;;  %v7066_v14 = vadd.f32 %v12212_v41, %v6926_v40  ;;  %v7112_v12 = vld [vmem:[#allocation2 + $0xe8] sm:$0xff] }
 0x866   : > { %v7131_v18 = vadd.f32 %v7099_v13, %v7067_v21 }
 0x867   : > { %v7130_v22 = vadd.f32 %v7098_v20, %v7066_v14  ;;  %v9872_v19 = vpop.f32.mrb[80].mxu1  ;;  %v7115_v14 = vld [vmem:[#allocation2 + $0x100] sm:$0xff] }
 0x868   : > { %7163 = vst [vmem:[#allocation2 + $0x80] sm:$0xff] %v7131_v18  ;;  %7227 = vst [vmem:[%s12220_s5 + $0x78] sm:$0xff] %v7131_v18  ;;  %v7069_v42 = vadd.f32 %v9872_v19, %v12212_v41  ;;  %v6936_v15 = vpop.f32.mrb[81].mxu1 }
 0x869   : > { %7162 = vst [vmem:[#allocation2 + $0x78] sm:$0xff] %v7130_v22  ;;  %7226 = vst [vmem:[%s12220_s5 + $0x70] sm:$0xff] %v7130_v22  ;;  %v7068_v43 = vadd.f32 %v12212_v41, %v6936_v15  ;;  %v7114_v22 = vld [vmem:[#allocation2 + $0xf8] sm:$0xff] }
 0x86a   : > { %v7133_v47 = vadd.f32 %v7101_v26, %v7069_v42 }
 0x86b   : > { %v7132_v27 = vadd.f32 %v7100_v28, %v7068_v43  ;;  %v9875_v32 = vpop.f32.mrb[82].mxu1 }
 0x86c   : > { %7165 = vst [vmem:[#allocation2 + $0x90] sm:$0xff] %v7133_v47  ;;  %7229 = vst [vmem:[%s12220_s5 + $0x88] sm:$0xff] %v7133_v47  ;;  %v7071_v48 = vadd.f32 %v9875_v32, %v12212_v41  ;;  %v6946_v49 = vpop.f32.mrb[83].mxu1 }
 0x86d   : > { %7164 = vst [vmem:[#allocation2 + $0x88] sm:$0xff] %v7132_v27  ;;  %7228 = vst [vmem:[%s12220_s5 + $0x80] sm:$0xff] %v7132_v27  ;;  %v7070_v50 = vadd.f32 %v12212_v41, %v6946_v49 }
 0x86e   : > { %v7135_v34 = vadd.f32 %v7103_v33, %v7071_v48 }
 0x86f   : > { %v7134_v53 = vadd.f32 %v7102_v35, %v7070_v50  ;;  %v9878_v54 = vpop.f32.mrb[84].mxu1 }
 0x870   : > { %7167 = vst [vmem:[#allocation2 + $0xa0] sm:$0xff] %v7135_v34  ;;  %7231 = vst [vmem:[%s12220_s5 + $0x98] sm:$0xff] %v7135_v34  ;;  %v7073_v46 = vadd.f32 %v9878_v54, %v12212_v41  ;;  %v6956_v37 = vpop.f32.mrb[85].mxu1 }
 0x871   : > { %7166 = vst [vmem:[#allocation2 + $0x98] sm:$0xff] %v7134_v53  ;;  %7230 = vst [vmem:[%s12220_s5 + $0x90] sm:$0xff] %v7134_v53  ;;  %v7072_v57 = vadd.f32 %v12212_v41, %v6956_v37 }
 0x872   : > { %v7137_v58 = vadd.f32 %v7105_v17, %v7073_v46 }
 0x873   : > { %v7136_v36 = vadd.f32 %v7104_v38, %v7072_v57  ;;  %v9881_v39 = vpop.f32.mrb[86].mxu1 }
 0x874   : > { %7169 = vst [vmem:[#allocation2 + $0xb0] sm:$0xff] %v7137_v58  ;;  %7233 = vst [vmem:[%s12220_s5 + $0xa8] sm:$0xff] %v7137_v58  ;;  %v7075_v59 = vadd.f32 %v9881_v39, %v12212_v41  ;;  %v6966_v44 = vpop.f32.mrb[87].mxu1 }
 0x875   : > { %7168 = vst [vmem:[#allocation2 + $0xa8] sm:$0xff] %v7136_v36  ;;  %7232 = vst [vmem:[%s12220_s5 + $0xa0] sm:$0xff] %v7136_v36  ;;  %v7074_v29 = vadd.f32 %v12212_v41, %v6966_v44 }
 0x876   : > { %v7139_v61 = vadd.f32 %v7107_v45, %v7075_v59 }
 0x877   : > { %v7138_v23 = vadd.f32 %v7106_v51, %v7074_v29  ;;  %v9884_v24 = vpop.f32.mrb[88].mxu1 }
 0x878   : > { %7171 = vst [vmem:[#allocation2 + $0xc0] sm:$0xff] %v7139_v61  ;;  %7235 = vst [vmem:[%s12220_s5 + $0xb8] sm:$0xff] %v7139_v61  ;;  %v7077_v55 = vadd.f32 %v9884_v24, %v12212_v41  ;;  %v6976_v1 = vpop.f32.mrb[89].mxu1 }
 0x879   : > { %7170 = vst [vmem:[#allocation2 + $0xb8] sm:$0xff] %v7138_v23  ;;  %7234 = vst [vmem:[%s12220_s5 + $0xb0] sm:$0xff] %v7138_v23  ;;  %v7076_v56 = vadd.f32 %v12212_v41, %v6976_v1 }
 0x87a   : > { %v7141_v4 = vadd.f32 %v7109_v3, %v7077_v55 }
 0x87b   : > { %v7140_v62 = vadd.f32 %v7108_v60, %v7076_v56  ;;  %v9887_v16 = vpop.f32.mrb[90].mxu1 }
 0x87c   : > { %7173 = vst [vmem:[#allocation2 + $0xd0] sm:$0xff] %v7141_v4  ;;  %7237 = vst [vmem:[%s12220_s5 + $0xc8] sm:$0xff] %v7141_v4  ;;  %v7079_v52 = vadd.f32 %v9887_v16, %v12212_v41  ;;  %v6986_v25 = vpop.f32.mrb[91].mxu1 }
 0x87d   : > { %7172 = vst [vmem:[#allocation2 + $0xc8] sm:$0xff] %v7140_v62  ;;  %7236 = vst [vmem:[%s12220_s5 + $0xc0] sm:$0xff] %v7140_v62  ;;  %v7078_v5 = vadd.f32 %v12212_v41, %v6986_v25 }
 0x87e   : > { %v7143_v6 = vadd.f32 %v7111_v2, %v7079_v52 }
 0x87f   : > { %v7142_v30 = vadd.f32 %v7110_v7, %v7078_v5  ;;  %v9890_v31 = vpop.f32.mrb[92].mxu1 }
 0x880   : > { %7175 = vst [vmem:[#allocation2 + $0xe0] sm:$0xff] %v7143_v6  ;;  %7239 = vst [vmem:[%s12220_s5 + $0xd8] sm:$0xff] %v7143_v6  ;;  %v7081_v8 = vadd.f32 %v9890_v31, %v12212_v41  ;;  %v6996_v9 = vpop.f32.mrb[93].mxu1 }
 0x881   : > { %7174 = vst [vmem:[#allocation2 + $0xd8] sm:$0xff] %v7142_v30  ;;  %7238 = vst [vmem:[%s12220_s5 + $0xd0] sm:$0xff] %v7142_v30  ;;  %v7080_v63 = vadd.f32 %v12212_v41, %v6996_v9 }
 0x882   : > { %v7145_v11 = vadd.f32 %v7113_v10, %v7081_v8 }
 0x883   : > { %v7144_v0 = vadd.f32 %v7112_v12, %v7080_v63  ;;  %v9893_v21 = vpop.f32.mrb[94].mxu1 }
 0x884   : > { %7177 = vst [vmem:[#allocation2 + $0xf0] sm:$0xff] %v7145_v11  ;;  %7241 = vst [vmem:[%s12220_s5 + $0xe8] sm:$0xff] %v7145_v11  ;;  %v7083_v40 = vadd.f32 %v9893_v21, %v12212_v41  ;;  %v7006_v13 = vpop.f32.mrb[95].mxu1 }
 0x885   : > { %7176 = vst [vmem:[#allocation2 + $0xe8] sm:$0xff] %v7144_v0  ;;  %7240 = vst [vmem:[%s12220_s5 + $0xe0] sm:$0xff] %v7144_v0  ;;  %v7082_v18 = vadd.f32 %v12212_v41, %v7006_v13 }
 0x886   : > { %v7147_v20 = vadd.f32 %v7115_v14, %v7083_v40 }
 0x887   : > { %v7146_v19 = vadd.f32 %v7114_v22, %v7082_v18 }
 0x888   : > { %7179 = vst [vmem:[#allocation2 + $0x100] sm:$0xff] %v7147_v20  ;;  %7243 = vst [vmem:[%s12220_s5 + $0xf8] sm:$0xff] %v7147_v20 }
 0x889   : > { %7178 = vst [vmem:[#allocation2 + $0xf8] sm:$0xff] %v7146_v19  ;;  %7242 = vst [vmem:[%s12220_s5 + $0xf0] sm:$0xff] %v7146_v19 }
 0x88a PF: > { %s13_s12 = sadd.s32 1, %s10868_s12  }
 0x88b   : > { %p10_p4 = scmp.ge.s32.totalorder %s13_s12, 4  }
 0x88d   :  { %12 = sbr.rel (!%p10_p4) target bundleno = 1 (0x1), region = 79 }

</bundles_post_ra>
